<compile_context>
chip_gen: v5e
topology: v5e:2x2
jax: 0.10.0
libtpu: 0.0.40
codegen_flags: <defaults>
</compile_context>

<pallas_src>
import functools

import numpy as np
import jax
import jax.numpy as jnp
from jax.experimental import pallas as pl
from jax.experimental.pallas import tpu as pltpu

_VMEM_LIMIT = 48 * 1024 * 1024       # explicit scoped-VMEM budget, safe on v5e/v6e/v7x
_BN_EPS = 1e-5
_ATTN_ROW_TILE = 128                 # query-row tile of the energy matrix


def _split_bf16(a):
    """Split an f32 array into (hi, lo) bf16 parts with hi+lo ~= a (19-bit mantissa)."""
    hi = a.astype(jnp.bfloat16)
    lo = (a - hi.astype(jnp.float32)).astype(jnp.bfloat16)
    return hi, lo


def _mm(a, b):
    """Split-bf16 (bf16x3) matmul with f32 accumulation.

    Three MXU-native bf16 passes; used identically by the Pallas kernels and the
    pure-JAX reference so the matmul precision policy matches on both sides.
    """
    a_hi, a_lo = _split_bf16(a)
    b_hi, b_lo = _split_bf16(b)
    f = lambda x, y: jnp.matmul(x, y, preferred_element_type=jnp.float32)
    return f(a_hi, b_hi) + f(a_lo, b_hi) + f(a_hi, b_lo)


def _pick_tile(n):
    for t in (512, 256, 128):
        if n % t == 0:
            return t
    raise ValueError("N must be a multiple of 128")


# --------------------- Kernel: 1x1 conv + BN partial sums -------------------
def _conv_stats_kernel(x_ref, w_ref, y_ref, sum_ref, ssq_ref, acc_s, acc_q):
    ti = pl.program_id(1)

    @pl.when(ti == 0)
    def _():
        acc_s[...] = jnp.zeros_like(acc_s)
        acc_q[...] = jnp.zeros_like(acc_q)

    y = _mm(w_ref[...], x_ref[0])                       # (Co, tn)
    y_ref[0] = y
    acc_s[...] += jnp.sum(y, axis=-1, keepdims=True)
    acc_q[...] += jnp.sum(y * y, axis=-1, keepdims=True)

    @pl.when(ti == pl.num_programs(1) - 1)
    def _():
        sum_ref[0] = acc_s[...]
        ssq_ref[0] = acc_q[...]


# ------------- Kernel: SA offset-attention (flash-style row tiles) ----------
def _sa_attn_kernel(tq, x_ref, wq_ref, wv_ref, bv_ref, wt_ref, bt_ref,
                    t_ref, sum_ref, ssq_ref,
                    q_sc, xv_sc, acc_sc, cs_sc):
    ti = pl.program_id(1)

    @pl.when(ti == 0)
    def _():
        x = x_ref[0]                                    # (C, N), resident block
        # q_conv and k_conv share weights -> a single projection.
        q_sc[...] = _mm(wq_ref[...], x)                 # (Cq, N)
        xv_sc[...] = _mm(wv_ref[...], x) + bv_ref[...]  # (C, N), bias add hoisted
        acc_sc[...] = jnp.zeros_like(acc_sc)
        cs_sc[...] = jnp.zeros_like(cs_sc)

    n0 = pl.multiple_of(ti * tq, tq)
    q_tile = q_sc[:, pl.ds(n0, tq)]                     # (Cq, tq)
    # energy rows [n0 : n0+tq]  -- full softmax row is resident, no online max.
    e = _mm(q_tile.T, q_sc[...])                        # (tq, N)
    m = jnp.max(e, axis=-1, keepdims=True)
    p = jnp.exp(e - m)
    r = 1.0 / jnp.sum(p, axis=-1, keepdims=True)        # (tq, 1)
    attn = p * r                                        # row-softmax (multiply, not divide)
    cs_sc[...] += jnp.sum(attn, axis=0, keepdims=True)  # running column sum  (1, N)
    acc_sc[...] += _mm(xv_sc[:, pl.ds(n0, tq)], attn)   # partial x_r          (C, N)

    @pl.when(ti == pl.num_programs(1) - 1)
    def _():
        x = x_ref[0]
        # Fold the dim=1 renormalization into a per-column scale of x_r
        # (algebraically identical to dividing attention by its column sum).
        inv_cs = 1.0 / (1e-9 + cs_sc[...])              # (1, N)
        xr = acc_sc[...] * inv_cs
        d = x - xr
        tout = _mm(wt_ref[...], d) + bt_ref[...]        # trans_conv
        t_ref[0] = tout
        # Per-batch BN partial sums (finished in plain JAX in the wrapper).
        sum_ref[0] = jnp.sum(tout, axis=-1, keepdims=True)
        ssq_ref[0] = jnp.sum(tout * tout, axis=-1, keepdims=True)


# ------------- Kernel: BN affine + ReLU (+ optional residual add) -----------
def _affine_relu_kernel(add_residual, *refs):
    if add_residual:
        x_ref, y_ref, sc_ref, sh_ref, o_ref = refs
    else:
        y_ref, sc_ref, sh_ref, o_ref = refs
    act = jnp.maximum(y_ref[0] * sc_ref[...] + sh_ref[...], 0.0)
    if add_residual:
        act = act + x_ref[0]
    o_ref[0] = act


# --------------------------------- Wrappers ---------------------------------
def _affine_relu(y, scale, shift, residual=None):
    B, C, N = y.shape
    tn = _pick_tile(N)
    sc = scale.reshape(C, 1)
    sh = shift.reshape(C, 1)
    add_res = residual is not None

    y_spec = pl.BlockSpec((1, C, tn), lambda b, t: (b, 0, t))
    par_spec = pl.BlockSpec((C, 1), lambda b, t: (0, 0))
    if add_res:
        args = (residual, y, sc, sh)
        in_specs = [y_spec, y_spec, par_spec, par_spec]
        aliases = {1: 0}        # the dead intermediate t reuses the output buffer
    else:
        args = (y, sc, sh)
        in_specs = [y_spec, par_spec, par_spec]
        aliases = {0: 0}

    return pl.pallas_call(
        functools.partial(_affine_relu_kernel, add_res),
        out_shape=jax.ShapeDtypeStruct((B, C, N), jnp.float32),
        grid=(B, N // tn),
        in_specs=in_specs,
        out_specs=y_spec,
        input_output_aliases=aliases,
        compiler_params=pltpu.CompilerParams(
            dimension_semantics=("parallel", "parallel"),
            vmem_limit_bytes=_VMEM_LIMIT),
    )(*args)


def _conv1x1_bn_relu(x, w, gamma, beta):
    B, C, N = x.shape
    Co = w.shape[0]
    tn = _pick_tile(N)

    y, ssum, ssq = pl.pallas_call(
        _conv_stats_kernel,
        out_shape=(jax.ShapeDtypeStruct((B, Co, N), jnp.float32),
                   jax.ShapeDtypeStruct((B, Co, 1), jnp.float32),
                   jax.ShapeDtypeStruct((B, Co, 1), jnp.float32)),
        grid=(B, N // tn),
        in_specs=[pl.BlockSpec((1, C, tn), lambda b, t: (b, 0, t)),
                  pl.BlockSpec((Co, C), lambda b, t: (0, 0))],
        out_specs=(pl.BlockSpec((1, Co, tn), lambda b, t: (b, 0, t)),
                   pl.BlockSpec((1, Co, 1), lambda b, t: (b, 0, 0)),
                   pl.BlockSpec((1, Co, 1), lambda b, t: (b, 0, 0))),
        scratch_shapes=[pltpu.VMEM((Co, 1), jnp.float32),
                        pltpu.VMEM((Co, 1), jnp.float32)],
        compiler_params=pltpu.CompilerParams(
            dimension_semantics=("parallel", "arbitrary"),
            vmem_limit_bytes=_VMEM_LIMIT),
    )(x, w)

    count = B * N
    mean = jnp.sum(ssum, axis=0).reshape(Co) / count
    var = jnp.sum(ssq, axis=0).reshape(Co) / count - mean * mean
    scale = gamma * jax.lax.rsqrt(var + _BN_EPS)
    shift = beta - mean * scale
    return _affine_relu(y, scale, shift, residual=None)


def _sa_layer(x, p):
    B, C, N = x.shape
    Cq = p["wq"].shape[0]
    tq = _ATTN_ROW_TILE

    t, ssum, ssq = pl.pallas_call(
        functools.partial(_sa_attn_kernel, tq),
        out_shape=(jax.ShapeDtypeStruct((B, C, N), jnp.float32),
                   jax.ShapeDtypeStruct((B, C, 1), jnp.float32),
                   jax.ShapeDtypeStruct((B, C, 1), jnp.float32)),
        grid=(B, N // tq),
        in_specs=[pl.BlockSpec((1, C, N), lambda b, t: (b, 0, 0)),   # x, resident
                  pl.BlockSpec((Cq, C), lambda b, t: (0, 0)),        # shared q/k weight
                  pl.BlockSpec((C, C), lambda b, t: (0, 0)),         # v weight
                  pl.BlockSpec((C, 1), lambda b, t: (0, 0)),         # v bias
                  pl.BlockSpec((C, C), lambda b, t: (0, 0)),         # trans weight
                  pl.BlockSpec((C, 1), lambda b, t: (0, 0))],        # trans bias
        out_specs=(pl.BlockSpec((1, C, N), lambda b, t: (b, 0, 0)),
                   pl.BlockSpec((1, C, 1), lambda b, t: (b, 0, 0)),
                   pl.BlockSpec((1, C, 1), lambda b, t: (b, 0, 0))),
        scratch_shapes=[pltpu.VMEM((Cq, N), jnp.float32),   # q projection
                        pltpu.VMEM((C, N), jnp.float32),    # v projection
                        pltpu.VMEM((C, N), jnp.float32),    # x_r accumulator
                        pltpu.VMEM((1, N), jnp.float32)],   # attention column sum
        compiler_params=pltpu.CompilerParams(
            dimension_semantics=("parallel", "arbitrary"),
            vmem_limit_bytes=_VMEM_LIMIT),
    )(x, p["wq"], p["wv"], p["bv"], p["wt"], p["bt"])

    count = B * N
    mean = jnp.sum(ssum, axis=0).reshape(C) / count
    var = jnp.sum(ssq, axis=0).reshape(C) / count - mean * mean
    scale = p["gamma"] * jax.lax.rsqrt(var + _BN_EPS)
    shift = p["beta"] - mean * scale
    return _affine_relu(t, scale, shift, residual=x)


def point_transformer_last(x, params):
    B, C, N = x.shape
    assert N % 128 == 0, "N must be a multiple of 128 (lane-dense tiles)"
    assert C % 8 == 0 and C % 4 == 0, "C must be a multiple of 8 (and of 4)"
    h = _conv1x1_bn_relu(x, params["conv1_w"], params["bn1_gamma"], params["bn1_beta"])
    h = _conv1x1_bn_relu(h, params["conv2_w"], params["bn2_gamma"], params["bn2_beta"])
    x1 = _sa_layer(h, params["sa1"])
    x2 = _sa_layer(x1, params["sa2"])
    x3 = _sa_layer(x2, params["sa3"])
    x4 = _sa_layer(x3, params["sa4"])
    return jnp.concatenate([x1, x2, x3, x4], axis=1)


# ----------------------------- Parameter init -------------------------------
def _sa_params(key, C):
    Cq = C // 4
    k1, k2, k3, k4, k5 = jax.random.split(key, 5)
    b = 1.0 / np.sqrt(C)
    u = lambda k, s: jax.random.uniform(k, s, jnp.float32, -b, b)
    return {
        "wq": u(k1, (Cq, C)),            # shared by q_conv and k_conv (no bias)
        "wv": u(k2, (C, C)),
        "bv": u(k3, (C, 1)),
        "wt": u(k4, (C, C)),
        "bt": u(k5, (C, 1)),
        "gamma": jnp.ones((C,), jnp.float32),
        "beta": jnp.zeros((C,), jnp.float32),
    }


def init_params(key, C):
    ks = jax.random.split(key, 6)
    b = 1.0 / np.sqrt(C)
    u = lambda k, s: jax.random.uniform(k, s, jnp.float32, -b, b)
    return {
        "conv1_w": u(ks[0], (C, C)),
        "conv2_w": u(ks[1], (C, C)),
        "bn1_gamma": jnp.ones((C,), jnp.float32),
        "bn1_beta": jnp.zeros((C,), jnp.float32),
        "bn2_gamma": jnp.ones((C,), jnp.float32),
        "bn2_beta": jnp.zeros((C,), jnp.float32),
        "sa1": _sa_params(ks[2], C),
        "sa2": _sa_params(ks[3], C),
        "sa3": _sa_params(ks[4], C),
        "sa4": _sa_params(ks[5], C),
    }


# ---------------------------- Pure-JAX reference ----------------------------
# Mirrors the kernels' matmul precision policy (shared split-bf16 `_mm`) so the
# comparison is tight; the math is identical to the PyTorch forward.
def _ref_conv_bn_relu(x, w, gamma, beta):
    y = _mm(w, x)                                                  # (B, Co, N)
    mean = y.mean(axis=(0, 2), keepdims=True)
    var = jnp.square(y - mean).mean(axis=(0, 2), keepdims=True)    # biased (training mode)
    return jax.nn.relu((y - mean) * jax.lax.rsqrt(var + _BN_EPS)
                       * gamma.reshape(1, -1, 1) + beta.reshape(1, -1, 1))


def _ref_sa(x, p):
    q = _mm(p["wq"], x)                                            # (B, Cq, N)
    energy = _mm(jnp.swapaxes(q, 1, 2), q)                         # (B, N, N)
    attn = jax.nn.softmax(energy, axis=-1)
    colsum = attn.sum(axis=1, keepdims=True)                       # (B, 1, N)
    xv = _mm(p["wv"], x) + p["bv"]
    # Algebraically identical to torch's  attn/(1e-9+colsum)  followed by bmm.
    xr = _mm(xv, attn) / (1e-9 + colsum)
    d = x - xr
    t = _mm(p["wt"], d) + p["bt"]
    mean = t.mean(axis=(0, 2), keepdims=True)
    var = jnp.square(t - mean).mean(axis=(0, 2), keepdims=True)
    r = jax.nn.relu((t - mean) * jax.lax.rsqrt(var + _BN_EPS)
                    * p["gamma"].reshape(1, -1, 1) + p["beta"].reshape(1, -1, 1))
    return x + r


def reference(x, params):
    h = _ref_conv_bn_relu(x, params["conv1_w"], params["bn1_gamma"], params["bn1_beta"])
    h = _ref_conv_bn_relu(h, params["conv2_w"], params["bn2_gamma"], params["bn2_beta"])
    x1 = _ref_sa(h, params["sa1"])
    x2 = _ref_sa(x1, params["sa2"])
    x3 = _ref_sa(x2, params["sa3"])
    x4 = _ref_sa(x3, params["sa4"])
    return jnp.concatenate([x1, x2, x3, x4], axis=1)


if __name__ == "__main__":
    B, C, N = 2, 128, 256          # batch, channels, number of points
    key = jax.random.PRNGKey(0)
    kx, kp = jax.random.split(key)
    x = jax.random.normal(kx, (B, C, N), jnp.float32)
    params = init_params(kp, C)

    out = jax.block_until_ready(jax.jit(point_transformer_last)(x, params))
    ref = jax.block_until_ready(reference(x, params))

    assert out.shape == (B, 4 * C, N)
    np.testing.assert_allclose(np.asarray(out), np.asarray(ref), atol=5e-3, rtol=5e-3)
    print("KERNEL_OK")
</pallas_src>

<mosaic_0001>
module attributes {stable_mosaic.version = 11 : i64} {
  func.func @_conv_stats_kernel(%arg0: i32, %arg1: i32, %arg2: memref<1x128x256xf32, #tpu.memory_space<vmem>>, %arg3: memref<128x128xf32, #tpu.memory_space<vmem>>, %arg4: memref<1x128x256xf32, #tpu.memory_space<vmem>>, %arg5: memref<1x128x1xf32, #tpu.memory_space<vmem>>, %arg6: memref<1x128x1xf32, #tpu.memory_space<vmem>>, %arg7: memref<128x1xf32, #tpu.memory_space<vmem>>, %arg8: memref<128x1xf32, #tpu.memory_space<vmem>>) attributes {dimension_semantics = [#tpu.dimension_semantics<parallel>, #tpu.dimension_semantics<arbitrary>], iteration_bounds = array<i64: 2, 1>, scalar_prefetch = 0 : i64, scratch_operands = 2 : i64, tpu.core_type = #tpu.core_type<tc>, window_params = [{transform_indices = @transform_0, window_bounds = array<i64: 1, 128, 256>}, {pipeline_mode = #tpu.pipeline_mode<synchronous>, transform_indices = @transform_1, window_bounds = array<i64: 128, 128>}, {transform_indices = @transform_2, window_bounds = array<i64: 1, 128, 256>}, {transform_indices = @transform_3, window_bounds = array<i64: 1, 128, 1>}, {transform_indices = @transform_4, window_bounds = array<i64: 1, 128, 1>}]} {
    %c0_i32 = arith.constant 0 : i32
    %0 = arith.cmpi eq, %arg1, %c0_i32 : i32
    %1 = arith.extui %0 : i1 to i32
    %c0_i32_0 = arith.constant 0 : i32
    %2 = arith.cmpi ne, %1, %c0_i32_0 : i32
    scf.if %2 {
      %cst_22 = arith.constant 0.000000e+00 : f32
      %36 = vector.broadcast %cst_22 : f32 to vector<128x1xf32>
      %c0_23 = arith.constant 0 : index
      %c0_24 = arith.constant 0 : index
      %37 = vector.load %arg7[%c0_23, %c0_24] : memref<128x1xf32, #tpu.memory_space<vmem>>, vector<128x1xf32>
      tpu.vector_store %arg7[%c0_23, %c0_24], %36 {strides = array<i32>} : memref<128x1xf32, #tpu.memory_space<vmem>>, vector<128x1xf32>,
      %cst_25 = arith.constant 0.000000e+00 : f32
      %38 = vector.broadcast %cst_25 : f32 to vector<128x1xf32>
      %c0_26 = arith.constant 0 : index
      %c0_27 = arith.constant 0 : index
      %39 = vector.load %arg8[%c0_26, %c0_27] : memref<128x1xf32, #tpu.memory_space<vmem>>, vector<128x1xf32>
      tpu.vector_store %arg8[%c0_26, %c0_27], %38 {strides = array<i32>} : memref<128x1xf32, #tpu.memory_space<vmem>>, vector<128x1xf32>,
    } else {
    }
    %c0 = arith.constant 0 : index
    %c0_1 = arith.constant 0 : index
    %3 = vector.load %arg3[%c0, %c0_1] : memref<128x128xf32, #tpu.memory_space<vmem>>, vector<128x128xf32>
    %c0_2 = arith.constant 0 : index
    %c0_3 = arith.constant 0 : index
    %c0_4 = arith.constant 0 : index
    %4 = vector.load %arg2[%c0_2, %c0_3, %c0_4] : memref<1x128x256xf32, #tpu.memory_space<vmem>>, vector<1x128x256xf32>
    %5 = vector.shape_cast %4 : vector<1x128x256xf32> to vector<128x256xf32>
    %6 = arith.truncf %3 : vector<128x128xf32> to vector<128x128xbf16>
    %7 = arith.extf %6 : vector<128x128xbf16> to vector<128x128xf32>
    %8 = arith.subf %3, %7 : vector<128x128xf32>
    %9 = arith.truncf %8 : vector<128x128xf32> to vector<128x128xbf16>
    %10 = arith.truncf %5 : vector<128x256xf32> to vector<128x256xbf16>
    %11 = arith.extf %10 : vector<128x256xbf16> to vector<128x256xf32>
    %12 = arith.subf %5, %11 : vector<128x256xf32>
    %13 = arith.truncf %12 : vector<128x256xf32> to vector<128x256xbf16>
    %cst = arith.constant dense<0.000000e+00> : vector<128x256xf32>
    %14 = tpu.matmul %6, %10, %cst {dimension_numbers = #tpu.dot_dimension_numbers<[1], [0], [0], [1], [0, 0, 1, 1], [], []>} : vector<128x128xbf16>, vector<128x256xbf16>, vector<128x256xf32> -> vector<128x256xf32>
    %cst_5 = arith.constant dense<0.000000e+00> : vector<128x256xf32>
    %15 = tpu.matmul %9, %10, %cst_5 {dimension_numbers = #tpu.dot_dimension_numbers<[1], [0], [0], [1], [0, 0, 1, 1], [], []>} : vector<128x128xbf16>, vector<128x256xbf16>, vector<128x256xf32> -> vector<128x256xf32>
    %16 = arith.addf %14, %15 : vector<128x256xf32>
    %cst_6 = arith.constant dense<0.000000e+00> : vector<128x256xf32>
    %17 = tpu.matmul %6, %13, %cst_6 {dimension_numbers = #tpu.dot_dimension_numbers<[1], [0], [0], [1], [0, 0, 1, 1], [], []>} : vector<128x128xbf16>, vector<128x256xbf16>, vector<128x256xf32> -> vector<128x256xf32>
    %18 = arith.addf %16, %17 : vector<128x256xf32>
    %c0_7 = arith.constant 0 : index
    %c0_8 = arith.constant 0 : index
    %c0_9 = arith.constant 0 : index
    %19 = vector.load %arg4[%c0_7, %c0_8, %c0_9] : memref<1x128x256xf32, #tpu.memory_space<vmem>>, vector<1x128x256xf32>
    %20 = vector.shape_cast %19 : vector<1x128x256xf32> to vector<128x256xf32>
    %21 = vector.shape_cast %18 : vector<128x256xf32> to vector<1x128x256xf32>
    tpu.vector_store %arg4[%c0_7, %c0_8, %c0_9], %21 {strides = array<i32>} : memref<1x128x256xf32, #tpu.memory_space<vmem>>, vector<1x128x256xf32>,
    %c0_10 = arith.constant 0 : index
    %c0_11 = arith.constant 0 : index
    %22 = vector.load %arg7[%c0_10, %c0_11] : memref<128x1xf32, #tpu.memory_space<vmem>>, vector<128x1xf32>
    %cst_12 = arith.constant dense<0.000000e+00> : vector<128xf32>
    %23 = vector.multi_reduction <add>, %18, %cst_12 [1] : vector<128x256xf32> to vector<128xf32>
    %24 = vector.shape_cast %23 : vector<128xf32> to vector<128x1xf32>
    %25 = arith.addf %22, %24 : vector<128x1xf32>
    %c0_13 = arith.constant 0 : index
    %c0_14 = arith.constant 0 : index
    %26 = vector.load %arg7[%c0_13, %c0_14] : memref<128x1xf32, #tpu.memory_space<vmem>>, vector<128x1xf32>
    tpu.vector_store %arg7[%c0_13, %c0_14], %25 {strides = array<i32>} : memref<128x1xf32, #tpu.memory_space<vmem>>, vector<128x1xf32>,
    %c0_15 = arith.constant 0 : index
    %c0_16 = arith.constant 0 : index
    %27 = vector.load %arg8[%c0_15, %c0_16] : memref<128x1xf32, #tpu.memory_space<vmem>>, vector<128x1xf32>
    %28 = arith.mulf %18, %18 : vector<128x256xf32>
    %cst_17 = arith.constant dense<0.000000e+00> : vector<128xf32>
    %29 = vector.multi_reduction <add>, %28, %cst_17 [1] : vector<128x256xf32> to vector<128xf32>
    %30 = vector.shape_cast %29 : vector<128xf32> to vector<128x1xf32>
    %31 = arith.addf %27, %30 : vector<128x1xf32>
    %c0_18 = arith.constant 0 : index
    %c0_19 = arith.constant 0 : index
    %32 = vector.load %arg8[%c0_18, %c0_19] : memref<128x1xf32, #tpu.memory_space<vmem>>, vector<128x1xf32>
    tpu.vector_store %arg8[%c0_18, %c0_19], %31 {strides = array<i32>} : memref<128x1xf32, #tpu.memory_space<vmem>>, vector<128x1xf32>,
    %c0_i32_20 = arith.constant 0 : i32
    %33 = arith.cmpi eq, %arg1, %c0_i32_20 : i32
    %34 = arith.extui %33 : i1 to i32
    %c0_i32_21 = arith.constant 0 : i32
    %35 = arith.cmpi ne, %34, %c0_i32_21 : i32
    scf.if %35 {
      %c0_22 = arith.constant 0 : index
      %c0_23 = arith.constant 0 : index
      %36 = vector.load %arg7[%c0_22, %c0_23] : memref<128x1xf32, #tpu.memory_space<vmem>>, vector<128x1xf32>
      %c0_24 = arith.constant 0 : index
      %c0_25 = arith.constant 0 : index
      %c0_26 = arith.constant 0 : index
      %37 = vector.load %arg5[%c0_24, %c0_25, %c0_26] : memref<1x128x1xf32, #tpu.memory_space<vmem>>, vector<1x128x1xf32>
      %38 = vector.shape_cast %37 : vector<1x128x1xf32> to vector<128x1xf32>
      %39 = vector.shape_cast %36 : vector<128x1xf32> to vector<1x128x1xf32>
      tpu.vector_store %arg5[%c0_24, %c0_25, %c0_26], %39 {strides = array<i32>} : memref<1x128x1xf32, #tpu.memory_space<vmem>>, vector<1x128x1xf32>,
      %c0_27 = arith.constant 0 : index
      %c0_28 = arith.constant 0 : index
      %40 = vector.load %arg8[%c0_27, %c0_28] : memref<128x1xf32, #tpu.memory_space<vmem>>, vector<128x1xf32>
      %c0_29 = arith.constant 0 : index
      %c0_30 = arith.constant 0 : index
      %c0_31 = arith.constant 0 : index
      %41 = vector.load %arg6[%c0_29, %c0_30, %c0_31] : memref<1x128x1xf32, #tpu.memory_space<vmem>>, vector<1x128x1xf32>
      %42 = vector.shape_cast %41 : vector<1x128x1xf32> to vector<128x1xf32>
      %43 = vector.shape_cast %40 : vector<128x1xf32> to vector<1x128x1xf32>
      tpu.vector_store %arg6[%c0_29, %c0_30, %c0_31], %43 {strides = array<i32>} : memref<1x128x1xf32, #tpu.memory_space<vmem>>, vector<1x128x1xf32>,
    } else {
    }
    return
  }
  func.func @transform_0(%arg0: i32, %arg1: i32) -> (i32, i32, i32) {
    %c0_i32 = arith.constant 0 : i32
    %c0_i32_0 = arith.constant 0 : i32
    return %arg0, %c0_i32, %arg1 : i32, i32, i32
  }
  func.func @transform_1(%arg0: i32, %arg1: i32) -> (i32, i32) {
    %c0_i32 = arith.constant 0 : i32
    %c0_i32_0 = arith.constant 0 : i32
    %c0_i32_1 = arith.constant 0 : i32
    return %c0_i32, %c0_i32_0 : i32, i32
  }
  func.func @transform_2(%arg0: i32, %arg1: i32) -> (i32, i32, i32) {
    %c0_i32 = arith.constant 0 : i32
    %c0_i32_0 = arith.constant 0 : i32
    return %arg0, %c0_i32, %arg1 : i32, i32, i32
  }
  func.func @transform_3(%arg0: i32, %arg1: i32) -> (i32, i32, i32) {
    %c0_i32 = arith.constant 0 : i32
    %c0_i32_0 = arith.constant 0 : i32
    %c0_i32_1 = arith.constant 0 : i32
    return %arg0, %c0_i32, %c0_i32_0 : i32, i32, i32
  }
  func.func @transform_4(%arg0: i32, %arg1: i32) -> (i32, i32, i32) {
    %c0_i32 = arith.constant 0 : i32
    %c0_i32_0 = arith.constant 0 : i32
    %c0_i32_1 = arith.constant 0 : i32
    return %arg0, %c0_i32, %c0_i32_0 : i32, i32, i32
  }
}

module attributes {stable_mosaic.version = 11 : i64} {
  func.func @_affine_relu_kernel(%arg0: i32, %arg1: i32, %arg2: memref<1x128x256xf32, #tpu.memory_space<vmem>>, %arg3: memref<128x1xf32, #tpu.memory_space<vmem>>, %arg4: memref<128x1xf32, #tpu.memory_space<vmem>>, %arg5: memref<1x128x256xf32, #tpu.memory_space<vmem>>) attributes {dimension_semantics = [#tpu.dimension_semantics<parallel>, #tpu.dimension_semantics<parallel>], iteration_bounds = array<i64: 2, 1>, scalar_prefetch = 0 : i64, scratch_operands = 0 : i64, tpu.core_type = #tpu.core_type<tc>, window_params = [{transform_indices = @transform_0, window_bounds = array<i64: 1, 128, 256>}, {pipeline_mode = #tpu.pipeline_mode<synchronous>, transform_indices = @transform_1, window_bounds = array<i64: 128, 1>}, {pipeline_mode = #tpu.pipeline_mode<synchronous>, transform_indices = @transform_2, window_bounds = array<i64: 128, 1>}, {transform_indices = @transform_3, window_bounds = array<i64: 1, 128, 256>}]} {
    %c0 = arith.constant 0 : index
    %c0_0 = arith.constant 0 : index
    %c0_1 = arith.constant 0 : index
    %0 = vector.load %arg2[%c0, %c0_0, %c0_1] : memref<1x128x256xf32, #tpu.memory_space<vmem>>, vector<1x128x256xf32>
    %1 = vector.shape_cast %0 : vector<1x128x256xf32> to vector<128x256xf32>
    %c0_2 = arith.constant 0 : index
    %c0_3 = arith.constant 0 : index
    %2 = vector.load %arg3[%c0_2, %c0_3] : memref<128x1xf32, #tpu.memory_space<vmem>>, vector<128x1xf32>
    %3 = vector.broadcast %2 : vector<128x1xf32> to vector<128x256xf32>
    %4 = arith.mulf %1, %3 : vector<128x256xf32>
    %c0_4 = arith.constant 0 : index
    %c0_5 = arith.constant 0 : index
    %5 = vector.load %arg4[%c0_4, %c0_5] : memref<128x1xf32, #tpu.memory_space<vmem>>, vector<128x1xf32>
    %6 = vector.broadcast %5 : vector<128x1xf32> to vector<128x256xf32>
    %7 = arith.addf %4, %6 : vector<128x256xf32>
    %cst = arith.constant 0.000000e+00 : f32
    %8 = vector.broadcast %cst : f32 to vector<128x256xf32>
    %9 = arith.maximumf %7, %8 : vector<128x256xf32>
    %c0_6 = arith.constant 0 : index
    %c0_7 = arith.constant 0 : index
    %c0_8 = arith.constant 0 : index
    %10 = vector.load %arg5[%c0_6, %c0_7, %c0_8] : memref<1x128x256xf32, #tpu.memory_space<vmem>>, vector<1x128x256xf32>
    %11 = vector.shape_cast %10 : vector<1x128x256xf32> to vector<128x256xf32>
    %12 = vector.shape_cast %9 : vector<128x256xf32> to vector<1x128x256xf32>
    tpu.vector_store %arg5[%c0_6, %c0_7, %c0_8], %12 {strides = array<i32>} : memref<1x128x256xf32, #tpu.memory_space<vmem>>, vector<1x128x256xf32>,
    return
  }
  func.func @transform_0(%arg0: i32, %arg1: i32) -> (i32, i32, i32) {
    %c0_i32 = arith.constant 0 : i32
    %c0_i32_0 = arith.constant 0 : i32
    return %arg0, %c0_i32, %arg1 : i32, i32, i32
  }
  func.func @transform_1(%arg0: i32, %arg1: i32) -> (i32, i32) {
    %c0_i32 = arith.constant 0 : i32
    %c0_i32_0 = arith.constant 0 : i32
    %c0_i32_1 = arith.constant 0 : i32
    return %c0_i32, %c0_i32_0 : i32, i32
  }
  func.func @transform_2(%arg0: i32, %arg1: i32) -> (i32, i32) {
    %c0_i32 = arith.constant 0 : i32
    %c0_i32_0 = arith.constant 0 : i32
    %c0_i32_1 = arith.constant 0 : i32
    return %c0_i32, %c0_i32_0 : i32, i32
  }
  func.func @transform_3(%arg0: i32, %arg1: i32) -> (i32, i32, i32) {
    %c0_i32 = arith.constant 0 : i32
    %c0_i32_0 = arith.constant 0 : i32
    return %arg0, %c0_i32, %arg1 : i32, i32, i32
  }
}

module attributes {stable_mosaic.version = 11 : i64} {
  func.func @_conv_stats_kernel(%arg0: i32, %arg1: i32, %arg2: memref<1x128x256xf32, #tpu.memory_space<vmem>>, %arg3: memref<128x128xf32, #tpu.memory_space<vmem>>, %arg4: memref<1x128x256xf32, #tpu.memory_space<vmem>>, %arg5: memref<1x128x1xf32, #tpu.memory_space<vmem>>, %arg6: memref<1x128x1xf32, #tpu.memory_space<vmem>>, %arg7: memref<128x1xf32, #tpu.memory_space<vmem>>, %arg8: memref<128x1xf32, #tpu.memory_space<vmem>>) attributes {dimension_semantics = [#tpu.dimension_semantics<parallel>, #tpu.dimension_semantics<arbitrary>], iteration_bounds = array<i64: 2, 1>, scalar_prefetch = 0 : i64, scratch_operands = 2 : i64, tpu.core_type = #tpu.core_type<tc>, window_params = [{transform_indices = @transform_0, window_bounds = array<i64: 1, 128, 256>}, {pipeline_mode = #tpu.pipeline_mode<synchronous>, transform_indices = @transform_1, window_bounds = array<i64: 128, 128>}, {transform_indices = @transform_2, window_bounds = array<i64: 1, 128, 256>}, {transform_indices = @transform_3, window_bounds = array<i64: 1, 128, 1>}, {transform_indices = @transform_4, window_bounds = array<i64: 1, 128, 1>}]} {
    %c0_i32 = arith.constant 0 : i32
    %0 = arith.cmpi eq, %arg1, %c0_i32 : i32
    %1 = arith.extui %0 : i1 to i32
    %c0_i32_0 = arith.constant 0 : i32
    %2 = arith.cmpi ne, %1, %c0_i32_0 : i32
    scf.if %2 {
      %cst_22 = arith.constant 0.000000e+00 : f32
      %36 = vector.broadcast %cst_22 : f32 to vector<128x1xf32>
      %c0_23 = arith.constant 0 : index
      %c0_24 = arith.constant 0 : index
      %37 = vector.load %arg7[%c0_23, %c0_24] : memref<128x1xf32, #tpu.memory_space<vmem>>, vector<128x1xf32>
      tpu.vector_store %arg7[%c0_23, %c0_24], %36 {strides = array<i32>} : memref<128x1xf32, #tpu.memory_space<vmem>>, vector<128x1xf32>,
      %cst_25 = arith.constant 0.000000e+00 : f32
      %38 = vector.broadcast %cst_25 : f32 to vector<128x1xf32>
      %c0_26 = arith.constant 0 : index
      %c0_27 = arith.constant 0 : index
      %39 = vector.load %arg8[%c0_26, %c0_27] : memref<128x1xf32, #tpu.memory_space<vmem>>, vector<128x1xf32>
      tpu.vector_store %arg8[%c0_26, %c0_27], %38 {strides = array<i32>} : memref<128x1xf32, #tpu.memory_space<vmem>>, vector<128x1xf32>,
    } else {
    }
    %c0 = arith.constant 0 : index
    %c0_1 = arith.constant 0 : index
    %3 = vector.load %arg3[%c0, %c0_1] : memref<128x128xf32, #tpu.memory_space<vmem>>, vector<128x128xf32>
    %c0_2 = arith.constant 0 : index
    %c0_3 = arith.constant 0 : index
    %c0_4 = arith.constant 0 : index
    %4 = vector.load %arg2[%c0_2, %c0_3, %c0_4] : memref<1x128x256xf32, #tpu.memory_space<vmem>>, vector<1x128x256xf32>
    %5 = vector.shape_cast %4 : vector<1x128x256xf32> to vector<128x256xf32>
    %6 = arith.truncf %3 : vector<128x128xf32> to vector<128x128xbf16>
    %7 = arith.extf %6 : vector<128x128xbf16> to vector<128x128xf32>
    %8 = arith.subf %3, %7 : vector<128x128xf32>
    %9 = arith.truncf %8 : vector<128x128xf32> to vector<128x128xbf16>
    %10 = arith.truncf %5 : vector<128x256xf32> to vector<128x256xbf16>
    %11 = arith.extf %10 : vector<128x256xbf16> to vector<128x256xf32>
    %12 = arith.subf %5, %11 : vector<128x256xf32>
    %13 = arith.truncf %12 : vector<128x256xf32> to vector<128x256xbf16>
    %cst = arith.constant dense<0.000000e+00> : vector<128x256xf32>
    %14 = tpu.matmul %6, %10, %cst {dimension_numbers = #tpu.dot_dimension_numbers<[1], [0], [0], [1], [0, 0, 1, 1], [], []>} : vector<128x128xbf16>, vector<128x256xbf16>, vector<128x256xf32> -> vector<128x256xf32>
    %cst_5 = arith.constant dense<0.000000e+00> : vector<128x256xf32>
    %15 = tpu.matmul %9, %10, %cst_5 {dimension_numbers = #tpu.dot_dimension_numbers<[1], [0], [0], [1], [0, 0, 1, 1], [], []>} : vector<128x128xbf16>, vector<128x256xbf16>, vector<128x256xf32> -> vector<128x256xf32>
    %16 = arith.addf %14, %15 : vector<128x256xf32>
    %cst_6 = arith.constant dense<0.000000e+00> : vector<128x256xf32>
    %17 = tpu.matmul %6, %13, %cst_6 {dimension_numbers = #tpu.dot_dimension_numbers<[1], [0], [0], [1], [0, 0, 1, 1], [], []>} : vector<128x128xbf16>, vector<128x256xbf16>, vector<128x256xf32> -> vector<128x256xf32>
    %18 = arith.addf %16, %17 : vector<128x256xf32>
    %c0_7 = arith.constant 0 : index
    %c0_8 = arith.constant 0 : index
    %c0_9 = arith.constant 0 : index
    %19 = vector.load %arg4[%c0_7, %c0_8, %c0_9] : memref<1x128x256xf32, #tpu.memory_space<vmem>>, vector<1x128x256xf32>
    %20 = vector.shape_cast %19 : vector<1x128x256xf32> to vector<128x256xf32>
    %21 = vector.shape_cast %18 : vector<128x256xf32> to vector<1x128x256xf32>
    tpu.vector_store %arg4[%c0_7, %c0_8, %c0_9], %21 {strides = array<i32>} : memref<1x128x256xf32, #tpu.memory_space<vmem>>, vector<1x128x256xf32>,
    %c0_10 = arith.constant 0 : index
    %c0_11 = arith.constant 0 : index
    %22 = vector.load %arg7[%c0_10, %c0_11] : memref<128x1xf32, #tpu.memory_space<vmem>>, vector<128x1xf32>
    %cst_12 = arith.constant dense<0.000000e+00> : vector<128xf32>
    %23 = vector.multi_reduction <add>, %18, %cst_12 [1] : vector<128x256xf32> to vector<128xf32>
    %24 = vector.shape_cast %23 : vector<128xf32> to vector<128x1xf32>
    %25 = arith.addf %22, %24 : vector<128x1xf32>
    %c0_13 = arith.constant 0 : index
    %c0_14 = arith.constant 0 : index
    %26 = vector.load %arg7[%c0_13, %c0_14] : memref<128x1xf32, #tpu.memory_space<vmem>>, vector<128x1xf32>
    tpu.vector_store %arg7[%c0_13, %c0_14], %25 {strides = array<i32>} : memref<128x1xf32, #tpu.memory_space<vmem>>, vector<128x1xf32>,
    %c0_15 = arith.constant 0 : index
    %c0_16 = arith.constant 0 : index
    %27 = vector.load %arg8[%c0_15, %c0_16] : memref<128x1xf32, #tpu.memory_space<vmem>>, vector<128x1xf32>
    %28 = arith.mulf %18, %18 : vector<128x256xf32>
    %cst_17 = arith.constant dense<0.000000e+00> : vector<128xf32>
    %29 = vector.multi_reduction <add>, %28, %cst_17 [1] : vector<128x256xf32> to vector<128xf32>
    %30 = vector.shape_cast %29 : vector<128xf32> to vector<128x1xf32>
    %31 = arith.addf %27, %30 : vector<128x1xf32>
    %c0_18 = arith.constant 0 : index
    %c0_19 = arith.constant 0 : index
    %32 = vector.load %arg8[%c0_18, %c0_19] : memref<128x1xf32, #tpu.memory_space<vmem>>, vector<128x1xf32>
    tpu.vector_store %arg8[%c0_18, %c0_19], %31 {strides = array<i32>} : memref<128x1xf32, #tpu.memory_space<vmem>>, vector<128x1xf32>,
    %c0_i32_20 = arith.constant 0 : i32
    %33 = arith.cmpi eq, %arg1, %c0_i32_20 : i32
    %34 = arith.extui %33 : i1 to i32
    %c0_i32_21 = arith.constant 0 : i32
    %35 = arith.cmpi ne, %34, %c0_i32_21 : i32
    scf.if %35 {
      %c0_22 = arith.constant 0 : index
      %c0_23 = arith.constant 0 : index
      %36 = vector.load %arg7[%c0_22, %c0_23] : memref<128x1xf32, #tpu.memory_space<vmem>>, vector<128x1xf32>
      %c0_24 = arith.constant 0 : index
      %c0_25 = arith.constant 0 : index
      %c0_26 = arith.constant 0 : index
      %37 = vector.load %arg5[%c0_24, %c0_25, %c0_26] : memref<1x128x1xf32, #tpu.memory_space<vmem>>, vector<1x128x1xf32>
      %38 = vector.shape_cast %37 : vector<1x128x1xf32> to vector<128x1xf32>
      %39 = vector.shape_cast %36 : vector<128x1xf32> to vector<1x128x1xf32>
      tpu.vector_store %arg5[%c0_24, %c0_25, %c0_26], %39 {strides = array<i32>} : memref<1x128x1xf32, #tpu.memory_space<vmem>>, vector<1x128x1xf32>,
      %c0_27 = arith.constant 0 : index
      %c0_28 = arith.constant 0 : index
      %40 = vector.load %arg8[%c0_27, %c0_28] : memref<128x1xf32, #tpu.memory_space<vmem>>, vector<128x1xf32>
      %c0_29 = arith.constant 0 : index
      %c0_30 = arith.constant 0 : index
      %c0_31 = arith.constant 0 : index
      %41 = vector.load %arg6[%c0_29, %c0_30, %c0_31] : memref<1x128x1xf32, #tpu.memory_space<vmem>>, vector<1x128x1xf32>
      %42 = vector.shape_cast %41 : vector<1x128x1xf32> to vector<128x1xf32>
      %43 = vector.shape_cast %40 : vector<128x1xf32> to vector<1x128x1xf32>
      tpu.vector_store %arg6[%c0_29, %c0_30, %c0_31], %43 {strides = array<i32>} : memref<1x128x1xf32, #tpu.memory_space<vmem>>, vector<1x128x1xf32>,
    } else {
    }
    return
  }
  func.func @transform_0(%arg0: i32, %arg1: i32) -> (i32, i32, i32) {
    %c0_i32 = arith.constant 0 : i32
    %c0_i32_0 = arith.constant 0 : i32
    return %arg0, %c0_i32, %arg1 : i32, i32, i32
  }
  func.func @transform_1(%arg0: i32, %arg1: i32) -> (i32, i32) {
    %c0_i32 = arith.constant 0 : i32
    %c0_i32_0 = arith.constant 0 : i32
    %c0_i32_1 = arith.constant 0 : i32
    return %c0_i32, %c0_i32_0 : i32, i32
  }
  func.func @transform_2(%arg0: i32, %arg1: i32) -> (i32, i32, i32) {
    %c0_i32 = arith.constant 0 : i32
    %c0_i32_0 = arith.constant 0 : i32
    return %arg0, %c0_i32, %arg1 : i32, i32, i32
  }
  func.func @transform_3(%arg0: i32, %arg1: i32) -> (i32, i32, i32) {
    %c0_i32 = arith.constant 0 : i32
    %c0_i32_0 = arith.constant 0 : i32
    %c0_i32_1 = arith.constant 0 : i32
    return %arg0, %c0_i32, %c0_i32_0 : i32, i32, i32
  }
  func.func @transform_4(%arg0: i32, %arg1: i32) -> (i32, i32, i32) {
    %c0_i32 = arith.constant 0 : i32
    %c0_i32_0 = arith.constant 0 : i32
    %c0_i32_1 = arith.constant 0 : i32
    return %arg0, %c0_i32, %c0_i32_0 : i32, i32, i32
  }
}

module attributes {stable_mosaic.version = 11 : i64} {
  func.func @_sa_attn_kernel(%arg0: i32, %arg1: i32, %arg2: memref<1x128x256xf32, #tpu.memory_space<vmem>>, %arg3: memref<32x128xf32, #tpu.memory_space<vmem>>, %arg4: memref<128x128xf32, #tpu.memory_space<vmem>>, %arg5: memref<128x1xf32, #tpu.memory_space<vmem>>, %arg6: memref<128x128xf32, #tpu.memory_space<vmem>>, %arg7: memref<128x1xf32, #tpu.memory_space<vmem>>, %arg8: memref<1x128x256xf32, #tpu.memory_space<vmem>>, %arg9: memref<1x128x1xf32, #tpu.memory_space<vmem>>, %arg10: memref<1x128x1xf32, #tpu.memory_space<vmem>>, %arg11: memref<32x256xf32, #tpu.memory_space<vmem>>, %arg12: memref<128x256xf32, #tpu.memory_space<vmem>>, %arg13: memref<128x256xf32, #tpu.memory_space<vmem>>, %arg14: memref<1x256xf32, #tpu.memory_space<vmem>>) attributes {dimension_semantics = [#tpu.dimension_semantics<parallel>, #tpu.dimension_semantics<arbitrary>], iteration_bounds = array<i64: 2, 2>, scalar_prefetch = 0 : i64, scratch_operands = 4 : i64, tpu.core_type = #tpu.core_type<tc>, window_params = [{transform_indices = @transform_0, window_bounds = array<i64: 1, 128, 256>}, {pipeline_mode = #tpu.pipeline_mode<synchronous>, transform_indices = @transform_1, window_bounds = array<i64: 32, 128>}, {pipeline_mode = #tpu.pipeline_mode<synchronous>, transform_indices = @transform_2, window_bounds = array<i64: 128, 128>}, {pipeline_mode = #tpu.pipeline_mode<synchronous>, transform_indices = @transform_3, window_bounds = array<i64: 128, 1>}, {pipeline_mode = #tpu.pipeline_mode<synchronous>, transform_indices = @transform_4, window_bounds = array<i64: 128, 128>}, {pipeline_mode = #tpu.pipeline_mode<synchronous>, transform_indices = @transform_5, window_bounds = array<i64: 128, 1>}, {transform_indices = @transform_6, window_bounds = array<i64: 1, 128, 256>}, {transform_indices = @transform_7, window_bounds = array<i64: 1, 128, 1>}, {transform_indices = @transform_8, window_bounds = array<i64: 1, 128, 1>}]} {
    %c0_i32 = arith.constant 0 : i32
    %0 = arith.cmpi eq, %arg1, %c0_i32 : i32
    %1 = arith.extui %0 : i1 to i32
    %c0_i32_0 = arith.constant 0 : i32
    %2 = arith.cmpi ne, %1, %c0_i32_0 : i32
    scf.if %2 {
      %c0_22 = arith.constant 0 : index
      %c0_23 = arith.constant 0 : index
      %c0_24 = arith.constant 0 : index
      %59 = vector.load %arg2[%c0_22, %c0_23, %c0_24] : memref<1x128x256xf32, #tpu.memory_space<vmem>>, vector<1x128x256xf32>
      %60 = vector.shape_cast %59 : vector<1x128x256xf32> to vector<128x256xf32>
      %c0_25 = arith.constant 0 : index
      %c0_26 = arith.constant 0 : index
      %61 = vector.load %arg3[%c0_25, %c0_26] : memref<32x128xf32, #tpu.memory_space<vmem>>, vector<32x128xf32>
      %62 = arith.truncf %61 : vector<32x128xf32> to vector<32x128xbf16>
      %63 = arith.extf %62 : vector<32x128xbf16> to vector<32x128xf32>
      %64 = arith.subf %61, %63 : vector<32x128xf32>
      %65 = arith.truncf %64 : vector<32x128xf32> to vector<32x128xbf16>
      %66 = arith.truncf %60 : vector<128x256xf32> to vector<128x256xbf16>
      %67 = arith.extf %66 : vector<128x256xbf16> to vector<128x256xf32>
      %68 = arith.subf %60, %67 : vector<128x256xf32>
      %69 = arith.truncf %68 : vector<128x256xf32> to vector<128x256xbf16>
      %cst_27 = arith.constant dense<0.000000e+00> : vector<32x256xf32>
      %70 = tpu.matmul %62, %66, %cst_27 {dimension_numbers = #tpu.dot_dimension_numbers<[1], [0], [0], [1], [0, 0, 1, 1], [], []>} : vector<32x128xbf16>, vector<128x256xbf16>, vector<32x256xf32> -> vector<32x256xf32>
      %cst_28 = arith.constant dense<0.000000e+00> : vector<32x256xf32>
      %71 = tpu.matmul %65, %66, %cst_28 {dimension_numbers = #tpu.dot_dimension_numbers<[1], [0], [0], [1], [0, 0, 1, 1], [], []>} : vector<32x128xbf16>, vector<128x256xbf16>, vector<32x256xf32> -> vector<32x256xf32>
      %72 = arith.addf %70, %71 : vector<32x256xf32>
      %cst_29 = arith.constant dense<0.000000e+00> : vector<32x256xf32>
      %73 = tpu.matmul %62, %69, %cst_29 {dimension_numbers = #tpu.dot_dimension_numbers<[1], [0], [0], [1], [0, 0, 1, 1], [], []>} : vector<32x128xbf16>, vector<128x256xbf16>, vector<32x256xf32> -> vector<32x256xf32>
      %74 = arith.addf %72, %73 : vector<32x256xf32>
      %c0_30 = arith.constant 0 : index
      %c0_31 = arith.constant 0 : index
      %75 = vector.load %arg11[%c0_30, %c0_31] : memref<32x256xf32, #tpu.memory_space<vmem>>, vector<32x256xf32>
      tpu.vector_store %arg11[%c0_30, %c0_31], %74 {strides = array<i32>} : memref<32x256xf32, #tpu.memory_space<vmem>>, vector<32x256xf32>,
      %c0_32 = arith.constant 0 : index
      %c0_33 = arith.constant 0 : index
      %76 = vector.load %arg4[%c0_32, %c0_33] : memref<128x128xf32, #tpu.memory_space<vmem>>, vector<128x128xf32>
      %77 = arith.truncf %76 : vector<128x128xf32> to vector<128x128xbf16>
      %78 = arith.extf %77 : vector<128x128xbf16> to vector<128x128xf32>
      %79 = arith.subf %76, %78 : vector<128x128xf32>
      %80 = arith.truncf %79 : vector<128x128xf32> to vector<128x128xbf16>
      %81 = arith.truncf %60 : vector<128x256xf32> to vector<128x256xbf16>
      %82 = arith.extf %81 : vector<128x256xbf16> to vector<128x256xf32>
      %83 = arith.subf %60, %82 : vector<128x256xf32>
      %84 = arith.truncf %83 : vector<128x256xf32> to vector<128x256xbf16>
      %cst_34 = arith.constant dense<0.000000e+00> : vector<128x256xf32>
      %85 = tpu.matmul %77, %81, %cst_34 {dimension_numbers = #tpu.dot_dimension_numbers<[1], [0], [0], [1], [0, 0, 1, 1], [], []>} : vector<128x128xbf16>, vector<128x256xbf16>, vector<128x256xf32> -> vector<128x256xf32>
      %cst_35 = arith.constant dense<0.000000e+00> : vector<128x256xf32>
      %86 = tpu.matmul %80, %81, %cst_35 {dimension_numbers = #tpu.dot_dimension_numbers<[1], [0], [0], [1], [0, 0, 1, 1], [], []>} : vector<128x128xbf16>, vector<128x256xbf16>, vector<128x256xf32> -> vector<128x256xf32>
      %87 = arith.addf %85, %86 : vector<128x256xf32>
      %cst_36 = arith.constant dense<0.000000e+00> : vector<128x256xf32>
      %88 = tpu.matmul %77, %84, %cst_36 {dimension_numbers = #tpu.dot_dimension_numbers<[1], [0], [0], [1], [0, 0, 1, 1], [], []>} : vector<128x128xbf16>, vector<128x256xbf16>, vector<128x256xf32> -> vector<128x256xf32>
      %89 = arith.addf %87, %88 : vector<128x256xf32>
      %c0_37 = arith.constant 0 : index
      %c0_38 = arith.constant 0 : index
      %90 = vector.load %arg5[%c0_37, %c0_38] : memref<128x1xf32, #tpu.memory_space<vmem>>, vector<128x1xf32>
      %91 = vector.broadcast %90 : vector<128x1xf32> to vector<128x256xf32>
      %92 = arith.addf %89, %91 : vector<128x256xf32>
      %c0_39 = arith.constant 0 : index
      %c0_40 = arith.constant 0 : index
      %93 = vector.load %arg12[%c0_39, %c0_40] : memref<128x256xf32, #tpu.memory_space<vmem>>, vector<128x256xf32>
      tpu.vector_store %arg12[%c0_39, %c0_40], %92 {strides = array<i32>} : memref<128x256xf32, #tpu.memory_space<vmem>>, vector<128x256xf32>,
      %cst_41 = arith.constant 0.000000e+00 : f32
      %94 = vector.broadcast %cst_41 : f32 to vector<128x256xf32>
      %c0_42 = arith.constant 0 : index
      %c0_43 = arith.constant 0 : index
      %95 = vector.load %arg13[%c0_42, %c0_43] : memref<128x256xf32, #tpu.memory_space<vmem>>, vector<128x256xf32>
      tpu.vector_store %arg13[%c0_42, %c0_43], %94 {strides = array<i32>} : memref<128x256xf32, #tpu.memory_space<vmem>>, vector<128x256xf32>,
      %cst_44 = arith.constant 0.000000e+00 : f32
      %96 = vector.broadcast %cst_44 : f32 to vector<1x256xf32>
      %c0_45 = arith.constant 0 : index
      %c0_46 = arith.constant 0 : index
      %97 = vector.load %arg14[%c0_45, %c0_46] : memref<1x256xf32, #tpu.memory_space<vmem>>, vector<1x256xf32>
      tpu.vector_store %arg14[%c0_45, %c0_46], %96 {strides = array<i32>} : memref<1x256xf32, #tpu.memory_space<vmem>>, vector<1x256xf32>,
    } else {
    }
    %c128_i32 = arith.constant 128 : i32
    %3 = arith.muli %arg1, %c128_i32 : i32
    %4 = tpu.assume_multiple %3, 128 : i32
    %c0 = arith.constant 0 : index
    %5 = arith.index_cast %4 : i32 to index
    %6 = vector.load %arg11[%c0, %5] : memref<32x256xf32, #tpu.memory_space<vmem>>, vector<32x128xf32>
    %7 = tpu.transpose %6, [1, 0] : vector<32x128xf32> -> vector<128x32xf32>
    %c0_1 = arith.constant 0 : index
    %c0_2 = arith.constant 0 : index
    %8 = vector.load %arg11[%c0_1, %c0_2] : memref<32x256xf32, #tpu.memory_space<vmem>>, vector<32x256xf32>
    %9 = arith.truncf %7 : vector<128x32xf32> to vector<128x32xbf16>
    %10 = arith.extf %9 : vector<128x32xbf16> to vector<128x32xf32>
    %11 = arith.subf %7, %10 : vector<128x32xf32>
    %12 = arith.truncf %11 : vector<128x32xf32> to vector<128x32xbf16>
    %13 = arith.truncf %8 : vector<32x256xf32> to vector<32x256xbf16>
    %14 = arith.extf %13 : vector<32x256xbf16> to vector<32x256xf32>
    %15 = arith.subf %8, %14 : vector<32x256xf32>
    %16 = arith.truncf %15 : vector<32x256xf32> to vector<32x256xbf16>
    %cst = arith.constant dense<0.000000e+00> : vector<128x256xf32>
    %17 = tpu.matmul %9, %13, %cst {dimension_numbers = #tpu.dot_dimension_numbers<[1], [0], [0], [1], [0, 0, 1, 1], [], []>} : vector<128x32xbf16>, vector<32x256xbf16>, vector<128x256xf32> -> vector<128x256xf32>
    %cst_3 = arith.constant dense<0.000000e+00> : vector<128x256xf32>
    %18 = tpu.matmul %12, %13, %cst_3 {dimension_numbers = #tpu.dot_dimension_numbers<[1], [0], [0], [1], [0, 0, 1, 1], [], []>} : vector<128x32xbf16>, vector<32x256xbf16>, vector<128x256xf32> -> vector<128x256xf32>
    %19 = arith.addf %17, %18 : vector<128x256xf32>
    %cst_4 = arith.constant dense<0.000000e+00> : vector<128x256xf32>
    %20 = tpu.matmul %9, %16, %cst_4 {dimension_numbers = #tpu.dot_dimension_numbers<[1], [0], [0], [1], [0, 0, 1, 1], [], []>} : vector<128x32xbf16>, vector<32x256xbf16>, vector<128x256xf32> -> vector<128x256xf32>
    %21 = arith.addf %19, %20 : vector<128x256xf32>
    %cst_5 = arith.constant dense<0xFF800000> : vector<128xf32>
    %22 = vector.multi_reduction <maximumf>, %21, %cst_5 [1] : vector<128x256xf32> to vector<128xf32>
    %23 = vector.shape_cast %22 : vector<128xf32> to vector<128x1xf32>
    %24 = vector.broadcast %23 : vector<128x1xf32> to vector<128x256xf32>
    %25 = arith.subf %21, %24 : vector<128x256xf32>
    %26 = math.exp %25 : vector<128x256xf32>
    %cst_6 = arith.constant dense<0.000000e+00> : vector<128xf32>
    %27 = vector.multi_reduction <add>, %26, %cst_6 [1] : vector<128x256xf32> to vector<128xf32>
    %28 = vector.shape_cast %27 : vector<128xf32> to vector<128x1xf32>
    %cst_7 = arith.constant 1.000000e+00 : f32
    %29 = vector.broadcast %cst_7 : f32 to vector<128x1xf32>
    %30 = arith.divf %29, %28 : vector<128x1xf32>
    %31 = vector.broadcast %30 : vector<128x1xf32> to vector<128x256xf32>
    %32 = arith.mulf %26, %31 : vector<128x256xf32>
    %c0_8 = arith.constant 0 : index
    %c0_9 = arith.constant 0 : index
    %33 = vector.load %arg14[%c0_8, %c0_9] : memref<1x256xf32, #tpu.memory_space<vmem>>, vector<1x256xf32>
    %cst_10 = arith.constant dense<0.000000e+00> : vector<256xf32>
    %34 = vector.multi_reduction <add>, %32, %cst_10 [0] : vector<128x256xf32> to vector<256xf32>
    %35 = vector.shape_cast %34 : vector<256xf32> to vector<1x256xf32>
    %36 = arith.addf %33, %35 : vector<1x256xf32>
    %c0_11 = arith.constant 0 : index
    %c0_12 = arith.constant 0 : index
    %37 = vector.load %arg14[%c0_11, %c0_12] : memref<1x256xf32, #tpu.memory_space<vmem>>, vector<1x256xf32>
    tpu.vector_store %arg14[%c0_11, %c0_12], %36 {strides = array<i32>} : memref<1x256xf32, #tpu.memory_space<vmem>>, vector<1x256xf32>,
    %c0_13 = arith.constant 0 : index
    %c0_14 = arith.constant 0 : index
    %38 = vector.load %arg13[%c0_13, %c0_14] : memref<128x256xf32, #tpu.memory_space<vmem>>, vector<128x256xf32>
    %c0_15 = arith.constant 0 : index
    %39 = arith.index_cast %4 : i32 to index
    %40 = vector.load %arg12[%c0_15, %39] : memref<128x256xf32, #tpu.memory_space<vmem>>, vector<128x128xf32>
    %41 = arith.truncf %40 : vector<128x128xf32> to vector<128x128xbf16>
    %42 = arith.extf %41 : vector<128x128xbf16> to vector<128x128xf32>
    %43 = arith.subf %40, %42 : vector<128x128xf32>
    %44 = arith.truncf %43 : vector<128x128xf32> to vector<128x128xbf16>
    %45 = arith.truncf %32 : vector<128x256xf32> to vector<128x256xbf16>
    %46 = arith.extf %45 : vector<128x256xbf16> to vector<128x256xf32>
    %47 = arith.subf %32, %46 : vector<128x256xf32>
    %48 = arith.truncf %47 : vector<128x256xf32> to vector<128x256xbf16>
    %cst_16 = arith.constant dense<0.000000e+00> : vector<128x256xf32>
    %49 = tpu.matmul %41, %45, %cst_16 {dimension_numbers = #tpu.dot_dimension_numbers<[1], [0], [0], [1], [0, 0, 1, 1], [], []>} : vector<128x128xbf16>, vector<128x256xbf16>, vector<128x256xf32> -> vector<128x256xf32>
    %cst_17 = arith.constant dense<0.000000e+00> : vector<128x256xf32>
    %50 = tpu.matmul %44, %45, %cst_17 {dimension_numbers = #tpu.dot_dimension_numbers<[1], [0], [0], [1], [0, 0, 1, 1], [], []>} : vector<128x128xbf16>, vector<128x256xbf16>, vector<128x256xf32> -> vector<128x256xf32>
    %51 = arith.addf %49, %50 : vector<128x256xf32>
    %cst_18 = arith.constant dense<0.000000e+00> : vector<128x256xf32>
    %52 = tpu.matmul %41, %48, %cst_18 {dimension_numbers = #tpu.dot_dimension_numbers<[1], [0], [0], [1], [0, 0, 1, 1], [], []>} : vector<128x128xbf16>, vector<128x256xbf16>, vector<128x256xf32> -> vector<128x256xf32>
    %53 = arith.addf %51, %52 : vector<128x256xf32>
    %54 = arith.addf %38, %53 : vector<128x256xf32>
    %c0_19 = arith.constant 0 : index
    %c0_20 = arith.constant 0 : index
    %55 = vector.load %arg13[%c0_19, %c0_20] : memref<128x256xf32, #tpu.memory_space<vmem>>, vector<128x256xf32>
    tpu.vector_store %arg13[%c0_19, %c0_20], %54 {strides = array<i32>} : memref<128x256xf32, #tpu.memory_space<vmem>>, vector<128x256xf32>,
    %c1_i32 = arith.constant 1 : i32
    %56 = arith.cmpi eq, %arg1, %c1_i32 : i32
    %57 = arith.extui %56 : i1 to i32
    %c0_i32_21 = arith.constant 0 : i32
    %58 = arith.cmpi ne, %57, %c0_i32_21 : i32
    scf.if %58 {
      %c0_22 = arith.constant 0 : index
      %c0_23 = arith.constant 0 : index
      %c0_24 = arith.constant 0 : index
      %59 = vector.load %arg2[%c0_22, %c0_23, %c0_24] : memref<1x128x256xf32, #tpu.memory_space<vmem>>, vector<1x128x256xf32>
      %60 = vector.shape_cast %59 : vector<1x128x256xf32> to vector<128x256xf32>
      %c0_25 = arith.constant 0 : index
      %c0_26 = arith.constant 0 : index
      %61 = vector.load %arg14[%c0_25, %c0_26] : memref<1x256xf32, #tpu.memory_space<vmem>>, vector<1x256xf32>
      %cst_27 = arith.constant 9.99999971E-10 : f32
      %62 = vector.broadcast %cst_27 : f32 to vector<1x256xf32>
      %63 = arith.addf %62, %61 : vector<1x256xf32>
      %cst_28 = arith.constant 1.000000e+00 : f32
      %64 = vector.broadcast %cst_28 : f32 to vector<1x256xf32>
      %65 = arith.divf %64, %63 : vector<1x256xf32>
      %c0_29 = arith.constant 0 : index
      %c0_30 = arith.constant 0 : index
      %66 = vector.load %arg13[%c0_29, %c0_30] : memref<128x256xf32, #tpu.memory_space<vmem>>, vector<128x256xf32>
      %67 = vector.broadcast %65 : vector<1x256xf32> to vector<128x256xf32>
      %68 = arith.mulf %66, %67 : vector<128x256xf32>
      %69 = arith.subf %60, %68 : vector<128x256xf32>
      %c0_31 = arith.constant 0 : index
      %c0_32 = arith.constant 0 : index
      %70 = vector.load %arg6[%c0_31, %c0_32] : memref<128x128xf32, #tpu.memory_space<vmem>>, vector<128x128xf32>
      %71 = arith.truncf %70 : vector<128x128xf32> to vector<128x128xbf16>
      %72 = arith.extf %71 : vector<128x128xbf16> to vector<128x128xf32>
      %73 = arith.subf %70, %72 : vector<128x128xf32>
      %74 = arith.truncf %73 : vector<128x128xf32> to vector<128x128xbf16>
      %75 = arith.truncf %69 : vector<128x256xf32> to vector<128x256xbf16>
      %76 = arith.extf %75 : vector<128x256xbf16> to vector<128x256xf32>
      %77 = arith.subf %69, %76 : vector<128x256xf32>
      %78 = arith.truncf %77 : vector<128x256xf32> to vector<128x256xbf16>
      %cst_33 = arith.constant dense<0.000000e+00> : vector<128x256xf32>
      %79 = tpu.matmul %71, %75, %cst_33 {dimension_numbers = #tpu.dot_dimension_numbers<[1], [0], [0], [1], [0, 0, 1, 1], [], []>} : vector<128x128xbf16>, vector<128x256xbf16>, vector<128x256xf32> -> vector<128x256xf32>
      %cst_34 = arith.constant dense<0.000000e+00> : vector<128x256xf32>
      %80 = tpu.matmul %74, %75, %cst_34 {dimension_numbers = #tpu.dot_dimension_numbers<[1], [0], [0], [1], [0, 0, 1, 1], [], []>} : vector<128x128xbf16>, vector<128x256xbf16>, vector<128x256xf32> -> vector<128x256xf32>
      %81 = arith.addf %79, %80 : vector<128x256xf32>
      %cst_35 = arith.constant dense<0.000000e+00> : vector<128x256xf32>
      %82 = tpu.matmul %71, %78, %cst_35 {dimension_numbers = #tpu.dot_dimension_numbers<[1], [0], [0], [1], [0, 0, 1, 1], [], []>} : vector<128x128xbf16>, vector<128x256xbf16>, vector<128x256xf32> -> vector<128x256xf32>
      %83 = arith.addf %81, %82 : vector<128x256xf32>
      %c0_36 = arith.constant 0 : index
      %c0_37 = arith.constant 0 : index
      %84 = vector.load %arg7[%c0_36, %c0_37] : memref<128x1xf32, #tpu.memory_space<vmem>>, vector<128x1xf32>
      %85 = vector.broadcast %84 : vector<128x1xf32> to vector<128x256xf32>
      %86 = arith.addf %83, %85 : vector<128x256xf32>
      %c0_38 = arith.constant 0 : index
      %c0_39 = arith.constant 0 : index
      %c0_40 = arith.constant 0 : index
      %87 = vector.load %arg8[%c0_38, %c0_39, %c0_40] : memref<1x128x256xf32, #tpu.memory_space<vmem>>, vector<1x128x256xf32>
      %88 = vector.shape_cast %87 : vector<1x128x256xf32> to vector<128x256xf32>
      %89 = vector.shape_cast %86 : vector<128x256xf32> to vector<1x128x256xf32>
      tpu.vector_store %arg8[%c0_38, %c0_39, %c0_40], %89 {strides = array<i32>} : memref<1x128x256xf32, #tpu.memory_space<vmem>>, vector<1x128x256xf32>,
      %cst_41 = arith.constant dense<0.000000e+00> : vector<128xf32>
      %90 = vector.multi_reduction <add>, %86, %cst_41 [1] : vector<128x256xf32> to vector<128xf32>
      %91 = vector.shape_cast %90 : vector<128xf32> to vector<128x1xf32>
      %c0_42 = arith.constant 0 : index
      %c0_43 = arith.constant 0 : index
      %c0_44 = arith.constant 0 : index
      %92 = vector.load %arg9[%c0_42, %c0_43, %c0_44] : memref<1x128x1xf32, #tpu.memory_space<vmem>>, vector<1x128x1xf32>
      %93 = vector.shape_cast %92 : vector<1x128x1xf32> to vector<128x1xf32>
      %94 = vector.shape_cast %91 : vector<128x1xf32> to vector<1x128x1xf32>
      tpu.vector_store %arg9[%c0_42, %c0_43, %c0_44], %94 {strides = array<i32>} : memref<1x128x1xf32, #tpu.memory_space<vmem>>, vector<1x128x1xf32>,
      %95 = arith.mulf %86, %86 : vector<128x256xf32>
      %cst_45 = arith.constant dense<0.000000e+00> : vector<128xf32>
      %96 = vector.multi_reduction <add>, %95, %cst_45 [1] : vector<128x256xf32> to vector<128xf32>
      %97 = vector.shape_cast %96 : vector<128xf32> to vector<128x1xf32>
      %c0_46 = arith.constant 0 : index
      %c0_47 = arith.constant 0 : index
      %c0_48 = arith.constant 0 : index
      %98 = vector.load %arg10[%c0_46, %c0_47, %c0_48] : memref<1x128x1xf32, #tpu.memory_space<vmem>>, vector<1x128x1xf32>
      %99 = vector.shape_cast %98 : vector<1x128x1xf32> to vector<128x1xf32>
      %100 = vector.shape_cast %97 : vector<128x1xf32> to vector<1x128x1xf32>
      tpu.vector_store %arg10[%c0_46, %c0_47, %c0_48], %100 {strides = array<i32>} : memref<1x128x1xf32, #tpu.memory_space<vmem>>, vector<1x128x1xf32>,
    } else {
    }
    return
  }
  func.func @transform_0(%arg0: i32, %arg1: i32) -> (i32, i32, i32) {
    %c0_i32 = arith.constant 0 : i32
    %c0_i32_0 = arith.constant 0 : i32
    %c0_i32_1 = arith.constant 0 : i32
    return %arg0, %c0_i32, %c0_i32_0 : i32, i32, i32
  }
  func.func @transform_1(%arg0: i32, %arg1: i32) -> (i32, i32) {
    %c0_i32 = arith.constant 0 : i32
    %c0_i32_0 = arith.constant 0 : i32
    %c0_i32_1 = arith.constant 0 : i32
    return %c0_i32, %c0_i32_0 : i32, i32
  }
  func.func @transform_2(%arg0: i32, %arg1: i32) -> (i32, i32) {
    %c0_i32 = arith.constant 0 : i32
    %c0_i32_0 = arith.constant 0 : i32
    %c0_i32_1 = arith.constant 0 : i32
    return %c0_i32, %c0_i32_0 : i32, i32
  }
  func.func @transform_3(%arg0: i32, %arg1: i32) -> (i32, i32) {
    %c0_i32 = arith.constant 0 : i32
    %c0_i32_0 = arith.constant 0 : i32
    %c0_i32_1 = arith.constant 0 : i32
    return %c0_i32, %c0_i32_0 : i32, i32
  }
  func.func @transform_4(%arg0: i32, %arg1: i32) -> (i32, i32) {
    %c0_i32 = arith.constant 0 : i32
    %c0_i32_0 = arith.constant 0 : i32
    %c0_i32_1 = arith.constant 0 : i32
    return %c0_i32, %c0_i32_0 : i32, i32
  }
  func.func @transform_5(%arg0: i32, %arg1: i32) -> (i32, i32) {
    %c0_i32 = arith.constant 0 : i32
    %c0_i32_0 = arith.constant 0 : i32
    %c0_i32_1 = arith.constant 0 : i32
    return %c0_i32, %c0_i32_0 : i32, i32
  }
  func.func @transform_6(%arg0: i32, %arg1: i32) -> (i32, i32, i32) {
    %c0_i32 = arith.constant 0 : i32
    %c0_i32_0 = arith.constant 0 : i32
    %c0_i32_1 = arith.constant 0 : i32
    return %arg0, %c0_i32, %c0_i32_0 : i32, i32, i32
  }
  func.func @transform_7(%arg0: i32, %arg1: i32) -> (i32, i32, i32) {
    %c0_i32 = arith.constant 0 : i32
    %c0_i32_0 = arith.constant 0 : i32
    %c0_i32_1 = arith.constant 0 : i32
    return %arg0, %c0_i32, %c0_i32_0 : i32, i32, i32
  }
  func.func @transform_8(%arg0: i32, %arg1: i32) -> (i32, i32, i32) {
    %c0_i32 = arith.constant 0 : i32
    %c0_i32_0 = arith.constant 0 : i32
    %c0_i32_1 = arith.constant 0 : i32
    return %arg0, %c0_i32, %c0_i32_0 : i32, i32, i32
  }
}

module attributes {stable_mosaic.version = 11 : i64} {
  func.func @_affine_relu_kernel(%arg0: i32, %arg1: i32, %arg2: memref<1x128x256xf32, #tpu.memory_space<vmem>>, %arg3: memref<1x128x256xf32, #tpu.memory_space<vmem>>, %arg4: memref<128x1xf32, #tpu.memory_space<vmem>>, %arg5: memref<128x1xf32, #tpu.memory_space<vmem>>, %arg6: memref<1x128x256xf32, #tpu.memory_space<vmem>>) attributes {dimension_semantics = [#tpu.dimension_semantics<parallel>, #tpu.dimension_semantics<parallel>], iteration_bounds = array<i64: 2, 1>, scalar_prefetch = 0 : i64, scratch_operands = 0 : i64, tpu.core_type = #tpu.core_type<tc>, window_params = [{transform_indices = @transform_0, window_bounds = array<i64: 1, 128, 256>}, {transform_indices = @transform_1, window_bounds = array<i64: 1, 128, 256>}, {pipeline_mode = #tpu.pipeline_mode<synchronous>, transform_indices = @transform_2, window_bounds = array<i64: 128, 1>}, {pipeline_mode = #tpu.pipeline_mode<synchronous>, transform_indices = @transform_3, window_bounds = array<i64: 128, 1>}, {transform_indices = @transform_4, window_bounds = array<i64: 1, 128, 256>}]} {
    %c0 = arith.constant 0 : index
    %c0_0 = arith.constant 0 : index
    %c0_1 = arith.constant 0 : index
    %0 = vector.load %arg3[%c0, %c0_0, %c0_1] : memref<1x128x256xf32, #tpu.memory_space<vmem>>, vector<1x128x256xf32>
    %1 = vector.shape_cast %0 : vector<1x128x256xf32> to vector<128x256xf32>
    %c0_2 = arith.constant 0 : index
    %c0_3 = arith.constant 0 : index
    %2 = vector.load %arg4[%c0_2, %c0_3] : memref<128x1xf32, #tpu.memory_space<vmem>>, vector<128x1xf32>
    %3 = vector.broadcast %2 : vector<128x1xf32> to vector<128x256xf32>
    %4 = arith.mulf %1, %3 : vector<128x256xf32>
    %c0_4 = arith.constant 0 : index
    %c0_5 = arith.constant 0 : index
    %5 = vector.load %arg5[%c0_4, %c0_5] : memref<128x1xf32, #tpu.memory_space<vmem>>, vector<128x1xf32>
    %6 = vector.broadcast %5 : vector<128x1xf32> to vector<128x256xf32>
    %7 = arith.addf %4, %6 : vector<128x256xf32>
    %cst = arith.constant 0.000000e+00 : f32
    %8 = vector.broadcast %cst : f32 to vector<128x256xf32>
    %9 = arith.maximumf %7, %8 : vector<128x256xf32>
    %c0_6 = arith.constant 0 : index
    %c0_7 = arith.constant 0 : index
    %c0_8 = arith.constant 0 : index
    %10 = vector.load %arg2[%c0_6, %c0_7, %c0_8] : memref<1x128x256xf32, #tpu.memory_space<vmem>>, vector<1x128x256xf32>
    %11 = vector.shape_cast %10 : vector<1x128x256xf32> to vector<128x256xf32>
    %12 = arith.addf %9, %11 : vector<128x256xf32>
    %c0_9 = arith.constant 0 : index
    %c0_10 = arith.constant 0 : index
    %c0_11 = arith.constant 0 : index
    %13 = vector.load %arg6[%c0_9, %c0_10, %c0_11] : memref<1x128x256xf32, #tpu.memory_space<vmem>>, vector<1x128x256xf32>
    %14 = vector.shape_cast %13 : vector<1x128x256xf32> to vector<128x256xf32>
    %15 = vector.shape_cast %12 : vector<128x256xf32> to vector<1x128x256xf32>
    tpu.vector_store %arg6[%c0_9, %c0_10, %c0_11], %15 {strides = array<i32>} : memref<1x128x256xf32, #tpu.memory_space<vmem>>, vector<1x128x256xf32>,
    return
  }
  func.func @transform_0(%arg0: i32, %arg1: i32) -> (i32, i32, i32) {
    %c0_i32 = arith.constant 0 : i32
    %c0_i32_0 = arith.constant 0 : i32
    return %arg0, %c0_i32, %arg1 : i32, i32, i32
  }
  func.func @transform_1(%arg0: i32, %arg1: i32) -> (i32, i32, i32) {
    %c0_i32 = arith.constant 0 : i32
    %c0_i32_0 = arith.constant 0 : i32
    return %arg0, %c0_i32, %arg1 : i32, i32, i32
  }
  func.func @transform_2(%arg0: i32, %arg1: i32) -> (i32, i32) {
    %c0_i32 = arith.constant 0 : i32
    %c0_i32_0 = arith.constant 0 : i32
    %c0_i32_1 = arith.constant 0 : i32
    return %c0_i32, %c0_i32_0 : i32, i32
  }
  func.func @transform_3(%arg0: i32, %arg1: i32) -> (i32, i32) {
    %c0_i32 = arith.constant 0 : i32
    %c0_i32_0 = arith.constant 0 : i32
    %c0_i32_1 = arith.constant 0 : i32
    return %c0_i32, %c0_i32_0 : i32, i32
  }
  func.func @transform_4(%arg0: i32, %arg1: i32) -> (i32, i32, i32) {
    %c0_i32 = arith.constant 0 : i32
    %c0_i32_0 = arith.constant 0 : i32
    return %arg0, %c0_i32, %arg1 : i32, i32, i32
  }
}

</mosaic_0001>

<bundles_post_ra>
// kernel: point_transformer_last.13
= control target key start
LH: loop header
LB: loop body
LE: loop exit
PB: predicated region body
PF: predicated region fallthrough
CT: control target
= control target key end

     0   :  { %s735_s12 = smov 0   ;;  %s737_s13 = smov 0   ;;  %s1041_s0 = inlined_call_operand.vmem [shape: f32[2,128,256], index: 0, kind: input, shape index: {}, may-alias: {0,3}]   ;;  %s1042_s1 = inlined_call_operand.vmem [shape: f32[128,1], index: 1, kind: input, shape index: {}]   ;;  %s1043_s2 = inlined_call_operand.vmem [shape: f32[128,1], index: 2, kind: input, shape index: {}]   ;;  %s1044_s3 = inlined_call_operand.vmem [shape: f32[2,128,256], index: 3, kind: output, shape index: {}, may-alias: {0,3}]  }
   0x1   :  { %s739_s14 = smov 0  }
   0x2 LB: > { %s25_s15 = sadd.s32 1, %s708_s13  ;;  %p653_p0 = scmp.ge.s32.totalorder %s712_s14, 1  ;;  %s712_s14 = sphi %s739_s14, %s13_s14   ;;  %s708_s13 = sphi %s737_s13, %s1046_s13   ;;  %s704_s12 = sphi %s735_s12, %s1045_s12  }
   0x3   : > { %p27_p1 = scmp.ge.s32.totalorder %s25_s15, 2  ;;  %p158_p2 = scmp.lt.s32.totalorder %s712_s14, 3 }
   0x5   : > { %s1048_s15 = smov (%p27_p1, %s25_s15), 0  ;;  %p159_p3 = pnand %p653_p0, %p158_p2 }
   0x6   : > { %p191_p4 = scmp.lt.s32.totalorder (!%p159_p3), %s704_s12, 1 }
   0x7   : > { %162 = sbr.rel (%p159_p3) target bundleno = 218 (0xda), region = 32 }
   0xc   : > { %v246_v0 = vld [vmem:[%s1042_s1 + $0x20] sm:$0xff]  ;;  %v244_v1 = vld [vmem:[%s1042_s1 + $0x10] sm:$0xff]  ;;  %v714_v3 = vmov 0   ;;  %v247_v4 = vld [vmem:[%s1042_s1 + $0x28] sm:$0xff]  ;;  %s1050_s12 = smov (!%p191_p4, %s704_s12), 1 }
   0xd   : > { %v242_v2 = vld [vmem:[%s1042_s1] sm:$0xff]  ;;  %689 = vset.pattern.permute.xlu2 %v714_v3  ;;  %688 = vset.pattern.permute.xlu1 %v714_v3  ;;  %v245_v5 = vld [vmem:[%s1042_s1 + $0x18] sm:$0xff]  ;;  %v243_v6 = vld [vmem:[%s1042_s1 + $0x8] sm:$0xff]  ;;  %s660_s7 = sshll.u32 %s1050_s12, 8 }
   0xe   : > { %687 = vset.pattern.permute.xlu0 %v714_v3  ;;  %280 = vperm.xlu2 %689, %v246_v0   ;;  %v250_v7 = vld [vmem:[%s1042_s1 + $0x40] sm:$0xff]  ;;  %v249_v8 = vld [vmem:[%s1042_s1 + $0x38] sm:$0xff]  ;;  %v248_v9 = vld [vmem:[%s1042_s1 + $0x30] sm:$0xff]  ;;  %s875_s10 = scalar_lea.vmem %s1041_s0, %s660_s7  ;;  %s933_s17 = scalar_lea.vmem %s1044_s3, %s660_s7 }
   0xf   : > { %270 = vperm.xlu1 %688, %v244_v1   ;;  %260 = vperm.xlu0 %687, %v242_v2   ;;  %v253_v10 = vld [vmem:[%s1042_s1 + $0x58] sm:$0xff]  ;;  %v252_v11 = vld [vmem:[%s1042_s1 + $0x50] sm:$0xff]  ;;  %v251_v12 = vld [vmem:[%s1042_s1 + $0x48] sm:$0xff] }
  0x10   : > { %v256_v13 = vld [vmem:[%s1042_s1 + $0x70] sm:$0xff]  ;;  %v255_v14 = vld [vmem:[%s1042_s1 + $0x68] sm:$0xff]  ;;  %v254_v15 = vld [vmem:[%s1042_s1 + $0x60] sm:$0xff] }
  0x11   : > { %v371_v16 = vld [vmem:[%s1043_s2 + $0x8] sm:$0xff]  ;;  %v370_v17 = vld [vmem:[%s1043_s2] sm:$0xff]  ;;  %v257_v18 = vld [vmem:[%s1042_s1 + $0x78] sm:$0xff] }
  0x12   : > { %v374_v19 = vld [vmem:[%s1043_s2 + $0x20] sm:$0xff]  ;;  %v373_v20 = vld [vmem:[%s1043_s2 + $0x18] sm:$0xff]  ;;  %v372_v21 = vld [vmem:[%s1043_s2 + $0x10] sm:$0xff] }
  0x13   : > { %v377_v22 = vld [vmem:[%s1043_s2 + $0x38] sm:$0xff]  ;;  %v376_v23 = vld [vmem:[%s1043_s2 + $0x30] sm:$0xff]  ;;  %v375_v24 = vld [vmem:[%s1043_s2 + $0x28] sm:$0xff] }
  0x14   : > { %v380_v25 = vld [vmem:[%s1043_s2 + $0x50] sm:$0xff]  ;;  %v379_v26 = vld [vmem:[%s1043_s2 + $0x48] sm:$0xff]  ;;  %v378_v27 = vld [vmem:[%s1043_s2 + $0x40] sm:$0xff] }
  0x15   : > { %v383_v28 = vld [vmem:[%s1043_s2 + $0x68] sm:$0xff]  ;;  %v382_v29 = vld [vmem:[%s1043_s2 + $0x60] sm:$0xff]  ;;  %v381_v30 = vld [vmem:[%s1043_s2 + $0x58] sm:$0xff] }
  0x16   : > { %285 = vperm.xlu2 %689, %v247_v4   ;;  %v385_v31 = vld [vmem:[%s1043_s2 + $0x78] sm:$0xff]  ;;  %v384_v32 = vld [vmem:[%s1043_s2 + $0x70] sm:$0xff]  ;;  %v230_v47 = vld [vmem:[%s875_s10 + $0xa0] sm:$0xff] }
  0x17   : > { %275 = vperm.xlu1 %688, %v245_v5   ;;  %265 = vperm.xlu0 %687, %v243_v6   ;;  %v212_v42 = vld [vmem:[%s875_s10 + $0x10] sm:$0xff]  ;;  %v213_v43 = vld [vmem:[%s875_s10 + $0x18] sm:$0xff]  ;;  %v231_v48 = vld [vmem:[%s875_s10 + $0xa8] sm:$0xff] }
  0x18   : > { %v882_v49 = vld [vmem:[%s875_s10 + $0x90] sm:$0xff]  ;;  %v885_v50 = vld [vmem:[%s875_s10 + $0x98] sm:$0xff]  ;;  %v896_v57 = vld [vmem:[%s875_s10 + $0xc0] sm:$0xff] }
  0x19   : > { %v890_v55 = vld [vmem:[%s875_s10 + $0xd0] sm:$0xff]  ;;  %v893_v56 = vld [vmem:[%s875_s10 + $0xd8] sm:$0xff]  ;;  %v218_v58 = vld [vmem:[%s875_s10 + $0x40] sm:$0xff] }
  0x1a   : > { %v219_v59 = vld [vmem:[%s875_s10 + $0x48] sm:$0xff]  ;;  %v901_v60 = vld [vmem:[%s875_s10 + $0x50] sm:$0xff]  ;;  %v904_v61 = vld [vmem:[%s875_s10 + $0x58] sm:$0xff] }
  0x1b   : > { %v907_v62 = vld [vmem:[%s875_s10 + $0x80] sm:$0xff]  ;;  %v910_v63 = vld [vmem:[%s875_s10 + $0x88] sm:$0xff]  ;;  %v913_v0 = vld [vmem:[%s875_s10 + $0xb0] sm:$0xff] }
  0x1c   : > { %v916_v1 = vld [vmem:[%s875_s10 + $0xb8] sm:$0xff]  ;;  %v214_v2 = vld [vmem:[%s875_s10 + $0x20] sm:$0xff]  ;;  %v215_v3 = vld [vmem:[%s875_s10 + $0x28] sm:$0xff] }
  0x1d   : > { %v210_v4 = vld [vmem:[%s875_s10] sm:$0xff]  ;;  %v211_v5 = vld [vmem:[%s875_s10 + $0x8] sm:$0xff] }
  0x1e   : > { %300 = vperm.xlu2 %689, %v250_v7   ;;  %v923_v6 = vld [vmem:[%s875_s10 + $0xe0] sm:$0xff]  ;;  %v926_v7 = vld [vmem:[%s875_s10 + $0xe8] sm:$0xff] }
  0x1f   : > { %295 = vperm.xlu1 %688, %v249_v8   ;;  %290 = vperm.xlu0 %687, %v248_v9   ;;  %v936_v8 = vld [vmem:[%s875_s10 + $0xc8] sm:$0xff]  ;;  %v939_v9 = vld [vmem:[%s875_s10 + $0xf0] sm:$0xff] }
  0x26   : > { %315 = vperm.xlu2 %689, %v253_v10   ;;  %v942_v10 = vld [vmem:[%s875_s10 + $0xf8] sm:$0xff] }
  0x27   : > { %310 = vperm.xlu1 %688, %v252_v11   ;;  %305 = vperm.xlu0 %687, %v251_v12   ;;  %v216_v11 = vld [vmem:[%s875_s10 + $0x30] sm:$0xff]  ;;  %v217_v12 = vld [vmem:[%s875_s10 + $0x38] sm:$0xff] }
  0x2e   : > { %330 = vperm.xlu2 %689, %v256_v13  }
  0x2f   : > { %325 = vperm.xlu1 %688, %v255_v14   ;;  %320 = vperm.xlu0 %687, %v254_v15   ;;  %v224_v15 = vld [vmem:[%s875_s10 + $0x70] sm:$0xff] }
  0x36   : > { %393 = vperm.xlu2 %689, %v371_v16   ;;  %v225_v16 = vld [vmem:[%s875_s10 + $0x78] sm:$0xff] }
  0x37   : > { %388 = vperm.xlu1 %688, %v370_v17   ;;  %335 = vperm.xlu0 %687, %v257_v18   ;;  %v949_v17 = vld [vmem:[%s875_s10 + $0x60] sm:$0xff]  ;;  %v952_v18 = vld [vmem:[%s875_s10 + $0x68] sm:$0xff] }
  0x3e   : > { %408 = vperm.xlu2 %689, %v374_v19  }
  0x3f   : > { %403 = vperm.xlu1 %688, %v373_v20   ;;  %398 = vperm.xlu0 %687, %v372_v21  }
  0x46   : > { %423 = vperm.xlu2 %689, %v377_v22  }
  0x47   : > { %418 = vperm.xlu1 %688, %v376_v23   ;;  %413 = vperm.xlu0 %687, %v375_v24  }
  0x4e   : > { %438 = vperm.xlu2 %689, %v380_v25  }
  0x4f   : > { %433 = vperm.xlu1 %688, %v379_v26   ;;  %428 = vperm.xlu0 %687, %v378_v27  }
  0x56   : > { %453 = vperm.xlu2 %689, %v383_v28  }
  0x57   : > { %448 = vperm.xlu1 %688, %v382_v29   ;;  %443 = vperm.xlu0 %687, %v381_v30  }
  0x5f   : > { %463 = vperm.xlu1 %688, %v385_v31   ;;  %458 = vperm.xlu0 %687, %v384_v32  }
  0x68   : > { %v281_v33 = vpop.permute.xlu2 %280 }
  0x69   : > { %v346_v19 = vmul.f32 %v281_v33, %v218_v58  ;;  %v347_v20 = vmul.f32 %v281_v33, %v219_v59 }
  0x70   : > { %v851_v34 = vpop.permute.xlu2 %285 }
  0x78   : > { %v853_v35 = vpop.permute.xlu2 %300 }
  0x80   : > { %v856_v36 = vpop.permute.xlu2 %315 }
  0x81   : > { %v858_v37 = vpop.permute.xlu1 %270  ;;  %v860_v38 = vpop.permute.xlu0 %260 }
  0x88   : > { %v866_v39 = vpop.permute.xlu2 %330 }
  0x89   : > { %v868_v40 = vpop.permute.xlu1 %275  ;;  %v266_v41 = vpop.permute.xlu0 %265 }
  0x8a   : > { %v340_v44 = vmul.f32 %v266_v41, %v212_v42  ;;  %v341_v45 = vmul.f32 %v266_v41, %v213_v43 }
  0x90   : > { %v394_v46 = vpop.permute.xlu2 %393 }
  0x91   : > { %v468_v51 = vadd.f32 %v394_v46, %v340_v44  ;;  %v469_v52 = vadd.f32 %v394_v46, %v341_v45  ;;  %v296_v53 = vpop.permute.xlu1 %295  ;;  %v887_v54 = vpop.permute.xlu0 %290  ;;  %v338_v46 = vmul.f32 %v860_v38, %v210_v4  ;;  %v342_v4 = vmul.f32 %v858_v37, %v214_v2 }
  0x92   : > { %v352_v28 = vmul.f32 %v296_v53, %v224_v15  ;;  %v353_v29 = vmul.f32 %v296_v53, %v225_v16 }
  0x93   : > { %v500_v13 = vmax.f32 %v468_v51, 0.0  ;;  %v501_v14 = vmax.f32 %v469_v52, 0.0  ;;  %v339_v51 = vmul.f32 %v860_v38, %v211_v5  ;;  %v343_v5 = vmul.f32 %v858_v37, %v215_v3 }
  0x95   : > { %532 = vst [vmem:[%s933_s17 + $0x10] sm:$0xff] %v500_v13 }
  0x96   : > { %533 = vst [vmem:[%s933_s17 + $0x18] sm:$0xff] %v501_v14 }
  0x98   : > { %v409_v21 = vpop.permute.xlu2 %408 }
  0x99   : > { %v474_v22 = vadd.f32 %v409_v21, %v346_v19  ;;  %v475_v23 = vadd.f32 %v409_v21, %v347_v20  ;;  %v311_v24 = vpop.permute.xlu1 %310  ;;  %v956_v25 = vpop.permute.xlu0 %305  ;;  %v344_v21 = vmul.f32 %v868_v40, %v216_v11 }
  0x9a   : > { %v358_v44 = vmul.f32 %v311_v24, %v230_v47  ;;  %v359_v45 = vmul.f32 %v311_v24, %v231_v48 }
  0x9b   : > { %v506_v26 = vmax.f32 %v474_v22, 0.0  ;;  %v507_v27 = vmax.f32 %v475_v23, 0.0  ;;  %v345_v22 = vmul.f32 %v868_v40, %v217_v12 }
  0x9d   : > { %538 = vst [vmem:[%s933_s17 + $0x40] sm:$0xff] %v506_v26 }
  0x9e   : > { %539 = vst [vmem:[%s933_s17 + $0x48] sm:$0xff] %v507_v27 }
  0xa0   : > { %v424_v30 = vpop.permute.xlu2 %423 }
  0xa1   : > { %v480_v31 = vadd.f32 %v424_v30, %v352_v28  ;;  %v481_v32 = vadd.f32 %v424_v30, %v353_v29  ;;  %v326_v41 = vpop.permute.xlu1 %325  ;;  %v960_v42 = vpop.permute.xlu0 %320 }
  0xa2   : > { %v364_v48 = vmul.f32 %v326_v41, %v890_v55  ;;  %v365_v38 = vmul.f32 %v326_v41, %v893_v56  ;;  %v350_v41 = vmul.f32 %v887_v54, %v949_v17  ;;  %v355_v17 = vmul.f32 %v853_v35, %v910_v63 }
  0xa3   : > { %v512_v33 = vmax.f32 %v480_v31, 0.0  ;;  %v513_v43 = vmax.f32 %v481_v32, 0.0  ;;  %v348_v31 = vmul.f32 %v851_v34, %v901_v60  ;;  %v349_v32 = vmul.f32 %v851_v34, %v904_v61 }
  0xa5   : > { %544 = vst [vmem:[%s933_s17 + $0x70] sm:$0xff] %v512_v33  ;;  %v351_v33 = vmul.f32 %v887_v54, %v952_v18  ;;  %v354_v54 = vmul.f32 %v853_v35, %v907_v62  ;;  %v356_v18 = vmul.f32 %v956_v25, %v882_v49  ;;  %v360_v49 = vmul.f32 %v856_v36, %v913_v0 }
  0xa6   : > { %545 = vst [vmem:[%s933_s17 + $0x78] sm:$0xff] %v513_v43 }
  0xa8   : > { %v439_v52 = vpop.permute.xlu2 %438 }
  0xa9   : > { %v486_v53 = vadd.f32 %v439_v52, %v358_v44  ;;  %v487_v58 = vadd.f32 %v439_v52, %v359_v45  ;;  %v389_v59 = vpop.permute.xlu1 %388  ;;  %v966_v13 = vpop.permute.xlu0 %335 }
  0xaa   : > { %v466_v14 = vadd.f32 %v389_v59, %v338_v46  ;;  %v467_v15 = vadd.f32 %v389_v59, %v339_v51 }
  0xab   : > { %v518_v16 = vmax.f32 %v486_v53, 0.0  ;;  %v519_v19 = vmax.f32 %v487_v58, 0.0  ;;  %v357_v58 = vmul.f32 %v956_v25, %v885_v50  ;;  %v361_v50 = vmul.f32 %v856_v36, %v916_v1 }
  0xac   : > { %v498_v20 = vmax.f32 %v466_v14, 0.0  ;;  %v499_v47 = vmax.f32 %v467_v15, 0.0  ;;  %v362_v25 = vmul.f32 %v960_v42, %v896_v57  ;;  %v366_v57 = vmul.f32 %v866_v39, %v923_v6 }
  0xad   : > { %550 = vst [vmem:[%s933_s17 + $0xa0] sm:$0xff] %v518_v16 }
  0xae   : > { %530 = vst [vmem:[%s933_s17] sm:$0xff] %v498_v20 }
  0xaf   : > { %531 = vst [vmem:[%s933_s17 + $0x8] sm:$0xff] %v499_v47 }
  0xb0   : > { %551 = vst [vmem:[%s933_s17 + $0xa8] sm:$0xff] %v519_v19  ;;  %v454_v23 = vpop.permute.xlu2 %453 }
  0xb1   : > { %v492_v24 = vadd.f32 %v454_v23, %v364_v48  ;;  %v493_v26 = vadd.f32 %v454_v23, %v365_v38  ;;  %v404_v27 = vpop.permute.xlu1 %403  ;;  %v399_v55 = vpop.permute.xlu0 %398  ;;  %v363_v48 = vmul.f32 %v960_v42, %v936_v8  ;;  %v367_v8 = vmul.f32 %v866_v39, %v926_v7 }
  0xb2   : > { %v472_v28 = vadd.f32 %v404_v27, %v344_v21  ;;  %v473_v56 = vadd.f32 %v404_v27, %v345_v22  ;;  %v470_v29 = vadd.f32 %v399_v55, %v342_v4  ;;  %v471_v2 = vadd.f32 %v399_v55, %v343_v5 }
  0xb3   : > { %v524_v37 = vmax.f32 %v492_v24, 0.0  ;;  %v525_v3 = vmax.f32 %v493_v26, 0.0  ;;  %v368_v42 = vmul.f32 %v966_v13, %v939_v9  ;;  %v369_v26 = vmul.f32 %v966_v13, %v942_v10 }
  0xb4   : > { %v504_v11 = vmax.f32 %v472_v28, 0.0  ;;  %v505_v30 = vmax.f32 %v473_v56, 0.0  ;;  %v502_v40 = vmax.f32 %v470_v29, 0.0  ;;  %v503_v12 = vmax.f32 %v471_v2, 0.0 }
  0xb5   : > { %556 = vst [vmem:[%s933_s17 + $0xd0] sm:$0xff] %v524_v37 }
  0xb6   : > { %557 = vst [vmem:[%s933_s17 + $0xd8] sm:$0xff] %v525_v3 }
  0xb7   : > { %536 = vst [vmem:[%s933_s17 + $0x30] sm:$0xff] %v504_v11 }
  0xb8   : > { %537 = vst [vmem:[%s933_s17 + $0x38] sm:$0xff] %v505_v30 }
  0xb9   : > { %534 = vst [vmem:[%s933_s17 + $0x20] sm:$0xff] %v502_v40  ;;  %v419_v43 = vpop.permute.xlu1 %418  ;;  %v414_v44 = vpop.permute.xlu0 %413 }
  0xba   : > { %535 = vst [vmem:[%s933_s17 + $0x28] sm:$0xff] %v503_v12  ;;  %v478_v45 = vadd.f32 %v419_v43, %v350_v41  ;;  %v479_v60 = vadd.f32 %v419_v43, %v351_v33  ;;  %v476_v46 = vadd.f32 %v414_v44, %v348_v31  ;;  %v477_v51 = vadd.f32 %v414_v44, %v349_v32 }
  0xbc   : > { %v510_v34 = vmax.f32 %v478_v45, 0.0  ;;  %v511_v61 = vmax.f32 %v479_v60, 0.0  ;;  %v508_v52 = vmax.f32 %v476_v46, 0.0  ;;  %v509_v53 = vmax.f32 %v477_v51, 0.0 }
  0xbe   : > { %542 = vst [vmem:[%s933_s17 + $0x60] sm:$0xff] %v510_v34 }
  0xbf   : > { %543 = vst [vmem:[%s933_s17 + $0x68] sm:$0xff] %v511_v61 }
  0xc0   : > { %540 = vst [vmem:[%s933_s17 + $0x50] sm:$0xff] %v508_v52 }
  0xc1   : > { %541 = vst [vmem:[%s933_s17 + $0x58] sm:$0xff] %v509_v53  ;;  %v434_v59 = vpop.permute.xlu1 %433  ;;  %v429_v14 = vpop.permute.xlu0 %428 }
  0xc2   : > { %v484_v15 = vadd.f32 %v434_v59, %v356_v18  ;;  %v485_v16 = vadd.f32 %v434_v59, %v357_v58  ;;  %v482_v62 = vadd.f32 %v429_v14, %v354_v54  ;;  %v483_v19 = vadd.f32 %v429_v14, %v355_v17 }
  0xc4   : > { %v516_v20 = vmax.f32 %v484_v15, 0.0  ;;  %v517_v47 = vmax.f32 %v485_v16, 0.0  ;;  %v514_v35 = vmax.f32 %v482_v62, 0.0  ;;  %v515_v63 = vmax.f32 %v483_v19, 0.0 }
  0xc6   : > { %548 = vst [vmem:[%s933_s17 + $0x90] sm:$0xff] %v516_v20 }
  0xc7   : > { %549 = vst [vmem:[%s933_s17 + $0x98] sm:$0xff] %v517_v47 }
  0xc8   : > { %546 = vst [vmem:[%s933_s17 + $0x80] sm:$0xff] %v514_v35 }
  0xc9   : > { %547 = vst [vmem:[%s933_s17 + $0x88] sm:$0xff] %v515_v63  ;;  %v449_v38 = vpop.permute.xlu1 %448  ;;  %v444_v4 = vpop.permute.xlu0 %443 }
  0xca   : > { %v490_v5 = vadd.f32 %v449_v38, %v362_v25  ;;  %v491_v21 = vadd.f32 %v449_v38, %v363_v48  ;;  %v488_v0 = vadd.f32 %v444_v4, %v360_v49  ;;  %v489_v22 = vadd.f32 %v444_v4, %v361_v50 }
  0xcc   : > { %v522_v23 = vmax.f32 %v490_v5, 0.0  ;;  %v523_v24 = vmax.f32 %v491_v21, 0.0  ;;  %v520_v36 = vmax.f32 %v488_v0, 0.0  ;;  %v521_v1 = vmax.f32 %v489_v22, 0.0 }
  0xce   : > { %554 = vst [vmem:[%s933_s17 + $0xc0] sm:$0xff] %v522_v23 }
  0xcf   : > { %555 = vst [vmem:[%s933_s17 + $0xc8] sm:$0xff] %v523_v24 }
  0xd0   : > { %552 = vst [vmem:[%s933_s17 + $0xb0] sm:$0xff] %v520_v36 }
  0xd1   : > { %553 = vst [vmem:[%s933_s17 + $0xb8] sm:$0xff] %v521_v1  ;;  %v464_v27 = vpop.permute.xlu1 %463  ;;  %v459_v55 = vpop.permute.xlu0 %458 }
  0xd2   : > { %v496_v28 = vadd.f32 %v464_v27, %v368_v42  ;;  %v497_v56 = vadd.f32 %v464_v27, %v369_v26  ;;  %v494_v6 = vadd.f32 %v459_v55, %v366_v57  ;;  %v495_v29 = vadd.f32 %v459_v55, %v367_v8 }
  0xd4   : > { %v528_v2 = vmax.f32 %v496_v28, 0.0  ;;  %v529_v37 = vmax.f32 %v497_v56, 0.0  ;;  %v526_v39 = vmax.f32 %v494_v6, 0.0  ;;  %v527_v7 = vmax.f32 %v495_v29, 0.0 }
  0xd6   : > { %560 = vst [vmem:[%s933_s17 + $0xf0] sm:$0xff] %v528_v2 }
  0xd7   : > { %561 = vst [vmem:[%s933_s17 + $0xf8] sm:$0xff] %v529_v37 }
  0xd8   : > { %558 = vst [vmem:[%s933_s17 + $0xe0] sm:$0xff] %v526_v39 }
  0xd9   : > { %559 = vst [vmem:[%s933_s17 + $0xe8] sm:$0xff] %v527_v7 }
  0xda PF: > { %s13_s14 = sadd.s32 1, %s712_s14   ;;  %s1045_s12 = smov %s708_s13 }
  0xdb   : > { %p10_p5 = scmp.ge.s32.totalorder %s13_s14, 4   ;;  %s1046_s13 = smov %s1048_s15 }
  0xdd   :  { %12 = sbr.rel (!%p10_p5) target bundleno = 2 (0x2), region = 62 }

// kernel: point_transformer_last.12
= control target key start
LH: loop header
LB: loop body
LE: loop exit
PB: predicated region body
PF: predicated region fallthrough
CT: control target
= control target key end

     0   :  { %10 = vsyncpa [#allocation5], 0  ;;  %s2492_s0 = inlined_call_operand.hbm [shape: f32[2,128,256], index: 0, kind: input, shape index: {}]   ;;  %s2493_s1 = inlined_call_operand.vmem [shape: f32[128,128], index: 1, kind: input, shape index: {}]   ;;  %s2494_s2 = inlined_call_operand.vmem [shape: f32[2,128,256], index: 2, kind: output, shape index: {0}]   ;;  %s2495_s3 = inlined_call_operand.vmem [shape: f32[2,128,1], index: 3, kind: output, shape index: {1}]   ;;  %s2496_s4 = inlined_call_operand.vmem [shape: f32[2,128,1], index: 4, kind: output, shape index: {2}]  }
   0x1   :  { %12 = vsyncpa [#allocation5 + $0x1], 0  ;;  %s1654_s15 = smov 0   ;;  %s1656_s16 = smov 0  }
   0x2   :  { %s1658_s17 = smov 0   ;;  %s1660_s18 = smov 0  }
   0x3   :  { %s1662_s19 = smov 0   ;;  %s1664_s20 = smov 0  }
   0x4 LB: > { %s1449_s21 = sadd.s32 4294967295, %s1624_s20   ;;  %s30_s22 = sadd.s32 1, %s1620_s19  ;;  %s1624_s20 = sphi %s1664_s20, %s18_s20   ;;  %s1620_s19 = sphi %s1662_s19, %s2582_s19   ;;  %s1616_s18 = sphi %s1660_s18, %s2581_s18   ;;  %s1612_s17 = sphi %s1658_s17, %s2580_s17   ;;  %s1608_s16 = sphi %s1656_s16, %s2579_s16   ;;  %s1604_s15 = sphi %s1654_s15, %s2578_s15  }
   0x5   : > { %p32_p0 = scmp.ge.s32.totalorder %s30_s22, 2  ;;  %s39_s23 = sadd.s32 1, %s1612_s17 }
   0x6   : > { %p46_p1 = scmp.ne.s32.totalorder %s1612_s17, %s1608_s16  ;;  %p47_p2 = scmp.eq.s32.totalorder %s1624_s20, 0 }
   0x7   : > { %s2584_s22 = smov (%p32_p0, %s30_s22), 0  ;;  %p52_p4 = scmp.ne.s32.totalorder %s1608_s16, %s1604_s15 }
   0x8   : > { %p1690_p3 = por %p47_p2, %p46_p1  ;;  %s34_s25 = ssub.s32 %s1620_s19, %s2584_s22 }
   0x9   : > { %p53_p5 = scmp.eq.s32.totalorder %s1449_s21, 0  ;;  %p37_p6 = scmp.eq.s32.totalorder %s34_s25, 0 }
   0xa   : > { %p1492_p8 = scmp.lt.s32.totalorder %s1624_s20, 2  ;;  %s180_s28 = sand.u32 1, %s1612_s17  }
   0xb   : > { %p1697_p7 = por %p53_p5, %p52_p4  ;;  %s1466_s29 = sshll.u32 %s1620_s19, 8 }
   0xc   : > { %s1703_s27 = scalar_select %p37_p6, %s1612_s17, %s39_s23  }
   0xd   : > { %s1453_s30 = sshll.u32 %s180_s28, 8  ;;  %s191_s7 = scalar_lea.hbm %s2492_s0, %s1466_s29 }
   0xe   : > { %s192_s8 = sshll.u32 %s191_s7, 4  ;;  %s184_s9 = scalar_lea.vmem [#allocation4], %s1453_s30  ;;  %s193_s8 = int_to_ptr.hbm [resolvable:$true] %s192_s8 }
   0xf   : > { %s194_s10 = sshll.u32 %s184_s9, 4  ;;  %p1489_p9 = pnand %p1492_p8, %p1690_p3  ;;  %s195_s10 = int_to_ptr.vmem [resolvable:$true] %s194_s10 }
  0x10   : > { %p1456_p10 = scmp.ge.s32.totalorder %s1624_s20, 1  ;;  %p202_p11 = scmp.lt.s32.totalorder %s1624_s20, 3 }
  0x11   : > { %s181_s11 = scalar_lea.sflag [#allocation5], %s180_s28  ;;  %s1626_s12 = smov 256  }
  0x12   : > { %s1627_s13 = smov 16   ;;  %p203_p12 = pnand %p1456_p10, %p202_p11 }
  0x13   : > { %1491 = dma.hbm_to_vmem [thread:$0]  (!%p1489_p9), %s193_s8, 4096, %s195_s10, %s181_s11, %s1626_s12, %s1626_s12, %s1627_s13  }
  0x14   : > { %206 = sbr.rel (%p203_p12) target bundleno = 528 (0x210), region = 28 }
  0x19   : > { %s208_s14 = sand.u32 1, %s1608_s16  }
  0x1a   : > { %s1457_s15 = sshll.u32 %s208_s14, 8  ;;  %s209_s21 = scalar_lea.sflag [#allocation5], %s208_s14 }
  0x1b   : > { %s1715_s23 = scalar_lea.vmem [#allocation4], %s1457_s15 }
  0x1c   : > { %1599 = dma.done.wait (%p1697_p7), %s209_s21, 4096  }
  0x1d   : > { %1601 = vsyncadd (%p1697_p7), %s209_s21, 4294963200  ;;  %v1722_v0 = vld [vmem:[%s1715_s23 + $0xe0] sm:$0xff]  ;;  %v1725_v1 = vld [vmem:[%s1715_s23 + $0xe8] sm:$0xff]  ;;  %p254_p13 = scmp.lt.s32.totalorder %s1616_s18, 1  ;;  %vm277_vm0 = vcmask 7168  }
  0x1e   : > { %v1728_v2 = vld [vmem:[%s1715_s23 + $0xf0] sm:$0xff]  ;;  %v1731_v3 = vld [vmem:[%s1715_s23 + $0xf8] sm:$0xff]  ;;  %v1735_v4 = vpack.c.bf16 %v1725_v1, %v1722_v0  ;;  %v1738_v5 = vld [vmem:[%s1715_s23 + $0xc0] sm:$0xff] }
  0x1f   : > { %v1741_v6 = vld [vmem:[%s1715_s23 + $0xc8] sm:$0xff]  ;;  %v1745_v7 = vpack.c.bf16 %v1731_v3, %v1728_v2  ;;  %v1748_v8 = vld [vmem:[%s1715_s23 + $0xd0] sm:$0xff]  ;;  %v1751_v9 = vld [vmem:[%s1715_s23 + $0xd8] sm:$0xff]  ;;  %s2586_s18 = smov (!%p254_p13, %s1616_s18), 1 }
  0x20   : > { %v1755_v10 = vpack.c.bf16 %v1741_v6, %v1738_v5  ;;  %v1758_v11 = vld [vmem:[%s1715_s23 + $0xa0] sm:$0xff]  ;;  %v554_v12 = vunpack.c.l.b16 %v1735_v4  ;;  %v555_v13 = vunpack.c.h.b16 %v1735_v4  ;;  %v1764_v14 = vpack.c.bf16 %v1751_v9, %v1748_v8  ;;  %v1767_v15 = vld [vmem:[%s1715_s23 + $0xa8] sm:$0xff]  ;;  %v1770_v16 = vld [vmem:[%s1715_s23 + $0xb0] sm:$0xff]  ;;  %s1467_s12 = sshll.u32 %s2586_s18, 8  ;;  %s1468_s21 = sshll.u32 %s2586_s18, 7 }
  0x21   : > { %v1773_v17 = vld [vmem:[%s1715_s23 + $0xb8] sm:$0xff]  ;;  %v556_v18 = vunpack.c.l.b16 %v1745_v7  ;;  %v557_v19 = vunpack.c.h.b16 %v1745_v7  ;;  %v1780_v22 = vld [vmem:[%s1715_s23 + $0x80] sm:$0xff]  ;;  %v1783_v23 = vld [vmem:[%s1715_s23 + $0x88] sm:$0xff]  ;;  %v1789_v26 = vpack.c.bf16 %v1767_v15, %v1758_v11  ;;  %s2239_s15 = scalar_lea.vmem %s2494_s2, %s1467_s12  ;;  %s2373_s25 = scalar_lea.vmem %s2495_s3, %s1468_s21 }
  0x22   : > { %v550_v20 = vunpack.c.l.b16 %v1755_v10  ;;  %v551_v21 = vunpack.c.h.b16 %v1755_v10  ;;  %v552_v24 = vunpack.c.l.b16 %v1764_v14  ;;  %v553_v25 = vunpack.c.h.b16 %v1764_v14  ;;  %v1796_v28 = vld [vmem:[%s1715_s23 + $0x90] sm:$0xff]  ;;  %v1799_v29 = vld [vmem:[%s1715_s23 + $0x98] sm:$0xff]  ;;  %v1820_v37 = vld [vmem:[%s1715_s23 + $0x60] sm:$0xff]  ;;  %s2378_s18 = scalar_lea.vmem %s2496_s4, %s1468_s21 }
  0x23   : > { %v1793_v27 = vpack.c.bf16 %v1773_v17, %v1770_v16  ;;  %v1801_v30 = vpack.c.b16 %v556_v18, %v554_v12  ;;  %v1803_v31 = vpack.c.b16 %v557_v19, %v555_v13  ;;  %v1807_v32 = vpack.c.bf16 %v1783_v23, %v1780_v22  ;;  %v1829_v41 = vld [vmem:[%s1715_s23 + $0x68] sm:$0xff]  ;;  %v1832_v42 = vld [vmem:[%s1715_s23 + $0x70] sm:$0xff]  ;;  %v1835_v43 = vld [vmem:[%s1715_s23 + $0x78] sm:$0xff] }
  0x24   : > { %v1811_v33 = vpack.c.b16 %v552_v24, %v550_v20  ;;  %v546_v34 = vunpack.c.l.b16 %v1789_v26  ;;  %v1817_v36 = vpack.c.bf16 %v1799_v29, %v1796_v28  ;;  %v1824_v38 = vpack.c.b16 %v553_v25, %v551_v21  ;;  %v1852_v49 = vld [vmem:[%s1715_s23 + $0x40] sm:$0xff]  ;;  %v1855_v50 = vld [vmem:[%s1715_s23 + $0x48] sm:$0xff]  ;;  %v1864_v54 = vld [vmem:[%s1715_s23 + $0x50] sm:$0xff] }
  0x25   : > { %590 = vmatpush.bf16.msra.mxu0 %v1801_v30  ;;  %1470 = vmatpush.bf16.msra.mxu2 %v1801_v30  ;;  %v548_v35 = vunpack.c.l.b16 %v1793_v27  ;;  %v547_v39 = vunpack.c.h.b16 %v1789_v26  ;;  %v549_v40 = vunpack.c.h.b16 %v1793_v27  ;;  %v542_v44 = vunpack.c.l.b16 %v1807_v32  ;;  %2528 = vst [vmem:[#allocation7_spill] sm:$0xff] %v1852_v49  ;;  %v1867_v55 = vld [vmem:[%s1715_s23 + $0x58] sm:$0xff]  ;;  %v1884_v61 = vld [vmem:[%s1715_s23 + $0x20] sm:$0xff]  ;;  %v1893_v13 = vld [vmem:[%s1715_s23 + $0x28] sm:$0xff] }
  0x26   : > { %639 = vmatpush.bf16.msra.mxu1 %v1803_v31  ;;  %1478 = vmatpush.bf16.msra.mxu3 %v1803_v31  ;;  %v544_v46 = vunpack.c.l.b16 %v1817_v36  ;;  %v1845_v47 = vpack.c.bf16 %v1829_v41, %v1820_v37  ;;  %v1849_v48 = vpack.c.bf16 %v1835_v43, %v1832_v42  ;;  %2529 = vst [vmem:[#allocation8_spill] sm:$0xff] %v1855_v50  ;;  %v543_v52 = vunpack.c.h.b16 %v1807_v32  ;;  %v1896_v18 = vld [vmem:[%s1715_s23 + $0x30] sm:$0xff]  ;;  %v1899_v19 = vld [vmem:[%s1715_s23 + $0x38] sm:$0xff]  ;;  %v1902_v20 = vld [vmem:[%s1715_s23] sm:$0xff] }
  0x27   : > { %v1840_v45 = vpack.c.b16 %v548_v35, %v546_v34  ;;  %v1859_v51 = vpack.c.b16 %v549_v40, %v547_v39  ;;  %v545_v53 = vunpack.c.h.b16 %v1817_v36  ;;  %2530 = vst [vmem:[#allocation9_spill] sm:$0xff] %v1864_v54  ;;  %v1871_v56 = vpack.c.bf16 %v1855_v50, %v1852_v49  ;;  %v310_v21 = vld [vmem:[%s2493_s1] sm:$0xff]  ;;  %v311_v25 = vld [vmem:[%s2493_s1 + $0x8] sm:$0xff] }
  0x28   : > { %2531 = vst [vmem:[#allocation10_spill] sm:$0xff] %v1867_v55  ;;  %v1875_v57 = vpack.c.b16 %v544_v46, %v542_v44  ;;  %v538_v58 = vunpack.c.l.b16 %v1845_v47  ;;  %v540_v59 = vunpack.c.l.b16 %v1849_v48  ;;  %v1881_v60 = vpack.c.bf16 %v1867_v55, %v1864_v54  ;;  %v318_v34 = vld [vmem:[%s2493_s1 + $0x40] sm:$0xff]  ;;  %v319_v35 = vld [vmem:[%s2493_s1 + $0x48] sm:$0xff]  ;;  %v1937_v55 = vld [vmem:[%s1715_s23 + $0x18] sm:$0xff] }
  0x29   : > { %591 = vmatpush.bf16.msra.mxu0 %v1811_v33  ;;  %1471 = vmatpush.bf16.msra.mxu2 %v1811_v33  ;;  %2532 = vst [vmem:[#allocation11_spill] sm:$0xff] %v1871_v56  ;;  %v1888_v62 = vpack.c.b16 %v545_v53, %v543_v52  ;;  %v539_v63 = vunpack.c.h.b16 %v1845_v47  ;;  %v541_v12 = vunpack.c.h.b16 %v1849_v48  ;;  %v534_v24 = vunpack.c.l.b16 %v1871_v56  ;;  %v1931_v52 = vld [vmem:[%s1715_s23 + $0x8] sm:$0xff]  ;;  %v1934_v53 = vld [vmem:[%s1715_s23 + $0x10] sm:$0xff] }
  0x2a   : > { %640 = vmatpush.bf16.msra.mxu1 %v1824_v38  ;;  %1479 = vmatpush.bf16.msra.mxu3 %v1824_v38  ;;  %2533 = vst [vmem:[#allocation12_spill] sm:$0xff] %v1875_v57  ;;  %v1919_v39 = vpack.c.b16 %v540_v59, %v538_v58  ;;  %v536_v40 = vunpack.c.l.b16 %v1881_v60  ;;  %v1924_v44 = vpack.c.bf16 %v1893_v13, %v1884_v61  ;;  %v535_v59 = vunpack.c.h.b16 %v1871_v56 }
  0x2b   : > { %2534 = vst [vmem:[#allocation13_spill] sm:$0xff] %v1881_v60  ;;  %v1928_v46 = vpack.c.bf16 %v1899_v19, %v1896_v18  ;;  %v1941_v58 = vpack.c.b16 %v541_v12, %v539_v63  ;;  %v1951_v50 = vpack.c.bf16 %v319_v35, %v319_v35  ;;  %v1955_v54 = vpack.c.bf16 %v1931_v52, %v1902_v20 }
  0x2c   : > { %2535 = vst [vmem:[#allocation14_spill] sm:$0xff] %v1884_v61  ;;  %v1945_v61 = vpack.c.bf16 %v310_v21, %v310_v21  ;;  %v1959_v63 = vpack.c.bf16 %v1937_v55, %v1934_v53  ;;  %v1963_v12 = vpack.c.b16 %v536_v40, %v534_v24  ;;  %v530_v49 = vunpack.c.l.b16 %v1924_v44 }
  0x2d   : > { %592 = vmatpush.bf16.msra.mxu0 %v1840_v45  ;;  %1472 = vmatpush.bf16.msra.mxu2 %v1840_v45  ;;  %2536 = vst [vmem:[#allocation15_spill] sm:$0xff] %v1888_v62  ;;  %v383_v40 = vunpack.c.l.bf16 %v1951_v50 }
  0x2e   : > { %641 = vmatpush.bf16.msra.mxu1 %v1859_v51  ;;  %1480 = vmatpush.bf16.msra.mxu3 %v1859_v51  ;;  %2537 = vst [vmem:[#allocation16_spill] sm:$0xff] %v1893_v13  ;;  %v537_v13 = vunpack.c.h.b16 %v1881_v60  ;;  %v532_v60 = vunpack.c.l.b16 %v1928_v46 }
  0x2f   : > { %2538 = vst [vmem:[#allocation17_spill] sm:$0xff] %v1896_v18  ;;  %v1949_v18 = vpack.c.bf16 %v318_v34, %v318_v34 }
  0x30   : > { %2539 = vst [vmem:[#allocation18_spill] sm:$0xff] %v1899_v19  ;;  %v1947_v19 = vpack.c.bf16 %v311_v25, %v311_v25 }
  0x31   : > { %2540 = vst [vmem:[#allocation19_spill] sm:$0xff] %v1902_v20  ;;  %593 = vmatpush.bf16.msra.mxu0 %v1875_v57  ;;  %1473 = vmatpush.bf16.msra.mxu2 %v1875_v57  ;;  %v531_v20 = vunpack.c.h.b16 %v1924_v44  ;;  %v382_v24 = vunpack.c.l.bf16 %v1949_v18 }
  0x32   : > { %2541 = vst [vmem:[#allocation20_spill] sm:$0xff] %v1919_v39  ;;  %642 = vmatpush.bf16.msra.mxu1 %v1888_v62  ;;  %1481 = vmatpush.bf16.msra.mxu3 %v1888_v62  ;;  %v375_v56 = vunpack.c.l.bf16 %v1947_v19  ;;  %v528_v62 = vunpack.c.l.b16 %v1959_v63 }
  0x33   : > { %2542 = vst [vmem:[#allocation21_spill] sm:$0xff] %v1924_v44  ;;  %v527_v44 = vunpack.c.h.b16 %v1955_v54 }
  0x34   : > { %2543 = vst [vmem:[#allocation22_spill] sm:$0xff] %v1928_v46 }
  0x35   : > { %2544 = vst [vmem:[#allocation23_spill] sm:$0xff] %v1931_v52  ;;  %594 = vmatpush.bf16.msra.mxu0 %v1919_v39  ;;  %1474 = vmatpush.bf16.msra.mxu2 %v1919_v39  ;;  %v1969_v52 = vpack.c.b16 %v537_v13, %v535_v59  ;;  %v526_v39 = vunpack.c.l.b16 %v1955_v54  ;;  %v1982_v13 = vpack.c.b16 %v532_v60, %v530_v49  ;;  %v460_v59 = vunpack.c.l.bf16 %v1745_v7 }
  0x36   : > { %2545 = vst [vmem:[#allocation24_spill] sm:$0xff] %v1934_v53  ;;  %643 = vmatpush.bf16.msra.mxu1 %v1941_v58  ;;  %1482 = vmatpush.bf16.msra.mxu3 %v1941_v58  ;;  %v374_v53 = vunpack.c.l.bf16 %v1945_v61  ;;  %v398_v49 = vsub.f32 %v318_v34, %v382_v24  ;;  %v399_v60 = vsub.f32 %v319_v35, %v383_v40  ;;  %v450_v35 = vunpack.c.l.bf16 %v1789_v26 }
  0x37   : > { %2546 = vst [vmem:[#allocation25_spill] sm:$0xff] %v1937_v55  ;;  %v533_v55 = vunpack.c.h.b16 %v1928_v46  ;;  %v459_v46 = vunpack.c.h.bf16 %v1735_v4  ;;  %v1993_v57 = vpack.c.b16 %v528_v62, %v526_v39  ;;  %v2009_v62 = vld [vmem:[%s2493_s1 + $0x18] sm:$0xff] }
  0x38   : > { %2547 = vst [vmem:[#allocation26_spill] sm:$0xff] %v1941_v58  ;;  %v458_v58 = vunpack.c.l.bf16 %v1735_v4  ;;  %v2026_v39 = vpack.c.bf16 %v2009_v62, %v2009_v62 }
  0x39   : > { %2548 = vst [vmem:[#allocation27_spill] sm:$0xff] %v1945_v61  ;;  %595 = vmatpush.bf16.msra.mxu0 %v1963_v12  ;;  %1475 = vmatpush.bf16.msra.mxu2 %v1963_v12  ;;  %v390_v61 = vsub.f32 %v310_v21, %v374_v53 }
  0x3a   : > { %2549 = vst [vmem:[#allocation28_spill] sm:$0xff] %v1947_v19  ;;  %644 = vmatpush.bf16.msra.mxu1 %v1969_v52  ;;  %1483 = vmatpush.bf16.msra.mxu3 %v1969_v52  ;;  %v529_v19 = vunpack.c.h.b16 %v1959_v63  ;;  %v490_v4 = vsub.f32 %v1722_v0, %v458_v58  ;;  %v454_v0 = vunpack.c.l.bf16 %v1755_v10 }
  0x3b   : > { %2550 = vst [vmem:[#allocation29_spill] sm:$0xff] %v1949_v18  ;;  %v461_v18 = vunpack.c.h.bf16 %v1745_v7  ;;  %v1999_v7 = vld [vmem:[%s2493_s1 + $0x10] sm:$0xff] }
  0x3c   : > { %2551 = vst [vmem:[#allocation30_spill] sm:$0xff] %v1951_v50  ;;  %v1989_v50 = vpack.c.b16 %v533_v55, %v531_v20  ;;  %v492_v55 = vsub.f32 %v1728_v2, %v460_v59  ;;  %v491_v20 = vsub.f32 %v1725_v1, %v459_v46  ;;  %v2014_v21 = vpack.c.b16 %v529_v19, %v527_v44  ;;  %v320_v19 = vld [vmem:[%s2493_s1 + $0x50] sm:$0xff] }
  0x3d   : > { %2552 = vst [vmem:[#allocation31_spill] sm:$0xff] %v1963_v12  ;;  %v391_v12 = vsub.f32 %v311_v25, %v375_v56  ;;  %596 = vmatpush.bf16.msra.mxu0 %v1982_v13  ;;  %1476 = vmatpush.bf16.msra.mxu2 %v1982_v13  ;;  %v493_v56 = vsub.f32 %v1731_v3, %v461_v18  ;;  %v456_v25 = vunpack.c.l.bf16 %v1764_v14  ;;  %v455_v2 = vunpack.c.h.bf16 %v1755_v10  ;;  %v321_v10 = vld [vmem:[%s2493_s1 + $0x58] sm:$0xff] }
  0x3e   : > { %645 = vmatpush.bf16.msra.mxu1 %v1989_v50  ;;  %1484 = vmatpush.bf16.msra.mxu3 %v1989_v50  ;;  %v457_v1 = vunpack.c.h.bf16 %v1764_v14  ;;  %v410_v18 = vpack.c.bf16 %v399_v60, %v398_v49  ;;  %v2021_v34 = vpack.c.bf16 %v1999_v7, %v1999_v7  ;;  %v452_v14 = vunpack.c.l.bf16 %v1793_v27 }
  0x3f   : > { %v406_v3 = vpack.c.bf16 %v391_v12, %v390_v61  ;;  %v451_v61 = vunpack.c.h.bf16 %v1789_v26  ;;  %v453_v44 = vunpack.c.h.bf16 %v1793_v27  ;;  %v508_v46 = vpack.c.bf16 %v492_v55, %v490_v4 }
  0x40   : > { %v509_v53 = vpack.c.bf16 %v493_v56, %v491_v20  ;;  %v486_v58 = vsub.f32 %v1738_v5, %v454_v0  ;;  %v488_v12 = vsub.f32 %v1748_v8, %v456_v25  ;;  %v487_v24 = vsub.f32 %v1741_v6, %v455_v2 }
  0x41   : > { %597 = vmatpush.bf16.msra.mxu0 %v1993_v57  ;;  %1477 = vmatpush.bf16.msra.mxu2 %v1993_v57  ;;  %v489_v26 = vsub.f32 %v1751_v9, %v457_v1  ;;  %v2047_v27 = vpack.c.bf16 %v320_v19, %v320_v19  ;;  %v2049_v40 = vpack.c.bf16 %v321_v10, %v321_v10  ;;  %v446_v9 = vunpack.c.l.bf16 %v1807_v32 }
  0x42   : > { %646 = vmatpush.bf16.msra.mxu1 %v2014_v21  ;;  %1485 = vmatpush.bf16.msra.mxu3 %v2014_v21  ;;  %v482_v5 = vsub.f32 %v1758_v11, %v450_v35  ;;  %v484_v59 = vsub.f32 %v1770_v16, %v452_v14  ;;  %v483_v8 = vsub.f32 %v1767_v15, %v451_v61  ;;  %v447_v11 = vunpack.c.h.bf16 %v1807_v32 }
  0x43   : > { %v485_v6 = vsub.f32 %v1773_v17, %v453_v44  ;;  %v507_v49 = vpack.c.bf16 %v489_v26, %v487_v24  ;;  %v449_v60 = vunpack.c.h.bf16 %v1817_v36  ;;  %v376_v15 = vunpack.c.l.bf16 %v2021_v34  ;;  %v2557_v24 = vld [vmem:[#allocation26_spill] sm:$0xff]  ;;  %v2558_v26 = vld [vmem:[#allocation28_spill] sm:$0xff] }
  0x44   : > { %598 = vmatmul.bf16.vlgmr.msra.gmra.mxu0 %v406_v3  ;;  %618 = vmatmul.bf16.vlgmr.msra.gmra.mxu2 %v410_v18  ;;  %v377_v16 = vunpack.c.l.bf16 %v2026_v39  ;;  %v384_v17 = vunpack.c.l.bf16 %v2047_v27  ;;  %v385_v4 = vunpack.c.l.bf16 %v2049_v40  ;;  %v504_v55 = vpack.c.bf16 %v484_v59, %v482_v5 }
  0x45   : > { %736 = vmatpush.bf16.msrb.mxu2 %v1801_v30  ;;  %647 = vmatmul.bf16.vlgmr.msra.gmra.mxu1 %v406_v3  ;;  %v448_v30 = vunpack.c.l.bf16 %v1817_v36  ;;  %v505_v20 = vpack.c.bf16 %v485_v6, %v483_v8  ;;  %v478_v56 = vsub.f32 %v1780_v22, %v446_v9  ;;  %v442_v36 = vunpack.c.l.bf16 %v1845_v47  ;;  %v2559_v9 = vld [vmem:[#allocation11_spill] sm:$0xff] }
  0x46   : > { %785 = vmatpush.bf16.msrb.mxu3 %v1803_v31  ;;  %834 = vmatpush.bf16.msrb.mxu0 %v508_v46  ;;  %v506_v31 = vpack.c.bf16 %v488_v12, %v486_v58  ;;  %v481_v0 = vsub.f32 %v1799_v29, %v449_v60  ;;  %v443_v25 = vunpack.c.h.bf16 %v1845_v47  ;;  %v445_v2 = vunpack.c.h.bf16 %v1849_v48  ;;  %v315_v29 = vld [vmem:[%s2493_s1 + $0x28] sm:$0xff]  ;;  %v322_v47 = vld [vmem:[%s2493_s1 + $0x60] sm:$0xff] }
  0x47   : > { %667 = vmatmul.bf16.vlgmr.msra.gmra.mxu3 %v410_v18  ;;  %883 = vmatpush.bf16.msrb.mxu1 %v509_v53  ;;  %v480_v32 = vsub.f32 %v1796_v28, %v448_v30  ;;  %v392_v1 = vsub.f32 %v1999_v7, %v376_v15  ;;  %v393_v22 = vsub.f32 %v2009_v62, %v377_v16  ;;  %v2555_v46 = vld [vmem:[#allocation27_spill] sm:$0xff]  ;;  %v2556_v12 = vld [vmem:[#allocation20_spill] sm:$0xff]  ;;  %v705_v5 = vunpack.c.l.b16 %v2558_v26  ;;  %v2561_v15 = vld [vmem:[#allocation21_spill] sm:$0xff] }
  0x48   : > { %v400_v28 = vsub.f32 %v320_v19, %v384_v17  ;;  %v401_v3 = vsub.f32 %v321_v10, %v385_v4  ;;  %v474_v7 = vsub.f32 %v1820_v37, %v442_v36  ;;  %v475_v62 = vsub.f32 %v1829_v41, %v443_v25  ;;  %v2553_v19 = vld [vmem:[#allocation12_spill] sm:$0xff]  ;;  %v2554_v10 = vld [vmem:[#allocation15_spill] sm:$0xff]  ;;  %v2562_v17 = vld [vmem:[#allocation22_spill] sm:$0xff] }
  0x49   : > { %737 = vmatpush.bf16.msrb.mxu2 %v1811_v33  ;;  %v444_v33 = vunpack.c.l.bf16 %v1849_v48  ;;  %v502_v48 = vpack.c.bf16 %v480_v32, %v478_v56  ;;  %v477_v18 = vsub.f32 %v1835_v43, %v445_v2  ;;  %v407_v35 = vpack.c.bf16 %v393_v22, %v392_v1  ;;  %v323_v37 = vld [vmem:[%s2493_s1 + $0x68] sm:$0xff]  ;;  %v2563_v32 = vld [vmem:[#allocation31_spill] sm:$0xff]  ;;  %v2567_v1 = vld [vmem:[#allocation10_spill] sm:$0xff] }
  0x4a   : > { %786 = vmatpush.bf16.msrb.mxu3 %v1824_v38  ;;  %835 = vmatpush.bf16.msrb.mxu0 %v506_v31  ;;  %v479_v38 = vsub.f32 %v1783_v23, %v447_v11  ;;  %v314_v23 = vld [vmem:[%s2493_s1 + $0x20] sm:$0xff]  ;;  %v411_v14 = vpack.c.bf16 %v401_v3, %v400_v28  ;;  %v2094_v44 = vpack.c.bf16 %v315_v29, %v315_v29  ;;  %v704_v53 = vunpack.c.l.b16 %v2555_v46  ;;  %v2560_v31 = vld [vmem:[#allocation13_spill] sm:$0xff]  ;;  %v2566_v25 = vld [vmem:[#allocation8_spill] sm:$0xff] }
  0x4b   : > { %884 = vmatpush.bf16.msrb.mxu1 %v507_v49  ;;  %v2092_v61 = vpack.c.bf16 %v314_v23, %v314_v23  ;;  %v501_v43 = vpack.c.bf16 %v477_v18, %v475_v62  ;;  %v2102_v58 = vpack.c.bf16 %v323_v37, %v323_v37  ;;  %v438_v30 = vunpack.c.l.bf16 %v2559_v9  ;;  %v2564_v36 = vld [vmem:[#allocation7_spill] sm:$0xff]  ;;  %v2568_v28 = vld [vmem:[#allocation14_spill] sm:$0xff] }
  0x4c   : > { %v379_v8 = vunpack.c.l.bf16 %v2094_v44  ;;  %v440_v49 = vunpack.c.l.bf16 %v2560_v31  ;;  %v439_v11 = vunpack.c.h.bf16 %v2559_v9  ;;  %v441_v60 = vunpack.c.h.bf16 %v2560_v31  ;;  %v2572_v9 = vld [vmem:[#allocation19_spill] sm:$0xff]  ;;  %v2573_v31 = vld [vmem:[#allocation24_spill] sm:$0xff] }
  0x4d   : > { %738 = vmatpush.bf16.msrb.mxu2 %v1840_v45  ;;  %v476_v45 = vsub.f32 %v1832_v42, %v444_v33  ;;  %v2099_v42 = vpack.c.bf16 %v322_v47, %v322_v47  ;;  %v378_v59 = vunpack.c.l.bf16 %v2092_v61  ;;  %v434_v16 = vunpack.c.l.bf16 %v2561_v15 }
  0x4e   : > { %787 = vmatpush.bf16.msrb.mxu3 %v1859_v51  ;;  %836 = vmatpush.bf16.msrb.mxu0 %v504_v55  ;;  %v503_v51 = vpack.c.bf16 %v481_v0, %v479_v38  ;;  %v436_v4 = vunpack.c.l.bf16 %v2562_v17  ;;  %v435_v55 = vunpack.c.h.bf16 %v2561_v15  ;;  %v387_v56 = vunpack.c.l.bf16 %v2102_v58  ;;  %v2565_v38 = vld [vmem:[#allocation9_spill] sm:$0xff] }
  0x4f   : > { %885 = vmatpush.bf16.msrb.mxu1 %v505_v20  ;;  %v500_v41 = vpack.c.bf16 %v476_v45, %v474_v7  ;;  %v386_v6 = vunpack.c.l.bf16 %v2099_v42  ;;  %v437_v20 = vunpack.c.h.bf16 %v2562_v17  ;;  %v470_v33 = vsub.f32 %v2564_v36, %v438_v30  ;;  %v2570_v45 = vld [vmem:[#allocation16_spill] sm:$0xff] }
  0x50   : > { %v472_v0 = vsub.f32 %v2565_v38, %v440_v49  ;;  %v471_v2 = vsub.f32 %v2566_v25, %v439_v11  ;;  %v473_v22 = vsub.f32 %v2567_v1, %v441_v60  ;;  %v466_v3 = vsub.f32 %v2568_v28, %v434_v16  ;;  %v2574_v11 = vld [vmem:[#allocation23_spill] sm:$0xff]  ;;  %v2575_v60 = vld [vmem:[#allocation25_spill] sm:$0xff] }
  0x51   : > { %739 = vmatpush.bf16.msrb.mxu2 %v2553_v19  ;;  %v394_v62 = vsub.f32 %v314_v23, %v378_v59  ;;  %v395_v46 = vsub.f32 %v315_v29, %v379_v8  ;;  %v403_v23 = vsub.f32 %v323_v37, %v387_v56  ;;  %v316_v29 = vld [vmem:[%s2493_s1 + $0x30] sm:$0xff]  ;;  %v707_v37 = vunpack.c.l.b16 %v2026_v39 }
  0x52   : > { %788 = vmatpush.bf16.msrb.mxu3 %v2554_v10  ;;  %837 = vmatpush.bf16.msrb.mxu0 %v502_v48  ;;  %v2569_v48 = vld [vmem:[#allocation17_spill] sm:$0xff]  ;;  %v498_v18 = vpack.c.bf16 %v472_v0, %v470_v33  ;;  %v499_v10 = vpack.c.bf16 %v473_v22, %v471_v2  ;;  %v708_v25 = vunpack.c.l.b16 %v2092_v61  ;;  %v709_v2 = vunpack.c.l.b16 %v2094_v44 }
  0x53   : > { %886 = vmatpush.bf16.msrb.mxu1 %v503_v51  ;;  %v468_v7 = vsub.f32 %v2569_v48, %v436_v4  ;;  %v467_v51 = vsub.f32 %v2570_v45, %v435_v55  ;;  %v2576_v48 = vld [vmem:[#allocation29_spill] sm:$0xff] }
  0x54   : > { %603 = vmatmul.bf16.gmra.mxu0 %v407_v35  ;;  %623 = vmatmul.bf16.gmra.mxu2 %v411_v14  ;;  %v722_v1 = vpack.c.b16 %v709_v2, %v708_v25  ;;  %v712_v61 = vunpack.c.l.b16 %v2576_v48 }
  0x55   : > { %740 = vmatpush.bf16.msrb.mxu2 %v2556_v12  ;;  %652 = vmatmul.bf16.gmra.mxu1 %v407_v35  ;;  %v2571_v35 = vld [vmem:[#allocation18_spill] sm:$0xff]  ;;  %v402_v12 = vsub.f32 %v322_v47, %v386_v6  ;;  %v496_v26 = vpack.c.bf16 %v468_v7, %v466_v3  ;;  %v706_v47 = vunpack.c.l.b16 %v2021_v34  ;;  %v364_v6 = vpack.c.bf16 %v316_v29, %v316_v29 }
  0x56   : > { %789 = vmatpush.bf16.msrb.mxu3 %v2557_v24  ;;  %838 = vmatpush.bf16.msrb.mxu0 %v500_v41  ;;  %v469_v19 = vsub.f32 %v2571_v35, %v437_v20  ;;  %v431_v41 = vunpack.c.h.bf16 %v1955_v54  ;;  %v720_v24 = vpack.c.b16 %v705_v5, %v704_v53  ;;  %v317_v53 = vld [vmem:[%s2493_s1 + $0x38] sm:$0xff]  ;;  %v716_v35 = vunpack.c.l.b16 %v2099_v42 }
  0x57   : > { %672 = vmatmul.bf16.gmra.mxu3 %v411_v14  ;;  %887 = vmatpush.bf16.msrb.mxu1 %v501_v43  ;;  %v432_v14 = vunpack.c.l.bf16 %v1959_v63  ;;  %v433_v43 = vunpack.c.h.bf16 %v1959_v63  ;;  %v365_v34 = vpack.c.bf16 %v317_v53, %v317_v53  ;;  %v721_v16 = vpack.c.b16 %v707_v37, %v706_v47  ;;  %v2577_v7 = vld [vmem:[#allocation30_spill] sm:$0xff] }
  0x58   : > { %v497_v59 = vpack.c.bf16 %v469_v19, %v467_v51  ;;  %v380_v17 = vunpack.c.l.bf16 %v364_v6  ;;  %v710_v22 = vunpack.c.l.b16 %v364_v6  ;;  %v713_v44 = vunpack.c.l.b16 %v2577_v7 }
  0x59   : > { %741 = vmatpush.bf16.msrb.mxu2 %v2563_v32  ;;  %v464_v49 = vsub.f32 %v2573_v31, %v432_v14  ;;  %v465_v63 = vsub.f32 %v2575_v60, %v433_v43  ;;  %v381_v4 = vunpack.c.l.bf16 %v365_v34  ;;  %v711_v28 = vunpack.c.l.b16 %v365_v34 }
  0x5a   : > { %790 = vmatpush.bf16.msrb.mxu3 %v1969_v52  ;;  %v430_v52 = vunpack.c.l.bf16 %v1955_v54  ;;  %839 = vmatpush.bf16.msrb.mxu0 %v498_v18  ;;  %v463_v54 = vsub.f32 %v2574_v11, %v431_v41  ;;  %v396_v56 = vsub.f32 %v316_v29, %v380_v17  ;;  %v724_v45 = vpack.c.b16 %v713_v44, %v712_v61 }
  0x5b   : > { %888 = vmatpush.bf16.msrb.mxu1 %v499_v10  ;;  %v397_v32 = vsub.f32 %v317_v53, %v381_v4  ;;  %v723_v3 = vpack.c.b16 %v711_v28, %v710_v22  ;;  %v714_v51 = vunpack.c.l.b16 %v2047_v27  ;;  %v717_v19 = vunpack.c.l.b16 %v2102_v58 }
  0x5c   : > { %v462_v30 = vsub.f32 %v2572_v9, %v430_v52  ;;  %v495_v8 = vpack.c.bf16 %v465_v63, %v463_v54 }
  0x5d   : > { %742 = vmatpush.bf16.msrb.mxu2 %v1982_v13  ;;  %v408_v13 = vpack.c.bf16 %v395_v46, %v394_v62  ;;  %v409_v38 = vpack.c.bf16 %v397_v32, %v396_v56  ;;  %v715_v62 = vunpack.c.l.b16 %v2049_v40  ;;  %v726_v14 = vpack.c.b16 %v717_v19, %v716_v35 }
  0x5e   : > { %791 = vmatpush.bf16.msrb.mxu3 %v1989_v50  ;;  %v412_v50 = vpack.c.bf16 %v403_v23, %v402_v12  ;;  %840 = vmatpush.bf16.msrb.mxu0 %v496_v26  ;;  %v494_v5 = vpack.c.bf16 %v464_v49, %v462_v30 }
  0x5f   : > { %889 = vmatpush.bf16.msrb.mxu1 %v497_v59  ;;  %v725_v18 = vpack.c.b16 %v715_v62, %v714_v51 }
  0x61   : > { %743 = vmatpush.bf16.msrb.mxu2 %v1993_v57  ;;  %v324_v57 = vld [vmem:[%s2493_s1 + $0x70] sm:$0xff] }
  0x62   : > { %792 = vmatpush.bf16.msrb.mxu3 %v2014_v21  ;;  %v325_v21 = vld [vmem:[%s2493_s1 + $0x78] sm:$0xff]  ;;  %v2155_v15 = vpack.c.bf16 %v324_v57, %v324_v57  ;;  %841 = vmatpush.bf16.msrb.mxu0 %v494_v5 }
  0x63   : > { %v2157_v39 = vpack.c.bf16 %v325_v21, %v325_v21  ;;  %890 = vmatpush.bf16.msrb.mxu1 %v495_v8 }
  0x64   : > { %608 = vmatmul.bf16.gmra.mxu0 %v408_v13  ;;  %628 = vmatmul.bf16.gmra.mxu2 %v412_v50  ;;  %v388_v55 = vunpack.c.l.bf16 %v2155_v15  ;;  %v718_v46 = vunpack.c.l.b16 %v2155_v15 }
  0x65   : > { %657 = vmatmul.bf16.gmra.mxu1 %v408_v13  ;;  %v389_v20 = vunpack.c.l.bf16 %v2157_v39  ;;  %v719_v42 = vunpack.c.l.b16 %v2157_v39 }
  0x66   : > { %v404_v36 = vsub.f32 %v324_v57, %v388_v55 }
  0x67   : > { %677 = vmatmul.bf16.gmra.mxu3 %v412_v50  ;;  %v405_v33 = vsub.f32 %v325_v21, %v389_v20  ;;  %v727_v26 = vpack.c.b16 %v719_v42, %v718_v46 }
  0x69   : > { %v413_v0 = vpack.c.bf16 %v405_v33, %v404_v36 }
  0x74   : > { %613 = vmatmul.bf16.gmra.mxu0 %v409_v38  ;;  %633 = vmatmul.bf16.gmra.mxu2 %v413_v0 }
  0x75   : > { %662 = vmatmul.bf16.gmra.mxu1 %v409_v38 }
  0x77   : > { %682 = vmatmul.bf16.gmra.mxu3 %v413_v0 }
  0x84   : > { %744 = vmatmul.bf16.vlgmr.msrb.gmra.mxu2 %v720_v24  ;;  %842 = vmatmul.bf16.vlgmr.msrb.gmra.mxu0 %v720_v24 }
  0x85   : > { %891 = vmatmul.bf16.vlgmr.msrb.gmra.mxu1 %v720_v24 }
  0x87   : > { %793 = vmatmul.bf16.vlgmr.msrb.gmra.mxu3 %v720_v24 }
  0x94   : > { %749 = vmatmul.bf16.gmra.mxu2 %v721_v16  ;;  %847 = vmatmul.bf16.gmra.mxu0 %v721_v16 }
  0x95   : > { %896 = vmatmul.bf16.gmra.mxu1 %v721_v16 }
  0x97   : > { %798 = vmatmul.bf16.gmra.mxu3 %v721_v16 }
  0xa4   : > { %754 = vmatmul.bf16.gmra.mxu2 %v722_v1  ;;  %852 = vmatmul.bf16.gmra.mxu0 %v722_v1 }
  0xa5   : > { %901 = vmatmul.bf16.gmra.mxu1 %v722_v1 }
  0xa7   : > { %803 = vmatmul.bf16.gmra.mxu3 %v722_v1 }
  0xb4   : > { %759 = vmatmul.bf16.gmra.mxu2 %v723_v3  ;;  %857 = vmatmul.bf16.gmra.mxu0 %v723_v3 }
  0xb5   : > { %906 = vmatmul.bf16.gmra.mxu1 %v723_v3 }
  0xb7   : > { %808 = vmatmul.bf16.gmra.mxu3 %v723_v3 }
  0xc1   : > { %v599_v52 = vpop.f32.mrf.mxu0 }
  0xc2   : > { %v648_v10 = vpop.f32.mrf.mxu1 }
  0xc4   : > { %764 = vmatmul.bf16.gmra.mxu2 %v724_v45  ;;  %862 = vmatmul.bf16.gmra.mxu0 %v724_v45 }
  0xc5   : > { %911 = vmatmul.bf16.gmra.mxu1 %v724_v45 }
  0xc7   : > { %813 = vmatmul.bf16.gmra.mxu3 %v724_v45  ;;  %v2169_v41 = vpop.f32.mrf.mxu2 }
  0xc9   : > { %v2173_v40 = vpop.f32.mrf.mxu0 }
  0xca   : > { %v2171_v27 = vpop.f32.mrf.mxu3  ;;  %v2175_v43 = vpop.f32.mrf.mxu1 }
  0xcf   : > { %v2179_v58 = vpop.f32.mrf.mxu2 }
  0xd1   : > { %v2183_v24 = vpop.f32.mrf.mxu0 }
  0xd2   : > { %v2181_v12 = vpop.f32.mrf.mxu3  ;;  %v2185_v23 = vpop.f32.mrf.mxu1 }
  0xd4   : > { %769 = vmatmul.bf16.gmra.mxu2 %v725_v18  ;;  %867 = vmatmul.bf16.gmra.mxu0 %v725_v18 }
  0xd5   : > { %916 = vmatmul.bf16.gmra.mxu1 %v725_v18 }
  0xd7   : > { %818 = vmatmul.bf16.gmra.mxu3 %v725_v18  ;;  %v2187_v59 = vpop.f32.mrf.mxu2 }
  0xd9   : > { %v2191_v30 = vpop.f32.mrf.mxu0 }
  0xda   : > { %v2189_v9 = vpop.f32.mrf.mxu3  ;;  %v2193_v31 = vpop.f32.mrf.mxu1 }
  0xdf   : > { %v2195_v49 = vpop.f32.mrf.mxu2 }
  0xe1   : > { %v2199_v54 = vpop.f32.mrf.mxu0 }
  0xe2   : > { %v2197_v11 = vpop.f32.mrf.mxu3  ;;  %v2201_v60 = vpop.f32.mrf.mxu1 }
  0xe4   : > { %774 = vmatmul.bf16.gmra.mxu2 %v726_v14  ;;  %872 = vmatmul.bf16.gmra.mxu0 %v726_v14 }
  0xe5   : > { %921 = vmatmul.bf16.gmra.mxu1 %v726_v14 }
  0xe7   : > { %823 = vmatmul.bf16.gmra.mxu3 %v726_v14  ;;  %v2203_v63 = vpop.f32.mrf.mxu2 }
  0xe9   : > { %v2207_v50 = vpop.f32.mrf.mxu0 }
  0xea   : > { %v2205_v13 = vpop.f32.mrf.mxu3  ;;  %v2209_v29 = vpop.f32.mrf.mxu1 }
  0xef   : > { %v2211_v47 = vpop.f32.mrf.mxu2 }
  0xf1   : > { %v2215_v53 = vpop.f32.mrf.mxu0 }
  0xf2   : > { %v2213_v37 = vpop.f32.mrf.mxu3  ;;  %v2217_v57 = vpop.f32.mrf.mxu1 }
  0xf4   : > { %779 = vmatmul.bf16.gmra.mxu2 %v727_v26  ;;  %877 = vmatmul.bf16.gmra.mxu0 %v727_v26 }
  0xf5   : > { %926 = vmatmul.bf16.gmra.mxu1 %v727_v26 }
  0xf7   : > { %828 = vmatmul.bf16.gmra.mxu3 %v727_v26  ;;  %v2219_v21 = vpop.f32.mrf.mxu2 }
  0xf9   : > { %v2223_v8 = vpop.f32.mrf.mxu0 }
  0xfa   : > { %v2221_v5 = vpop.f32.mrf.mxu3  ;;  %v2225_v6 = vpop.f32.mrf.mxu1 }
  0xff   : > { %v2228_v34 = vpop.f32.mrf.mxu2 }
 0x101   : > { %v843_v39 = vpop.f32.mrf.mxu0 }
 0x102   : > { %v2230_v15 = vpop.f32.mrf.mxu3  ;;  %v892_v16 = vpop.f32.mrf.mxu1 }
 0x107   : > { %v745_v17 = vpop.f32.mrf.mxu2 }
 0x108   : > { %v746_v4 = vadd.f32 %v745_v17, %v599_v52 }
 0x109   : > { %v845_v56 = vpop.f32.mrf.mxu0 }
 0x10a   : > { %v794_v55 = vpop.f32.mrf.mxu3  ;;  %v932_v32 = vadd.f32 %v843_v39, %v746_v4  ;;  %v894_v36 = vpop.f32.mrf.mxu1 }
 0x10b   : > { %v795_v20 = vadd.f32 %v794_v55, %v648_v10 }
 0x10c   : > { %964 = vst [vmem:[%s2239_s15] sm:$0xff] %v932_v32  ;;  %v1109_v38 = vmul.f32 %v932_v32, %v932_v32 }
 0x10d   : > { %v933_v33 = vadd.f32 %v892_v16, %v795_v20 }
 0x10f   : > { %965 = vst [vmem:[%s2239_s15 + $0x8] sm:$0xff] %v933_v33  ;;  %v1012_v0 = vadd.f32 %v933_v33, %v932_v32  ;;  %v1110_v25 = vmul.f32 %v933_v33, %v933_v33  ;;  %v747_v2 = vpop.f32.mrf.mxu2 }
 0x110   : > { %v748_v22 = vadd.f32 %v747_v2, %v2173_v40 }
 0x111   : > { %1013 = vadd.xlane.f32.xlu0 %v1012_v0  ;;  %v1141_v1 = vadd.f32 %v1110_v25, %v1109_v38  ;;  %v848_v48 = vpop.f32.mrf.mxu0 }
 0x112   : > { %v796_v28 = vpop.f32.mrf.mxu3  ;;  %v934_v61 = vadd.f32 %v845_v56, %v748_v22  ;;  %v897_v7 = vpop.f32.mrf.mxu1 }
 0x113   : > { %v797_v3 = vadd.f32 %v796_v28, %v2175_v43  ;;  %1142 = vadd.xlane.f32.xlu1 %v1141_v1 }
 0x114   : > { %966 = vst [vmem:[%s2239_s15 + $0x10] sm:$0xff] %v934_v61  ;;  %v1111_v45 = vmul.f32 %v934_v61, %v934_v61 }
 0x115   : > { %v935_v44 = vadd.f32 %v894_v36, %v797_v3 }
 0x117   : > { %967 = vst [vmem:[%s2239_s15 + $0x18] sm:$0xff] %v935_v44  ;;  %v1015_v51 = vadd.f32 %v935_v44, %v934_v61  ;;  %v1112_v62 = vmul.f32 %v935_v44, %v935_v44  ;;  %v750_v18 = vpop.f32.mrf.mxu2 }
 0x118   : > { %v751_v19 = vadd.f32 %v750_v18, %v2183_v24 }
 0x119   : > { %1016 = vadd.xlane.f32.xlu0 %v1015_v51  ;;  %v1144_v35 = vadd.f32 %v1112_v62, %v1111_v45  ;;  %v850_v14 = vpop.f32.mrf.mxu0 }
 0x11a   : > { %v799_v52 = vpop.f32.mrf.mxu3  ;;  %v936_v40 = vadd.f32 %v848_v48, %v751_v19  ;;  %v899_v43 = vpop.f32.mrf.mxu1 }
 0x11b   : > { %v800_v10 = vadd.f32 %v799_v52, %v2185_v23  ;;  %1145 = vadd.xlane.f32.xlu2 %v1144_v35 }
 0x11c   : > { %968 = vst [vmem:[%s2239_s15 + $0x20] sm:$0xff] %v936_v40  ;;  %v1113_v42 = vmul.f32 %v936_v40, %v936_v40 }
 0x11d   : > { %v937_v46 = vadd.f32 %v897_v7, %v800_v10 }
 0x11f   : > { %969 = vst [vmem:[%s2239_s15 + $0x28] sm:$0xff] %v937_v46  ;;  %v1018_v26 = vadd.f32 %v937_v46, %v936_v40  ;;  %v1114_v39 = vmul.f32 %v937_v46, %v937_v46  ;;  %v752_v16 = vpop.f32.mrf.mxu2 }
 0x120   : > { %v753_v24 = vadd.f32 %v752_v16, %v2191_v30 }
 0x121   : > { %1019 = vadd.xlane.f32.xlu1 %v1018_v26  ;;  %v1147_v17 = vadd.f32 %v1114_v39, %v1113_v42  ;;  %v853_v55 = vpop.f32.mrf.mxu0 }
 0x122   : > { %v801_v4 = vpop.f32.mrf.mxu3  ;;  %v938_v20 = vadd.f32 %v850_v14, %v753_v24  ;;  %v902_v56 = vpop.f32.mrf.mxu1 }
 0x123   : > { %v802_v23 = vadd.f32 %v801_v4, %v2193_v31  ;;  %1148 = vadd.xlane.f32.xlu0 %v1147_v17 }
 0x124   : > { %970 = vst [vmem:[%s2239_s15 + $0x30] sm:$0xff] %v938_v20  ;;  %v1115_v2 = vmul.f32 %v938_v20, %v938_v20 }
 0x125   : > { %v939_v32 = vadd.f32 %v899_v43, %v802_v23 }
 0x127   : > { %971 = vst [vmem:[%s2239_s15 + $0x38] sm:$0xff] %v939_v32  ;;  %v1021_v36 = vadd.f32 %v939_v32, %v938_v20  ;;  %v755_v33 = vpop.f32.mrf.mxu2  ;;  %v1116_v31 = vmul.f32 %v939_v32, %v939_v32 }
 0x128   : > { %v756_v38 = vadd.f32 %v755_v33, %v2199_v54 }
 0x129   : > { %1022 = vadd.xlane.f32.xlu1 %v1021_v36  ;;  %v855_v25 = vpop.f32.mrf.mxu0  ;;  %v1150_v3 = vadd.f32 %v1116_v31, %v1115_v2 }
 0x12a   : > { %v804_v0 = vpop.f32.mrf.mxu3  ;;  %v940_v1 = vadd.f32 %v853_v55, %v756_v38  ;;  %v904_v22 = vpop.f32.mrf.mxu1 }
 0x12b   : > { %v805_v30 = vadd.f32 %v804_v0, %v2201_v60 }
 0x12c   : > { %972 = vst [vmem:[%s2239_s15 + $0x40] sm:$0xff] %v940_v1  ;;  %v1117_v45 = vmul.f32 %v940_v1, %v940_v1 }
 0x12d   : > { %v941_v28 = vadd.f32 %v902_v56, %v805_v30 }
 0x12f   : > { %973 = vst [vmem:[%s2239_s15 + $0x48] sm:$0xff] %v941_v28  ;;  %v1024_v48 = vadd.f32 %v941_v28, %v940_v1  ;;  %v757_v61 = vpop.f32.mrf.mxu2  ;;  %v1118_v51 = vmul.f32 %v941_v28, %v941_v28 }
 0x130   : > { %v758_v54 = vadd.f32 %v757_v61, %v2207_v50 }
 0x131   : > { %1151 = vadd.xlane.f32.xlu1 %v1150_v3  ;;  %1025 = vadd.xlane.f32.xlu2 %v1024_v48  ;;  %v858_v44 = vpop.f32.mrf.mxu0  ;;  %v1153_v52 = vadd.f32 %v1118_v51, %v1117_v45 }
 0x132   : > { %v806_v7 = vpop.f32.mrf.mxu3  ;;  %v942_v62 = vadd.f32 %v855_v25, %v758_v54  ;;  %v907_v18 = vpop.f32.mrf.mxu1 }
 0x133   : > { %v807_v60 = vadd.f32 %v806_v7, %v2209_v29 }
 0x134   : > { %974 = vst [vmem:[%s2239_s15 + $0x50] sm:$0xff] %v942_v62  ;;  %v1119_v19 = vmul.f32 %v942_v62, %v942_v62 }
 0x135   : > { %v943_v35 = vadd.f32 %v904_v22, %v807_v60 }
 0x137   : > { %975 = vst [vmem:[%s2239_s15 + $0x58] sm:$0xff] %v943_v35  ;;  %v1120_v10 = vmul.f32 %v943_v35, %v943_v35  ;;  %v760_v14 = vpop.f32.mrf.mxu2  ;;  %v1027_v17 = vadd.f32 %v943_v35, %v942_v62 }
 0x138   : > { %v761_v50 = vadd.f32 %v760_v14, %v2215_v53 }
 0x139   : > { %1154 = vadd.xlane.f32.xlu2 %v1153_v52  ;;  %v1156_v40 = vadd.f32 %v1120_v10, %v1119_v19  ;;  %v860_v46 = vpop.f32.mrf.mxu0 }
 0x13a   : > { %v809_v43 = vpop.f32.mrf.mxu3  ;;  %v944_v42 = vadd.f32 %v858_v44, %v761_v50  ;;  %v909_v26 = vpop.f32.mrf.mxu1 }
 0x13b   : > { %v810_v29 = vadd.f32 %v809_v43, %v2217_v57  ;;  %1157 = vadd.xlane.f32.xlu0 %v1156_v40 }
 0x13c   : > { %976 = vst [vmem:[%s2239_s15 + $0x60] sm:$0xff] %v944_v42  ;;  %v1121_v16 = vmul.f32 %v944_v42, %v944_v42 }
 0x13d   : > { %v945_v39 = vadd.f32 %v907_v18, %v810_v29 }
 0x13f   : > { %977 = vst [vmem:[%s2239_s15 + $0x68] sm:$0xff] %v945_v39  ;;  %v1122_v24 = vmul.f32 %v945_v39, %v945_v39  ;;  %v762_v4 = vpop.f32.mrf.mxu2  ;;  %v1030_v55 = vadd.f32 %v945_v39, %v944_v42  ;;  %v1628_v42 = vmov 0.0  }
 0x140   : > { %v763_v53 = vadd.f32 %v762_v4, %v2223_v8  ;;  %278 = vst.msk [vmem:[#allocation2] sm:$0xff] %vm277_vm0, %v1628_v42 }
 0x141   : > { %1028 = vadd.xlane.f32.xlu2 %v1027_v17  ;;  %v1159_v23 = vadd.f32 %v1122_v24, %v1121_v16  ;;  %v863_v56 = vpop.f32.mrf.mxu0  ;;  %279 = vst.msk [vmem:[#allocation2 + $0x8] sm:$0xff] %vm277_vm0, %v1628_v42 }
 0x142   : > { %v811_v20 = vpop.f32.mrf.mxu3  ;;  %v946_v32 = vadd.f32 %v860_v46, %v763_v53  ;;  %v912_v36 = vpop.f32.mrf.mxu1  ;;  %280 = vst.msk [vmem:[#allocation2 + $0x10] sm:$0xff] %vm277_vm0, %v1628_v42 }
 0x143   : > { %v812_v57 = vadd.f32 %v811_v20, %v2225_v6  ;;  %1160 = vadd.xlane.f32.xlu1 %v1159_v23  ;;  %1031 = vadd.xlane.f32.xlu0 %v1030_v55  ;;  %281 = vst.msk [vmem:[#allocation2 + $0x18] sm:$0xff] %vm277_vm0, %v1628_v42 }
 0x144   : > { %978 = vst [vmem:[%s2239_s15 + $0x70] sm:$0xff] %v946_v32  ;;  %v1123_v38 = vmul.f32 %v946_v32, %v946_v32 }
 0x145   : > { %v947_v33 = vadd.f32 %v909_v26, %v812_v57  ;;  %282 = vst.msk [vmem:[#allocation2 + $0x20] sm:$0xff] %vm277_vm0, %v1628_v42 }
 0x146   : > { %283 = vst.msk [vmem:[#allocation2 + $0x28] sm:$0xff] %vm277_vm0, %v1628_v42 }
 0x147   : > { %979 = vst [vmem:[%s2239_s15 + $0x78] sm:$0xff] %v947_v33  ;;  %v1124_v0 = vmul.f32 %v947_v33, %v947_v33  ;;  %v765_v30 = vpop.f32.mrf.mxu2  ;;  %v1033_v2 = vadd.f32 %v947_v33, %v946_v32 }
 0x148   : > { %v766_v8 = vadd.f32 %v765_v30, %v2169_v41  ;;  %284 = vst.msk [vmem:[#allocation2 + $0x30] sm:$0xff] %vm277_vm0, %v1628_v42 }
 0x149   : > { %v1162_v25 = vadd.f32 %v1124_v0, %v1123_v38  ;;  %v865_v1 = vpop.f32.mrf.mxu0  ;;  %285 = vst.msk [vmem:[#allocation2 + $0x38] sm:$0xff] %vm277_vm0, %v1628_v42 }
 0x14a   : > { %v814_v31 = vpop.f32.mrf.mxu3  ;;  %v948_v22 = vadd.f32 %v863_v56, %v766_v8  ;;  %v914_v28 = vpop.f32.mrf.mxu1  ;;  %286 = vst.msk [vmem:[#allocation2 + $0x40] sm:$0xff] %vm277_vm0, %v1628_v42 }
 0x14b   : > { %v815_v6 = vadd.f32 %v814_v31, %v2171_v27  ;;  %1163 = vadd.xlane.f32.xlu2 %v1162_v25  ;;  %1034 = vadd.xlane.f32.xlu1 %v1033_v2  ;;  %287 = vst.msk [vmem:[#allocation2 + $0x48] sm:$0xff] %vm277_vm0, %v1628_v42 }
 0x14c   : > { %980 = vst [vmem:[%s2239_s15 + $0x80] sm:$0xff] %v948_v22  ;;  %v1125_v48 = vmul.f32 %v948_v22, %v948_v22 }
 0x14d   : > { %v949_v3 = vadd.f32 %v912_v36, %v815_v6  ;;  %288 = vst.msk [vmem:[#allocation2 + $0x50] sm:$0xff] %vm277_vm0, %v1628_v42 }
 0x14e   : > { %289 = vst.msk [vmem:[#allocation2 + $0x58] sm:$0xff] %vm277_vm0, %v1628_v42 }
 0x14f   : > { %981 = vst [vmem:[%s2239_s15 + $0x88] sm:$0xff] %v949_v3  ;;  %v1126_v61 = vmul.f32 %v949_v3, %v949_v3  ;;  %v767_v54 = vpop.f32.mrf.mxu2  ;;  %v1036_v60 = vadd.f32 %v949_v3, %v948_v22 }
 0x150   : > { %v768_v41 = vadd.f32 %v767_v54, %v2179_v58  ;;  %290 = vst.msk [vmem:[#allocation2 + $0x60] sm:$0xff] %vm277_vm0, %v1628_v42 }
 0x151   : > { %v1165_v7 = vadd.f32 %v1126_v61, %v1125_v48  ;;  %v868_v45 = vpop.f32.mrf.mxu0  ;;  %291 = vst.msk [vmem:[#allocation2 + $0x68] sm:$0xff] %vm277_vm0, %v1628_v42 }
 0x152   : > { %v816_v44 = vpop.f32.mrf.mxu3  ;;  %v950_v51 = vadd.f32 %v865_v1, %v768_v41  ;;  %v917_v62 = vpop.f32.mrf.mxu1  ;;  %292 = vst.msk [vmem:[#allocation2 + $0x70] sm:$0xff] %vm277_vm0, %v1628_v42 }
 0x153   : > { %v817_v27 = vadd.f32 %v816_v44, %v2181_v12  ;;  %1166 = vadd.xlane.f32.xlu0 %v1165_v7  ;;  %1037 = vadd.xlane.f32.xlu2 %v1036_v60  ;;  %293 = vst.msk [vmem:[#allocation2 + $0x78] sm:$0xff] %vm277_vm0, %v1628_v42 }
 0x154   : > { %982 = vst [vmem:[%s2239_s15 + $0x90] sm:$0xff] %v950_v51  ;;  %v1127_v35 = vmul.f32 %v950_v51, %v950_v51 }
 0x155   : > { %v951_v18 = vadd.f32 %v914_v28, %v817_v27  ;;  %294 = vst.msk [vmem:[#allocation3] sm:$0xff] %vm277_vm0, %v1628_v42 }
 0x156   : > { %295 = vst.msk [vmem:[#allocation3 + $0x8] sm:$0xff] %vm277_vm0, %v1628_v42 }
 0x157   : > { %983 = vst [vmem:[%s2239_s15 + $0x98] sm:$0xff] %v951_v18  ;;  %v1128_v19 = vmul.f32 %v951_v18, %v951_v18  ;;  %v770_v52 = vpop.f32.mrf.mxu2  ;;  %v1039_v10 = vadd.f32 %v951_v18, %v950_v51 }
 0x158   : > { %v771_v58 = vadd.f32 %v770_v52, %v2187_v59  ;;  %296 = vst.msk [vmem:[#allocation3 + $0x10] sm:$0xff] %vm277_vm0, %v1628_v42 }
 0x159   : > { %v1168_v14 = vadd.f32 %v1128_v19, %v1127_v35  ;;  %v870_v50 = vpop.f32.mrf.mxu0  ;;  %297 = vst.msk [vmem:[#allocation3 + $0x18] sm:$0xff] %vm277_vm0, %v1628_v42 }
 0x15a   : > { %v819_v40 = vpop.f32.mrf.mxu3  ;;  %v952_v43 = vadd.f32 %v868_v45, %v771_v58  ;;  %v919_v29 = vpop.f32.mrf.mxu1  ;;  %298 = vst.msk [vmem:[#allocation3 + $0x20] sm:$0xff] %vm277_vm0, %v1628_v42 }
 0x15b   : > { %v820_v12 = vadd.f32 %v819_v40, %v2189_v9  ;;  %1040 = vadd.xlane.f32.xlu0 %v1039_v10  ;;  %1169 = vadd.xlane.f32.xlu1 %v1168_v14  ;;  %299 = vst.msk [vmem:[#allocation3 + $0x28] sm:$0xff] %vm277_vm0, %v1628_v42 }
 0x15c   : > { %984 = vst [vmem:[%s2239_s15 + $0xa0] sm:$0xff] %v952_v43  ;;  %v1129_v26 = vmul.f32 %v952_v43, %v952_v43 }
 0x15d   : > { %v953_v46 = vadd.f32 %v917_v62, %v820_v12  ;;  %300 = vst.msk [vmem:[#allocation3 + $0x30] sm:$0xff] %vm277_vm0, %v1628_v42  ;;  %v996_v62 = vld [vmem:[#allocation2] sm:$0xff] }
 0x15e   : > { %301 = vst.msk [vmem:[#allocation3 + $0x38] sm:$0xff] %vm277_vm0, %v1628_v42 }
 0x15f   : > { %985 = vst [vmem:[%s2239_s15 + $0xa8] sm:$0xff] %v953_v46  ;;  %v1130_v39 = vmul.f32 %v953_v46, %v953_v46  ;;  %v772_v59 = vpop.f32.mrf.mxu2  ;;  %v1042_v16 = vadd.f32 %v953_v46, %v952_v43 }
 0x160   : > { %v773_v17 = vadd.f32 %v772_v59, %v2195_v49  ;;  %302 = vst.msk [vmem:[#allocation3 + $0x40] sm:$0xff] %vm277_vm0, %v1628_v42  ;;  %v997_v59 = vld [vmem:[#allocation2 + $0x8] sm:$0xff] }
 0x161   : > { %v1171_v9 = vadd.f32 %v1130_v39, %v1129_v26  ;;  %v873_v53 = vpop.f32.mrf.mxu0  ;;  %303 = vst.msk [vmem:[#allocation3 + $0x48] sm:$0xff] %vm277_vm0, %v1628_v42 }
 0x162   : > { %v821_v24 = vpop.f32.mrf.mxu3  ;;  %v954_v23 = vadd.f32 %v870_v50, %v773_v17  ;;  %v922_v49 = vpop.f32.mrf.mxu1  ;;  %304 = vst.msk [vmem:[#allocation3 + $0x50] sm:$0xff] %vm277_vm0, %v1628_v42 }
 0x163   : > { %v822_v4 = vadd.f32 %v821_v24, %v2197_v11  ;;  %1172 = vadd.xlane.f32.xlu2 %v1171_v9  ;;  %1043 = vadd.xlane.f32.xlu1 %v1042_v16  ;;  %305 = vst.msk [vmem:[#allocation3 + $0x58] sm:$0xff] %vm277_vm0, %v1628_v42  ;;  %v1094_v24 = vld [vmem:[#allocation3 + $0x8] sm:$0xff] }
 0x164   : > { %986 = vst [vmem:[%s2239_s15 + $0xb0] sm:$0xff] %v954_v23  ;;  %v1131_v20 = vmul.f32 %v954_v23, %v954_v23 }
 0x165   : > { %v955_v55 = vadd.f32 %v919_v29, %v822_v4  ;;  %306 = vst.msk [vmem:[#allocation3 + $0x60] sm:$0xff] %vm277_vm0, %v1628_v42 }
 0x166   : > { %307 = vst.msk [vmem:[#allocation3 + $0x68] sm:$0xff] %vm277_vm0, %v1628_v42 }
 0x167   : > { %987 = vst [vmem:[%s2239_s15 + $0xb8] sm:$0xff] %v955_v55  ;;  %v1132_v57 = vmul.f32 %v955_v55, %v955_v55  ;;  %v775_v11 = vpop.f32.mrf.mxu2  ;;  %v1045_v32 = vadd.f32 %v955_v55, %v954_v23 }
 0x168   : > { %v776_v36 = vadd.f32 %v775_v11, %v2203_v63  ;;  %308 = vst.msk [vmem:[#allocation3 + $0x70] sm:$0xff] %vm277_vm0, %v1628_v42  ;;  %v1095_v11 = vld [vmem:[#allocation3 + $0x10] sm:$0xff] }
 0x169   : > { %v1174_v56 = vadd.f32 %v1132_v57, %v1131_v20  ;;  %v875_v25 = vpop.f32.mrf.mxu0  ;;  %309 = vst.msk [vmem:[#allocation3 + $0x78] sm:$0xff] %vm277_vm0, %v1628_v42  ;;  %v998_v20 = vld [vmem:[#allocation2 + $0x10] sm:$0xff] }
 0x16a   : > { %v824_v33 = vpop.f32.mrf.mxu3  ;;  %v956_v0 = vadd.f32 %v873_v53, %v776_v36  ;;  %v924_v8 = vpop.f32.mrf.mxu1 }
 0x16b   : > { %v825_v38 = vadd.f32 %v824_v33, %v2205_v13  ;;  %1175 = vadd.xlane.f32.xlu0 %v1174_v56  ;;  %1046 = vadd.xlane.f32.xlu2 %v1045_v32 }
 0x16c   : > { %988 = vst [vmem:[%s2239_s15 + $0xc0] sm:$0xff] %v956_v0  ;;  %v1133_v63 = vmul.f32 %v956_v0, %v956_v0 }
 0x16d   : > { %v957_v30 = vadd.f32 %v922_v49, %v825_v38 }
 0x16f   : > { %989 = vst [vmem:[%s2239_s15 + $0xc8] sm:$0xff] %v957_v30  ;;  %v1134_v2 = vmul.f32 %v957_v30, %v957_v30  ;;  %v777_v13 = vpop.f32.mrf.mxu2  ;;  %v1048_v31 = vadd.f32 %v957_v30, %v956_v0  ;;  %v999_v0 = vld [vmem:[#allocation2 + $0x18] sm:$0xff] }
 0x170   : > { %v778_v1 = vadd.f32 %v777_v13, %v2211_v47  ;;  %v1000_v13 = vld [vmem:[#allocation2 + $0x20] sm:$0xff] }
 0x171   : > { %v1177_v6 = vadd.f32 %v1134_v2, %v1133_v63  ;;  %v878_v47 = vpop.f32.mrf.mxu0 }
 0x172   : > { %v826_v22 = vpop.f32.mrf.mxu3  ;;  %v958_v3 = vadd.f32 %v875_v25, %v778_v1  ;;  %v927_v54 = vpop.f32.mrf.mxu1 }
 0x173   : > { %v827_v28 = vadd.f32 %v826_v22, %v2213_v37  ;;  %1049 = vadd.xlane.f32.xlu0 %v1048_v31  ;;  %1178 = vadd.xlane.f32.xlu1 %v1177_v6 }
 0x174   : > { %990 = vst [vmem:[%s2239_s15 + $0xd0] sm:$0xff] %v958_v3  ;;  %v1135_v19 = vmul.f32 %v958_v3, %v958_v3 }
 0x175   : > { %v959_v48 = vadd.f32 %v924_v8, %v827_v28  ;;  %v1096_v8 = vld [vmem:[#allocation3 + $0x18] sm:$0xff] }
 0x177   : > { %991 = vst [vmem:[%s2239_s15 + $0xd8] sm:$0xff] %v959_v48  ;;  %v780_v37 = vpop.f32.mrf.mxu2  ;;  %v1051_v61 = vadd.f32 %v959_v48, %v958_v3  ;;  %v1136_v52 = vmul.f32 %v959_v48, %v959_v48  ;;  %v1097_v3 = vld [vmem:[#allocation3 + $0x20] sm:$0xff] }
 0x178   : > { %v781_v7 = vadd.f32 %v780_v37, %v2219_v21 }
 0x179   : > { %v880_v18 = vpop.f32.mrf.mxu0  ;;  %v1180_v46 = vadd.f32 %v1136_v52, %v1135_v19  ;;  %v1100_v52 = vld [vmem:[#allocation3 + $0x38] sm:$0xff] }
 0x17a   : > { %v829_v60 = vpop.f32.mrf.mxu3  ;;  %v960_v44 = vadd.f32 %v878_v47, %v781_v7  ;;  %v929_v10 = vpop.f32.mrf.mxu1  ;;  %v1098_v47 = vld [vmem:[#allocation3 + $0x28] sm:$0xff] }
 0x17b   : > { %v830_v41 = vadd.f32 %v829_v60, %v2221_v5  ;;  %1052 = vadd.xlane.f32.xlu1 %v1051_v61 }
 0x17c   : > { %992 = vst [vmem:[%s2239_s15 + $0xe0] sm:$0xff] %v960_v44  ;;  %v1137_v9 = vmul.f32 %v960_v44, %v960_v44 }
 0x17d   : > { %v961_v27 = vadd.f32 %v927_v54, %v830_v41  ;;  %v1001_v41 = vld [vmem:[#allocation2 + $0x28] sm:$0xff] }
 0x17f   : > { %993 = vst [vmem:[%s2239_s15 + $0xe8] sm:$0xff] %v961_v27  ;;  %v1054_v21 = vadd.f32 %v961_v27, %v960_v44  ;;  %v782_v5 = vpop.f32.mrf.mxu2  ;;  %v1138_v16 = vmul.f32 %v961_v27, %v961_v27  ;;  %v1099_v27 = vld [vmem:[#allocation3 + $0x30] sm:$0xff] }
 0x180   : > { %v783_v45 = vadd.f32 %v782_v5, %v2228_v34  ;;  %v1093_v34 = vld [vmem:[#allocation3] sm:$0xff] }
 0x181   : > { %1055 = vadd.xlane.f32.xlu2 %v1054_v21  ;;  %v1183_v53 = vadd.f32 %v1138_v16, %v1137_v9  ;;  %v1002_v21 = vld [vmem:[#allocation2 + $0x30] sm:$0xff] }
 0x182   : > { %v831_v51 = vpop.f32.mrf.mxu3  ;;  %v962_v14 = vadd.f32 %v880_v18, %v783_v45 }
 0x183   : > { %v832_v35 = vadd.f32 %v831_v51, %v2230_v15 }
 0x184   : > { %v1014_v58 = vpop.xlane.xlu0 %1013  ;;  %994 = vst [vmem:[%s2239_s15 + $0xf0] sm:$0xff] %v962_v14  ;;  %v1139_v50 = vmul.f32 %v962_v14, %v962_v14 }
 0x185   : > { %v963_v40 = vadd.f32 %v929_v10, %v832_v35  ;;  %v1060_v12 = vadd.f32 %v1014_v58, %v996_v62  ;;  %v1003_v10 = vld [vmem:[#allocation2 + $0x38] sm:$0xff] }
 0x186   : > { %v1143_v15 = vpop.xlane.xlu1 %1142 }
 0x187   : > { %995 = vst [vmem:[%s2239_s15 + $0xf8] sm:$0xff] %v963_v40  ;;  %v1189_v43 = vadd.f32 %v1143_v15, %v1093_v34  ;;  %v1057_v29 = vadd.f32 %v963_v40, %v962_v14  ;;  %v1140_v26 = vmul.f32 %v963_v40, %v963_v40 }
 0x188   : > { %1077 = vst.msk [vmem:[#allocation2] sm:$0xff] %vm277_vm0, %v1060_v12 }
 0x189   : > { %1058 = vadd.xlane.f32.xlu0 %v1057_v29  ;;  %1181 = vadd.xlane.f32.xlu2 %v1180_v46  ;;  %v1186_v39 = vadd.f32 %v1140_v26, %v1139_v50  ;;  %1205 = vst.msk [vmem:[#allocation3] sm:$0xff] %vm277_vm0, %v1189_v43  ;;  %v1101_v43 = vld [vmem:[#allocation3 + $0x40] sm:$0xff] }
 0x18a   : > { %v1004_v29 = vld [vmem:[#allocation2 + $0x40] sm:$0xff] }
 0x18b   : > { %1187 = vadd.xlane.f32.xlu1 %v1186_v39 }
 0x18c   : > { %v1017_v17 = vpop.xlane.xlu0 %1016 }
 0x18d   : > { %v1061_v4 = vadd.f32 %v1017_v17, %v997_v59  ;;  %v1005_v17 = vld [vmem:[#allocation2 + $0x48] sm:$0xff] }
 0x18e   : > { %v1146_v42 = vpop.xlane.xlu2 %1145 }
 0x18f   : > { %v1224_v23 = vld [vmem:[#allocation2] sm:$0xff]  ;;  %1078 = vst.msk [vmem:[#allocation2 + $0x8] sm:$0xff] %vm277_vm0, %v1061_v4  ;;  %v1190_v55 = vadd.f32 %v1146_v42, %v1094_v24  ;;  %v1102_v24 = vld [vmem:[#allocation3 + $0x48] sm:$0xff] }
 0x190   : > { %1240 = vst.msk [vmem:[%s2373_s25] sm:$0xff] %vm277_vm0, %v1224_v23  ;;  %v1256_v49 = vld [vmem:[#allocation3] sm:$0xff] }
 0x191   : > { %1206 = vst.msk [vmem:[#allocation3 + $0x8] sm:$0xff] %vm277_vm0, %v1190_v55  ;;  %1184 = vadd.xlane.f32.xlu0 %v1183_v53 }
 0x192   : > { %1272 = vst.msk [vmem:[%s2378_s18] sm:$0xff] %vm277_vm0, %v1256_v49 }
 0x194   : > { %v1020_v57 = vpop.xlane.xlu1 %1019 }
 0x195   : > { %v1062_v56 = vadd.f32 %v1020_v57, %v998_v20  ;;  %v1103_v20 = vld [vmem:[#allocation3 + $0x50] sm:$0xff] }
 0x196   : > { %v1225_v32 = vld [vmem:[#allocation2 + $0x8] sm:$0xff]  ;;  %v1149_v36 = vpop.xlane.xlu0 %1148  ;;  %v1006_v57 = vld [vmem:[#allocation2 + $0x50] sm:$0xff] }
 0x197   : > { %1241 = vst.msk [vmem:[%s2373_s25 + $0x8] sm:$0xff] %vm277_vm0, %v1225_v32  ;;  %v1191_v33 = vadd.f32 %v1149_v36, %v1095_v11 }
 0x198   : > { %v1257_v38 = vld [vmem:[#allocation3 + $0x8] sm:$0xff]  ;;  %1079 = vst.msk [vmem:[#allocation2 + $0x10] sm:$0xff] %vm277_vm0, %v1062_v56 }
 0x199   : > { %1273 = vst.msk [vmem:[%s2378_s18 + $0x8] sm:$0xff] %vm277_vm0, %v1257_v38 }
 0x19a   : > { %1207 = vst.msk [vmem:[#allocation3 + $0x10] sm:$0xff] %vm277_vm0, %v1191_v33 }
 0x19c   : > { %v1023_v30 = vpop.xlane.xlu1 %1022 }
 0x19d   : > { %v1063_v63 = vadd.f32 %v1023_v30, %v999_v0  ;;  %v1104_v0 = vld [vmem:[#allocation3 + $0x58] sm:$0xff] }
 0x19e   : > { %v1007_v30 = vld [vmem:[#allocation2 + $0x58] sm:$0xff] }
 0x19f   : > { %v1226_v25 = vld [vmem:[#allocation2 + $0x10] sm:$0xff]  ;;  %1080 = vst.msk [vmem:[#allocation2 + $0x18] sm:$0xff] %vm277_vm0, %v1063_v63 }
 0x1a0   : > { %1242 = vst.msk [vmem:[%s2373_s25 + $0x10] sm:$0xff] %vm277_vm0, %v1226_v25 }
 0x1a1   : > { %v1258_v2 = vld [vmem:[#allocation3 + $0x10] sm:$0xff] }
 0x1a2   : > { %1274 = vst.msk [vmem:[%s2378_s18 + $0x10] sm:$0xff] %vm277_vm0, %v1258_v2 }
 0x1a4   : > { %v1152_v31 = vpop.xlane.xlu1 %1151  ;;  %v1026_v6 = vpop.xlane.xlu2 %1025 }
 0x1a5   : > { %v1192_v1 = vadd.f32 %v1152_v31, %v1096_v8  ;;  %v1064_v22 = vadd.f32 %v1026_v6, %v1000_v13  ;;  %v1008_v6 = vld [vmem:[#allocation2 + $0x60] sm:$0xff] }
 0x1a6   : > { %v1227_v28 = vld [vmem:[#allocation2 + $0x18] sm:$0xff] }
 0x1a7   : > { %1243 = vst.msk [vmem:[%s2373_s25 + $0x18] sm:$0xff] %vm277_vm0, %v1227_v28 }
 0x1a8   : > { %1208 = vst.msk [vmem:[#allocation3 + $0x18] sm:$0xff] %vm277_vm0, %v1192_v1  ;;  %v1105_v1 = vld [vmem:[#allocation3 + $0x60] sm:$0xff] }
 0x1a9   : > { %1081 = vst.msk [vmem:[#allocation2 + $0x20] sm:$0xff] %vm277_vm0, %v1064_v22 }
 0x1ac   : > { %v1155_v48 = vpop.xlane.xlu2 %1154 }
 0x1ad   : > { %v1193_v37 = vadd.f32 %v1155_v48, %v1097_v3 }
 0x1ae   : > { %v1158_v61 = vpop.xlane.xlu0 %1157 }
 0x1af   : > { %v1259_v54 = vld [vmem:[#allocation3 + $0x18] sm:$0xff]  ;;  %1209 = vst.msk [vmem:[#allocation3 + $0x20] sm:$0xff] %vm277_vm0, %v1193_v37  ;;  %v1194_v7 = vadd.f32 %v1158_v61, %v1098_v47  ;;  %v1009_v61 = vld [vmem:[#allocation2 + $0x68] sm:$0xff] }
 0x1b0   : > { %1275 = vst.msk [vmem:[%s2378_s18 + $0x18] sm:$0xff] %vm277_vm0, %v1259_v54  ;;  %v1228_v60 = vld [vmem:[#allocation2 + $0x20] sm:$0xff] }
 0x1b1   : > { %1244 = vst.msk [vmem:[%s2373_s25 + $0x20] sm:$0xff] %vm277_vm0, %v1228_v60 }
 0x1b2   : > { %1210 = vst.msk [vmem:[#allocation3 + $0x28] sm:$0xff] %vm277_vm0, %v1194_v7 }
 0x1b4   : > { %v1029_v44 = vpop.xlane.xlu2 %1028 }
 0x1b5   : > { %v1065_v5 = vadd.f32 %v1029_v44, %v1001_v41  ;;  %v1010_v44 = vld [vmem:[#allocation2 + $0x70] sm:$0xff] }
 0x1b6   : > { %v1260_v45 = vld [vmem:[#allocation3 + $0x20] sm:$0xff]  ;;  %v1161_v51 = vpop.xlane.xlu1 %1160  ;;  %v1032_v62 = vpop.xlane.xlu0 %1031 }
 0x1b7   : > { %1276 = vst.msk [vmem:[%s2378_s18 + $0x20] sm:$0xff] %vm277_vm0, %v1260_v45  ;;  %v1195_v18 = vadd.f32 %v1161_v51, %v1099_v27  ;;  %v1066_v35 = vadd.f32 %v1032_v62, %v1002_v21  ;;  %v1011_v45 = vld [vmem:[#allocation2 + $0x78] sm:$0xff]  ;;  %v1106_v51 = vld [vmem:[#allocation3 + $0x68] sm:$0xff] }
 0x1b8   : > { %1082 = vst.msk [vmem:[#allocation2 + $0x28] sm:$0xff] %vm277_vm0, %v1065_v5 }
 0x1b9   : > { %v1261_v19 = vld [vmem:[#allocation3 + $0x28] sm:$0xff]  ;;  %1211 = vst.msk [vmem:[#allocation3 + $0x30] sm:$0xff] %vm277_vm0, %v1195_v18 }
 0x1ba   : > { %1277 = vst.msk [vmem:[%s2378_s18 + $0x28] sm:$0xff] %vm277_vm0, %v1261_v19 }
 0x1bb   : > { %1083 = vst.msk [vmem:[#allocation2 + $0x30] sm:$0xff] %vm277_vm0, %v1066_v35  ;;  %v1108_v35 = vld [vmem:[#allocation3 + $0x78] sm:$0xff] }
 0x1be   : > { %v1164_v14 = vpop.xlane.xlu2 %1163  ;;  %v1035_v58 = vpop.xlane.xlu1 %1034 }
 0x1bf   : > { %v1229_v34 = vld [vmem:[#allocation2 + $0x28] sm:$0xff]  ;;  %v1196_v40 = vadd.f32 %v1164_v14, %v1100_v52  ;;  %v1067_v15 = vadd.f32 %v1035_v58, %v1003_v10 }
 0x1c0   : > { %1245 = vst.msk [vmem:[%s2373_s25 + $0x28] sm:$0xff] %vm277_vm0, %v1229_v34  ;;  %v1262_v12 = vld [vmem:[#allocation3 + $0x30] sm:$0xff] }
 0x1c1   : > { %1278 = vst.msk [vmem:[%s2378_s18 + $0x30] sm:$0xff] %vm277_vm0, %v1262_v12  ;;  %v1107_v34 = vld [vmem:[#allocation3 + $0x70] sm:$0xff] }
 0x1c2   : > { %v1230_v50 = vld [vmem:[#allocation2 + $0x30] sm:$0xff]  ;;  %1212 = vst.msk [vmem:[#allocation3 + $0x38] sm:$0xff] %vm277_vm0, %v1196_v40 }
 0x1c3   : > { %1246 = vst.msk [vmem:[%s2373_s25 + $0x30] sm:$0xff] %vm277_vm0, %v1230_v50 }
 0x1c4   : > { %1084 = vst.msk [vmem:[#allocation2 + $0x38] sm:$0xff] %vm277_vm0, %v1067_v15 }
 0x1c6   : > { %v1167_v46 = vpop.xlane.xlu0 %1166  ;;  %v1038_v26 = vpop.xlane.xlu2 %1037 }
 0x1c7   : > { %v1197_v39 = vadd.f32 %v1167_v46, %v1101_v43  ;;  %v1068_v59 = vadd.f32 %v1038_v26, %v1004_v29 }
 0x1c9   : > { %v1263_v9 = vld [vmem:[#allocation3 + $0x38] sm:$0xff]  ;;  %1213 = vst.msk [vmem:[#allocation3 + $0x40] sm:$0xff] %vm277_vm0, %v1197_v39 }
 0x1ca   : > { %1279 = vst.msk [vmem:[%s2378_s18 + $0x38] sm:$0xff] %vm277_vm0, %v1263_v9 }
 0x1cb   : > { %v1231_v16 = vld [vmem:[#allocation2 + $0x38] sm:$0xff]  ;;  %1085 = vst.msk [vmem:[#allocation2 + $0x40] sm:$0xff] %vm277_vm0, %v1068_v59 }
 0x1cc   : > { %1247 = vst.msk [vmem:[%s2373_s25 + $0x38] sm:$0xff] %vm277_vm0, %v1231_v16 }
 0x1ce   : > { %v1041_v4 = vpop.xlane.xlu0 %1040  ;;  %v1170_v42 = vpop.xlane.xlu1 %1169 }
 0x1cf   : > { %v1069_v23 = vadd.f32 %v1041_v4, %v1005_v17  ;;  %v1198_v53 = vadd.f32 %v1170_v42, %v1102_v24 }
 0x1d0   : > { %v1264_v55 = vld [vmem:[#allocation3 + $0x40] sm:$0xff] }
 0x1d1   : > { %1280 = vst.msk [vmem:[%s2378_s18 + $0x40] sm:$0xff] %vm277_vm0, %v1264_v55 }
 0x1d2   : > { %v1232_v49 = vld [vmem:[#allocation2 + $0x40] sm:$0xff]  ;;  %1086 = vst.msk [vmem:[#allocation2 + $0x48] sm:$0xff] %vm277_vm0, %v1069_v23 }
 0x1d3   : > { %1248 = vst.msk [vmem:[%s2373_s25 + $0x40] sm:$0xff] %vm277_vm0, %v1232_v49 }
 0x1d4   : > { %1214 = vst.msk [vmem:[#allocation3 + $0x48] sm:$0xff] %vm277_vm0, %v1198_v53 }
 0x1d6   : > { %v1173_v11 = vpop.xlane.xlu2 %1172  ;;  %v1044_v56 = vpop.xlane.xlu1 %1043 }
 0x1d7   : > { %v1199_v32 = vadd.f32 %v1173_v11, %v1103_v20  ;;  %v1070_v36 = vadd.f32 %v1044_v56, %v1006_v57 }
 0x1d9   : > { %v1233_v33 = vld [vmem:[#allocation2 + $0x48] sm:$0xff]  ;;  %1215 = vst.msk [vmem:[#allocation3 + $0x50] sm:$0xff] %vm277_vm0, %v1199_v32 }
 0x1da   : > { %1249 = vst.msk [vmem:[%s2373_s25 + $0x48] sm:$0xff] %vm277_vm0, %v1233_v33 }
 0x1db   : > { %v1265_v38 = vld [vmem:[#allocation3 + $0x48] sm:$0xff]  ;;  %1087 = vst.msk [vmem:[#allocation2 + $0x50] sm:$0xff] %vm277_vm0, %v1070_v36 }
 0x1dc   : > { %1281 = vst.msk [vmem:[%s2378_s18 + $0x48] sm:$0xff] %vm277_vm0, %v1265_v38 }
 0x1de   : > { %v1176_v63 = vpop.xlane.xlu0 %1175  ;;  %v1047_v25 = vpop.xlane.xlu2 %1046 }
 0x1df   : > { %v1200_v2 = vadd.f32 %v1176_v63, %v1104_v0  ;;  %v1071_v13 = vadd.f32 %v1047_v25, %v1007_v30 }
 0x1e0   : > { %v1266_v8 = vld [vmem:[#allocation3 + $0x50] sm:$0xff] }
 0x1e1   : > { %1282 = vst.msk [vmem:[%s2378_s18 + $0x50] sm:$0xff] %vm277_vm0, %v1266_v8 }
 0x1e2   : > { %v1234_v31 = vld [vmem:[#allocation2 + $0x50] sm:$0xff]  ;;  %1216 = vst.msk [vmem:[#allocation3 + $0x58] sm:$0xff] %vm277_vm0, %v1200_v2 }
 0x1e3   : > { %1250 = vst.msk [vmem:[%s2373_s25 + $0x50] sm:$0xff] %vm277_vm0, %v1234_v31 }
 0x1e4   : > { %1088 = vst.msk [vmem:[#allocation2 + $0x58] sm:$0xff] %vm277_vm0, %v1071_v13 }
 0x1e6   : > { %v1050_v22 = vpop.xlane.xlu0 %1049  ;;  %v1179_v28 = vpop.xlane.xlu1 %1178 }
 0x1e7   : > { %v1072_v3 = vadd.f32 %v1050_v22, %v1008_v6  ;;  %v1201_v48 = vadd.f32 %v1179_v28, %v1105_v1 }
 0x1e9   : > { %v1267_v47 = vld [vmem:[#allocation3 + $0x58] sm:$0xff]  ;;  %1089 = vst.msk [vmem:[#allocation2 + $0x60] sm:$0xff] %vm277_vm0, %v1072_v3 }
 0x1ea   : > { %1283 = vst.msk [vmem:[%s2378_s18 + $0x58] sm:$0xff] %vm277_vm0, %v1267_v47 }
 0x1eb   : > { %v1235_v37 = vld [vmem:[#allocation2 + $0x58] sm:$0xff]  ;;  %1217 = vst.msk [vmem:[#allocation3 + $0x60] sm:$0xff] %vm277_vm0, %v1201_v48 }
 0x1ec   : > { %1251 = vst.msk [vmem:[%s2373_s25 + $0x58] sm:$0xff] %vm277_vm0, %v1235_v37 }
 0x1ee   : > { %v1053_v54 = vpop.xlane.xlu1 %1052 }
 0x1ef   : > { %v1073_v7 = vadd.f32 %v1053_v54, %v1009_v61 }
 0x1f0   : > { %v1236_v60 = vld [vmem:[#allocation2 + $0x60] sm:$0xff] }
 0x1f1   : > { %1252 = vst.msk [vmem:[%s2373_s25 + $0x60] sm:$0xff] %vm277_vm0, %v1236_v60 }
 0x1f2   : > { %v1268_v41 = vld [vmem:[#allocation3 + $0x60] sm:$0xff]  ;;  %1090 = vst.msk [vmem:[#allocation2 + $0x68] sm:$0xff] %vm277_vm0, %v1073_v7 }
 0x1f3   : > { %1284 = vst.msk [vmem:[%s2378_s18 + $0x60] sm:$0xff] %vm277_vm0, %v1268_v41 }
 0x1f4   : > { %v1056_v27 = vpop.xlane.xlu2 %1055 }
 0x1f5   : > { %v1074_v21 = vadd.f32 %v1056_v27, %v1010_v44 }
 0x1f7   : > { %1091 = vst.msk [vmem:[#allocation2 + $0x70] sm:$0xff] %vm277_vm0, %v1074_v21 }
 0x1f9   : > { %v1237_v5 = vld [vmem:[#allocation2 + $0x68] sm:$0xff] }
 0x1fa   : > { %1253 = vst.msk [vmem:[%s2373_s25 + $0x68] sm:$0xff] %vm277_vm0, %v1237_v5 }
 0x1fc   : > { %v1059_v62 = vpop.xlane.xlu0 %1058  ;;  %v1182_v18 = vpop.xlane.xlu2 %1181 }
 0x1fd   : > { %v1075_v19 = vadd.f32 %v1059_v62, %v1011_v45  ;;  %v1202_v52 = vadd.f32 %v1182_v18, %v1106_v51 }
 0x1fe   : > { %v1238_v10 = vld [vmem:[#allocation2 + $0x70] sm:$0xff]  ;;  %v1188_v14 = vpop.xlane.xlu1 %1187 }
 0x1ff   : > { %1254 = vst.msk [vmem:[%s2373_s25 + $0x70] sm:$0xff] %vm277_vm0, %v1238_v10  ;;  %v1204_v58 = vadd.f32 %v1188_v14, %v1108_v35 }
 0x200   : > { %1092 = vst.msk [vmem:[#allocation2 + $0x78] sm:$0xff] %vm277_vm0, %v1075_v19 }
 0x201   : > { %1218 = vst.msk [vmem:[#allocation3 + $0x68] sm:$0xff] %vm277_vm0, %v1202_v52 }
 0x202   : > { %1220 = vst.msk [vmem:[#allocation3 + $0x78] sm:$0xff] %vm277_vm0, %v1204_v58 }
 0x204   : > { %v1185_v40 = vpop.xlane.xlu0 %1184 }
 0x205   : > { %v1203_v12 = vadd.f32 %v1185_v40, %v1107_v34 }
 0x207   : > { %v1239_v15 = vld [vmem:[#allocation2 + $0x78] sm:$0xff]  ;;  %1219 = vst.msk [vmem:[#allocation3 + $0x70] sm:$0xff] %vm277_vm0, %v1203_v12 }
 0x208   : > { %1255 = vst.msk [vmem:[%s2373_s25 + $0x78] sm:$0xff] %vm277_vm0, %v1239_v15  ;;  %v1269_v50 = vld [vmem:[#allocation3 + $0x68] sm:$0xff] }
 0x209   : > { %1285 = vst.msk [vmem:[%s2378_s18 + $0x68] sm:$0xff] %vm277_vm0, %v1269_v50  ;;  %v1271_v43 = vld [vmem:[#allocation3 + $0x78] sm:$0xff] }
 0x20a   : > { %1287 = vst.msk [vmem:[%s2378_s18 + $0x78] sm:$0xff] %vm277_vm0, %v1271_v43 }
 0x20e   : > { %v1270_v29 = vld [vmem:[#allocation3 + $0x70] sm:$0xff] }
 0x20f   : > { %1286 = vst.msk [vmem:[%s2378_s18 + $0x70] sm:$0xff] %vm277_vm0, %v1270_v29 }
 0x210 PF: > { %s18_s20 = sadd.s32 1, %s1624_s20   ;;  %s2578_s15 = smov %s1608_s16 }
 0x211   : > { %p15_p0 = scmp.ge.s32.totalorder %s18_s20, 4   ;;  %s2579_s16 = smov %s1612_s17 }
 0x212   : > { %s2580_s17 = smov %s1703_s27  ;;  %s2581_s18 = smov %s1620_s19 }
 0x213   : > { %s2582_s19 = smov %s2584_s22  ;;  %17 = sbr.rel (!%p15_p0) target bundleno = 4 (0x4), region = 100 }
 0x218   :  { %1350 = vsyncpa [#allocation5], 1 }
 0x219   :  { %1352 = vsyncpa [#allocation5 + $0x1], 1 }

// kernel: point_transformer_last.14
= control target key start
LH: loop header
LB: loop body
LE: loop exit
PB: predicated region body
PF: predicated region fallthrough
CT: control target
= control target key end

     0   :  { %s1540_s15 = smov 0   ;;  %s1542_s16 = smov 0   ;;  %s2324_s0 = inlined_call_operand.vmem [shape: f32[2,128,256], index: 0, kind: input, shape index: {}]   ;;  %s2325_s1 = inlined_call_operand.vmem [shape: f32[128,128], index: 1, kind: input, shape index: {}]   ;;  %s2326_s2 = inlined_call_operand.vmem [shape: f32[2,128,256], index: 2, kind: output, shape index: {0}]   ;;  %s2327_s3 = inlined_call_operand.vmem [shape: f32[2,128,1], index: 3, kind: output, shape index: {1}]   ;;  %s2328_s4 = inlined_call_operand.vmem [shape: f32[2,128,1], index: 4, kind: output, shape index: {2}]  }
   0x1   :  { %s1544_s17 = smov 0  }
   0x2 LB: > { %s27_s18 = sadd.s32 1, %s1508_s16  ;;  %p1434_p0 = scmp.ge.s32.totalorder %s1512_s17, 1  ;;  %s1512_s17 = sphi %s1544_s17, %s15_s17   ;;  %s1508_s16 = sphi %s1542_s16, %s2409_s16   ;;  %s1504_s15 = sphi %s1540_s15, %s2408_s15  }
   0x3   : > { %p29_p1 = scmp.ge.s32.totalorder %s27_s18, 2  ;;  %p188_p2 = scmp.lt.s32.totalorder %s1512_s17, 3 }
   0x5   : > { %s2411_s18 = smov (%p29_p1, %s27_s18), 0  ;;  %p189_p3 = pnand %p1434_p0, %p188_p2 }
   0x7   : > { %192 = sbr.rel (%p189_p3) target bundleno = 516 (0x204), region = 28 }
   0xc   : > { %p233_p4 = scmp.lt.s32.totalorder %s1504_s15, 1  ;;  %vm266_vm0 = vcmask 7168  }
   0xe   : > { %s2413_s15 = smov (!%p233_p4, %s1504_s15), 1 }
   0xf   : > { %s1445_s19 = sshll.u32 %s2413_s15, 8 }
  0x10   : > { %s1566_s22 = scalar_lea.vmem %s2324_s0, %s1445_s19  ;;  %s2081_s10 = scalar_lea.vmem %s2326_s2, %s1445_s19 }
  0x11   : > { %v1569_v0 = vld [vmem:[%s1566_s22 + $0xe0] sm:$0xff]  ;;  %v1572_v1 = vld [vmem:[%s1566_s22 + $0xe8] sm:$0xff]  ;;  %v1575_v2 = vld [vmem:[%s1566_s22 + $0xf0] sm:$0xff]  ;;  %s1447_s19 = sshll.u32 %s2413_s15, 7 }
  0x12   : > { %v1578_v3 = vld [vmem:[%s1566_s22 + $0xf8] sm:$0xff]  ;;  %v1582_v4 = vpack.c.bf16 %v1572_v1, %v1569_v0  ;;  %v1585_v5 = vld [vmem:[%s1566_s22 + $0xc0] sm:$0xff]  ;;  %v1588_v6 = vld [vmem:[%s1566_s22 + $0xc8] sm:$0xff]  ;;  %s2214_s13 = scalar_lea.vmem %s2327_s3, %s1447_s19  ;;  %s2219_s15 = scalar_lea.vmem %s2328_s4, %s1447_s19 }
  0x13   : > { %v1592_v7 = vpack.c.bf16 %v1578_v3, %v1575_v2  ;;  %v1595_v8 = vld [vmem:[%s1566_s22 + $0xd0] sm:$0xff]  ;;  %v1598_v9 = vld [vmem:[%s1566_s22 + $0xd8] sm:$0xff]  ;;  %v1602_v10 = vpack.c.bf16 %v1588_v6, %v1585_v5  ;;  %v1605_v11 = vld [vmem:[%s1566_s22 + $0xa0] sm:$0xff] }
  0x14   : > { %v543_v12 = vunpack.c.l.b16 %v1582_v4  ;;  %v544_v13 = vunpack.c.h.b16 %v1582_v4  ;;  %v1611_v14 = vpack.c.bf16 %v1598_v9, %v1595_v8  ;;  %v1614_v15 = vld [vmem:[%s1566_s22 + $0xa8] sm:$0xff]  ;;  %v1617_v16 = vld [vmem:[%s1566_s22 + $0xb0] sm:$0xff]  ;;  %v1620_v17 = vld [vmem:[%s1566_s22 + $0xb8] sm:$0xff] }
  0x15   : > { %v545_v18 = vunpack.c.l.b16 %v1592_v7  ;;  %v546_v19 = vunpack.c.h.b16 %v1592_v7  ;;  %v539_v20 = vunpack.c.l.b16 %v1602_v10  ;;  %v540_v21 = vunpack.c.h.b16 %v1602_v10  ;;  %v1627_v22 = vld [vmem:[%s1566_s22 + $0x80] sm:$0xff]  ;;  %v1630_v23 = vld [vmem:[%s1566_s22 + $0x88] sm:$0xff]  ;;  %v1643_v28 = vld [vmem:[%s1566_s22 + $0x90] sm:$0xff] }
  0x16   : > { %v541_v24 = vunpack.c.l.b16 %v1611_v14  ;;  %v542_v25 = vunpack.c.h.b16 %v1611_v14  ;;  %v1636_v26 = vpack.c.bf16 %v1614_v15, %v1605_v11  ;;  %v1640_v27 = vpack.c.bf16 %v1620_v17, %v1617_v16  ;;  %v1646_v29 = vld [vmem:[%s1566_s22 + $0x98] sm:$0xff]  ;;  %v1667_v37 = vld [vmem:[%s1566_s22 + $0x60] sm:$0xff]  ;;  %v1676_v41 = vld [vmem:[%s1566_s22 + $0x68] sm:$0xff] }
  0x17   : > { %v1648_v30 = vpack.c.b16 %v545_v18, %v543_v12  ;;  %v1650_v31 = vpack.c.b16 %v546_v19, %v544_v13  ;;  %v1654_v32 = vpack.c.bf16 %v1630_v23, %v1627_v22  ;;  %v1664_v36 = vpack.c.bf16 %v1646_v29, %v1643_v28  ;;  %v1679_v42 = vld [vmem:[%s1566_s22 + $0x70] sm:$0xff]  ;;  %v1682_v43 = vld [vmem:[%s1566_s22 + $0x78] sm:$0xff]  ;;  %v1699_v49 = vld [vmem:[%s1566_s22 + $0x40] sm:$0xff] }
  0x18   : > { %v1658_v33 = vpack.c.b16 %v541_v24, %v539_v20  ;;  %v535_v34 = vunpack.c.l.b16 %v1636_v26  ;;  %v537_v35 = vunpack.c.l.b16 %v1640_v27  ;;  %v1671_v38 = vpack.c.b16 %v542_v25, %v540_v21  ;;  %2358 = vst [vmem:[#allocation4_spill] sm:$0xff] %v1699_v49  ;;  %v1702_v50 = vld [vmem:[%s1566_s22 + $0x48] sm:$0xff]  ;;  %v1711_v54 = vld [vmem:[%s1566_s22 + $0x50] sm:$0xff]  ;;  %v1714_v55 = vld [vmem:[%s1566_s22 + $0x58] sm:$0xff] }
  0x19   : > { %579 = vmatpush.bf16.msra.mxu0 %v1648_v30  ;;  %1449 = vmatpush.bf16.msra.mxu2 %v1648_v30  ;;  %v536_v39 = vunpack.c.h.b16 %v1636_v26  ;;  %v538_v40 = vunpack.c.h.b16 %v1640_v27  ;;  %v531_v44 = vunpack.c.l.b16 %v1654_v32  ;;  %v533_v46 = vunpack.c.l.b16 %v1664_v36  ;;  %2359 = vst [vmem:[#allocation5_spill] sm:$0xff] %v1702_v50  ;;  %v1731_v61 = vld [vmem:[%s1566_s22 + $0x20] sm:$0xff]  ;;  %v1740_v13 = vld [vmem:[%s1566_s22 + $0x28] sm:$0xff]  ;;  %v1743_v18 = vld [vmem:[%s1566_s22 + $0x30] sm:$0xff] }
  0x1a   : > { %628 = vmatpush.bf16.msra.mxu1 %v1650_v31  ;;  %1457 = vmatpush.bf16.msra.mxu3 %v1650_v31  ;;  %v1687_v45 = vpack.c.b16 %v537_v35, %v535_v34  ;;  %v1692_v47 = vpack.c.bf16 %v1676_v41, %v1667_v37  ;;  %v1696_v48 = vpack.c.bf16 %v1682_v43, %v1679_v42  ;;  %v532_v52 = vunpack.c.h.b16 %v1654_v32  ;;  %v1746_v19 = vld [vmem:[%s1566_s22 + $0x38] sm:$0xff]  ;;  %v299_v20 = vld [vmem:[%s2325_s1] sm:$0xff]  ;;  %v300_v21 = vld [vmem:[%s2325_s1 + $0x8] sm:$0xff] }
  0x1b   : > { %v1706_v51 = vpack.c.b16 %v538_v40, %v536_v39  ;;  %v534_v53 = vunpack.c.h.b16 %v1664_v36  ;;  %2360 = vst [vmem:[#allocation6_spill] sm:$0xff] %v1711_v54  ;;  %v1718_v56 = vpack.c.bf16 %v1702_v50, %v1699_v49  ;;  %v1722_v57 = vpack.c.b16 %v533_v46, %v531_v44  ;;  %v1756_v25 = vld [vmem:[%s1566_s22] sm:$0xff]  ;;  %v1759_v34 = vld [vmem:[%s1566_s22 + $0x8] sm:$0xff] }
  0x1c   : > { %2361 = vst [vmem:[#allocation7_spill] sm:$0xff] %v1714_v55  ;;  %v527_v58 = vunpack.c.l.b16 %v1692_v47  ;;  %v529_v59 = vunpack.c.l.b16 %v1696_v48  ;;  %v1728_v60 = vpack.c.bf16 %v1714_v55, %v1711_v54  ;;  %v528_v63 = vunpack.c.h.b16 %v1692_v47  ;;  %v307_v35 = vld [vmem:[%s2325_s1 + $0x40] sm:$0xff]  ;;  %v308_v55 = vld [vmem:[%s2325_s1 + $0x48] sm:$0xff] }
  0x1d   : > { %580 = vmatpush.bf16.msra.mxu0 %v1658_v33  ;;  %1450 = vmatpush.bf16.msra.mxu2 %v1658_v33  ;;  %2362 = vst [vmem:[#allocation8_spill] sm:$0xff] %v1718_v56  ;;  %v1735_v62 = vpack.c.b16 %v534_v53, %v532_v52  ;;  %v530_v12 = vunpack.c.h.b16 %v1696_v48  ;;  %v523_v24 = vunpack.c.l.b16 %v1718_v56  ;;  %v1771_v44 = vpack.c.bf16 %v1740_v13, %v1731_v61  ;;  %v1778_v52 = vld [vmem:[%s1566_s22 + $0x10] sm:$0xff]  ;;  %v1781_v53 = vld [vmem:[%s1566_s22 + $0x18] sm:$0xff] }
  0x1e   : > { %629 = vmatpush.bf16.msra.mxu1 %v1671_v38  ;;  %1458 = vmatpush.bf16.msra.mxu3 %v1671_v38  ;;  %2363 = vst [vmem:[#allocation9_spill] sm:$0xff] %v1722_v57  ;;  %v1766_v39 = vpack.c.b16 %v529_v59, %v527_v58  ;;  %v525_v40 = vunpack.c.l.b16 %v1728_v60  ;;  %v1775_v46 = vpack.c.bf16 %v1746_v19, %v1743_v18  ;;  %v524_v59 = vunpack.c.h.b16 %v1718_v56 }
  0x1f   : > { %2364 = vst [vmem:[#allocation10_spill] sm:$0xff] %v1728_v60  ;;  %v1788_v58 = vpack.c.b16 %v530_v12, %v528_v63  ;;  %v1800_v50 = vpack.c.bf16 %v1759_v34, %v1756_v25  ;;  %v1804_v54 = vpack.c.bf16 %v1781_v53, %v1778_v52  ;;  %v1806_v63 = vpack.c.bf16 %v308_v55, %v308_v55 }
  0x20   : > { %2365 = vst [vmem:[#allocation11_spill] sm:$0xff] %v1731_v61  ;;  %v1796_v61 = vpack.c.bf16 %v307_v35, %v307_v35  ;;  %v1810_v12 = vpack.c.b16 %v525_v40, %v523_v24  ;;  %v519_v49 = vunpack.c.l.b16 %v1771_v44 }
  0x21   : > { %581 = vmatpush.bf16.msra.mxu0 %v1687_v45  ;;  %1451 = vmatpush.bf16.msra.mxu2 %v1687_v45  ;;  %2366 = vst [vmem:[#allocation12_spill] sm:$0xff] %v1735_v62  ;;  %v515_v40 = vunpack.c.l.b16 %v1800_v50 }
  0x22   : > { %630 = vmatpush.bf16.msra.mxu1 %v1706_v51  ;;  %1459 = vmatpush.bf16.msra.mxu3 %v1706_v51  ;;  %2367 = vst [vmem:[#allocation13_spill] sm:$0xff] %v1740_v13  ;;  %v526_v13 = vunpack.c.h.b16 %v1728_v60  ;;  %v521_v60 = vunpack.c.l.b16 %v1775_v46  ;;  %v371_v24 = vunpack.c.l.bf16 %v1796_v61 }
  0x23   : > { %2368 = vst [vmem:[#allocation14_spill] sm:$0xff] %v1743_v18  ;;  %v1794_v18 = vpack.c.bf16 %v300_v21, %v300_v21 }
  0x24   : > { %2369 = vst [vmem:[#allocation15_spill] sm:$0xff] %v1746_v19  ;;  %v1792_v19 = vpack.c.bf16 %v299_v20, %v299_v20 }
  0x25   : > { %2370 = vst [vmem:[#allocation16_spill] sm:$0xff] %v1756_v25  ;;  %582 = vmatpush.bf16.msra.mxu0 %v1722_v57  ;;  %1452 = vmatpush.bf16.msra.mxu2 %v1722_v57  ;;  %v364_v56 = vunpack.c.l.bf16 %v1794_v18 }
  0x26   : > { %2371 = vst [vmem:[#allocation17_spill] sm:$0xff] %v1759_v34  ;;  %631 = vmatpush.bf16.msra.mxu1 %v1735_v62  ;;  %1460 = vmatpush.bf16.msra.mxu3 %v1735_v62  ;;  %v1816_v34 = vpack.c.b16 %v526_v13, %v524_v59  ;;  %v363_v25 = vunpack.c.l.bf16 %v1792_v19  ;;  %v372_v62 = vunpack.c.l.bf16 %v1806_v63  ;;  %v1829_v13 = vpack.c.b16 %v521_v60, %v519_v49 }
  0x27   : > { %2372 = vst [vmem:[#allocation18_spill] sm:$0xff] %v1766_v39  ;;  %v449_v59 = vunpack.c.l.bf16 %v1592_v7  ;;  %v387_v60 = vsub.f32 %v307_v35, %v371_v24  ;;  %v446_v35 = vunpack.c.h.bf16 %v1611_v14 }
  0x28   : > { %2373 = vst [vmem:[#allocation19_spill] sm:$0xff] %v1771_v44  ;;  %v388_v57 = vsub.f32 %v308_v55, %v372_v62  ;;  %v443_v62 = vunpack.c.l.bf16 %v1602_v10 }
  0x29   : > { %2374 = vst [vmem:[#allocation20_spill] sm:$0xff] %v1775_v46  ;;  %583 = vmatpush.bf16.msra.mxu0 %v1766_v39  ;;  %1453 = vmatpush.bf16.msra.mxu2 %v1766_v39  ;;  %v517_v39 = vunpack.c.l.b16 %v1804_v54 }
  0x2a   : > { %2375 = vst [vmem:[#allocation21_spill] sm:$0xff] %v1778_v52  ;;  %632 = vmatpush.bf16.msra.mxu1 %v1788_v58  ;;  %1461 = vmatpush.bf16.msra.mxu3 %v1788_v58  ;;  %v522_v52 = vunpack.c.h.b16 %v1775_v46  ;;  %v448_v46 = vunpack.c.h.bf16 %v1582_v4 }
  0x2b   : > { %2376 = vst [vmem:[#allocation22_spill] sm:$0xff] %v1781_v53  ;;  %v520_v53 = vunpack.c.h.b16 %v1771_v44  ;;  %v1840_v49 = vpack.c.b16 %v517_v39, %v515_v40 }
  0x2c   : > { %2377 = vst [vmem:[#allocation23_spill] sm:$0xff] %v1788_v58  ;;  %v447_v58 = vunpack.c.l.bf16 %v1582_v4  ;;  %v480_v55 = vsub.f32 %v1572_v1, %v448_v46  ;;  %v442_v46 = vunpack.c.h.bf16 %v1640_v27 }
  0x2d   : > { %2378 = vst [vmem:[#allocation24_spill] sm:$0xff] %v1792_v19  ;;  %584 = vmatpush.bf16.msra.mxu0 %v1810_v12  ;;  %1454 = vmatpush.bf16.msra.mxu2 %v1810_v12  ;;  %v1836_v44 = vpack.c.b16 %v522_v52, %v520_v53  ;;  %v379_v19 = vsub.f32 %v299_v20, %v363_v25  ;;  %v1851_v52 = vld [vmem:[%s2325_s1 + $0x18] sm:$0xff]  ;;  %v444_v25 = vunpack.c.h.bf16 %v1602_v10 }
  0x2e   : > { %2379 = vst [vmem:[#allocation25_spill] sm:$0xff] %v1794_v18  ;;  %633 = vmatpush.bf16.msra.mxu1 %v1816_v34  ;;  %1462 = vmatpush.bf16.msra.mxu3 %v1816_v34  ;;  %v518_v18 = vunpack.c.h.b16 %v1804_v54  ;;  %v479_v4 = vsub.f32 %v1569_v0, %v447_v58  ;;  %v310_v10 = vld [vmem:[%s2325_s1 + $0x58] sm:$0xff]  ;;  %v475_v58 = vsub.f32 %v1585_v5, %v443_v62 }
  0x2f   : > { %2380 = vst [vmem:[#allocation26_spill] sm:$0xff] %v1796_v61  ;;  %v450_v61 = vunpack.c.h.bf16 %v1592_v7  ;;  %v1846_v7 = vld [vmem:[%s2325_s1 + $0x10] sm:$0xff]  ;;  %v1896_v24 = vpack.c.bf16 %v310_v10, %v310_v10 }
  0x30   : > { %2381 = vst [vmem:[#allocation27_spill] sm:$0xff] %v1806_v63  ;;  %v516_v63 = vunpack.c.h.b16 %v1800_v50  ;;  %v1868_v1 = vpack.c.bf16 %v1846_v7, %v1846_v7 }
  0x31   : > { %2382 = vst [vmem:[#allocation28_spill] sm:$0xff] %v1810_v12  ;;  %v380_v12 = vsub.f32 %v300_v21, %v364_v56  ;;  %585 = vmatpush.bf16.msra.mxu0 %v1829_v13  ;;  %1455 = vmatpush.bf16.msra.mxu2 %v1829_v13  ;;  %v481_v56 = vsub.f32 %v1575_v2, %v449_v59  ;;  %v445_v21 = vunpack.c.l.bf16 %v1611_v14  ;;  %v441_v14 = vunpack.c.l.bf16 %v1640_v27 }
  0x32   : > { %v482_v0 = vsub.f32 %v1578_v3, %v450_v61  ;;  %634 = vmatpush.bf16.msra.mxu1 %v1836_v44  ;;  %1463 = vmatpush.bf16.msra.mxu3 %v1836_v44  ;;  %v1861_v20 = vpack.c.b16 %v518_v18, %v516_v63  ;;  %v1872_v2 = vpack.c.bf16 %v1851_v52, %v1851_v52  ;;  %v439_v3 = vunpack.c.l.bf16 %v1636_v26  ;;  %v309_v18 = vld [vmem:[%s2325_s1 + $0x50] sm:$0xff] }
  0x33   : > { %v395_v39 = vpack.c.bf16 %v380_v12, %v379_v19  ;;  %v399_v61 = vpack.c.bf16 %v388_v57, %v387_v60  ;;  %v440_v19 = vunpack.c.h.bf16 %v1636_v26  ;;  %v497_v53 = vpack.c.bf16 %v481_v56, %v479_v4 }
  0x34   : > { %v498_v57 = vpack.c.bf16 %v482_v0, %v480_v55  ;;  %v477_v63 = vsub.f32 %v1595_v8, %v445_v21  ;;  %v476_v12 = vsub.f32 %v1588_v6, %v444_v25  ;;  %v478_v26 = vsub.f32 %v1598_v9, %v446_v35 }
  0x35   : > { %586 = vmatpush.bf16.msra.mxu0 %v1840_v49  ;;  %1456 = vmatpush.bf16.msra.mxu2 %v1840_v49  ;;  %v1894_v27 = vpack.c.bf16 %v309_v18, %v309_v18  ;;  %v471_v5 = vsub.f32 %v1605_v11, %v439_v3  ;;  %v473_v40 = vsub.f32 %v1617_v16, %v441_v14  ;;  %v435_v9 = vunpack.c.l.bf16 %v1654_v32 }
  0x36   : > { %635 = vmatpush.bf16.msra.mxu1 %v1861_v20  ;;  %1464 = vmatpush.bf16.msra.mxu3 %v1861_v20  ;;  %v472_v8 = vsub.f32 %v1614_v15, %v440_v19  ;;  %v474_v6 = vsub.f32 %v1620_v17, %v442_v46  ;;  %v496_v59 = vpack.c.bf16 %v478_v26, %v476_v12  ;;  %v436_v11 = vunpack.c.h.bf16 %v1654_v32  ;;  %v2387_v12 = vld [vmem:[#allocation23_spill] sm:$0xff]  ;;  %v2388_v26 = vld [vmem:[#allocation25_spill] sm:$0xff] }
  0x37   : > { %v438_v60 = vunpack.c.h.bf16 %v1664_v36  ;;  %v365_v15 = vunpack.c.l.bf16 %v1868_v1  ;;  %v366_v16 = vunpack.c.l.bf16 %v1872_v2  ;;  %v373_v17 = vunpack.c.l.bf16 %v1894_v27 }
  0x38   : > { %587 = vmatmul.bf16.vlgmr.msra.gmra.mxu0 %v395_v39  ;;  %607 = vmatmul.bf16.vlgmr.msra.gmra.mxu2 %v399_v61  ;;  %v374_v4 = vunpack.c.l.bf16 %v1896_v24  ;;  %v493_v56 = vpack.c.bf16 %v473_v40, %v471_v5  ;;  %v494_v55 = vpack.c.bf16 %v474_v6, %v472_v8  ;;  %v467_v0 = vsub.f32 %v1627_v22, %v435_v9  ;;  %v2389_v9 = vld [vmem:[#allocation8_spill] sm:$0xff] }
  0x39   : > { %725 = vmatpush.bf16.msrb.mxu2 %v1648_v30  ;;  %636 = vmatmul.bf16.vlgmr.msra.gmra.mxu1 %v395_v39  ;;  %v437_v30 = vunpack.c.l.bf16 %v1664_v36  ;;  %v431_v36 = vunpack.c.l.bf16 %v1692_v47  ;;  %v470_v62 = vsub.f32 %v1646_v29, %v438_v60  ;;  %v432_v21 = vunpack.c.h.bf16 %v1692_v47  ;;  %v304_v29 = vld [vmem:[%s2325_s1 + $0x28] sm:$0xff]  ;;  %v311_v47 = vld [vmem:[%s2325_s1 + $0x60] sm:$0xff] }
  0x3a   : > { %774 = vmatpush.bf16.msrb.mxu3 %v1650_v31  ;;  %823 = vmatpush.bf16.msrb.mxu0 %v497_v53  ;;  %v495_v31 = vpack.c.bf16 %v477_v63, %v475_v58  ;;  %v434_v25 = vunpack.c.h.bf16 %v1696_v48  ;;  %v381_v35 = vsub.f32 %v1846_v7, %v365_v15  ;;  %v382_v22 = vsub.f32 %v1851_v52, %v366_v16  ;;  %v2385_v53 = vld [vmem:[#allocation24_spill] sm:$0xff]  ;;  %v2386_v63 = vld [vmem:[#allocation18_spill] sm:$0xff]  ;;  %v2391_v15 = vld [vmem:[#allocation19_spill] sm:$0xff] }
  0x3b   : > { %656 = vmatmul.bf16.vlgmr.msra.gmra.mxu3 %v399_v61  ;;  %872 = vmatpush.bf16.msrb.mxu1 %v498_v57  ;;  %v469_v32 = vsub.f32 %v1643_v28, %v437_v30  ;;  %v389_v28 = vsub.f32 %v309_v18, %v373_v17  ;;  %v390_v39 = vsub.f32 %v310_v10, %v374_v4  ;;  %v2383_v18 = vld [vmem:[#allocation9_spill] sm:$0xff]  ;;  %v2384_v10 = vld [vmem:[#allocation12_spill] sm:$0xff]  ;;  %v693_v57 = vunpack.c.l.b16 %v2385_v53 }
  0x3c   : > { %v463_v7 = vsub.f32 %v1667_v37, %v431_v36  ;;  %v464_v52 = vsub.f32 %v1676_v41, %v432_v21  ;;  %v466_v3 = vsub.f32 %v1682_v43, %v434_v25  ;;  %v396_v61 = vpack.c.bf16 %v382_v22, %v381_v35  ;;  %v312_v37 = vld [vmem:[%s2325_s1 + $0x68] sm:$0xff]  ;;  %v2392_v17 = vld [vmem:[#allocation20_spill] sm:$0xff]  ;;  %v2397_v35 = vld [vmem:[#allocation7_spill] sm:$0xff] }
  0x3d   : > { %726 = vmatpush.bf16.msrb.mxu2 %v1658_v33  ;;  %v433_v33 = vunpack.c.l.bf16 %v1696_v48  ;;  %v491_v48 = vpack.c.bf16 %v469_v32, %v467_v0  ;;  %v400_v14 = vpack.c.bf16 %v390_v39, %v389_v28  ;;  %v1941_v46 = vpack.c.bf16 %v304_v29, %v304_v29  ;;  %v2393_v32 = vld [vmem:[#allocation28_spill] sm:$0xff]  ;;  %v2396_v21 = vld [vmem:[#allocation5_spill] sm:$0xff]  ;;  %v2398_v28 = vld [vmem:[#allocation11_spill] sm:$0xff] }
  0x3e   : > { %775 = vmatpush.bf16.msrb.mxu3 %v1671_v38  ;;  %824 = vmatpush.bf16.msrb.mxu0 %v495_v31  ;;  %v468_v38 = vsub.f32 %v1630_v23, %v436_v11  ;;  %v303_v23 = vld [vmem:[%s2325_s1 + $0x20] sm:$0xff]  ;;  %v490_v43 = vpack.c.bf16 %v466_v3, %v464_v52  ;;  %v1949_v58 = vpack.c.bf16 %v312_v37, %v312_v37  ;;  %v694_v5 = vunpack.c.l.b16 %v2388_v26  ;;  %v2390_v31 = vld [vmem:[#allocation10_spill] sm:$0xff] }
  0x3f   : > { %873 = vmatpush.bf16.msrb.mxu1 %v496_v59  ;;  %v1939_v19 = vpack.c.bf16 %v303_v23, %v303_v23  ;;  %v368_v8 = vunpack.c.l.bf16 %v1941_v46  ;;  %v427_v30 = vunpack.c.l.bf16 %v2389_v9  ;;  %v429_v59 = vunpack.c.l.bf16 %v2390_v31  ;;  %v2394_v36 = vld [vmem:[#allocation4_spill] sm:$0xff] }
  0x40   : > { %v428_v11 = vunpack.c.h.bf16 %v2389_v9  ;;  %v430_v60 = vunpack.c.h.bf16 %v2390_v31  ;;  %v423_v16 = vunpack.c.l.bf16 %v2391_v15  ;;  %v425_v4 = vunpack.c.l.bf16 %v2392_v17  ;;  %v2402_v9 = vld [vmem:[#allocation16_spill] sm:$0xff]  ;;  %v2403_v31 = vld [vmem:[#allocation21_spill] sm:$0xff] }
  0x41   : > { %727 = vmatpush.bf16.msrb.mxu2 %v1687_v45  ;;  %v465_v45 = vsub.f32 %v1679_v42, %v433_v33  ;;  %v1946_v42 = vpack.c.bf16 %v311_v47, %v311_v47  ;;  %v367_v40 = vunpack.c.l.bf16 %v1939_v19  ;;  %v376_v0 = vunpack.c.l.bf16 %v1949_v58 }
  0x42   : > { %776 = vmatpush.bf16.msrb.mxu3 %v1706_v51  ;;  %825 = vmatpush.bf16.msrb.mxu0 %v493_v56  ;;  %v492_v51 = vpack.c.bf16 %v470_v62, %v468_v38  ;;  %v424_v56 = vunpack.c.h.bf16 %v2391_v15  ;;  %v459_v33 = vsub.f32 %v2394_v36, %v427_v30  ;;  %v2395_v38 = vld [vmem:[#allocation6_spill] sm:$0xff]  ;;  %v460_v25 = vsub.f32 %v2396_v21, %v428_v11  ;;  %v2404_v11 = vld [vmem:[#allocation17_spill] sm:$0xff] }
  0x43   : > { %874 = vmatpush.bf16.msrb.mxu1 %v494_v55  ;;  %v489_v41 = vpack.c.bf16 %v465_v45, %v463_v7  ;;  %v375_v6 = vunpack.c.l.bf16 %v1946_v42  ;;  %v426_v55 = vunpack.c.h.bf16 %v2392_v17  ;;  %v461_v62 = vsub.f32 %v2395_v38, %v429_v59  ;;  %v2400_v45 = vld [vmem:[#allocation13_spill] sm:$0xff] }
  0x44   : > { %v462_v22 = vsub.f32 %v2397_v35, %v430_v60  ;;  %v455_v39 = vsub.f32 %v2398_v28, %v423_v16  ;;  %v383_v52 = vsub.f32 %v303_v23, %v367_v40  ;;  %v384_v53 = vsub.f32 %v304_v29, %v368_v8  ;;  %v2405_v60 = vld [vmem:[#allocation22_spill] sm:$0xff] }
  0x45   : > { %728 = vmatpush.bf16.msrb.mxu2 %v2383_v18  ;;  %v487_v3 = vpack.c.bf16 %v461_v62, %v459_v33  ;;  %v392_v23 = vsub.f32 %v312_v37, %v376_v0  ;;  %v305_v29 = vld [vmem:[%s2325_s1 + $0x30] sm:$0xff]  ;;  %v696_v37 = vunpack.c.l.b16 %v1872_v2  ;;  %v697_v21 = vunpack.c.l.b16 %v1939_v19 }
  0x46   : > { %777 = vmatpush.bf16.msrb.mxu3 %v2384_v10  ;;  %826 = vmatpush.bf16.msrb.mxu0 %v491_v48  ;;  %v2399_v48 = vld [vmem:[#allocation14_spill] sm:$0xff]  ;;  %v488_v10 = vpack.c.bf16 %v462_v22, %v460_v25  ;;  %v698_v25 = vunpack.c.l.b16 %v1941_v46 }
  0x47   : > { %875 = vmatpush.bf16.msrb.mxu1 %v492_v51  ;;  %v457_v7 = vsub.f32 %v2399_v48, %v425_v4  ;;  %v456_v51 = vsub.f32 %v2400_v45, %v424_v56  ;;  %v2406_v48 = vld [vmem:[#allocation26_spill] sm:$0xff] }
  0x48   : > { %592 = vmatmul.bf16.gmra.mxu0 %v396_v61  ;;  %612 = vmatmul.bf16.gmra.mxu2 %v400_v14  ;;  %v711_v35 = vpack.c.b16 %v698_v25, %v697_v21  ;;  %v701_v19 = vunpack.c.l.b16 %v2406_v48 }
  0x49   : > { %729 = vmatpush.bf16.msrb.mxu2 %v2386_v63  ;;  %641 = vmatmul.bf16.gmra.mxu1 %v396_v61  ;;  %v2401_v61 = vld [vmem:[#allocation15_spill] sm:$0xff]  ;;  %v391_v63 = vsub.f32 %v311_v47, %v375_v6  ;;  %v485_v26 = vpack.c.bf16 %v457_v7, %v455_v39  ;;  %v695_v47 = vunpack.c.l.b16 %v1868_v1  ;;  %v353_v6 = vpack.c.bf16 %v305_v29, %v305_v29 }
  0x4a   : > { %778 = vmatpush.bf16.msrb.mxu3 %v2387_v12  ;;  %827 = vmatpush.bf16.msrb.mxu0 %v489_v41  ;;  %v458_v18 = vsub.f32 %v2401_v61, %v426_v55  ;;  %v420_v41 = vunpack.c.h.bf16 %v1800_v50  ;;  %v709_v12 = vpack.c.b16 %v694_v5, %v693_v57  ;;  %v306_v57 = vld [vmem:[%s2325_s1 + $0x38] sm:$0xff]  ;;  %v705_v61 = vunpack.c.l.b16 %v1946_v42 }
  0x4b   : > { %661 = vmatmul.bf16.gmra.mxu3 %v400_v14  ;;  %876 = vmatpush.bf16.msrb.mxu1 %v490_v43  ;;  %v421_v14 = vunpack.c.l.bf16 %v1804_v54  ;;  %v422_v43 = vunpack.c.h.bf16 %v1804_v54  ;;  %v354_v1 = vpack.c.bf16 %v306_v57, %v306_v57  ;;  %v710_v16 = vpack.c.b16 %v696_v37, %v695_v47  ;;  %v2407_v7 = vld [vmem:[#allocation27_spill] sm:$0xff] }
  0x4c   : > { %v486_v40 = vpack.c.bf16 %v458_v18, %v456_v51  ;;  %v369_v17 = vunpack.c.l.bf16 %v353_v6  ;;  %v699_v22 = vunpack.c.l.b16 %v353_v6  ;;  %v702_v46 = vunpack.c.l.b16 %v2407_v7 }
  0x4d   : > { %730 = vmatpush.bf16.msrb.mxu2 %v2393_v32  ;;  %v453_v59 = vsub.f32 %v2403_v31, %v421_v14  ;;  %v454_v54 = vsub.f32 %v2405_v60, %v422_v43  ;;  %v370_v4 = vunpack.c.l.bf16 %v354_v1  ;;  %v700_v28 = vunpack.c.l.b16 %v354_v1 }
  0x4e   : > { %779 = vmatpush.bf16.msrb.mxu3 %v1816_v34  ;;  %v419_v34 = vunpack.c.l.bf16 %v1800_v50  ;;  %828 = vmatpush.bf16.msrb.mxu0 %v487_v3  ;;  %v452_v50 = vsub.f32 %v2404_v11, %v420_v41  ;;  %v385_v0 = vsub.f32 %v305_v29, %v369_v17  ;;  %v713_v45 = vpack.c.b16 %v702_v46, %v701_v19 }
  0x4f   : > { %877 = vmatpush.bf16.msrb.mxu1 %v488_v10  ;;  %v386_v32 = vsub.f32 %v306_v57, %v370_v4  ;;  %v712_v39 = vpack.c.b16 %v700_v28, %v699_v22  ;;  %v703_v51 = vunpack.c.l.b16 %v1894_v27  ;;  %v706_v18 = vunpack.c.l.b16 %v1949_v58 }
  0x50   : > { %v451_v30 = vsub.f32 %v2402_v9, %v419_v34  ;;  %v484_v8 = vpack.c.bf16 %v454_v54, %v452_v50 }
  0x51   : > { %731 = vmatpush.bf16.msrb.mxu2 %v1829_v13  ;;  %v397_v13 = vpack.c.bf16 %v384_v53, %v383_v52  ;;  %v398_v38 = vpack.c.bf16 %v386_v32, %v385_v0  ;;  %v704_v52 = vunpack.c.l.b16 %v1896_v24  ;;  %v715_v14 = vpack.c.b16 %v706_v18, %v705_v61 }
  0x52   : > { %780 = vmatpush.bf16.msrb.mxu3 %v1836_v44  ;;  %v401_v44 = vpack.c.bf16 %v392_v23, %v391_v63  ;;  %829 = vmatpush.bf16.msrb.mxu0 %v485_v26  ;;  %v483_v5 = vpack.c.bf16 %v453_v59, %v451_v30 }
  0x53   : > { %878 = vmatpush.bf16.msrb.mxu1 %v486_v40  ;;  %v714_v3 = vpack.c.b16 %v704_v52, %v703_v51 }
  0x55   : > { %732 = vmatpush.bf16.msrb.mxu2 %v1840_v49  ;;  %v313_v49 = vld [vmem:[%s2325_s1 + $0x70] sm:$0xff] }
  0x56   : > { %781 = vmatpush.bf16.msrb.mxu3 %v1861_v20  ;;  %v314_v20 = vld [vmem:[%s2325_s1 + $0x78] sm:$0xff]  ;;  %v2002_v15 = vpack.c.bf16 %v313_v49, %v313_v49  ;;  %830 = vmatpush.bf16.msrb.mxu0 %v483_v5 }
  0x57   : > { %v2004_v2 = vpack.c.bf16 %v314_v20, %v314_v20  ;;  %879 = vmatpush.bf16.msrb.mxu1 %v484_v8 }
  0x58   : > { %597 = vmatmul.bf16.gmra.mxu0 %v397_v13  ;;  %617 = vmatmul.bf16.gmra.mxu2 %v401_v44  ;;  %v377_v56 = vunpack.c.l.bf16 %v2002_v15  ;;  %v707_v53 = vunpack.c.l.b16 %v2002_v15 }
  0x59   : > { %646 = vmatmul.bf16.gmra.mxu1 %v397_v13  ;;  %v378_v55 = vunpack.c.l.bf16 %v2004_v2  ;;  %v708_v42 = vunpack.c.l.b16 %v2004_v2 }
  0x5a   : > { %v393_v36 = vsub.f32 %v313_v49, %v377_v56 }
  0x5b   : > { %666 = vmatmul.bf16.gmra.mxu3 %v401_v44  ;;  %v394_v33 = vsub.f32 %v314_v20, %v378_v55  ;;  %v716_v26 = vpack.c.b16 %v708_v42, %v707_v53 }
  0x5d   : > { %v402_v62 = vpack.c.bf16 %v394_v33, %v393_v36 }
  0x68   : > { %602 = vmatmul.bf16.gmra.mxu0 %v398_v38  ;;  %622 = vmatmul.bf16.gmra.mxu2 %v402_v62 }
  0x69   : > { %651 = vmatmul.bf16.gmra.mxu1 %v398_v38 }
  0x6b   : > { %671 = vmatmul.bf16.gmra.mxu3 %v402_v62 }
  0x78   : > { %733 = vmatmul.bf16.vlgmr.msrb.gmra.mxu2 %v709_v12  ;;  %831 = vmatmul.bf16.vlgmr.msrb.gmra.mxu0 %v709_v12 }
  0x79   : > { %880 = vmatmul.bf16.vlgmr.msrb.gmra.mxu1 %v709_v12 }
  0x7b   : > { %782 = vmatmul.bf16.vlgmr.msrb.gmra.mxu3 %v709_v12 }
  0x88   : > { %738 = vmatmul.bf16.gmra.mxu2 %v710_v16  ;;  %836 = vmatmul.bf16.gmra.mxu0 %v710_v16 }
  0x89   : > { %885 = vmatmul.bf16.gmra.mxu1 %v710_v16 }
  0x8b   : > { %787 = vmatmul.bf16.gmra.mxu3 %v710_v16 }
  0x98   : > { %743 = vmatmul.bf16.gmra.mxu2 %v711_v35  ;;  %841 = vmatmul.bf16.gmra.mxu0 %v711_v35 }
  0x99   : > { %890 = vmatmul.bf16.gmra.mxu1 %v711_v35 }
  0x9b   : > { %792 = vmatmul.bf16.gmra.mxu3 %v711_v35 }
  0xa8   : > { %748 = vmatmul.bf16.gmra.mxu2 %v712_v39  ;;  %846 = vmatmul.bf16.gmra.mxu0 %v712_v39 }
  0xa9   : > { %895 = vmatmul.bf16.gmra.mxu1 %v712_v39 }
  0xab   : > { %797 = vmatmul.bf16.gmra.mxu3 %v712_v39 }
  0xb5   : > { %v588_v34 = vpop.f32.mrf.mxu0 }
  0xb6   : > { %v637_v10 = vpop.f32.mrf.mxu1 }
  0xb8   : > { %753 = vmatmul.bf16.gmra.mxu2 %v713_v45  ;;  %851 = vmatmul.bf16.gmra.mxu0 %v713_v45 }
  0xb9   : > { %900 = vmatmul.bf16.gmra.mxu1 %v713_v45 }
  0xbb   : > { %802 = vmatmul.bf16.gmra.mxu3 %v713_v45  ;;  %v2016_v41 = vpop.f32.mrf.mxu2 }
  0xbd   : > { %v590_v24 = vpop.f32.mrf.mxu0 }
  0xbe   : > { %v2018_v27 = vpop.f32.mrf.mxu3  ;;  %v2020_v43 = vpop.f32.mrf.mxu1 }
  0xc3   : > { %v2024_v63 = vpop.f32.mrf.mxu2 }
  0xc5   : > { %v2028_v12 = vpop.f32.mrf.mxu0 }
  0xc6   : > { %v2026_v58 = vpop.f32.mrf.mxu3  ;;  %v2030_v23 = vpop.f32.mrf.mxu1 }
  0xc8   : > { %758 = vmatmul.bf16.gmra.mxu2 %v714_v3  ;;  %856 = vmatmul.bf16.gmra.mxu0 %v714_v3 }
  0xc9   : > { %905 = vmatmul.bf16.gmra.mxu1 %v714_v3 }
  0xcb   : > { %807 = vmatmul.bf16.gmra.mxu3 %v714_v3  ;;  %v2032_v40 = vpop.f32.mrf.mxu2 }
  0xcd   : > { %v2036_v30 = vpop.f32.mrf.mxu0 }
  0xce   : > { %v2034_v9 = vpop.f32.mrf.mxu3  ;;  %v2038_v31 = vpop.f32.mrf.mxu1 }
  0xd3   : > { %v2040_v59 = vpop.f32.mrf.mxu2 }
  0xd5   : > { %v2044_v50 = vpop.f32.mrf.mxu0 }
  0xd6   : > { %v2042_v11 = vpop.f32.mrf.mxu3  ;;  %v2046_v60 = vpop.f32.mrf.mxu1 }
  0xd8   : > { %763 = vmatmul.bf16.gmra.mxu2 %v715_v14  ;;  %861 = vmatmul.bf16.gmra.mxu0 %v715_v14 }
  0xd9   : > { %910 = vmatmul.bf16.gmra.mxu1 %v715_v14 }
  0xdb   : > { %812 = vmatmul.bf16.gmra.mxu3 %v715_v14  ;;  %v2048_v54 = vpop.f32.mrf.mxu2 }
  0xdd   : > { %v2052_v44 = vpop.f32.mrf.mxu0 }
  0xde   : > { %v2050_v13 = vpop.f32.mrf.mxu3  ;;  %v2054_v29 = vpop.f32.mrf.mxu1 }
  0xe3   : > { %v2056_v47 = vpop.f32.mrf.mxu2 }
  0xe5   : > { %v2060_v57 = vpop.f32.mrf.mxu0 }
  0xe6   : > { %v2058_v37 = vpop.f32.mrf.mxu3  ;;  %v2062_v49 = vpop.f32.mrf.mxu1 }
  0xe8   : > { %768 = vmatmul.bf16.gmra.mxu2 %v716_v26  ;;  %866 = vmatmul.bf16.gmra.mxu0 %v716_v26 }
  0xe9   : > { %915 = vmatmul.bf16.gmra.mxu1 %v716_v26 }
  0xeb   : > { %817 = vmatmul.bf16.gmra.mxu3 %v716_v26  ;;  %v2064_v20 = vpop.f32.mrf.mxu2 }
  0xed   : > { %v2068_v8 = vpop.f32.mrf.mxu0 }
  0xee   : > { %v2066_v5 = vpop.f32.mrf.mxu3  ;;  %v2070_v6 = vpop.f32.mrf.mxu1 }
  0xf3   : > { %v2072_v1 = vpop.f32.mrf.mxu2 }
  0xf5   : > { %v832_v2 = vpop.f32.mrf.mxu0 }
  0xf6   : > { %v2074_v15 = vpop.f32.mrf.mxu3  ;;  %v881_v16 = vpop.f32.mrf.mxu1 }
  0xfb   : > { %v734_v17 = vpop.f32.mrf.mxu2 }
  0xfc   : > { %v735_v4 = vadd.f32 %v734_v17, %v588_v34 }
  0xfd   : > { %v834_v0 = vpop.f32.mrf.mxu0 }
  0xfe   : > { %v783_v56 = vpop.f32.mrf.mxu3  ;;  %v921_v32 = vadd.f32 %v832_v2, %v735_v4  ;;  %v883_v36 = vpop.f32.mrf.mxu1 }
  0xff   : > { %v784_v55 = vadd.f32 %v783_v56, %v637_v10 }
 0x100   : > { %953 = vst [vmem:[%s2081_s10] sm:$0xff] %v921_v32  ;;  %v1098_v38 = vmul.f32 %v921_v32, %v921_v32 }
 0x101   : > { %v922_v33 = vadd.f32 %v881_v16, %v784_v55 }
 0x103   : > { %954 = vst [vmem:[%s2081_s10 + $0x8] sm:$0xff] %v922_v33  ;;  %v1001_v62 = vadd.f32 %v922_v33, %v921_v32  ;;  %v1099_v21 = vmul.f32 %v922_v33, %v922_v33  ;;  %v736_v25 = vpop.f32.mrf.mxu2 }
 0x104   : > { %v737_v22 = vadd.f32 %v736_v25, %v590_v24 }
 0x105   : > { %1002 = vadd.xlane.f32.xlu0 %v1001_v62  ;;  %v1130_v35 = vadd.f32 %v1099_v21, %v1098_v38  ;;  %v837_v48 = vpop.f32.mrf.mxu0 }
 0x106   : > { %v785_v28 = vpop.f32.mrf.mxu3  ;;  %v923_v19 = vadd.f32 %v834_v0, %v737_v22  ;;  %v886_v7 = vpop.f32.mrf.mxu1 }
 0x107   : > { %v786_v39 = vadd.f32 %v785_v28, %v2020_v43  ;;  %1131 = vadd.xlane.f32.xlu1 %v1130_v35 }
 0x108   : > { %955 = vst [vmem:[%s2081_s10 + $0x10] sm:$0xff] %v923_v19  ;;  %v1100_v45 = vmul.f32 %v923_v19, %v923_v19 }
 0x109   : > { %v924_v46 = vadd.f32 %v883_v36, %v786_v39 }
 0x10b   : > { %956 = vst [vmem:[%s2081_s10 + $0x18] sm:$0xff] %v924_v46  ;;  %v1004_v51 = vadd.f32 %v924_v46, %v923_v19  ;;  %v1101_v52 = vmul.f32 %v924_v46, %v924_v46  ;;  %v739_v3 = vpop.f32.mrf.mxu2 }
 0x10c   : > { %v740_v18 = vadd.f32 %v739_v3, %v2028_v12 }
 0x10d   : > { %1005 = vadd.xlane.f32.xlu0 %v1004_v51  ;;  %v1133_v61 = vadd.f32 %v1101_v52, %v1100_v45  ;;  %v839_v14 = vpop.f32.mrf.mxu0 }
 0x10e   : > { %v788_v34 = vpop.f32.mrf.mxu3  ;;  %v925_v24 = vadd.f32 %v837_v48, %v740_v18  ;;  %v888_v43 = vpop.f32.mrf.mxu1 }
 0x10f   : > { %v789_v10 = vadd.f32 %v788_v34, %v2030_v23  ;;  %1134 = vadd.xlane.f32.xlu2 %v1133_v61 }
 0x110   : > { %957 = vst [vmem:[%s2081_s10 + $0x20] sm:$0xff] %v925_v24  ;;  %v1102_v42 = vmul.f32 %v925_v24, %v925_v24 }
 0x111   : > { %v926_v53 = vadd.f32 %v886_v7, %v789_v10 }
 0x113   : > { %958 = vst [vmem:[%s2081_s10 + $0x28] sm:$0xff] %v926_v53  ;;  %v1007_v26 = vadd.f32 %v926_v53, %v925_v24  ;;  %v1103_v2 = vmul.f32 %v926_v53, %v926_v53  ;;  %v741_v16 = vpop.f32.mrf.mxu2 }
 0x114   : > { %v742_v12 = vadd.f32 %v741_v16, %v2036_v30 }
 0x115   : > { %1008 = vadd.xlane.f32.xlu1 %v1007_v26  ;;  %v1136_v17 = vadd.f32 %v1103_v2, %v1102_v42  ;;  %v842_v56 = vpop.f32.mrf.mxu0 }
 0x116   : > { %v790_v4 = vpop.f32.mrf.mxu3  ;;  %v927_v55 = vadd.f32 %v839_v14, %v742_v12  ;;  %v891_v0 = vpop.f32.mrf.mxu1 }
 0x117   : > { %v791_v23 = vadd.f32 %v790_v4, %v2038_v31  ;;  %1137 = vadd.xlane.f32.xlu0 %v1136_v17 }
 0x118   : > { %959 = vst [vmem:[%s2081_s10 + $0x30] sm:$0xff] %v927_v55  ;;  %v1104_v25 = vmul.f32 %v927_v55, %v927_v55 }
 0x119   : > { %v928_v32 = vadd.f32 %v888_v43, %v791_v23 }
 0x11b   : > { %960 = vst [vmem:[%s2081_s10 + $0x38] sm:$0xff] %v928_v32  ;;  %v1010_v36 = vadd.f32 %v928_v32, %v927_v55  ;;  %v744_v33 = vpop.f32.mrf.mxu2  ;;  %v1105_v31 = vmul.f32 %v928_v32, %v928_v32 }
 0x11c   : > { %v745_v38 = vadd.f32 %v744_v33, %v2044_v50 }
 0x11d   : > { %1011 = vadd.xlane.f32.xlu1 %v1010_v36  ;;  %v844_v21 = vpop.f32.mrf.mxu0  ;;  %v1139_v39 = vadd.f32 %v1105_v31, %v1104_v25 }
 0x11e   : > { %v793_v62 = vpop.f32.mrf.mxu3  ;;  %v929_v35 = vadd.f32 %v842_v56, %v745_v38  ;;  %v893_v22 = vpop.f32.mrf.mxu1 }
 0x11f   : > { %v794_v30 = vadd.f32 %v793_v62, %v2046_v60 }
 0x120   : > { %961 = vst [vmem:[%s2081_s10 + $0x40] sm:$0xff] %v929_v35  ;;  %v1106_v45 = vmul.f32 %v929_v35, %v929_v35 }
 0x121   : > { %v930_v28 = vadd.f32 %v891_v0, %v794_v30 }
 0x123   : > { %962 = vst [vmem:[%s2081_s10 + $0x48] sm:$0xff] %v930_v28  ;;  %v1013_v48 = vadd.f32 %v930_v28, %v929_v35  ;;  %v746_v19 = vpop.f32.mrf.mxu2  ;;  %v1107_v51 = vmul.f32 %v930_v28, %v930_v28 }
 0x124   : > { %v747_v50 = vadd.f32 %v746_v19, %v2052_v44 }
 0x125   : > { %1140 = vadd.xlane.f32.xlu1 %v1139_v39  ;;  %1014 = vadd.xlane.f32.xlu2 %v1013_v48  ;;  %v847_v46 = vpop.f32.mrf.mxu0  ;;  %v1142_v34 = vadd.f32 %v1107_v51, %v1106_v45 }
 0x126   : > { %v795_v7 = vpop.f32.mrf.mxu3  ;;  %v931_v52 = vadd.f32 %v844_v21, %v747_v50  ;;  %v896_v3 = vpop.f32.mrf.mxu1 }
 0x127   : > { %v796_v60 = vadd.f32 %v795_v7, %v2054_v29 }
 0x128   : > { %963 = vst [vmem:[%s2081_s10 + $0x50] sm:$0xff] %v931_v52  ;;  %v1108_v18 = vmul.f32 %v931_v52, %v931_v52 }
 0x129   : > { %v932_v61 = vadd.f32 %v893_v22, %v796_v60 }
 0x12b   : > { %964 = vst [vmem:[%s2081_s10 + $0x58] sm:$0xff] %v932_v61  ;;  %v1109_v10 = vmul.f32 %v932_v61, %v932_v61  ;;  %v749_v14 = vpop.f32.mrf.mxu2  ;;  %v1016_v17 = vadd.f32 %v932_v61, %v931_v52 }
 0x12c   : > { %v750_v44 = vadd.f32 %v749_v14, %v2060_v57 }
 0x12d   : > { %1143 = vadd.xlane.f32.xlu2 %v1142_v34  ;;  %v1145_v24 = vadd.f32 %v1109_v10, %v1108_v18  ;;  %v849_v53 = vpop.f32.mrf.mxu0 }
 0x12e   : > { %v798_v43 = vpop.f32.mrf.mxu3  ;;  %v933_v42 = vadd.f32 %v847_v46, %v750_v44  ;;  %v898_v26 = vpop.f32.mrf.mxu1 }
 0x12f   : > { %v799_v29 = vadd.f32 %v798_v43, %v2062_v49  ;;  %1146 = vadd.xlane.f32.xlu0 %v1145_v24 }
 0x130   : > { %965 = vst [vmem:[%s2081_s10 + $0x60] sm:$0xff] %v933_v42  ;;  %v1110_v16 = vmul.f32 %v933_v42, %v933_v42 }
 0x131   : > { %v934_v2 = vadd.f32 %v896_v3, %v799_v29 }
 0x133   : > { %966 = vst [vmem:[%s2081_s10 + $0x68] sm:$0xff] %v934_v2  ;;  %v1111_v12 = vmul.f32 %v934_v2, %v934_v2  ;;  %v751_v4 = vpop.f32.mrf.mxu2  ;;  %v1019_v56 = vadd.f32 %v934_v2, %v933_v42  ;;  %v1514_v42 = vmov 0.0  }
 0x134   : > { %v752_v57 = vadd.f32 %v751_v4, %v2068_v8  ;;  %267 = vst.msk [vmem:[#allocation2] sm:$0xff] %vm266_vm0, %v1514_v42 }
 0x135   : > { %1017 = vadd.xlane.f32.xlu2 %v1016_v17  ;;  %v1148_v23 = vadd.f32 %v1111_v12, %v1110_v16  ;;  %v852_v0 = vpop.f32.mrf.mxu0  ;;  %268 = vst.msk [vmem:[#allocation2 + $0x8] sm:$0xff] %vm266_vm0, %v1514_v42 }
 0x136   : > { %v800_v55 = vpop.f32.mrf.mxu3  ;;  %v935_v32 = vadd.f32 %v849_v53, %v752_v57  ;;  %v901_v36 = vpop.f32.mrf.mxu1  ;;  %269 = vst.msk [vmem:[#allocation2 + $0x10] sm:$0xff] %vm266_vm0, %v1514_v42 }
 0x137   : > { %v801_v49 = vadd.f32 %v800_v55, %v2070_v6  ;;  %1149 = vadd.xlane.f32.xlu1 %v1148_v23  ;;  %1020 = vadd.xlane.f32.xlu0 %v1019_v56  ;;  %270 = vst.msk [vmem:[#allocation2 + $0x18] sm:$0xff] %vm266_vm0, %v1514_v42 }
 0x138   : > { %967 = vst [vmem:[%s2081_s10 + $0x70] sm:$0xff] %v935_v32  ;;  %v1112_v38 = vmul.f32 %v935_v32, %v935_v32 }
 0x139   : > { %v936_v33 = vadd.f32 %v898_v26, %v801_v49  ;;  %271 = vst.msk [vmem:[#allocation2 + $0x20] sm:$0xff] %vm266_vm0, %v1514_v42 }
 0x13a   : > { %272 = vst.msk [vmem:[#allocation2 + $0x28] sm:$0xff] %vm266_vm0, %v1514_v42 }
 0x13b   : > { %968 = vst [vmem:[%s2081_s10 + $0x78] sm:$0xff] %v936_v33  ;;  %v1113_v62 = vmul.f32 %v936_v33, %v936_v33  ;;  %v754_v30 = vpop.f32.mrf.mxu2  ;;  %v1022_v25 = vadd.f32 %v936_v33, %v935_v32 }
 0x13c   : > { %v755_v8 = vadd.f32 %v754_v30, %v2016_v41  ;;  %273 = vst.msk [vmem:[#allocation2 + $0x30] sm:$0xff] %vm266_vm0, %v1514_v42 }
 0x13d   : > { %v1151_v21 = vadd.f32 %v1113_v62, %v1112_v38  ;;  %v854_v35 = vpop.f32.mrf.mxu0  ;;  %274 = vst.msk [vmem:[#allocation2 + $0x38] sm:$0xff] %vm266_vm0, %v1514_v42 }
 0x13e   : > { %v803_v31 = vpop.f32.mrf.mxu3  ;;  %v937_v22 = vadd.f32 %v852_v0, %v755_v8  ;;  %v903_v28 = vpop.f32.mrf.mxu1  ;;  %275 = vst.msk [vmem:[#allocation2 + $0x40] sm:$0xff] %vm266_vm0, %v1514_v42 }
 0x13f   : > { %v804_v6 = vadd.f32 %v803_v31, %v2018_v27  ;;  %1152 = vadd.xlane.f32.xlu2 %v1151_v21  ;;  %1023 = vadd.xlane.f32.xlu1 %v1022_v25  ;;  %276 = vst.msk [vmem:[#allocation2 + $0x48] sm:$0xff] %vm266_vm0, %v1514_v42 }
 0x140   : > { %969 = vst [vmem:[%s2081_s10 + $0x80] sm:$0xff] %v937_v22  ;;  %v1114_v48 = vmul.f32 %v937_v22, %v937_v22 }
 0x141   : > { %v938_v39 = vadd.f32 %v901_v36, %v804_v6  ;;  %277 = vst.msk [vmem:[#allocation2 + $0x50] sm:$0xff] %vm266_vm0, %v1514_v42 }
 0x142   : > { %278 = vst.msk [vmem:[#allocation2 + $0x58] sm:$0xff] %vm266_vm0, %v1514_v42 }
 0x143   : > { %970 = vst [vmem:[%s2081_s10 + $0x88] sm:$0xff] %v938_v39  ;;  %v1115_v19 = vmul.f32 %v938_v39, %v938_v39  ;;  %v756_v50 = vpop.f32.mrf.mxu2  ;;  %v1025_v60 = vadd.f32 %v938_v39, %v937_v22 }
 0x144   : > { %v757_v41 = vadd.f32 %v756_v50, %v2024_v63  ;;  %279 = vst.msk [vmem:[#allocation2 + $0x60] sm:$0xff] %vm266_vm0, %v1514_v42 }
 0x145   : > { %v1154_v7 = vadd.f32 %v1115_v19, %v1114_v48  ;;  %v857_v45 = vpop.f32.mrf.mxu0  ;;  %280 = vst.msk [vmem:[#allocation2 + $0x68] sm:$0xff] %vm266_vm0, %v1514_v42 }
 0x146   : > { %v805_v46 = vpop.f32.mrf.mxu3  ;;  %v939_v51 = vadd.f32 %v854_v35, %v757_v41  ;;  %v906_v52 = vpop.f32.mrf.mxu1  ;;  %281 = vst.msk [vmem:[#allocation2 + $0x70] sm:$0xff] %vm266_vm0, %v1514_v42 }
 0x147   : > { %v806_v27 = vadd.f32 %v805_v46, %v2026_v58  ;;  %1155 = vadd.xlane.f32.xlu0 %v1154_v7  ;;  %1026 = vadd.xlane.f32.xlu2 %v1025_v60  ;;  %282 = vst.msk [vmem:[#allocation2 + $0x78] sm:$0xff] %vm266_vm0, %v1514_v42 }
 0x148   : > { %971 = vst [vmem:[%s2081_s10 + $0x90] sm:$0xff] %v939_v51  ;;  %v1116_v61 = vmul.f32 %v939_v51, %v939_v51 }
 0x149   : > { %v940_v3 = vadd.f32 %v903_v28, %v806_v27  ;;  %283 = vst.msk [vmem:[#allocation3] sm:$0xff] %vm266_vm0, %v1514_v42 }
 0x14a   : > { %284 = vst.msk [vmem:[#allocation3 + $0x8] sm:$0xff] %vm266_vm0, %v1514_v42 }
 0x14b   : > { %972 = vst [vmem:[%s2081_s10 + $0x98] sm:$0xff] %v940_v3  ;;  %v1117_v18 = vmul.f32 %v940_v3, %v940_v3  ;;  %v759_v34 = vpop.f32.mrf.mxu2  ;;  %v1028_v14 = vadd.f32 %v940_v3, %v939_v51 }
 0x14c   : > { %v760_v63 = vadd.f32 %v759_v34, %v2032_v40  ;;  %285 = vst.msk [vmem:[#allocation3 + $0x10] sm:$0xff] %vm266_vm0, %v1514_v42 }
 0x14d   : > { %v1157_v10 = vadd.f32 %v1117_v18, %v1116_v61  ;;  %v859_v44 = vpop.f32.mrf.mxu0  ;;  %286 = vst.msk [vmem:[#allocation3 + $0x18] sm:$0xff] %vm266_vm0, %v1514_v42 }
 0x14e   : > { %v808_v24 = vpop.f32.mrf.mxu3  ;;  %v941_v43 = vadd.f32 %v857_v45, %v760_v63  ;;  %v908_v29 = vpop.f32.mrf.mxu1  ;;  %287 = vst.msk [vmem:[#allocation3 + $0x20] sm:$0xff] %vm266_vm0, %v1514_v42 }
 0x14f   : > { %v809_v58 = vadd.f32 %v808_v24, %v2034_v9  ;;  %1158 = vadd.xlane.f32.xlu1 %v1157_v10  ;;  %1029 = vadd.xlane.f32.xlu0 %v1028_v14  ;;  %288 = vst.msk [vmem:[#allocation3 + $0x28] sm:$0xff] %vm266_vm0, %v1514_v42 }
 0x150   : > { %973 = vst [vmem:[%s2081_s10 + $0xa0] sm:$0xff] %v941_v43  ;;  %v1118_v26 = vmul.f32 %v941_v43, %v941_v43 }
 0x151   : > { %v942_v53 = vadd.f32 %v906_v52, %v809_v58  ;;  %289 = vst.msk [vmem:[#allocation3 + $0x30] sm:$0xff] %vm266_vm0, %v1514_v42  ;;  %v985_v52 = vld [vmem:[#allocation2] sm:$0xff] }
 0x152   : > { %290 = vst.msk [vmem:[#allocation3 + $0x38] sm:$0xff] %vm266_vm0, %v1514_v42 }
 0x153   : > { %974 = vst [vmem:[%s2081_s10 + $0xa8] sm:$0xff] %v942_v53  ;;  %v1119_v2 = vmul.f32 %v942_v53, %v942_v53  ;;  %v761_v40 = vpop.f32.mrf.mxu2  ;;  %v1031_v16 = vadd.f32 %v942_v53, %v941_v43 }
 0x154   : > { %v762_v17 = vadd.f32 %v761_v40, %v2040_v59  ;;  %291 = vst.msk [vmem:[#allocation3 + $0x40] sm:$0xff] %vm266_vm0, %v1514_v42  ;;  %v986_v40 = vld [vmem:[#allocation2 + $0x8] sm:$0xff] }
 0x155   : > { %v1160_v9 = vadd.f32 %v1119_v2, %v1118_v26  ;;  %v862_v57 = vpop.f32.mrf.mxu0  ;;  %292 = vst.msk [vmem:[#allocation3 + $0x48] sm:$0xff] %vm266_vm0, %v1514_v42 }
 0x156   : > { %v810_v12 = vpop.f32.mrf.mxu3  ;;  %v943_v23 = vadd.f32 %v859_v44, %v762_v17  ;;  %v911_v59 = vpop.f32.mrf.mxu1  ;;  %293 = vst.msk [vmem:[#allocation3 + $0x50] sm:$0xff] %vm266_vm0, %v1514_v42 }
 0x157   : > { %v811_v4 = vadd.f32 %v810_v12, %v2042_v11  ;;  %1161 = vadd.xlane.f32.xlu2 %v1160_v9  ;;  %1032 = vadd.xlane.f32.xlu1 %v1031_v16  ;;  %294 = vst.msk [vmem:[#allocation3 + $0x58] sm:$0xff] %vm266_vm0, %v1514_v42  ;;  %v1083_v12 = vld [vmem:[#allocation3 + $0x8] sm:$0xff] }
 0x158   : > { %975 = vst [vmem:[%s2081_s10 + $0xb0] sm:$0xff] %v943_v23  ;;  %v1120_v55 = vmul.f32 %v943_v23, %v943_v23 }
 0x159   : > { %v944_v56 = vadd.f32 %v908_v29, %v811_v4  ;;  %295 = vst.msk [vmem:[#allocation3 + $0x60] sm:$0xff] %vm266_vm0, %v1514_v42 }
 0x15a   : > { %296 = vst.msk [vmem:[#allocation3 + $0x68] sm:$0xff] %vm266_vm0, %v1514_v42 }
 0x15b   : > { %976 = vst [vmem:[%s2081_s10 + $0xb8] sm:$0xff] %v944_v56  ;;  %v1121_v49 = vmul.f32 %v944_v56, %v944_v56  ;;  %v764_v11 = vpop.f32.mrf.mxu2  ;;  %v1034_v32 = vadd.f32 %v944_v56, %v943_v23 }
 0x15c   : > { %v765_v36 = vadd.f32 %v764_v11, %v2048_v54  ;;  %297 = vst.msk [vmem:[#allocation3 + $0x70] sm:$0xff] %vm266_vm0, %v1514_v42  ;;  %v1084_v11 = vld [vmem:[#allocation3 + $0x10] sm:$0xff] }
 0x15d   : > { %v1163_v0 = vadd.f32 %v1121_v49, %v1120_v55  ;;  %v864_v21 = vpop.f32.mrf.mxu0  ;;  %298 = vst.msk [vmem:[#allocation3 + $0x78] sm:$0xff] %vm266_vm0, %v1514_v42  ;;  %v987_v55 = vld [vmem:[#allocation2 + $0x10] sm:$0xff] }
 0x15e   : > { %v813_v33 = vpop.f32.mrf.mxu3  ;;  %v945_v62 = vadd.f32 %v862_v57, %v765_v36  ;;  %v913_v8 = vpop.f32.mrf.mxu1 }
 0x15f   : > { %v814_v38 = vadd.f32 %v813_v33, %v2050_v13  ;;  %1164 = vadd.xlane.f32.xlu0 %v1163_v0  ;;  %1035 = vadd.xlane.f32.xlu2 %v1034_v32 }
 0x160   : > { %977 = vst [vmem:[%s2081_s10 + $0xc0] sm:$0xff] %v945_v62  ;;  %v1122_v54 = vmul.f32 %v945_v62, %v945_v62 }
 0x161   : > { %v946_v30 = vadd.f32 %v911_v59, %v814_v38 }
 0x163   : > { %978 = vst [vmem:[%s2081_s10 + $0xc8] sm:$0xff] %v946_v30  ;;  %v1123_v25 = vmul.f32 %v946_v30, %v946_v30  ;;  %v766_v13 = vpop.f32.mrf.mxu2  ;;  %v1037_v6 = vadd.f32 %v946_v30, %v945_v62  ;;  %v988_v62 = vld [vmem:[#allocation2 + $0x18] sm:$0xff] }
 0x164   : > { %v767_v35 = vadd.f32 %v766_v13, %v2056_v47  ;;  %v989_v13 = vld [vmem:[#allocation2 + $0x20] sm:$0xff] }
 0x165   : > { %v1166_v31 = vadd.f32 %v1123_v25, %v1122_v54  ;;  %v867_v47 = vpop.f32.mrf.mxu0 }
 0x166   : > { %v815_v22 = vpop.f32.mrf.mxu3  ;;  %v947_v39 = vadd.f32 %v864_v21, %v767_v35  ;;  %v916_v50 = vpop.f32.mrf.mxu1 }
 0x167   : > { %v816_v28 = vadd.f32 %v815_v22, %v2058_v37  ;;  %1167 = vadd.xlane.f32.xlu1 %v1166_v31  ;;  %1038 = vadd.xlane.f32.xlu0 %v1037_v6 }
 0x168   : > { %979 = vst [vmem:[%s2081_s10 + $0xd0] sm:$0xff] %v947_v39  ;;  %v1124_v18 = vmul.f32 %v947_v39, %v947_v39 }
 0x169   : > { %v948_v48 = vadd.f32 %v913_v8, %v816_v28  ;;  %v1085_v8 = vld [vmem:[#allocation3 + $0x18] sm:$0xff] }
 0x16b   : > { %980 = vst [vmem:[%s2081_s10 + $0xd8] sm:$0xff] %v948_v48  ;;  %v769_v37 = vpop.f32.mrf.mxu2  ;;  %v1040_v19 = vadd.f32 %v948_v48, %v947_v39  ;;  %v1125_v34 = vmul.f32 %v948_v48, %v948_v48  ;;  %v1086_v39 = vld [vmem:[#allocation3 + $0x20] sm:$0xff] }
 0x16c   : > { %v770_v7 = vadd.f32 %v769_v37, %v2064_v20 }
 0x16d   : > { %v869_v3 = vpop.f32.mrf.mxu0  ;;  %v1169_v29 = vadd.f32 %v1125_v34, %v1124_v18  ;;  %v1089_v34 = vld [vmem:[#allocation3 + $0x38] sm:$0xff] }
 0x16e   : > { %v818_v60 = vpop.f32.mrf.mxu3  ;;  %v949_v46 = vadd.f32 %v867_v47, %v770_v7  ;;  %v918_v10 = vpop.f32.mrf.mxu1  ;;  %v1087_v47 = vld [vmem:[#allocation3 + $0x28] sm:$0xff] }
 0x16f   : > { %v819_v41 = vadd.f32 %v818_v60, %v2066_v5  ;;  %1041 = vadd.xlane.f32.xlu1 %v1040_v19 }
 0x170   : > { %981 = vst [vmem:[%s2081_s10 + $0xe0] sm:$0xff] %v949_v46  ;;  %v1126_v9 = vmul.f32 %v949_v46, %v949_v46 }
 0x171   : > { %v950_v27 = vadd.f32 %v916_v50, %v819_v41  ;;  %v990_v41 = vld [vmem:[#allocation2 + $0x28] sm:$0xff] }
 0x173   : > { %982 = vst [vmem:[%s2081_s10 + $0xe8] sm:$0xff] %v950_v27  ;;  %v1043_v20 = vadd.f32 %v950_v27, %v949_v46  ;;  %v771_v5 = vpop.f32.mrf.mxu2  ;;  %v1127_v16 = vmul.f32 %v950_v27, %v950_v27  ;;  %v1088_v27 = vld [vmem:[#allocation3 + $0x30] sm:$0xff] }
 0x174   : > { %v772_v45 = vadd.f32 %v771_v5, %v2072_v1  ;;  %v1082_v1 = vld [vmem:[#allocation3] sm:$0xff] }
 0x175   : > { %1044 = vadd.xlane.f32.xlu2 %v1043_v20  ;;  %v1172_v57 = vadd.f32 %v1127_v16, %v1126_v9  ;;  %v991_v20 = vld [vmem:[#allocation2 + $0x30] sm:$0xff] }
 0x176   : > { %v820_v51 = vpop.f32.mrf.mxu3  ;;  %v951_v14 = vadd.f32 %v869_v3, %v772_v45 }
 0x177   : > { %v821_v61 = vadd.f32 %v820_v51, %v2074_v15 }
 0x178   : > { %v1003_v63 = vpop.xlane.xlu0 %1002  ;;  %983 = vst [vmem:[%s2081_s10 + $0xf0] sm:$0xff] %v951_v14  ;;  %v1128_v44 = vmul.f32 %v951_v14, %v951_v14 }
 0x179   : > { %v952_v24 = vadd.f32 %v918_v10, %v821_v61  ;;  %v1049_v58 = vadd.f32 %v1003_v63, %v985_v52  ;;  %v992_v10 = vld [vmem:[#allocation2 + $0x38] sm:$0xff] }
 0x17a   : > { %v1132_v15 = vpop.xlane.xlu1 %1131 }
 0x17b   : > { %984 = vst [vmem:[%s2081_s10 + $0xf8] sm:$0xff] %v952_v24  ;;  %v1178_v43 = vadd.f32 %v1132_v15, %v1082_v1  ;;  %v1046_v53 = vadd.f32 %v952_v24, %v951_v14  ;;  %v1129_v26 = vmul.f32 %v952_v24, %v952_v24 }
 0x17c   : > { %1066 = vst.msk [vmem:[#allocation2] sm:$0xff] %vm266_vm0, %v1049_v58 }
 0x17d   : > { %1170 = vadd.xlane.f32.xlu2 %v1169_v29  ;;  %1047 = vadd.xlane.f32.xlu0 %v1046_v53  ;;  %v1175_v2 = vadd.f32 %v1129_v26, %v1128_v44  ;;  %1194 = vst.msk [vmem:[#allocation3] sm:$0xff] %vm266_vm0, %v1178_v43  ;;  %v1090_v43 = vld [vmem:[#allocation3 + $0x40] sm:$0xff] }
 0x17e   : > { %v993_v29 = vld [vmem:[#allocation2 + $0x40] sm:$0xff] }
 0x17f   : > { %1176 = vadd.xlane.f32.xlu1 %v1175_v2 }
 0x180   : > { %v1006_v17 = vpop.xlane.xlu0 %1005 }
 0x181   : > { %v1050_v4 = vadd.f32 %v1006_v17, %v986_v40  ;;  %v1091_v17 = vld [vmem:[#allocation3 + $0x48] sm:$0xff] }
 0x182   : > { %v1135_v42 = vpop.xlane.xlu2 %1134 }
 0x183   : > { %v1213_v23 = vld [vmem:[#allocation2] sm:$0xff]  ;;  %1067 = vst.msk [vmem:[#allocation2 + $0x8] sm:$0xff] %vm266_vm0, %v1050_v4  ;;  %v1179_v56 = vadd.f32 %v1135_v42, %v1083_v12  ;;  %v994_v12 = vld [vmem:[#allocation2 + $0x48] sm:$0xff] }
 0x184   : > { %1229 = vst.msk [vmem:[%s2214_s13] sm:$0xff] %vm266_vm0, %v1213_v23  ;;  %v1245_v59 = vld [vmem:[#allocation3] sm:$0xff] }
 0x185   : > { %1195 = vst.msk [vmem:[#allocation3 + $0x8] sm:$0xff] %vm266_vm0, %v1179_v56  ;;  %1173 = vadd.xlane.f32.xlu0 %v1172_v57 }
 0x186   : > { %1261 = vst.msk [vmem:[%s2219_s15] sm:$0xff] %vm266_vm0, %v1245_v59 }
 0x188   : > { %v1009_v49 = vpop.xlane.xlu1 %1008 }
 0x189   : > { %v1051_v0 = vadd.f32 %v1009_v49, %v987_v55  ;;  %v1092_v55 = vld [vmem:[#allocation3 + $0x50] sm:$0xff] }
 0x18a   : > { %v1214_v32 = vld [vmem:[#allocation2 + $0x8] sm:$0xff]  ;;  %v1138_v36 = vpop.xlane.xlu0 %1137  ;;  %v995_v49 = vld [vmem:[#allocation2 + $0x50] sm:$0xff] }
 0x18b   : > { %1230 = vst.msk [vmem:[%s2214_s13 + $0x8] sm:$0xff] %vm266_vm0, %v1214_v32  ;;  %v1180_v33 = vadd.f32 %v1138_v36, %v1084_v11 }
 0x18c   : > { %v1246_v38 = vld [vmem:[#allocation3 + $0x8] sm:$0xff]  ;;  %1068 = vst.msk [vmem:[#allocation2 + $0x10] sm:$0xff] %vm266_vm0, %v1051_v0 }
 0x18d   : > { %1262 = vst.msk [vmem:[%s2219_s15 + $0x8] sm:$0xff] %vm266_vm0, %v1246_v38 }
 0x18e   : > { %1196 = vst.msk [vmem:[#allocation3 + $0x10] sm:$0xff] %vm266_vm0, %v1180_v33 }
 0x190   : > { %v1012_v30 = vpop.xlane.xlu1 %1011 }
 0x191   : > { %v1052_v54 = vadd.f32 %v1012_v30, %v988_v62  ;;  %v1093_v62 = vld [vmem:[#allocation3 + $0x58] sm:$0xff] }
 0x192   : > { %v996_v30 = vld [vmem:[#allocation2 + $0x58] sm:$0xff] }
 0x193   : > { %v1215_v21 = vld [vmem:[#allocation2 + $0x10] sm:$0xff]  ;;  %1069 = vst.msk [vmem:[#allocation2 + $0x18] sm:$0xff] %vm266_vm0, %v1052_v54 }
 0x194   : > { %1231 = vst.msk [vmem:[%s2214_s13 + $0x10] sm:$0xff] %vm266_vm0, %v1215_v21 }
 0x195   : > { %v1247_v25 = vld [vmem:[#allocation3 + $0x10] sm:$0xff] }
 0x196   : > { %1263 = vst.msk [vmem:[%s2219_s15 + $0x10] sm:$0xff] %vm266_vm0, %v1247_v25 }
 0x198   : > { %v1141_v31 = vpop.xlane.xlu1 %1140  ;;  %v1015_v6 = vpop.xlane.xlu2 %1014 }
 0x199   : > { %v1181_v35 = vadd.f32 %v1141_v31, %v1085_v8  ;;  %v1053_v22 = vadd.f32 %v1015_v6, %v989_v13  ;;  %v1094_v6 = vld [vmem:[#allocation3 + $0x60] sm:$0xff] }
 0x19a   : > { %v1216_v28 = vld [vmem:[#allocation2 + $0x18] sm:$0xff] }
 0x19b   : > { %1232 = vst.msk [vmem:[%s2214_s13 + $0x18] sm:$0xff] %vm266_vm0, %v1216_v28 }
 0x19c   : > { %1197 = vst.msk [vmem:[#allocation3 + $0x18] sm:$0xff] %vm266_vm0, %v1181_v35  ;;  %v997_v35 = vld [vmem:[#allocation2 + $0x60] sm:$0xff] }
 0x19d   : > { %1070 = vst.msk [vmem:[#allocation2 + $0x20] sm:$0xff] %vm266_vm0, %v1053_v22 }
 0x1a0   : > { %v1144_v48 = vpop.xlane.xlu2 %1143 }
 0x1a1   : > { %v1182_v37 = vadd.f32 %v1144_v48, %v1086_v39 }
 0x1a2   : > { %v1147_v19 = vpop.xlane.xlu0 %1146 }
 0x1a3   : > { %v1248_v50 = vld [vmem:[#allocation3 + $0x18] sm:$0xff]  ;;  %1198 = vst.msk [vmem:[#allocation3 + $0x20] sm:$0xff] %vm266_vm0, %v1182_v37  ;;  %v1183_v7 = vadd.f32 %v1147_v19, %v1087_v47  ;;  %v998_v19 = vld [vmem:[#allocation2 + $0x68] sm:$0xff] }
 0x1a4   : > { %1264 = vst.msk [vmem:[%s2219_s15 + $0x18] sm:$0xff] %vm266_vm0, %v1248_v50  ;;  %v1217_v60 = vld [vmem:[#allocation2 + $0x20] sm:$0xff] }
 0x1a5   : > { %1233 = vst.msk [vmem:[%s2214_s13 + $0x20] sm:$0xff] %vm266_vm0, %v1217_v60 }
 0x1a6   : > { %1199 = vst.msk [vmem:[#allocation3 + $0x28] sm:$0xff] %vm266_vm0, %v1183_v7 }
 0x1a8   : > { %v1018_v46 = vpop.xlane.xlu2 %1017 }
 0x1a9   : > { %v1054_v5 = vadd.f32 %v1018_v46, %v990_v41  ;;  %v999_v46 = vld [vmem:[#allocation2 + $0x70] sm:$0xff] }
 0x1aa   : > { %v1249_v45 = vld [vmem:[#allocation3 + $0x20] sm:$0xff]  ;;  %v1150_v51 = vpop.xlane.xlu1 %1149  ;;  %v1021_v52 = vpop.xlane.xlu0 %1020 }
 0x1ab   : > { %1265 = vst.msk [vmem:[%s2219_s15 + $0x20] sm:$0xff] %vm266_vm0, %v1249_v45  ;;  %v1184_v3 = vadd.f32 %v1150_v51, %v1088_v27  ;;  %v1055_v61 = vadd.f32 %v1021_v52, %v991_v20  ;;  %v1095_v45 = vld [vmem:[#allocation3 + $0x68] sm:$0xff]  ;;  %v1000_v51 = vld [vmem:[#allocation2 + $0x78] sm:$0xff] }
 0x1ac   : > { %1071 = vst.msk [vmem:[#allocation2 + $0x28] sm:$0xff] %vm266_vm0, %v1054_v5 }
 0x1ad   : > { %v1250_v18 = vld [vmem:[#allocation3 + $0x28] sm:$0xff]  ;;  %1200 = vst.msk [vmem:[#allocation3 + $0x30] sm:$0xff] %vm266_vm0, %v1184_v3 }
 0x1ae   : > { %1266 = vst.msk [vmem:[%s2219_s15 + $0x28] sm:$0xff] %vm266_vm0, %v1250_v18 }
 0x1af   : > { %1072 = vst.msk [vmem:[#allocation2 + $0x30] sm:$0xff] %vm266_vm0, %v1055_v61  ;;  %v1097_v61 = vld [vmem:[#allocation3 + $0x78] sm:$0xff] }
 0x1b2   : > { %v1153_v14 = vpop.xlane.xlu2 %1152  ;;  %v1024_v63 = vpop.xlane.xlu1 %1023 }
 0x1b3   : > { %v1218_v1 = vld [vmem:[#allocation2 + $0x28] sm:$0xff]  ;;  %v1185_v24 = vadd.f32 %v1153_v14, %v1089_v34  ;;  %v1056_v15 = vadd.f32 %v1024_v63, %v992_v10 }
 0x1b4   : > { %1234 = vst.msk [vmem:[%s2214_s13 + $0x28] sm:$0xff] %vm266_vm0, %v1218_v1  ;;  %v1251_v58 = vld [vmem:[#allocation3 + $0x30] sm:$0xff] }
 0x1b5   : > { %1267 = vst.msk [vmem:[%s2219_s15 + $0x30] sm:$0xff] %vm266_vm0, %v1251_v58  ;;  %v1096_v1 = vld [vmem:[#allocation3 + $0x70] sm:$0xff] }
 0x1b6   : > { %v1219_v44 = vld [vmem:[#allocation2 + $0x30] sm:$0xff]  ;;  %1201 = vst.msk [vmem:[#allocation3 + $0x38] sm:$0xff] %vm266_vm0, %v1185_v24 }
 0x1b7   : > { %1235 = vst.msk [vmem:[%s2214_s13 + $0x30] sm:$0xff] %vm266_vm0, %v1219_v44 }
 0x1b8   : > { %1073 = vst.msk [vmem:[#allocation2 + $0x38] sm:$0xff] %vm266_vm0, %v1056_v15 }
 0x1ba   : > { %v1156_v53 = vpop.xlane.xlu0 %1155  ;;  %v1027_v26 = vpop.xlane.xlu2 %1026 }
 0x1bb   : > { %v1186_v2 = vadd.f32 %v1156_v53, %v1090_v43  ;;  %v1057_v40 = vadd.f32 %v1027_v26, %v993_v29 }
 0x1bd   : > { %v1252_v9 = vld [vmem:[#allocation3 + $0x38] sm:$0xff]  ;;  %1202 = vst.msk [vmem:[#allocation3 + $0x40] sm:$0xff] %vm266_vm0, %v1186_v2 }
 0x1be   : > { %1268 = vst.msk [vmem:[%s2219_s15 + $0x38] sm:$0xff] %vm266_vm0, %v1252_v9 }
 0x1bf   : > { %v1220_v16 = vld [vmem:[#allocation2 + $0x38] sm:$0xff]  ;;  %1074 = vst.msk [vmem:[#allocation2 + $0x40] sm:$0xff] %vm266_vm0, %v1057_v40 }
 0x1c0   : > { %1236 = vst.msk [vmem:[%s2214_s13 + $0x38] sm:$0xff] %vm266_vm0, %v1220_v16 }
 0x1c2   : > { %v1159_v4 = vpop.xlane.xlu1 %1158  ;;  %v1030_v42 = vpop.xlane.xlu0 %1029 }
 0x1c3   : > { %v1187_v23 = vadd.f32 %v1159_v4, %v1091_v17  ;;  %v1058_v57 = vadd.f32 %v1030_v42, %v994_v12 }
 0x1c4   : > { %v1253_v56 = vld [vmem:[#allocation3 + $0x40] sm:$0xff] }
 0x1c5   : > { %1269 = vst.msk [vmem:[%s2219_s15 + $0x40] sm:$0xff] %vm266_vm0, %v1253_v56 }
 0x1c6   : > { %v1221_v59 = vld [vmem:[#allocation2 + $0x40] sm:$0xff]  ;;  %1203 = vst.msk [vmem:[#allocation3 + $0x48] sm:$0xff] %vm266_vm0, %v1187_v23 }
 0x1c7   : > { %1237 = vst.msk [vmem:[%s2214_s13 + $0x40] sm:$0xff] %vm266_vm0, %v1221_v59 }
 0x1c8   : > { %1075 = vst.msk [vmem:[#allocation2 + $0x48] sm:$0xff] %vm266_vm0, %v1058_v57 }
 0x1ca   : > { %v1162_v11 = vpop.xlane.xlu2 %1161  ;;  %v1033_v0 = vpop.xlane.xlu1 %1032 }
 0x1cb   : > { %v1188_v32 = vadd.f32 %v1162_v11, %v1092_v55  ;;  %v1059_v36 = vadd.f32 %v1033_v0, %v995_v49 }
 0x1cd   : > { %v1254_v33 = vld [vmem:[#allocation3 + $0x48] sm:$0xff]  ;;  %1204 = vst.msk [vmem:[#allocation3 + $0x50] sm:$0xff] %vm266_vm0, %v1188_v32 }
 0x1ce   : > { %1270 = vst.msk [vmem:[%s2219_s15 + $0x48] sm:$0xff] %vm266_vm0, %v1254_v33 }
 0x1cf   : > { %v1222_v38 = vld [vmem:[#allocation2 + $0x48] sm:$0xff]  ;;  %1076 = vst.msk [vmem:[#allocation2 + $0x50] sm:$0xff] %vm266_vm0, %v1059_v36 }
 0x1d0   : > { %1238 = vst.msk [vmem:[%s2214_s13 + $0x48] sm:$0xff] %vm266_vm0, %v1222_v38 }
 0x1d2   : > { %v1165_v54 = vpop.xlane.xlu0 %1164  ;;  %v1036_v21 = vpop.xlane.xlu2 %1035 }
 0x1d3   : > { %v1189_v25 = vadd.f32 %v1165_v54, %v1093_v62  ;;  %v1060_v13 = vadd.f32 %v1036_v21, %v996_v30 }
 0x1d4   : > { %v1255_v8 = vld [vmem:[#allocation3 + $0x50] sm:$0xff] }
 0x1d5   : > { %1271 = vst.msk [vmem:[%s2219_s15 + $0x50] sm:$0xff] %vm266_vm0, %v1255_v8 }
 0x1d6   : > { %v1223_v31 = vld [vmem:[#allocation2 + $0x50] sm:$0xff]  ;;  %1205 = vst.msk [vmem:[#allocation3 + $0x58] sm:$0xff] %vm266_vm0, %v1189_v25 }
 0x1d7   : > { %1239 = vst.msk [vmem:[%s2214_s13 + $0x50] sm:$0xff] %vm266_vm0, %v1223_v31 }
 0x1d8   : > { %1077 = vst.msk [vmem:[#allocation2 + $0x58] sm:$0xff] %vm266_vm0, %v1060_v13 }
 0x1da   : > { %v1168_v22 = vpop.xlane.xlu1 %1167  ;;  %v1039_v28 = vpop.xlane.xlu0 %1038 }
 0x1db   : > { %v1190_v39 = vadd.f32 %v1168_v22, %v1094_v6  ;;  %v1061_v48 = vadd.f32 %v1039_v28, %v997_v35 }
 0x1dd   : > { %v1256_v47 = vld [vmem:[#allocation3 + $0x58] sm:$0xff]  ;;  %1206 = vst.msk [vmem:[#allocation3 + $0x60] sm:$0xff] %vm266_vm0, %v1190_v39 }
 0x1de   : > { %1272 = vst.msk [vmem:[%s2219_s15 + $0x58] sm:$0xff] %vm266_vm0, %v1256_v47 }
 0x1df   : > { %v1224_v37 = vld [vmem:[#allocation2 + $0x58] sm:$0xff]  ;;  %1078 = vst.msk [vmem:[#allocation2 + $0x60] sm:$0xff] %vm266_vm0, %v1061_v48 }
 0x1e0   : > { %1240 = vst.msk [vmem:[%s2214_s13 + $0x58] sm:$0xff] %vm266_vm0, %v1224_v37 }
 0x1e2   : > { %v1042_v50 = vpop.xlane.xlu1 %1041 }
 0x1e3   : > { %v1062_v7 = vadd.f32 %v1042_v50, %v998_v19 }
 0x1e4   : > { %v1257_v60 = vld [vmem:[#allocation3 + $0x60] sm:$0xff] }
 0x1e5   : > { %1273 = vst.msk [vmem:[%s2219_s15 + $0x60] sm:$0xff] %vm266_vm0, %v1257_v60 }
 0x1e6   : > { %v1225_v41 = vld [vmem:[#allocation2 + $0x60] sm:$0xff]  ;;  %1079 = vst.msk [vmem:[#allocation2 + $0x68] sm:$0xff] %vm266_vm0, %v1062_v7 }
 0x1e7   : > { %1241 = vst.msk [vmem:[%s2214_s13 + $0x60] sm:$0xff] %vm266_vm0, %v1225_v41 }
 0x1e8   : > { %v1045_v27 = vpop.xlane.xlu2 %1044 }
 0x1e9   : > { %v1063_v20 = vadd.f32 %v1045_v27, %v999_v46 }
 0x1eb   : > { %1080 = vst.msk [vmem:[#allocation2 + $0x70] sm:$0xff] %vm266_vm0, %v1063_v20 }
 0x1ed   : > { %v1226_v5 = vld [vmem:[#allocation2 + $0x68] sm:$0xff] }
 0x1ee   : > { %1242 = vst.msk [vmem:[%s2214_s13 + $0x68] sm:$0xff] %vm266_vm0, %v1226_v5 }
 0x1f0   : > { %v1171_v52 = vpop.xlane.xlu2 %1170  ;;  %v1048_v3 = vpop.xlane.xlu0 %1047 }
 0x1f1   : > { %v1191_v18 = vadd.f32 %v1171_v52, %v1095_v45  ;;  %v1064_v34 = vadd.f32 %v1048_v3, %v1000_v51 }
 0x1f2   : > { %v1227_v10 = vld [vmem:[#allocation2 + $0x70] sm:$0xff]  ;;  %v1177_v14 = vpop.xlane.xlu1 %1176 }
 0x1f3   : > { %1243 = vst.msk [vmem:[%s2214_s13 + $0x70] sm:$0xff] %vm266_vm0, %v1227_v10  ;;  %v1193_v63 = vadd.f32 %v1177_v14, %v1097_v61 }
 0x1f4   : > { %1207 = vst.msk [vmem:[#allocation3 + $0x68] sm:$0xff] %vm266_vm0, %v1191_v18 }
 0x1f5   : > { %1081 = vst.msk [vmem:[#allocation2 + $0x78] sm:$0xff] %vm266_vm0, %v1064_v34 }
 0x1f6   : > { %1209 = vst.msk [vmem:[#allocation3 + $0x78] sm:$0xff] %vm266_vm0, %v1193_v63 }
 0x1f8   : > { %v1174_v24 = vpop.xlane.xlu0 %1173 }
 0x1f9   : > { %v1192_v58 = vadd.f32 %v1174_v24, %v1096_v1 }
 0x1fb   : > { %v1258_v15 = vld [vmem:[#allocation3 + $0x68] sm:$0xff]  ;;  %1208 = vst.msk [vmem:[#allocation3 + $0x70] sm:$0xff] %vm266_vm0, %v1192_v58 }
 0x1fc   : > { %1274 = vst.msk [vmem:[%s2219_s15 + $0x68] sm:$0xff] %vm266_vm0, %v1258_v15  ;;  %v1228_v44 = vld [vmem:[#allocation2 + $0x78] sm:$0xff] }
 0x1fd   : > { %1244 = vst.msk [vmem:[%s2214_s13 + $0x78] sm:$0xff] %vm266_vm0, %v1228_v44  ;;  %v1260_v43 = vld [vmem:[#allocation3 + $0x78] sm:$0xff] }
 0x1fe   : > { %1276 = vst.msk [vmem:[%s2219_s15 + $0x78] sm:$0xff] %vm266_vm0, %v1260_v43 }
 0x202   : > { %v1259_v29 = vld [vmem:[#allocation3 + $0x70] sm:$0xff] }
 0x203   : > { %1275 = vst.msk [vmem:[%s2219_s15 + $0x70] sm:$0xff] %vm266_vm0, %v1259_v29 }
 0x204 PF: > { %s15_s17 = sadd.s32 1, %s1512_s17   ;;  %s2408_s15 = smov %s1508_s16 }
 0x205   : > { %p12_p5 = scmp.ge.s32.totalorder %s15_s17, 4   ;;  %s2409_s16 = smov %s2411_s18 }
 0x207   :  { %14 = sbr.rel (!%p12_p5) target bundleno = 2 (0x2), region = 90 }

// kernel: point_transformer_last.17
= control target key start
LH: loop header
LB: loop body
LE: loop exit
PB: predicated region body
PF: predicated region fallthrough
CT: control target
= control target key end

     0   :  { %s888_s15 = smov 0   ;;  %s890_s16 = smov 0   ;;  %s1247_s0 = inlined_call_operand.vmem [shape: f32[2,128,256], index: 0, kind: input, shape index: {}]   ;;  %s1248_s1 = inlined_call_operand.vmem [shape: f32[2,128,256], index: 1, kind: input, shape index: {}, may-alias: {1,4}]   ;;  %s1249_s2 = inlined_call_operand.vmem [shape: f32[128,1], index: 2, kind: input, shape index: {}]   ;;  %s1250_s3 = inlined_call_operand.vmem [shape: f32[128,1], index: 3, kind: input, shape index: {}]   ;;  %s1251_s4 = inlined_call_operand.vmem [shape: f32[2,128,256], index: 4, kind: output, shape index: {}, may-alias: {1,4}]  }
   0x1   :  { %s892_s17 = smov 0  }
   0x2 LB: > { %s26_s18 = sadd.s32 1, %s856_s16  ;;  %p798_p0 = scmp.ge.s32.totalorder %s860_s17, 1  ;;  %s860_s17 = sphi %s892_s17, %s14_s17   ;;  %s856_s16 = sphi %s890_s16, %s1253_s16   ;;  %s852_s15 = sphi %s888_s15, %s1252_s15  }
   0x3   : > { %p28_p1 = scmp.ge.s32.totalorder %s26_s18, 2  ;;  %p200_p2 = scmp.lt.s32.totalorder %s860_s17, 3 }
   0x5   : > { %s1255_s18 = smov (%p28_p1, %s26_s18), 0  ;;  %p201_p3 = pnand %p798_p0, %p200_p2 }
   0x6   : > { %p244_p4 = scmp.lt.s32.totalorder (!%p201_p3), %s852_s15, 1 }
   0x7   : > { %204 = sbr.rel (%p201_p3) target bundleno = 220 (0xdc), region = 36 }
   0xc   : > { %v309_v0 = vld [vmem:[%s1249_s2 + $0x20] sm:$0xff]  ;;  %v307_v1 = vld [vmem:[%s1249_s2 + $0x10] sm:$0xff]  ;;  %v862_v3 = vmov 0   ;;  %v310_v4 = vld [vmem:[%s1249_s2 + $0x28] sm:$0xff]  ;;  %s1257_s15 = smov (!%p244_p4, %s852_s15), 1 }
   0xd   : > { %v305_v2 = vld [vmem:[%s1249_s2] sm:$0xff]  ;;  %837 = vset.pattern.permute.xlu2 %v862_v3  ;;  %836 = vset.pattern.permute.xlu1 %v862_v3  ;;  %v308_v5 = vld [vmem:[%s1249_s2 + $0x18] sm:$0xff]  ;;  %v306_v6 = vld [vmem:[%s1249_s2 + $0x8] sm:$0xff]  ;;  %s1016_s13 = sshll.u32 %s1257_s15, 8 }
   0xe   : > { %835 = vset.pattern.permute.xlu0 %v862_v3  ;;  %343 = vperm.xlu2 %837, %v309_v0   ;;  %v313_v7 = vld [vmem:[%s1249_s2 + $0x40] sm:$0xff]  ;;  %v312_v8 = vld [vmem:[%s1249_s2 + $0x38] sm:$0xff]  ;;  %v311_v9 = vld [vmem:[%s1249_s2 + $0x30] sm:$0xff]  ;;  %s1026_s20 = scalar_lea.vmem %s1248_s1, %s1016_s13  ;;  %s1034_s22 = scalar_lea.vmem %s1247_s0, %s1016_s13 }
   0xf   : > { %333 = vperm.xlu1 %836, %v307_v1   ;;  %323 = vperm.xlu0 %835, %v305_v2   ;;  %v316_v10 = vld [vmem:[%s1249_s2 + $0x58] sm:$0xff]  ;;  %v315_v11 = vld [vmem:[%s1249_s2 + $0x50] sm:$0xff]  ;;  %v314_v12 = vld [vmem:[%s1249_s2 + $0x48] sm:$0xff]  ;;  %s1099_s25 = scalar_lea.vmem %s1251_s4, %s1016_s13 }
  0x10   : > { %v319_v13 = vld [vmem:[%s1249_s2 + $0x70] sm:$0xff]  ;;  %v318_v14 = vld [vmem:[%s1249_s2 + $0x68] sm:$0xff]  ;;  %v317_v15 = vld [vmem:[%s1249_s2 + $0x60] sm:$0xff] }
  0x11   : > { %v434_v16 = vld [vmem:[%s1250_s3 + $0x8] sm:$0xff]  ;;  %v433_v17 = vld [vmem:[%s1250_s3] sm:$0xff]  ;;  %v320_v18 = vld [vmem:[%s1249_s2 + $0x78] sm:$0xff] }
  0x12   : > { %v437_v19 = vld [vmem:[%s1250_s3 + $0x20] sm:$0xff]  ;;  %v436_v20 = vld [vmem:[%s1250_s3 + $0x18] sm:$0xff]  ;;  %v435_v21 = vld [vmem:[%s1250_s3 + $0x10] sm:$0xff] }
  0x13   : > { %v440_v22 = vld [vmem:[%s1250_s3 + $0x38] sm:$0xff]  ;;  %v439_v23 = vld [vmem:[%s1250_s3 + $0x30] sm:$0xff]  ;;  %v438_v24 = vld [vmem:[%s1250_s3 + $0x28] sm:$0xff] }
  0x14   : > { %v443_v25 = vld [vmem:[%s1250_s3 + $0x50] sm:$0xff]  ;;  %v442_v26 = vld [vmem:[%s1250_s3 + $0x48] sm:$0xff]  ;;  %v441_v27 = vld [vmem:[%s1250_s3 + $0x40] sm:$0xff] }
  0x15   : > { %v446_v28 = vld [vmem:[%s1250_s3 + $0x68] sm:$0xff]  ;;  %v445_v29 = vld [vmem:[%s1250_s3 + $0x60] sm:$0xff]  ;;  %v444_v30 = vld [vmem:[%s1250_s3 + $0x58] sm:$0xff] }
  0x16   : > { %348 = vperm.xlu2 %837, %v310_v4   ;;  %v448_v31 = vld [vmem:[%s1250_s3 + $0x78] sm:$0xff]  ;;  %v447_v32 = vld [vmem:[%s1250_s3 + $0x70] sm:$0xff]  ;;  %v281_v53 = vld [vmem:[%s1026_s20 + $0x40] sm:$0xff] }
  0x17   : > { %338 = vperm.xlu1 %836, %v308_v5   ;;  %328 = vperm.xlu0 %835, %v306_v6   ;;  %v275_v42 = vld [vmem:[%s1026_s20 + $0x10] sm:$0xff]  ;;  %v276_v43 = vld [vmem:[%s1026_s20 + $0x18] sm:$0xff]  ;;  %v282_v54 = vld [vmem:[%s1026_s20 + $0x48] sm:$0xff] }
  0x18   : > { %v595_v49 = vld [vmem:[%s1034_s22 + $0x10] sm:$0xff]  ;;  %v596_v50 = vld [vmem:[%s1034_s22 + $0x18] sm:$0xff]  ;;  %v1043_v55 = vld [vmem:[%s1026_s20 + $0xa0] sm:$0xff] }
  0x19   : > { %v1046_v56 = vld [vmem:[%s1026_s20 + $0xa8] sm:$0xff]  ;;  %v1049_v57 = vld [vmem:[%s1026_s20 + $0x90] sm:$0xff]  ;;  %v1052_v58 = vld [vmem:[%s1026_s20 + $0x98] sm:$0xff] }
  0x1a   : > { %v1055_v61 = vld [vmem:[%s1026_s20 + $0xd0] sm:$0xff]  ;;  %v1058_v62 = vld [vmem:[%s1026_s20 + $0xd8] sm:$0xff]  ;;  %v1061_v63 = vld [vmem:[%s1026_s20 + $0xc0] sm:$0xff] }
  0x1b   : > { %v1064_v0 = vld [vmem:[%s1026_s20 + $0x50] sm:$0xff]  ;;  %v1067_v1 = vld [vmem:[%s1026_s20 + $0x58] sm:$0xff]  ;;  %v1070_v2 = vld [vmem:[%s1026_s20 + $0x80] sm:$0xff] }
  0x1c   : > { %v1073_v3 = vld [vmem:[%s1026_s20 + $0x88] sm:$0xff]  ;;  %v1076_v4 = vld [vmem:[%s1026_s20 + $0xb0] sm:$0xff]  ;;  %v1079_v5 = vld [vmem:[%s1026_s20 + $0xb8] sm:$0xff] }
  0x1d   : > { %v1082_v6 = vld [vmem:[%s1026_s20 + $0x20] sm:$0xff] }
  0x1e   : > { %363 = vperm.xlu2 %837, %v313_v7   ;;  %v1085_v7 = vld [vmem:[%s1026_s20 + $0x28] sm:$0xff] }
  0x1f   : > { %358 = vperm.xlu1 %836, %v312_v8   ;;  %353 = vperm.xlu0 %835, %v311_v9   ;;  %v273_v8 = vld [vmem:[%s1026_s20] sm:$0xff]  ;;  %v274_v9 = vld [vmem:[%s1026_s20 + $0x8] sm:$0xff] }
  0x26   : > { %378 = vperm.xlu2 %837, %v316_v10   ;;  %v1090_v10 = vld [vmem:[%s1026_s20 + $0xe0] sm:$0xff] }
  0x27   : > { %373 = vperm.xlu1 %836, %v315_v11   ;;  %368 = vperm.xlu0 %835, %v314_v12   ;;  %v1093_v11 = vld [vmem:[%s1026_s20 + $0xe8] sm:$0xff] }
  0x28   : > { %v1102_v12 = vld [vmem:[%s1026_s20 + $0xc8] sm:$0xff] }
  0x2e   : > { %393 = vperm.xlu2 %837, %v319_v13   ;;  %v1105_v13 = vld [vmem:[%s1026_s20 + $0xf0] sm:$0xff] }
  0x2f   : > { %388 = vperm.xlu1 %836, %v318_v14   ;;  %383 = vperm.xlu0 %835, %v317_v15   ;;  %v1108_v14 = vld [vmem:[%s1026_s20 + $0xf8] sm:$0xff]  ;;  %v1111_v15 = vld [vmem:[%s1026_s20 + $0x30] sm:$0xff] }
  0x36   : > { %456 = vperm.xlu2 %837, %v434_v16   ;;  %v1114_v16 = vld [vmem:[%s1026_s20 + $0x38] sm:$0xff] }
  0x37   : > { %451 = vperm.xlu1 %836, %v433_v17   ;;  %398 = vperm.xlu0 %835, %v320_v18  }
  0x3e   : > { %471 = vperm.xlu2 %837, %v437_v19   ;;  %v287_v19 = vld [vmem:[%s1026_s20 + $0x70] sm:$0xff] }
  0x3f   : > { %466 = vperm.xlu1 %836, %v436_v20   ;;  %461 = vperm.xlu0 %835, %v435_v21   ;;  %v288_v20 = vld [vmem:[%s1026_s20 + $0x78] sm:$0xff]  ;;  %v1119_v21 = vld [vmem:[%s1026_s20 + $0x60] sm:$0xff] }
  0x46   : > { %486 = vperm.xlu2 %837, %v440_v22   ;;  %v1122_v22 = vld [vmem:[%s1026_s20 + $0x68] sm:$0xff] }
  0x47   : > { %481 = vperm.xlu1 %836, %v439_v23   ;;  %476 = vperm.xlu0 %835, %v438_v24  }
  0x4e   : > { %501 = vperm.xlu2 %837, %v443_v25  }
  0x4f   : > { %496 = vperm.xlu1 %836, %v442_v26   ;;  %491 = vperm.xlu0 %835, %v441_v27  }
  0x56   : > { %516 = vperm.xlu2 %837, %v446_v28  }
  0x57   : > { %511 = vperm.xlu1 %836, %v445_v29   ;;  %506 = vperm.xlu0 %835, %v444_v30   ;;  %v601_v30 = vld [vmem:[%s1034_s22 + $0x40] sm:$0xff] }
  0x5f   : > { %526 = vperm.xlu1 %836, %v448_v31   ;;  %521 = vperm.xlu0 %835, %v447_v32   ;;  %v602_v31 = vld [vmem:[%s1034_s22 + $0x48] sm:$0xff] }
  0x68   : > { %v344_v33 = vpop.permute.xlu2 %343 }
  0x69   : > { %v409_v23 = vmul.f32 %v344_v33, %v281_v53  ;;  %v410_v24 = vmul.f32 %v344_v33, %v282_v54  ;;  %v608_v53 = vld [vmem:[%s1034_s22 + $0x78] sm:$0xff] }
  0x70   : > { %v1004_v34 = vpop.permute.xlu2 %348 }
  0x78   : > { %v1006_v35 = vpop.permute.xlu2 %363 }
  0x80   : > { %v1009_v36 = vpop.permute.xlu2 %378 }
  0x81   : > { %v1011_v37 = vpop.permute.xlu1 %333  ;;  %v1013_v38 = vpop.permute.xlu0 %323 }
  0x88   : > { %v1018_v39 = vpop.permute.xlu2 %393 }
  0x89   : > { %v1020_v40 = vpop.permute.xlu1 %338  ;;  %v329_v41 = vpop.permute.xlu0 %328 }
  0x8a   : > { %v403_v44 = vmul.f32 %v329_v41, %v275_v42  ;;  %v404_v45 = vmul.f32 %v329_v41, %v276_v43 }
  0x90   : > { %v457_v46 = vpop.permute.xlu2 %456 }
  0x91   : > { %v531_v47 = vadd.f32 %v457_v46, %v403_v44  ;;  %v532_v48 = vadd.f32 %v457_v46, %v404_v45  ;;  %v359_v51 = vpop.permute.xlu1 %358  ;;  %v1038_v52 = vpop.permute.xlu0 %353 }
  0x92   : > { %v415_v44 = vmul.f32 %v359_v51, %v287_v19  ;;  %v416_v33 = vmul.f32 %v359_v51, %v288_v20  ;;  %v401_v19 = vmul.f32 %v1013_v38, %v273_v8  ;;  %v402_v20 = vmul.f32 %v1013_v38, %v274_v9 }
  0x93   : > { %v563_v59 = vmax.f32 %v531_v47, 0.0  ;;  %v564_v60 = vmax.f32 %v532_v48, 0.0 }
  0x95   : > { %v627_v17 = vadd.f32 %v595_v49, %v563_v59  ;;  %v628_v18 = vadd.f32 %v596_v50, %v564_v60  ;;  %v607_v50 = vld [vmem:[%s1034_s22 + $0x70] sm:$0xff] }
  0x97   : > { %659 = vst [vmem:[%s1099_s25 + $0x10] sm:$0xff] %v627_v17 }
  0x98   : > { %v472_v25 = vpop.permute.xlu2 %471  ;;  %660 = vst [vmem:[%s1099_s25 + $0x18] sm:$0xff] %v628_v18 }
  0x99   : > { %v537_v26 = vadd.f32 %v472_v25, %v409_v23  ;;  %v538_v27 = vadd.f32 %v472_v25, %v410_v24  ;;  %v374_v28 = vpop.permute.xlu1 %373  ;;  %v1126_v29 = vpop.permute.xlu0 %368 }
  0x9a   : > { %v421_v18 = vmul.f32 %v374_v28, %v1043_v55  ;;  %v422_v51 = vmul.f32 %v374_v28, %v1046_v56  ;;  %v614_v28 = vld [vmem:[%s1034_s22 + $0xa8] sm:$0xff] }
  0x9b   : > { %v569_v32 = vmax.f32 %v537_v26, 0.0  ;;  %v570_v41 = vmax.f32 %v538_v27, 0.0 }
  0x9d   : > { %v633_v42 = vadd.f32 %v601_v30, %v569_v32  ;;  %v634_v43 = vadd.f32 %v602_v31, %v570_v41  ;;  %v613_v30 = vld [vmem:[%s1034_s22 + $0xa0] sm:$0xff] }
  0x9e   : > { %v593_v41 = vld [vmem:[%s1034_s22] sm:$0xff] }
  0x9f   : > { %665 = vst [vmem:[%s1099_s25 + $0x40] sm:$0xff] %v633_v42  ;;  %v594_v42 = vld [vmem:[%s1034_s22 + $0x8] sm:$0xff] }
  0xa0   : > { %v487_v45 = vpop.permute.xlu2 %486  ;;  %666 = vst [vmem:[%s1099_s25 + $0x48] sm:$0xff] %v634_v43 }
  0xa1   : > { %v543_v46 = vadd.f32 %v487_v45, %v415_v44  ;;  %v544_v47 = vadd.f32 %v487_v45, %v416_v33  ;;  %v389_v48 = vpop.permute.xlu1 %388  ;;  %v1132_v49 = vpop.permute.xlu0 %383 }
  0xa2   : > { %v427_v45 = vmul.f32 %v389_v48, %v1055_v61 }
  0xa3   : > { %v575_v54 = vmax.f32 %v543_v46, 0.0  ;;  %v576_v59 = vmax.f32 %v544_v47, 0.0  ;;  %v428_v46 = vmul.f32 %v389_v48, %v1058_v62  ;;  %v405_v47 = vmul.f32 %v1011_v37, %v1082_v6  ;;  %v619_v6 = vld [vmem:[%s1034_s22 + $0xd0] sm:$0xff] }
  0xa5   : > { %v639_v60 = vadd.f32 %v607_v50, %v575_v54  ;;  %v640_v17 = vadd.f32 %v608_v53, %v576_v59  ;;  %v406_v50 = vmul.f32 %v1011_v37, %v1085_v7  ;;  %v407_v53 = vmul.f32 %v1020_v40, %v1111_v15 }
  0xa6   : > { %v408_v54 = vmul.f32 %v1020_v40, %v1114_v16 }
  0xa7   : > { %671 = vst [vmem:[%s1099_s25 + $0x70] sm:$0xff] %v639_v60 }
  0xa8   : > { %v502_v23 = vpop.permute.xlu2 %501  ;;  %672 = vst [vmem:[%s1099_s25 + $0x78] sm:$0xff] %v640_v17  ;;  %v620_v17 = vld [vmem:[%s1034_s22 + $0xd8] sm:$0xff] }
  0xa9   : > { %v549_v24 = vadd.f32 %v502_v23, %v421_v18  ;;  %v550_v25 = vadd.f32 %v502_v23, %v422_v51  ;;  %v452_v26 = vpop.permute.xlu1 %451  ;;  %v1142_v27 = vpop.permute.xlu0 %398  ;;  %v599_v51 = vld [vmem:[%s1034_s22 + $0x30] sm:$0xff] }
  0xaa   : > { %v529_v55 = vadd.f32 %v452_v26, %v401_v19  ;;  %v530_v31 = vadd.f32 %v452_v26, %v402_v20  ;;  %v600_v19 = vld [vmem:[%s1034_s22 + $0x38] sm:$0xff]  ;;  %v597_v26 = vld [vmem:[%s1034_s22 + $0x20] sm:$0xff] }
  0xab   : > { %v581_v32 = vmax.f32 %v549_v24, 0.0  ;;  %v582_v56 = vmax.f32 %v550_v25, 0.0 }
  0xac   : > { %v561_v8 = vmax.f32 %v529_v55, 0.0  ;;  %v562_v38 = vmax.f32 %v530_v31, 0.0  ;;  %v598_v31 = vld [vmem:[%s1034_s22 + $0x28] sm:$0xff] }
  0xad   : > { %v645_v9 = vadd.f32 %v613_v30, %v581_v32  ;;  %v646_v43 = vadd.f32 %v614_v28, %v582_v56  ;;  %v411_v28 = vmul.f32 %v1004_v34, %v1064_v0 }
  0xae   : > { %v625_v44 = vadd.f32 %v593_v41, %v561_v8  ;;  %v626_v33 = vadd.f32 %v594_v42, %v562_v38  ;;  %v412_v42 = vmul.f32 %v1004_v34, %v1067_v1  ;;  %v413_v8 = vmul.f32 %v1038_v52, %v1119_v21  ;;  %v605_v34 = vld [vmem:[%s1034_s22 + $0x60] sm:$0xff]  ;;  %v606_v1 = vld [vmem:[%s1034_s22 + $0x68] sm:$0xff]  ;;  %v603_v21 = vld [vmem:[%s1034_s22 + $0x50] sm:$0xff] }
  0xaf   : > { %677 = vst [vmem:[%s1099_s25 + $0xa0] sm:$0xff] %v645_v9  ;;  %v414_v38 = vmul.f32 %v1038_v52, %v1122_v22 }
  0xb0   : > { %657 = vst [vmem:[%s1099_s25] sm:$0xff] %v625_v44  ;;  %v517_v59 = vpop.permute.xlu2 %516 }
  0xb1   : > { %658 = vst [vmem:[%s1099_s25 + $0x8] sm:$0xff] %v626_v33  ;;  %v555_v61 = vadd.f32 %v517_v59, %v427_v45  ;;  %v556_v62 = vadd.f32 %v517_v59, %v428_v46  ;;  %v467_v48 = vpop.permute.xlu1 %466  ;;  %v462_v60 = vpop.permute.xlu0 %461 }
  0xb2   : > { %678 = vst [vmem:[%s1099_s25 + $0xa8] sm:$0xff] %v646_v43  ;;  %v535_v37 = vadd.f32 %v467_v48, %v407_v53  ;;  %v536_v7 = vadd.f32 %v467_v48, %v408_v54  ;;  %v533_v15 = vadd.f32 %v462_v60, %v405_v47  ;;  %v534_v18 = vadd.f32 %v462_v60, %v406_v50  ;;  %v604_v53 = vld [vmem:[%s1034_s22 + $0x58] sm:$0xff] }
  0xb3   : > { %v587_v40 = vmax.f32 %v555_v61, 0.0  ;;  %v588_v16 = vmax.f32 %v556_v62, 0.0  ;;  %v417_v48 = vmul.f32 %v1006_v35, %v1070_v2  ;;  %v418_v60 = vmul.f32 %v1006_v35, %v1073_v3  ;;  %v612_v35 = vld [vmem:[%s1034_s22 + $0x98] sm:$0xff]  ;;  %v609_v3 = vld [vmem:[%s1034_s22 + $0x80] sm:$0xff] }
  0xb4   : > { %v567_v20 = vmax.f32 %v535_v37, 0.0  ;;  %v568_v23 = vmax.f32 %v536_v7, 0.0  ;;  %v565_v24 = vmax.f32 %v533_v15, 0.0  ;;  %v566_v25 = vmax.f32 %v534_v18, 0.0 }
  0xb5   : > { %v651_v30 = vadd.f32 %v619_v6, %v587_v40  ;;  %v652_v55 = vadd.f32 %v620_v17, %v588_v16  ;;  %v419_v6 = vmul.f32 %v1126_v29, %v1049_v57  ;;  %v420_v17 = vmul.f32 %v1126_v29, %v1052_v58  ;;  %v611_v16 = vld [vmem:[%s1034_s22 + $0x90] sm:$0xff] }
  0xb6   : > { %v631_v32 = vadd.f32 %v599_v51, %v567_v20  ;;  %v632_v56 = vadd.f32 %v600_v19, %v568_v23  ;;  %v629_v41 = vadd.f32 %v597_v26, %v565_v24  ;;  %v630_v9 = vadd.f32 %v598_v31, %v566_v25  ;;  %v610_v19 = vld [vmem:[%s1034_s22 + $0x88] sm:$0xff] }
  0xb7   : > { %683 = vst [vmem:[%s1099_s25 + $0xd0] sm:$0xff] %v651_v30  ;;  %v423_v26 = vmul.f32 %v1009_v36, %v1076_v4  ;;  %v424_v30 = vmul.f32 %v1009_v36, %v1079_v5  ;;  %v426_v31 = vmul.f32 %v1132_v49, %v1102_v12  ;;  %v618_v36 = vld [vmem:[%s1034_s22 + $0xc8] sm:$0xff]  ;;  %v615_v5 = vld [vmem:[%s1034_s22 + $0xb0] sm:$0xff] }
  0xb8   : > { %684 = vst [vmem:[%s1099_s25 + $0xd8] sm:$0xff] %v652_v55  ;;  %v425_v55 = vmul.f32 %v1132_v49, %v1061_v63 }
  0xb9   : > { %663 = vst [vmem:[%s1099_s25 + $0x30] sm:$0xff] %v631_v32  ;;  %v482_v0 = vpop.permute.xlu1 %481  ;;  %v477_v43 = vpop.permute.xlu0 %476 }
  0xba   : > { %664 = vst [vmem:[%s1099_s25 + $0x38] sm:$0xff] %v632_v56  ;;  %v541_v44 = vadd.f32 %v482_v0, %v413_v8  ;;  %v542_v33 = vadd.f32 %v482_v0, %v414_v38  ;;  %v539_v45 = vadd.f32 %v477_v43, %v411_v28  ;;  %v540_v46 = vadd.f32 %v477_v43, %v412_v42  ;;  %v617_v8 = vld [vmem:[%s1034_s22 + $0xc0] sm:$0xff] }
  0xbb   : > { %661 = vst [vmem:[%s1099_s25 + $0x20] sm:$0xff] %v629_v41 }
  0xbc   : > { %662 = vst [vmem:[%s1099_s25 + $0x28] sm:$0xff] %v630_v9  ;;  %v573_v47 = vmax.f32 %v541_v44, 0.0  ;;  %v574_v52 = vmax.f32 %v542_v33, 0.0  ;;  %v571_v22 = vmax.f32 %v539_v45, 0.0  ;;  %v572_v50 = vmax.f32 %v540_v46, 0.0  ;;  %v616_v9 = vld [vmem:[%s1034_s22 + $0xb8] sm:$0xff] }
  0xbd   : > { %v429_v45 = vmul.f32 %v1018_v39, %v1090_v10  ;;  %v430_v46 = vmul.f32 %v1018_v39, %v1093_v11  ;;  %v623_v39 = vld [vmem:[%s1034_s22 + $0xf0] sm:$0xff]  ;;  %v624_v11 = vld [vmem:[%s1034_s22 + $0xf8] sm:$0xff] }
  0xbe   : > { %v637_v54 = vadd.f32 %v605_v34, %v573_v47  ;;  %v638_v59 = vadd.f32 %v606_v1, %v574_v52  ;;  %v635_v61 = vadd.f32 %v603_v21, %v571_v22  ;;  %v636_v62 = vadd.f32 %v604_v53, %v572_v50 }
  0xbf   : > { %v431_v34 = vmul.f32 %v1142_v27, %v1105_v13  ;;  %v432_v1 = vmul.f32 %v1142_v27, %v1108_v14  ;;  %v621_v13 = vld [vmem:[%s1034_s22 + $0xe0] sm:$0xff] }
  0xc0   : > { %669 = vst [vmem:[%s1099_s25 + $0x60] sm:$0xff] %v637_v54 }
  0xc1   : > { %670 = vst [vmem:[%s1099_s25 + $0x68] sm:$0xff] %v638_v59  ;;  %v497_v37 = vpop.permute.xlu1 %496  ;;  %v492_v7 = vpop.permute.xlu0 %491  ;;  %v622_v59 = vld [vmem:[%s1034_s22 + $0xe8] sm:$0xff] }
  0xc2   : > { %667 = vst [vmem:[%s1099_s25 + $0x50] sm:$0xff] %v635_v61  ;;  %v547_v15 = vadd.f32 %v497_v37, %v419_v6  ;;  %v548_v18 = vadd.f32 %v497_v37, %v420_v17  ;;  %v545_v40 = vadd.f32 %v492_v7, %v417_v48  ;;  %v546_v2 = vadd.f32 %v492_v7, %v418_v60 }
  0xc3   : > { %668 = vst [vmem:[%s1099_s25 + $0x58] sm:$0xff] %v636_v62 }
  0xc4   : > { %v579_v57 = vmax.f32 %v547_v15, 0.0  ;;  %v580_v51 = vmax.f32 %v548_v18, 0.0  ;;  %v577_v58 = vmax.f32 %v545_v40, 0.0  ;;  %v578_v29 = vmax.f32 %v546_v2, 0.0 }
  0xc6   : > { %v643_v20 = vadd.f32 %v611_v16, %v579_v57  ;;  %v644_v23 = vadd.f32 %v612_v35, %v580_v51  ;;  %v641_v24 = vadd.f32 %v609_v3, %v577_v58  ;;  %v642_v25 = vadd.f32 %v610_v19, %v578_v29 }
  0xc8   : > { %675 = vst [vmem:[%s1099_s25 + $0x90] sm:$0xff] %v643_v20 }
  0xc9   : > { %676 = vst [vmem:[%s1099_s25 + $0x98] sm:$0xff] %v644_v23  ;;  %v512_v32 = vpop.permute.xlu1 %511  ;;  %v507_v56 = vpop.permute.xlu0 %506 }
  0xca   : > { %673 = vst [vmem:[%s1099_s25 + $0x80] sm:$0xff] %v641_v24  ;;  %v553_v28 = vadd.f32 %v512_v32, %v425_v55  ;;  %v554_v41 = vadd.f32 %v512_v32, %v426_v31  ;;  %v551_v42 = vadd.f32 %v507_v56, %v423_v26  ;;  %v552_v4 = vadd.f32 %v507_v56, %v424_v30 }
  0xcb   : > { %674 = vst [vmem:[%s1099_s25 + $0x88] sm:$0xff] %v642_v25 }
  0xcc   : > { %v585_v63 = vmax.f32 %v553_v28, 0.0  ;;  %v586_v38 = vmax.f32 %v554_v41, 0.0  ;;  %v583_v12 = vmax.f32 %v551_v42, 0.0  ;;  %v584_v49 = vmax.f32 %v552_v4, 0.0 }
  0xce   : > { %v649_v0 = vadd.f32 %v617_v8, %v585_v63  ;;  %v650_v43 = vadd.f32 %v618_v36, %v586_v38  ;;  %v647_v44 = vadd.f32 %v615_v5, %v583_v12  ;;  %v648_v33 = vadd.f32 %v616_v9, %v584_v49 }
  0xd0   : > { %681 = vst [vmem:[%s1099_s25 + $0xc0] sm:$0xff] %v649_v0 }
  0xd1   : > { %682 = vst [vmem:[%s1099_s25 + $0xc8] sm:$0xff] %v650_v43  ;;  %v527_v21 = vpop.permute.xlu1 %526  ;;  %v522_v47 = vpop.permute.xlu0 %521 }
  0xd2   : > { %679 = vst [vmem:[%s1099_s25 + $0xb0] sm:$0xff] %v647_v44  ;;  %v559_v52 = vadd.f32 %v527_v21, %v431_v34  ;;  %v560_v22 = vadd.f32 %v527_v21, %v432_v1  ;;  %v557_v10 = vadd.f32 %v522_v47, %v429_v45  ;;  %v558_v50 = vadd.f32 %v522_v47, %v430_v46 }
  0xd3   : > { %680 = vst [vmem:[%s1099_s25 + $0xb8] sm:$0xff] %v648_v33 }
  0xd4   : > { %v591_v53 = vmax.f32 %v559_v52, 0.0  ;;  %v592_v14 = vmax.f32 %v560_v22, 0.0  ;;  %v589_v27 = vmax.f32 %v557_v10, 0.0  ;;  %v590_v54 = vmax.f32 %v558_v50, 0.0 }
  0xd6   : > { %v655_v61 = vadd.f32 %v623_v39, %v591_v53  ;;  %v656_v62 = vadd.f32 %v624_v11, %v592_v14  ;;  %v653_v48 = vadd.f32 %v621_v13, %v589_v27  ;;  %v654_v60 = vadd.f32 %v622_v59, %v590_v54 }
  0xd8   : > { %687 = vst [vmem:[%s1099_s25 + $0xf0] sm:$0xff] %v655_v61 }
  0xd9   : > { %688 = vst [vmem:[%s1099_s25 + $0xf8] sm:$0xff] %v656_v62 }
  0xda   : > { %685 = vst [vmem:[%s1099_s25 + $0xe0] sm:$0xff] %v653_v48 }
  0xdb   : > { %686 = vst [vmem:[%s1099_s25 + $0xe8] sm:$0xff] %v654_v60 }
  0xdc PF: > { %s14_s17 = sadd.s32 1, %s860_s17   ;;  %s1252_s15 = smov %s856_s16 }
  0xdd   : > { %p11_p5 = scmp.ge.s32.totalorder %s14_s17, 4   ;;  %s1253_s16 = smov %s1255_s18 }
  0xdf   :  { %13 = sbr.rel (!%p11_p5) target bundleno = 2 (0x2), region = 69 }

// kernel: point_transformer_last.16
= control target key start
LH: loop header
LB: loop body
LE: loop exit
PB: predicated region body
PF: predicated region fallthrough
CT: control target
= control target key end

     0   :  { %s4735_s27 = smov 0   ;;  %s4737_s28 = smov 0   ;;  %s7498_s0 = inlined_call_operand.vmem [shape: f32[2,128,256], index: 0, kind: input, shape index: {}]   ;;  %s7499_s1 = inlined_call_operand.vmem [shape: f32[32,128], index: 1, kind: input, shape index: {}]   ;;  %s7500_s2 = inlined_call_operand.vmem [shape: f32[128,128], index: 2, kind: input, shape index: {}]   ;;  %s7501_s3 = inlined_call_operand.vmem [shape: f32[128,1], index: 3, kind: input, shape index: {}]   ;;  %s7502_s4 = inlined_call_operand.vmem [shape: f32[128,128], index: 4, kind: input, shape index: {}]   ;;  %s7503_s5 = inlined_call_operand.vmem [shape: f32[128,1], index: 5, kind: input, shape index: {}]   ;;  %s7504_s6 = inlined_call_operand.vmem [shape: f32[2,128,256], index: 6, kind: output, shape index: {0}]   ;;  %s7505_s7 = inlined_call_operand.vmem [shape: f32[2,128,1], index: 7, kind: output, shape index: {1}]   ;;  %s7506_s8 = inlined_call_operand.vmem [shape: f32[2,128,1], index: 8, kind: output, shape index: {2}]  }
   0x1   :  { %s4739_s29 = smov 0   ;;  %s4741_s30 = smov 0  }
   0x2   :  { %s4743_s9 = smov 0  }
   0x3 LB: > { %s28_s10 = sadd.s32 1, %s4677_s29  ;;  %s31_s11 = sadd.s32 1, %s4681_s30  ;;  %s4685_s9 = sphi %s4743_s9, %s19_s9   ;;  %s4681_s30 = sphi %s4741_s30, %s7740_s30   ;;  %s4677_s29 = sphi %s4739_s29, %s7739_s29   ;;  %s4673_s28 = sphi %s4737_s28, %s7738_s28   ;;  %s4669_s27 = sphi %s4735_s27, %s7737_s27  }
   0x4   : > { %p29_p0 = scmp.ge.s32.totalorder %s28_s10, 2  ;;  %p4399_p1 = scmp.ge.s32.totalorder %s4685_s9, 1 }
   0x5   : > { %p279_p2 = scmp.lt.s32.totalorder %s4685_s9, 5 }
   0x6   : > { %s7742_s10 = smov (%p29_p0, %s28_s10), 0  ;;  %s7744_s11 = smov (!%p29_p0, %s31_s11), %s4681_s30 }
   0x7   : > { %p280_p3 = pnand %p4399_p1, %p279_p2  ;;  %p33_p4 = scmp.ge.s32.totalorder %s7744_s11, 2 }
   0x9   : > { %s7746_s11 = smov (%p33_p4, %s7744_s11), 0  ;;  %283 = sbr.rel (%p280_p3) target bundleno = 2207 (0x89f), region = 44 }
   0xe   : > { %p323_p5 = scmp.lt.s32.totalorder %s4673_s28, 1  ;;  %p4408_p6 = scmp.ne.s32.totalorder %s4669_s27, 0 }
  0x10   : > { %s7748_s28 = smov (!%p323_p5, %s4673_s28), 1  ;;  %347 = sbr.rel (%p4408_p6) target bundleno = 431 (0x1af), region = 48 }
  0x11   : > { %s4463_s12 = sshll.u32 %s7748_s28, 8  ;;  %s4465_s13 = sshll.u32 %s7748_s28, 7 }
  0x12   : > { %s4770_s16 = scalar_lea.vmem %s7498_s0, %s4463_s12  ;;  %s4775_s19 = scalar_lea.vmem %s7504_s6, %s4463_s12 }
  0x13   : > { %s4780_s22 = scalar_lea.vmem %s7505_s7, %s4465_s13  ;;  %s4785_s25 = scalar_lea.vmem %s7506_s8, %s4465_s13 }
  0x15   : > { %v4789_v0 = vld [vmem:[%s4770_s16 + $0xe0] sm:$0xff]  ;;  %v4792_v1 = vld [vmem:[%s4770_s16 + $0xe8] sm:$0xff]  ;;  %v4795_v2 = vld [vmem:[%s4770_s16 + $0xf0] sm:$0xff] }
  0x16   : > { %v4798_v3 = vld [vmem:[%s4770_s16 + $0xf8] sm:$0xff]  ;;  %v4802_v4 = vpack.c.bf16 %v4792_v1, %v4789_v0  ;;  %v4805_v5 = vld [vmem:[%s4770_s16 + $0xc0] sm:$0xff]  ;;  %v4808_v6 = vld [vmem:[%s4770_s16 + $0xc8] sm:$0xff] }
  0x17   : > { %v4812_v7 = vpack.c.bf16 %v4798_v3, %v4795_v2  ;;  %v4815_v8 = vld [vmem:[%s4770_s16 + $0xd0] sm:$0xff]  ;;  %v4818_v9 = vld [vmem:[%s4770_s16 + $0xd8] sm:$0xff]  ;;  %v4822_v10 = vpack.c.bf16 %v4808_v6, %v4805_v5  ;;  %v4825_v11 = vld [vmem:[%s4770_s16 + $0xa0] sm:$0xff] }
  0x18   : > { %v538_v12 = vunpack.c.l.b16 %v4802_v4  ;;  %v539_v13 = vunpack.c.h.b16 %v4802_v4  ;;  %v4831_v14 = vpack.c.bf16 %v4818_v9, %v4815_v8  ;;  %v4834_v15 = vld [vmem:[%s4770_s16 + $0xa8] sm:$0xff]  ;;  %v4837_v16 = vld [vmem:[%s4770_s16 + $0xb0] sm:$0xff]  ;;  %v4840_v17 = vld [vmem:[%s4770_s16 + $0xb8] sm:$0xff] }
  0x19   : > { %v540_v18 = vunpack.c.l.b16 %v4812_v7  ;;  %v541_v19 = vunpack.c.h.b16 %v4812_v7  ;;  %v534_v20 = vunpack.c.l.b16 %v4822_v10  ;;  %v535_v21 = vunpack.c.h.b16 %v4822_v10  ;;  %v4847_v22 = vld [vmem:[%s4770_s16 + $0x80] sm:$0xff]  ;;  %v4850_v23 = vld [vmem:[%s4770_s16 + $0x88] sm:$0xff]  ;;  %v4853_v24 = vld [vmem:[%s4770_s16 + $0x90] sm:$0xff] }
  0x1a   : > { %v536_v25 = vunpack.c.l.b16 %v4831_v14  ;;  %v537_v26 = vunpack.c.h.b16 %v4831_v14  ;;  %v4859_v27 = vpack.c.bf16 %v4834_v15, %v4825_v11  ;;  %v4863_v28 = vpack.c.bf16 %v4840_v17, %v4837_v16  ;;  %v4866_v29 = vld [vmem:[%s4770_s16 + $0x98] sm:$0xff]  ;;  %v4891_v40 = vld [vmem:[%s4770_s16 + $0x60] sm:$0xff]  ;;  %v4894_v41 = vld [vmem:[%s4770_s16 + $0x68] sm:$0xff] }
  0x1b   : > { %v4868_v30 = vpack.c.b16 %v540_v18, %v538_v12  ;;  %v4870_v31 = vpack.c.b16 %v541_v19, %v539_v13  ;;  %v4874_v32 = vpack.c.bf16 %v4850_v23, %v4847_v22  ;;  %v4882_v35 = vpack.c.bf16 %v4866_v29, %v4853_v24  ;;  %v4899_v42 = vld [vmem:[%s4770_s16 + $0x70] sm:$0xff]  ;;  %v4902_v43 = vld [vmem:[%s4770_s16 + $0x78] sm:$0xff]  ;;  %v4923_v52 = vld [vmem:[%s4770_s16 + $0x40] sm:$0xff] }
  0x1c   : > { %v4876_v33 = vpack.c.b16 %v536_v25, %v534_v20  ;;  %v4878_v34 = vpack.c.b16 %v537_v26, %v535_v21  ;;  %v530_v36 = vunpack.c.l.b16 %v4859_v27  ;;  %v532_v37 = vunpack.c.l.b16 %v4863_v28  ;;  %7586 = vst [vmem:[#allocation6_spill] sm:$0xff] %v4923_v52  ;;  %v4926_v53 = vld [vmem:[%s4770_s16 + $0x48] sm:$0xff]  ;;  %v4931_v54 = vld [vmem:[%s4770_s16 + $0x50] sm:$0xff]  ;;  %v4934_v55 = vld [vmem:[%s4770_s16 + $0x58] sm:$0xff] }
  0x1d   : > { %574 = vmatpush.bf16.msra.mxu0 %v4868_v30  ;;  %593 = vmatpush.bf16.msra.mxu1 %v4870_v31  ;;  %v531_v38 = vunpack.c.h.b16 %v4859_v27  ;;  %v533_v39 = vunpack.c.h.b16 %v4863_v28  ;;  %v526_v44 = vunpack.c.l.b16 %v4874_v32  ;;  %v528_v45 = vunpack.c.l.b16 %v4882_v35  ;;  %7587 = vst [vmem:[#allocation7_spill] sm:$0xff] %v4926_v53  ;;  %v4946_v60 = vld [vmem:[%s4770_s16 + $0x20] sm:$0xff]  ;;  %v4958_v13 = vld [vmem:[%s4770_s16 + $0x28] sm:$0xff]  ;;  %v4961_v18 = vld [vmem:[%s4770_s16 + $0x30] sm:$0xff] }
  0x1e   : > { %624 = vmatpush.bf16.msra.mxu2 %v4868_v30  ;;  %643 = vmatpush.bf16.msra.mxu3 %v4870_v31  ;;  %v527_v46 = vunpack.c.h.b16 %v4874_v32  ;;  %v529_v47 = vunpack.c.h.b16 %v4882_v35  ;;  %v4910_v48 = vpack.c.bf16 %v4894_v41, %v4891_v40  ;;  %v4914_v49 = vpack.c.b16 %v532_v37, %v530_v36  ;;  %7588 = vst [vmem:[#allocation8_spill] sm:$0xff] %v4931_v54  ;;  %v4964_v19 = vld [vmem:[%s4770_s16 + $0x38] sm:$0xff]  ;;  %v4969_v20 = vld [vmem:[%s4770_s16] sm:$0xff]  ;;  %v4972_v21 = vld [vmem:[%s4770_s16 + $0x8] sm:$0xff] }
  0x1f   : > { %v4916_v50 = vpack.c.b16 %v533_v39, %v531_v38  ;;  %v4920_v51 = vpack.c.bf16 %v4902_v43, %v4899_v42  ;;  %7589 = vst [vmem:[#allocation9_spill] sm:$0xff] %v4934_v55  ;;  %v4936_v56 = vpack.c.b16 %v528_v45, %v526_v44  ;;  %v4943_v59 = vpack.c.bf16 %v4926_v53, %v4923_v52  ;;  %v4975_v25 = vld [vmem:[%s4770_s16 + $0x10] sm:$0xff]  ;;  %v4978_v26 = vld [vmem:[%s4770_s16 + $0x18] sm:$0xff] }
  0x20   : > { %v4938_v57 = vpack.c.b16 %v529_v47, %v527_v46  ;;  %v522_v58 = vunpack.c.l.b16 %v4910_v48  ;;  %7592 = vst [vmem:[#allocation12_spill] sm:$0xff] %v4946_v60  ;;  %v523_v62 = vunpack.c.h.b16 %v4910_v48  ;;  %v4955_v12 = vpack.c.bf16 %v4934_v55, %v4931_v54 }
  0x21   : > { %575 = vmatpush.bf16.msra.mxu0 %v4876_v33  ;;  %594 = vmatpush.bf16.msra.mxu1 %v4878_v34  ;;  %7590 = vst [vmem:[#allocation10_spill] sm:$0xff] %v4936_v56  ;;  %v524_v61 = vunpack.c.l.b16 %v4920_v51  ;;  %v525_v63 = vunpack.c.h.b16 %v4920_v51  ;;  %v518_v36 = vunpack.c.l.b16 %v4943_v59  ;;  %v519_v37 = vunpack.c.h.b16 %v4943_v59 }
  0x22   : > { %625 = vmatpush.bf16.msra.mxu2 %v4876_v33  ;;  %644 = vmatpush.bf16.msra.mxu3 %v4878_v34  ;;  %7591 = vst [vmem:[#allocation11_spill] sm:$0xff] %v4938_v57  ;;  %v4984_v38 = vpack.c.bf16 %v4958_v13, %v4946_v60  ;;  %v4988_v39 = vpack.c.bf16 %v4964_v19, %v4961_v18  ;;  %v520_v46 = vunpack.c.l.b16 %v4955_v12  ;;  %v521_v47 = vunpack.c.h.b16 %v4955_v12 }
  0x23   : > { %7593 = vst [vmem:[#allocation13_spill] sm:$0xff] %v4958_v13  ;;  %v4992_v44 = vpack.c.b16 %v524_v61, %v522_v58  ;;  %v4994_v45 = vpack.c.b16 %v525_v63, %v523_v62  ;;  %v380_v13 = vld [vmem:[%s7499_s1] sm:$0xff]  ;;  %v5008_v58 = vpack.c.bf16 %v4972_v21, %v4969_v20  ;;  %v5012_v61 = vpack.c.bf16 %v4978_v26, %v4975_v25 }
  0x24   : > { %7594 = vst [vmem:[#allocation14_spill] sm:$0xff] %v4961_v18  ;;  %v514_v62 = vunpack.c.l.b16 %v4984_v38  ;;  %v516_v63 = vunpack.c.l.b16 %v4988_v39  ;;  %v384_v18 = vpack.c.bf16 %v380_v13, %v380_v13  ;;  %v5018_v55 = vpack.c.b16 %v520_v46, %v518_v36 }
  0x25   : > { %576 = vmatpush.bf16.msra.mxu0 %v4914_v49  ;;  %595 = vmatpush.bf16.msra.mxu1 %v4916_v50  ;;  %7595 = vst [vmem:[#allocation15_spill] sm:$0xff] %v4964_v19  ;;  %v381_v19 = vld [vmem:[%s7499_s1 + $0x8] sm:$0xff]  ;;  %v5020_v53 = vpack.c.b16 %v521_v47, %v519_v37  ;;  %v511_v54 = vunpack.c.h.b16 %v5008_v58  ;;  %v513_v52 = vunpack.c.h.b16 %v5012_v61  ;;  %v442_v36 = vunpack.c.l.bf16 %v4802_v4 }
  0x26   : > { %626 = vmatpush.bf16.msra.mxu2 %v4914_v49  ;;  %645 = vmatpush.bf16.msra.mxu3 %v4916_v50  ;;  %7596 = vst [vmem:[#allocation16_spill] sm:$0xff] %v4969_v20  ;;  %v385_v60 = vpack.c.bf16 %v381_v19, %v381_v19  ;;  %v517_v20 = vunpack.c.h.b16 %v4988_v39  ;;  %v5031_v37 = vpack.c.b16 %v516_v63, %v514_v62  ;;  %v388_v46 = vunpack.c.l.bf16 %v384_v18 }
  0x27   : > { %7597 = vst [vmem:[#allocation17_spill] sm:$0xff] %v4972_v21  ;;  %v515_v21 = vunpack.c.h.b16 %v4984_v38  ;;  %v5044_v63 = vpack.c.b16 %v513_v52, %v511_v54  ;;  %v441_v54 = vunpack.c.h.bf16 %v4831_v14 }
  0x28   : > { %7598 = vst [vmem:[#allocation18_spill] sm:$0xff] %v4975_v25  ;;  %v512_v25 = vunpack.c.l.b16 %v5012_v61  ;;  %v389_v47 = vunpack.c.l.bf16 %v385_v60 }
  0x29   : > { %7599 = vst [vmem:[#allocation19_spill] sm:$0xff] %v4978_v26  ;;  %577 = vmatpush.bf16.msra.mxu0 %v4936_v56  ;;  %596 = vmatpush.bf16.msra.mxu1 %v4938_v57  ;;  %v510_v26 = vunpack.c.l.b16 %v5008_v58 }
  0x2a   : > { %7600 = vst [vmem:[#allocation20_spill] sm:$0xff] %v4984_v38  ;;  %627 = vmatpush.bf16.msra.mxu2 %v4936_v56  ;;  %646 = vmatpush.bf16.msra.mxu3 %v4938_v57  ;;  %v617_v38 = vunpack.c.l.b16 %v385_v60  ;;  %v474_v57 = vsub.f32 %v4789_v0, %v442_v36  ;;  %v438_v56 = vunpack.c.l.bf16 %v4822_v10  ;;  %v439_v0 = vunpack.c.h.bf16 %v4822_v10 }
  0x2b   : > { %7601 = vst [vmem:[#allocation21_spill] sm:$0xff] %v4988_v39  ;;  %v443_v39 = vunpack.c.h.bf16 %v4802_v4  ;;  %v5042_v62 = vpack.c.b16 %v512_v25, %v510_v26  ;;  %v440_v4 = vunpack.c.l.bf16 %v4831_v14  ;;  %v435_v26 = vunpack.c.h.bf16 %v4859_v27 }
  0x2c   : > { %7602 = vst [vmem:[#allocation22_spill] sm:$0xff] %v4992_v44  ;;  %v471_v14 = vsub.f32 %v4808_v6, %v439_v0  ;;  %v432_v6 = vunpack.c.l.bf16 %v4882_v35 }
  0x2d   : > { %7603 = vst [vmem:[#allocation23_spill] sm:$0xff] %v4994_v45  ;;  %578 = vmatpush.bf16.msra.mxu0 %v4992_v44  ;;  %597 = vmatpush.bf16.msra.mxu1 %v4994_v45  ;;  %v475_v25 = vsub.f32 %v4792_v1, %v443_v39  ;;  %v382_v1 = vld [vmem:[%s7499_s1 + $0x10] sm:$0xff] }
  0x2e   : > { %7604 = vst [vmem:[#allocation24_spill] sm:$0xff] %v5008_v58  ;;  %628 = vmatpush.bf16.msra.mxu2 %v4992_v44  ;;  %647 = vmatpush.bf16.msra.mxu3 %v4994_v45  ;;  %v5035_v44 = vpack.c.b16 %v517_v20, %v515_v21  ;;  %v444_v45 = vunpack.c.l.bf16 %v4812_v7  ;;  %v445_v58 = vunpack.c.h.bf16 %v4812_v7  ;;  %v392_v20 = vsub.f32 %v380_v13, %v388_v46 }
  0x2f   : > { %7605 = vst [vmem:[#allocation25_spill] sm:$0xff] %v5012_v61  ;;  %v616_v61 = vunpack.c.l.b16 %v384_v18  ;;  %v393_v21 = vsub.f32 %v381_v19, %v389_v47  ;;  %v470_v18 = vsub.f32 %v4805_v5, %v438_v56  ;;  %v472_v19 = vsub.f32 %v4815_v8, %v440_v4 }
  0x30   : > { %v476_v7 = vsub.f32 %v4795_v2, %v444_v45  ;;  %v477_v52 = vsub.f32 %v4798_v3, %v445_v58  ;;  %v383_v2 = vld [vmem:[%s7499_s1 + $0x18] sm:$0xff]  ;;  %v434_v5 = vunpack.c.l.bf16 %v4859_v27  ;;  %v436_v8 = vunpack.c.l.bf16 %v4863_v28 }
  0x31   : > { %579 = vmatpush.bf16.msra.mxu0 %v5018_v55  ;;  %598 = vmatpush.bf16.msra.mxu1 %v5020_v53  ;;  %v396_v60 = vpack.c.bf16 %v393_v21, %v392_v20  ;;  %v5058_v13 = vpack.c.b16 %v617_v38, %v616_v61  ;;  %v473_v56 = vsub.f32 %v4818_v9, %v441_v54  ;;  %v437_v38 = vunpack.c.h.bf16 %v4863_v28 }
  0x32   : > { %629 = vmatpush.bf16.msra.mxu2 %v5018_v55  ;;  %648 = vmatpush.bf16.msra.mxu3 %v5020_v53  ;;  %v5070_v3 = vpack.c.bf16 %v476_v7, %v474_v57  ;;  %v5072_v10 = vpack.c.bf16 %v477_v52, %v475_v25  ;;  %v386_v57 = vpack.c.bf16 %v382_v1, %v382_v1  ;;  %v430_v58 = vunpack.c.l.bf16 %v4874_v32 }
  0x33   : > { %v387_v39 = vpack.c.bf16 %v383_v2, %v383_v2  ;;  %v5084_v45 = vpack.c.bf16 %v472_v19, %v470_v18  ;;  %v466_v9 = vsub.f32 %v4825_v11, %v434_v5  ;;  %v468_v27 = vsub.f32 %v4837_v16, %v436_v8  ;;  %v7606_v8 = vld [vmem:[#allocation10_spill] sm:$0xff] }
  0x34   : > { %v431_v28 = vunpack.c.h.bf16 %v4874_v32  ;;  %v433_v61 = vunpack.c.h.bf16 %v4882_v35  ;;  %v5096_v36 = vpack.c.bf16 %v473_v56, %v471_v14  ;;  %v467_v46 = vsub.f32 %v4834_v15, %v435_v26  ;;  %v7607_v14 = vld [vmem:[#allocation11_spill] sm:$0xff] }
  0x35   : > { %580 = vmatpush.bf16.msra.mxu0 %v5031_v37  ;;  %599 = vmatpush.bf16.msra.mxu1 %v5035_v44  ;;  %v469_v47 = vsub.f32 %v4840_v17, %v437_v38  ;;  %v390_v11 = vunpack.c.l.bf16 %v386_v57  ;;  %v391_v16 = vunpack.c.l.bf16 %v387_v39  ;;  %v462_v32 = vsub.f32 %v4847_v22, %v430_v58  ;;  %v7611_v58 = vld [vmem:[#allocation21_spill] sm:$0xff] }
  0x36   : > { %630 = vmatpush.bf16.msra.mxu2 %v5031_v37  ;;  %649 = vmatpush.bf16.msra.mxu3 %v5035_v44  ;;  %v464_v35 = vsub.f32 %v4853_v24, %v432_v6  ;;  %v5104_v20 = vpack.c.bf16 %v468_v27, %v466_v9  ;;  %v463_v21 = vsub.f32 %v4850_v23, %v431_v28  ;;  %v426_v15 = vunpack.c.l.bf16 %v4910_v48 }
  0x37   : > { %v465_v4 = vsub.f32 %v4866_v29, %v433_v61  ;;  %v5111_v17 = vpack.c.bf16 %v469_v47, %v467_v46  ;;  %v428_v7 = vunpack.c.l.bf16 %v4920_v51  ;;  %v427_v22 = vunpack.c.h.bf16 %v4910_v48  ;;  %v7614_v47 = vld [vmem:[#allocation22_spill] sm:$0xff] }
  0x38   : > { %v429_v24 = vunpack.c.h.bf16 %v4920_v51  ;;  %v394_v23 = vsub.f32 %v382_v1, %v390_v11  ;;  %v395_v29 = vsub.f32 %v383_v2, %v391_v16  ;;  %v618_v25 = vunpack.c.l.b16 %v386_v57  ;;  %v7610_v57 = vld [vmem:[#allocation20_spill] sm:$0xff]  ;;  %v7615_v11 = vld [vmem:[#allocation23_spill] sm:$0xff] }
  0x39   : > { %581 = vmatpush.bf16.msra.mxu0 %v5042_v62  ;;  %600 = vmatpush.bf16.msra.mxu1 %v5044_v63  ;;  %v619_v52 = vunpack.c.l.b16 %v387_v39  ;;  %v5118_v0 = vpack.c.bf16 %v464_v35, %v462_v32  ;;  %v422_v54 = vunpack.c.l.bf16 %v4943_v59  ;;  %v5122_v18 = vpack.c.bf16 %v465_v4, %v463_v21  ;;  %v722_v16 = vld [vmem:[%s7500_s2 + $0x30] sm:$0xff]  ;;  %v723_v32 = vld [vmem:[%s7500_s2 + $0x38] sm:$0xff] }
  0x3a   : > { %631 = vmatpush.bf16.msra.mxu2 %v5042_v62  ;;  %650 = vmatpush.bf16.msra.mxu3 %v5044_v63  ;;  %v458_v48 = vsub.f32 %v4891_v40, %v426_v15  ;;  %v423_v51 = vunpack.c.h.bf16 %v4943_v59  ;;  %v425_v19 = vunpack.c.h.bf16 %v4955_v12  ;;  %v460_v1 = vsub.f32 %v4899_v42, %v428_v7  ;;  %v7608_v59 = vld [vmem:[#allocation6_spill] sm:$0xff]  ;;  %v7612_v42 = vld [vmem:[#allocation7_spill] sm:$0xff]  ;;  %v7616_v21 = vld [vmem:[#allocation12_spill] sm:$0xff] }
  0x3b   : > { %v459_v2 = vsub.f32 %v4894_v41, %v427_v22  ;;  %v461_v5 = vsub.f32 %v4902_v43, %v429_v24  ;;  %v397_v56 = vpack.c.bf16 %v395_v29, %v394_v23  ;;  %v5134_v40 = vpack.c.b16 %v619_v52, %v618_v25  ;;  %v7613_v41 = vld [vmem:[#allocation9_spill] sm:$0xff]  ;;  %v7617_v15 = vld [vmem:[#allocation14_spill] sm:$0xff]  ;;  %v7618_v22 = vld [vmem:[#allocation24_spill] sm:$0xff] }
  0x3c   : > { %582 = vmatmul.bf16.vlgmr.msra.gmra.mxu0 %v396_v60  ;;  %601 = vmatmul.bf16.vlgmr.msra.gmra.mxu1 %v396_v60  ;;  %v424_v60 = vunpack.c.l.bf16 %v4955_v12  ;;  %v454_v26 = vsub.f32 %v7608_v59, %v422_v54  ;;  %v7609_v12 = vld [vmem:[#allocation8_spill] sm:$0xff]  ;;  %v418_v39 = vunpack.c.l.bf16 %v7610_v57  ;;  %v420_v6 = vunpack.c.l.bf16 %v7611_v58  ;;  %v7619_v29 = vld [vmem:[#allocation13_spill] sm:$0xff]  ;;  %v7620_v52 = vld [vmem:[#allocation15_spill] sm:$0xff] }
  0x3d   : > { %632 = vmatmul.bf16.vlgmr.msra.gmra.mxu2 %v5058_v13  ;;  %651 = vmatmul.bf16.vlgmr.msra.gmra.mxu3 %v5058_v13  ;;  %v455_v9 = vsub.f32 %v7612_v42, %v423_v51  ;;  %v457_v27 = vsub.f32 %v7613_v41, %v425_v19  ;;  %v419_v43 = vunpack.c.h.bf16 %v7610_v57  ;;  %v421_v28 = vunpack.c.h.bf16 %v7611_v58  ;;  %v7622_v59 = vld [vmem:[#allocation16_spill] sm:$0xff]  ;;  %v7624_v57 = vld [vmem:[#allocation17_spill] sm:$0xff]  ;;  %v7625_v58 = vld [vmem:[#allocation19_spill] sm:$0xff] }
  0x3e   : > { %4467 = vmatpush.bf16.msrb.mxu2 %v4868_v30  ;;  %4475 = vmatpush.bf16.msrb.mxu3 %v4870_v31  ;;  %v456_v38 = vsub.f32 %v7609_v12, %v424_v60  ;;  %v5146_v61 = vpack.c.bf16 %v460_v1, %v458_v48  ;;  %v5148_v46 = vpack.c.bf16 %v461_v5, %v459_v2  ;;  %v414_v24 = vunpack.c.l.bf16 %v7618_v22  ;;  %v7621_v60 = vld [vmem:[#allocation25_spill] sm:$0xff]  ;;  %v7623_v12 = vld [vmem:[#allocation18_spill] sm:$0xff] }
  0x3f   : > { %662 = vmatpush.bf16.msrb.mxu0 %v5070_v3  ;;  %681 = vmatpush.bf16.msrb.mxu1 %v5072_v10  ;;  %v450_v4 = vsub.f32 %v7616_v21, %v418_v39  ;;  %v452_v7 = vsub.f32 %v7617_v15, %v420_v6  ;;  %v5165_v23 = vpack.c.bf16 %v457_v27, %v455_v9  ;;  %v416_v48 = vunpack.c.l.bf16 %v7621_v60 }
  0x40   : > { %v5158_v35 = vpack.c.bf16 %v456_v38, %v454_v26  ;;  %v451_v25 = vsub.f32 %v7619_v29, %v419_v43  ;;  %v453_v54 = vsub.f32 %v7620_v52, %v421_v28  ;;  %v415_v51 = vunpack.c.h.bf16 %v7618_v22 }
  0x41   : > { %v417_v19 = vunpack.c.h.bf16 %v7621_v60  ;;  %v5174_v1 = vpack.c.bf16 %v722_v16, %v722_v16  ;;  %v5176_v2 = vpack.c.bf16 %v723_v32, %v723_v32  ;;  %v5180_v5 = vpack.c.bf16 %v452_v7, %v450_v4 }
  0x42   : > { %4468 = vmatpush.bf16.msrb.mxu2 %v4876_v33  ;;  %4476 = vmatpush.bf16.msrb.mxu3 %v4878_v34  ;;  %v446_v26 = vsub.f32 %v7622_v59, %v414_v24  ;;  %v448_v38 = vsub.f32 %v7623_v12, %v416_v48  ;;  %v447_v39 = vsub.f32 %v7624_v57, %v415_v51  ;;  %v718_v51 = vld [vmem:[%s7500_s2 + $0x10] sm:$0xff] }
  0x43   : > { %663 = vmatpush.bf16.msrb.mxu0 %v5084_v45  ;;  %682 = vmatpush.bf16.msrb.mxu1 %v5096_v36  ;;  %v449_v6 = vsub.f32 %v7625_v58, %v417_v19  ;;  %v754_v42 = vunpack.c.l.bf16 %v5174_v1  ;;  %v755_v9 = vunpack.c.l.bf16 %v5176_v2  ;;  %v719_v19 = vld [vmem:[%s7500_s2 + $0x18] sm:$0xff] }
  0x44   : > { %v5194_v41 = vpack.c.bf16 %v448_v38, %v446_v26 }
  0x45   : > { %v5198_v27 = vpack.c.bf16 %v449_v6, %v447_v39  ;;  %v770_v43 = vsub.f32 %v722_v16, %v754_v42  ;;  %v771_v28 = vsub.f32 %v723_v32, %v755_v9  ;;  %v724_v16 = vld [vmem:[%s7500_s2 + $0x40] sm:$0xff]  ;;  %v725_v32 = vld [vmem:[%s7500_s2 + $0x48] sm:$0xff] }
  0x46   : > { %4469 = vmatpush.bf16.msrb.mxu2 %v4914_v49  ;;  %4477 = vmatpush.bf16.msrb.mxu3 %v4916_v50  ;;  %v720_v42 = vld [vmem:[%s7500_s2 + $0x20] sm:$0xff] }
  0x47   : > { %664 = vmatpush.bf16.msrb.mxu0 %v5104_v20  ;;  %683 = vmatpush.bf16.msrb.mxu1 %v5111_v17  ;;  %v783_v21 = vpack.c.bf16 %v771_v28, %v770_v43 }
  0x4a   : > { %4470 = vmatpush.bf16.msrb.mxu2 %v7606_v8  ;;  %4478 = vmatpush.bf16.msrb.mxu3 %v7607_v14 }
  0x4b   : > { %665 = vmatpush.bf16.msrb.mxu0 %v5118_v0  ;;  %684 = vmatpush.bf16.msrb.mxu1 %v5122_v18 }
  0x4c   : > { %587 = vmatmul.bf16.gmra.mxu0 %v397_v56  ;;  %606 = vmatmul.bf16.gmra.mxu1 %v397_v56  ;;  %v5182_v56 = vpack.c.bf16 %v453_v54, %v451_v25 }
  0x4d   : > { %637 = vmatmul.bf16.gmra.mxu2 %v5134_v40  ;;  %656 = vmatmul.bf16.gmra.mxu3 %v5134_v40 }
  0x4e   : > { %4471 = vmatpush.bf16.msrb.mxu2 %v7614_v47  ;;  %4479 = vmatpush.bf16.msrb.mxu3 %v7615_v11 }
  0x4f   : > { %666 = vmatpush.bf16.msrb.mxu0 %v5146_v61  ;;  %685 = vmatpush.bf16.msrb.mxu1 %v5148_v46 }
  0x52   : > { %4472 = vmatpush.bf16.msrb.mxu2 %v5018_v55  ;;  %4480 = vmatpush.bf16.msrb.mxu3 %v5020_v53 }
  0x53   : > { %667 = vmatpush.bf16.msrb.mxu0 %v5158_v35  ;;  %686 = vmatpush.bf16.msrb.mxu1 %v5165_v23 }
  0x56   : > { %4473 = vmatpush.bf16.msrb.mxu2 %v5031_v37  ;;  %4481 = vmatpush.bf16.msrb.mxu3 %v5035_v44 }
  0x57   : > { %668 = vmatpush.bf16.msrb.mxu0 %v5180_v5  ;;  %687 = vmatpush.bf16.msrb.mxu1 %v5182_v56 }
  0x5a   : > { %4474 = vmatpush.bf16.msrb.mxu2 %v5042_v62  ;;  %4482 = vmatpush.bf16.msrb.mxu3 %v5044_v63 }
  0x5b   : > { %669 = vmatpush.bf16.msrb.mxu0 %v5194_v41  ;;  %688 = vmatpush.bf16.msrb.mxu1 %v5198_v27 }
  0x5d   : > { %811 = vmatmul.bf16.vlgmr.msrb.gmra.mxu2 %v783_v21  ;;  %860 = vmatmul.bf16.vlgmr.msrb.gmra.mxu3 %v783_v21 }
  0x5e   : > { %1032 = vmatpush.bf16.msra.mxu2 %v5070_v3  ;;  %1081 = vmatpush.bf16.msra.mxu3 %v5072_v10  ;;  %v5218_v3 = vpack.c.bf16 %v724_v16, %v724_v16  ;;  %v5220_v10 = vpack.c.bf16 %v725_v32, %v725_v32 }
  0x5f   : > { %788 = vmatpush.bf16.msra.mxu0 %v4868_v30  ;;  %837 = vmatpush.bf16.msra.mxu1 %v4870_v31 }
  0x60   : > { %670 = vmatmul.bf16.vlgmr.msrb.gmra.mxu0 %v5058_v13  ;;  %689 = vmatmul.bf16.vlgmr.msrb.gmra.mxu1 %v5058_v13 }
  0x62   : > { %1033 = vmatpush.bf16.msra.mxu2 %v5084_v45  ;;  %1082 = vmatpush.bf16.msra.mxu3 %v5096_v36  ;;  %v756_v45 = vunpack.c.l.bf16 %v5218_v3  ;;  %v757_v36 = vunpack.c.l.bf16 %v5220_v10 }
  0x63   : > { %789 = vmatpush.bf16.msra.mxu0 %v4876_v33  ;;  %838 = vmatpush.bf16.msra.mxu1 %v4878_v34 }
  0x64   : > { %v772_v13 = vsub.f32 %v724_v16, %v756_v45  ;;  %v773_v4 = vsub.f32 %v725_v32, %v757_v36 }
  0x66   : > { %1034 = vmatpush.bf16.msra.mxu2 %v5104_v20  ;;  %1083 = vmatpush.bf16.msra.mxu3 %v5111_v17  ;;  %v784_v20 = vpack.c.bf16 %v773_v4, %v772_v13  ;;  %v716_v17 = vld [vmem:[%s7500_s2] sm:$0xff]  ;;  %v4687_v13 = vmov 0   ;;  %v1163_v4 = vld [vmem:[%s7501_s3 + $0x8] sm:$0xff] }
  0x67   : > { %790 = vmatpush.bf16.msra.mxu0 %v4914_v49  ;;  %839 = vmatpush.bf16.msra.mxu1 %v4916_v50 }
  0x68   : > { %4543 = vset.pattern.permute.xlu0 %v4687_v13  ;;  %4544 = vset.pattern.permute.xlu1 %v4687_v13 }
  0x69   : > { %4545 = vset.pattern.permute.xlu2 %v4687_v13 }
  0x6a   : > { %1035 = vmatpush.bf16.msra.mxu2 %v5118_v0  ;;  %1084 = vmatpush.bf16.msra.mxu3 %v5122_v18  ;;  %v717_v0 = vld [vmem:[%s7500_s2 + $0x8] sm:$0xff]  ;;  %v726_v18 = vld [vmem:[%s7500_s2 + $0x50] sm:$0xff] }
  0x6b   : > { %791 = vmatpush.bf16.msra.mxu0 %v7606_v8  ;;  %840 = vmatpush.bf16.msra.mxu1 %v7607_v14  ;;  %v5256_v15 = vpack.c.bf16 %v717_v0, %v717_v0  ;;  %v5258_v7 = vpack.c.bf16 %v726_v18, %v726_v18 }
  0x6d   : > { %816 = vmatmul.bf16.gmra.mxu2 %v784_v20  ;;  %865 = vmatmul.bf16.gmra.mxu3 %v784_v20  ;;  %v758_v24 = vunpack.c.l.bf16 %v5258_v7 }
  0x6e   : > { %1036 = vmatpush.bf16.msra.mxu2 %v5146_v61  ;;  %1085 = vmatpush.bf16.msra.mxu3 %v5148_v46  ;;  %v727_v61 = vld [vmem:[%s7500_s2 + $0x58] sm:$0xff]  ;;  %v5254_v46 = vpack.c.bf16 %v716_v17, %v716_v17 }
  0x6f   : > { %792 = vmatpush.bf16.msra.mxu0 %v7614_v47  ;;  %841 = vmatpush.bf16.msra.mxu1 %v7615_v11  ;;  %v5260_v22 = vpack.c.bf16 %v727_v61, %v727_v61  ;;  %v774_v52 = vsub.f32 %v726_v18, %v758_v24 }
  0x70   : > { %675 = vmatmul.bf16.gmra.mxu0 %v5134_v40  ;;  %694 = vmatmul.bf16.gmra.mxu1 %v5134_v40  ;;  %v748_v40 = vunpack.c.l.bf16 %v5254_v46 }
  0x72   : > { %1037 = vmatpush.bf16.msra.mxu2 %v5158_v35  ;;  %1086 = vmatpush.bf16.msra.mxu3 %v5165_v23  ;;  %v749_v35 = vunpack.c.l.bf16 %v5256_v15  ;;  %v759_v23 = vunpack.c.l.bf16 %v5260_v22  ;;  %v764_v29 = vsub.f32 %v716_v17, %v748_v40  ;;  %v1164_v17 = vld [vmem:[%s7501_s3 + $0x10] sm:$0xff] }
  0x73   : > { %793 = vmatpush.bf16.msra.mxu0 %v5018_v55  ;;  %842 = vmatpush.bf16.msra.mxu1 %v5020_v53 }
  0x74   : > { %v765_v25 = vsub.f32 %v717_v0, %v749_v35  ;;  %v775_v54 = vsub.f32 %v727_v61, %v759_v23  ;;  %1190 = vperm.xlu1 %4544, %v1164_v17   ;;  %v1165_v0 = vld [vmem:[%s7501_s3 + $0x18] sm:$0xff] }
  0x76   : > { %1038 = vmatpush.bf16.msra.mxu2 %v5180_v5  ;;  %1087 = vmatpush.bf16.msra.mxu3 %v5182_v56  ;;  %v780_v60 = vpack.c.bf16 %v765_v25, %v764_v29  ;;  %v785_v48 = vpack.c.bf16 %v775_v54, %v774_v52  ;;  %v728_v5 = vld [vmem:[%s7500_s2 + $0x60] sm:$0xff]  ;;  %v5294_v56 = vpack.c.bf16 %v719_v19, %v719_v19  ;;  %v910_v54 = vunpack.c.l.b16 %v5218_v3 }
  0x77   : > { %794 = vmatpush.bf16.msra.mxu0 %v5031_v37  ;;  %843 = vmatpush.bf16.msra.mxu1 %v5035_v44  ;;  %v5296_v59 = vpack.c.bf16 %v728_v5, %v728_v5 }
  0x78   : > { %v905_v61 = vunpack.c.l.b16 %v5294_v56 }
  0x79   : > { %v760_v12 = vunpack.c.l.bf16 %v5296_v59 }
  0x7a   : > { %1039 = vmatpush.bf16.msra.mxu2 %v5194_v41  ;;  %1088 = vmatpush.bf16.msra.mxu3 %v5198_v27 }
  0x7b   : > { %795 = vmatpush.bf16.msra.mxu0 %v5042_v62  ;;  %844 = vmatpush.bf16.msra.mxu1 %v5044_v63  ;;  %v776_v58 = vsub.f32 %v728_v5, %v760_v12  ;;  %v908_v12 = vunpack.c.l.b16 %v5174_v1 }
  0x7c   : > { %1195 = vperm.xlu1 %4544, %v1165_v0  }
  0x7d   : > { %821 = vmatmul.bf16.gmra.mxu2 %v785_v48  ;;  %870 = vmatmul.bf16.gmra.mxu3 %v785_v48 }
  0x7f   : > { %934 = vmatpush.bf16.msrb.mxu0 %v4868_v30  ;;  %983 = vmatpush.bf16.msrb.mxu1 %v4870_v31  ;;  %v729_v30 = vld [vmem:[%s7500_s2 + $0x68] sm:$0xff]  ;;  %v5292_v31 = vpack.c.bf16 %v718_v51, %v718_v51 }
  0x80   : > { %796 = vmatmul.bf16.vlgmr.msra.gmra.mxu0 %v780_v60  ;;  %845 = vmatmul.bf16.vlgmr.msra.gmra.mxu1 %v780_v60  ;;  %v5298_v26 = vpack.c.bf16 %v729_v30, %v729_v30  ;;  %v911_v60 = vunpack.c.l.b16 %v5220_v10 }
  0x81   : > { %v904_v18 = vunpack.c.l.b16 %v5292_v31 }
  0x82   : > { %v761_v38 = vunpack.c.l.bf16 %v5298_v26 }
  0x83   : > { %935 = vmatpush.bf16.msrb.mxu0 %v4876_v33  ;;  %984 = vmatpush.bf16.msrb.mxu1 %v4878_v34  ;;  %v750_v33 = vunpack.c.l.bf16 %v5292_v31  ;;  %v751_v34 = vunpack.c.l.bf16 %v5294_v56  ;;  %v919_v40 = vpack.c.b16 %v905_v61, %v904_v18  ;;  %v5360_v31 = vpack.c.b16 %v911_v60, %v910_v54  ;;  %v1168_v56 = vld [vmem:[%s7501_s3 + $0x30] sm:$0xff]  ;;  %v1175_v54 = vld [vmem:[%s7501_s3 + $0x68] sm:$0xff] }
  0x84   : > { %v777_v6 = vsub.f32 %v729_v30, %v761_v38  ;;  %v909_v38 = vunpack.c.l.b16 %v5176_v2 }
  0x85   : > { %v766_v57 = vsub.f32 %v718_v51, %v750_v33  ;;  %v767_v39 = vsub.f32 %v719_v19, %v751_v34 }
  0x87   : > { %936 = vmatpush.bf16.msrb.mxu0 %v4914_v49  ;;  %985 = vmatpush.bf16.msrb.mxu1 %v4916_v50  ;;  %v781_v49 = vpack.c.bf16 %v767_v39, %v766_v57  ;;  %v786_v50 = vpack.c.bf16 %v777_v6, %v776_v58  ;;  %v912_v57 = vunpack.c.l.b16 %v5258_v7  ;;  %v913_v39 = vunpack.c.l.b16 %v5260_v22  ;;  %v1166_v58 = vld [vmem:[%s7501_s3 + $0x20] sm:$0xff]  ;;  %v1169_v6 = vld [vmem:[%s7501_s3 + $0x38] sm:$0xff] }
  0x88   : > { %1200 = vperm.xlu2 %4545, %v1166_v58   ;;  %1215 = vperm.xlu1 %4544, %v1169_v6  }
  0x89   : > { %v5379_v7 = vpack.c.b16 %v913_v39, %v912_v57  ;;  %v1176_v57 = vld [vmem:[%s7501_s3 + $0x70] sm:$0xff] }
  0x8b   : > { %937 = vmatpush.bf16.msrb.mxu0 %v7606_v8  ;;  %986 = vmatpush.bf16.msrb.mxu1 %v7607_v14  ;;  %v721_v8 = vld [vmem:[%s7500_s2 + $0x28] sm:$0xff]  ;;  %v730_v14 = vld [vmem:[%s7500_s2 + $0x70] sm:$0xff] }
  0x8c   : > { %v5326_v9 = vpack.c.bf16 %v721_v8, %v721_v8  ;;  %v5328_v41 = vpack.c.bf16 %v730_v14, %v730_v14 }
  0x8d   : > { %826 = vmatmul.bf16.gmra.mxu2 %v786_v50  ;;  %875 = vmatmul.bf16.gmra.mxu3 %v786_v50 }
  0x8e   : > { %v762_v43 = vunpack.c.l.bf16 %v5328_v41  ;;  %v907_v52 = vunpack.c.l.b16 %v5326_v9  ;;  %v916_v60 = vunpack.c.l.b16 %v5328_v41 }
  0x8f   : > { %938 = vmatpush.bf16.msrb.mxu0 %v7614_v47  ;;  %987 = vmatpush.bf16.msrb.mxu1 %v7615_v11  ;;  %v731_v47 = vld [vmem:[%s7500_s2 + $0x78] sm:$0xff]  ;;  %v5324_v11 = vpack.c.bf16 %v720_v42, %v720_v42 }
  0x90   : > { %801 = vmatmul.bf16.gmra.mxu0 %v781_v49  ;;  %850 = vmatmul.bf16.gmra.mxu1 %v781_v49  ;;  %v5330_v27 = vpack.c.bf16 %v731_v47, %v731_v47  ;;  %v778_v32 = vsub.f32 %v730_v14, %v762_v43 }
  0x91   : > { %v906_v25 = vunpack.c.l.b16 %v5324_v11 }
  0x92   : > { %v763_v28 = vunpack.c.l.bf16 %v5330_v27 }
  0x93   : > { %939 = vmatpush.bf16.msrb.mxu0 %v5018_v55  ;;  %988 = vmatpush.bf16.msrb.mxu1 %v5020_v53  ;;  %v752_v55 = vunpack.c.l.bf16 %v5324_v11  ;;  %v753_v53 = vunpack.c.l.bf16 %v5326_v9  ;;  %v920_v30 = vpack.c.b16 %v907_v52, %v906_v25  ;;  %v1167_v11 = vld [vmem:[%s7501_s3 + $0x28] sm:$0xff] }
  0x94   : > { %v779_v45 = vsub.f32 %v731_v47, %v763_v28  ;;  %v1171_v9 = vld [vmem:[%s7501_s3 + $0x48] sm:$0xff]  ;;  %1205 = vperm.xlu2 %4545, %v1167_v11  }
  0x95   : > { %v768_v21 = vsub.f32 %v720_v42, %v752_v55  ;;  %v769_v16 = vsub.f32 %v721_v8, %v753_v53  ;;  %v921_v8 = vpack.c.b16 %v909_v38, %v908_v12 }
  0x97   : > { %940 = vmatpush.bf16.msrb.mxu0 %v5031_v37  ;;  %989 = vmatpush.bf16.msrb.mxu1 %v5035_v44  ;;  %v782_v36 = vpack.c.bf16 %v769_v16, %v768_v21  ;;  %v787_v37 = vpack.c.bf16 %v779_v45, %v778_v32  ;;  %v1162_v44 = vld [vmem:[%s7501_s3] sm:$0xff] }
  0x98   : > { %1180 = vperm.xlu0 %4543, %v1162_v44   ;;  %v915_v44 = vunpack.c.l.b16 %v5298_v26  ;;  %v1177_v26 = vld [vmem:[%s7501_s3 + $0x78] sm:$0xff] }
  0x9b   : > { %941 = vmatpush.bf16.msrb.mxu0 %v5042_v62  ;;  %990 = vmatpush.bf16.msrb.mxu1 %v5044_v63  ;;  %v902_v62 = vunpack.c.l.b16 %v5254_v46  ;;  %v903_v63 = vunpack.c.l.b16 %v5256_v15 }
  0x9d   : > { %831 = vmatmul.bf16.gmra.mxu2 %v787_v37  ;;  %880 = vmatmul.bf16.gmra.mxu3 %v787_v37  ;;  %v918_v20 = vpack.c.b16 %v903_v63, %v902_v62  ;;  %v914_v37 = vunpack.c.l.b16 %v5296_v59  ;;  %v1172_v59 = vld [vmem:[%s7501_s3 + $0x50] sm:$0xff] }
  0x9e   : > { %1230 = vperm.xlu1 %4544, %v1172_v59  }
  0x9f   : > { %v924_v0 = vpack.c.b16 %v915_v44, %v914_v37 }
  0xa0   : > { %806 = vmatmul.bf16.gmra.mxu0 %v782_v36  ;;  %855 = vmatmul.bf16.gmra.mxu1 %v782_v36  ;;  %v1174_v36 = vld [vmem:[%s7501_s3 + $0x60] sm:$0xff] }
  0xa1   : > { %1185 = vperm.xlu0 %4543, %v1163_v4  }
  0xa6   : > { %1245 = vperm.xlu1 %4544, %v1175_v54  }
  0xa9   : > { %1210 = vperm.xlu0 %4543, %v1168_v56  }
  0xad   : > { %1040 = vmatmul.bf16.vlgmr.msra.gmra.mxu2 %v918_v20  ;;  %1089 = vmatmul.bf16.vlgmr.msra.gmra.mxu3 %v918_v20 }
  0xb0   : > { %942 = vmatmul.bf16.vlgmr.msrb.gmra.mxu0 %v918_v20  ;;  %991 = vmatmul.bf16.vlgmr.msrb.gmra.mxu1 %v918_v20 }
  0xb1   : > { %1225 = vperm.xlu0 %4543, %v1171_v9  }
  0xb9   : > { %v583_v46 = vpop.f32.mrf.mxu0  ;;  %v602_v15 = vpop.f32.mrf.mxu1  ;;  %1240 = vperm.xlu0 %4543, %v1174_v36  }
  0xbd   : > { %1045 = vmatmul.bf16.gmra.mxu2 %v919_v40  ;;  %1094 = vmatmul.bf16.gmra.mxu3 %v919_v40 }
  0xc0   : > { %947 = vmatmul.bf16.gmra.mxu0 %v919_v40  ;;  %996 = vmatmul.bf16.gmra.mxu1 %v919_v40  ;;  %v633_v35 = vpop.f32.mrf.mxu2  ;;  %v652_v24 = vpop.f32.mrf.mxu3 }
  0xc1   : > { %v585_v23 = vpop.f32.mrf.mxu0  ;;  %v604_v29 = vpop.f32.mrf.mxu1  ;;  %v634_v42 = vadd.f32 %v633_v35, %v583_v46  ;;  %v653_v1 = vadd.f32 %v652_v24, %v602_v15  ;;  %1255 = vperm.xlu0 %4543, %v1177_v26  }
  0xc8   : > { %v635_v48 = vpop.f32.mrf.mxu2  ;;  %v654_v51 = vpop.f32.mrf.mxu3 }
  0xc9   : > { %v588_v19 = vpop.f32.mrf.mxu0  ;;  %v607_v5 = vpop.f32.mrf.mxu1  ;;  %v636_v55 = vadd.f32 %v635_v48, %v585_v23  ;;  %v655_v53 = vadd.f32 %v654_v51, %v604_v29  ;;  %v1170_v29 = vld [vmem:[%s7501_s3 + $0x40] sm:$0xff]  ;;  %v917_v48 = vunpack.c.l.b16 %v5330_v27 }
  0xca   : > { %1220 = vperm.xlu2 %4545, %v1170_v29  }
  0xcd   : > { %1050 = vmatmul.bf16.gmra.mxu2 %v920_v30  ;;  %1099 = vmatmul.bf16.gmra.mxu3 %v920_v30 }
  0xd0   : > { %952 = vmatmul.bf16.gmra.mxu0 %v920_v30  ;;  %1001 = vmatmul.bf16.gmra.mxu1 %v920_v30  ;;  %v638_v33 = vpop.f32.mrf.mxu2  ;;  %v657_v3 = vpop.f32.mrf.mxu3 }
  0xd1   : > { %v5365_v34 = vpop.f32.mrf.mxu0  ;;  %v5367_v10 = vpop.f32.mrf.mxu1  ;;  %v639_v13 = vadd.f32 %v638_v33, %v588_v19  ;;  %v658_v62 = vadd.f32 %v657_v3, %v607_v5  ;;  %v1173_v3 = vld [vmem:[%s7501_s3 + $0x58] sm:$0xff] }
  0xd2   : > { %1235 = vperm.xlu2 %4545, %v1173_v3  }
  0xd8   : > { %v640_v49 = vpop.f32.mrf.mxu2  ;;  %v659_v50 = vpop.f32.mrf.mxu3 }
  0xd9   : > { %v641_v46 = vadd.f32 %v640_v49, %v5365_v34  ;;  %v660_v15 = vadd.f32 %v659_v50, %v5367_v10 }
  0xda   : > { %1250 = vperm.xlu2 %4545, %v1176_v57  }
  0xdd   : > { %v671_v2 = vpop.f32.mrf.mxu0  ;;  %v690_v14 = vpop.f32.mrf.mxu1  ;;  %1055 = vmatmul.bf16.gmra.mxu2 %v921_v8  ;;  %1104 = vmatmul.bf16.gmra.mxu3 %v921_v8 }
  0xde   : > { %v700_v22 = vadd.f32 %v671_v2, %v634_v42  ;;  %v701_v47 = vadd.f32 %v690_v14, %v653_v1 }
  0xe0   : > { %708 = vst [vmem:[#allocation2] sm:$0xff] %v700_v22  ;;  %957 = vmatmul.bf16.gmra.mxu0 %v921_v8  ;;  %1006 = vmatmul.bf16.gmra.mxu1 %v921_v8  ;;  %v5387_v43 = vpop.f32.mrf.mxu2  ;;  %v5389_v28 = vpop.f32.mrf.mxu3 }
  0xe1   : > { %709 = vst [vmem:[#allocation2 + $0x8] sm:$0xff] %v701_v47 }
  0xe5   : > { %v673_v21 = vpop.f32.mrf.mxu0  ;;  %v692_v16 = vpop.f32.mrf.mxu1 }
  0xe6   : > { %v702_v32 = vadd.f32 %v673_v21, %v636_v55  ;;  %v703_v45 = vadd.f32 %v692_v16, %v655_v53 }
  0xe8   : > { %710 = vst [vmem:[#allocation2 + $0x10] sm:$0xff] %v702_v32  ;;  %v5396_v63 = vpop.f32.mrf.mxu2  ;;  %v5398_v4 = vpop.f32.mrf.mxu3 }
  0xe9   : > { %711 = vst [vmem:[#allocation2 + $0x18] sm:$0xff] %v703_v45 }
  0xed   : > { %v676_v20 = vpop.f32.mrf.mxu0  ;;  %v695_v17 = vpop.f32.mrf.mxu1  ;;  %1060 = vmatmul.bf16.gmra.mxu2 %v5360_v31  ;;  %1109 = vmatmul.bf16.gmra.mxu3 %v5360_v31 }
  0xee   : > { %v704_v18 = vadd.f32 %v676_v20, %v639_v13  ;;  %v705_v61 = vadd.f32 %v695_v17, %v658_v62 }
  0xf0   : > { %712 = vst [vmem:[#allocation2 + $0x20] sm:$0xff] %v704_v18  ;;  %962 = vmatmul.bf16.gmra.mxu0 %v5360_v31  ;;  %1011 = vmatmul.bf16.gmra.mxu1 %v5360_v31  ;;  %v5412_v40 = vpop.f32.mrf.mxu2  ;;  %v5414_v35 = vpop.f32.mrf.mxu3  ;;  %v925_v31 = vpack.c.b16 %v917_v48, %v916_v60 }
  0xf1   : > { %713 = vst [vmem:[#allocation2 + $0x28] sm:$0xff] %v705_v61 }
  0xf5   : > { %v678_v24 = vpop.f32.mrf.mxu0  ;;  %v697_v23 = vpop.f32.mrf.mxu1 }
  0xf6   : > { %v706_v25 = vadd.f32 %v678_v24, %v641_v46  ;;  %v707_v52 = vadd.f32 %v697_v23, %v660_v15 }
  0xf8   : > { %714 = vst [vmem:[#allocation2 + $0x30] sm:$0xff] %v706_v25  ;;  %v5424_v51 = vpop.f32.mrf.mxu2  ;;  %v5426_v19 = vpop.f32.mrf.mxu3 }
  0xf9   : > { %715 = vst [vmem:[#allocation2 + $0x38] sm:$0xff] %v707_v52  ;;  %v1191_v25 = vpop.permute.xlu1 %1190 }
  0xfd   : > { %v797_v5 = vpop.f32.mrf.mxu0  ;;  %v846_v30 = vpop.f32.mrf.mxu1  ;;  %1065 = vmatmul.bf16.gmra.mxu2 %v5379_v7  ;;  %1114 = vmatmul.bf16.gmra.mxu3 %v5379_v7 }
 0x100   : > { %967 = vmatmul.bf16.gmra.mxu0 %v5379_v7  ;;  %1016 = vmatmul.bf16.gmra.mxu1 %v5379_v7  ;;  %v5432_v41 = vpop.f32.mrf.mxu2  ;;  %v5434_v27 = vpop.f32.mrf.mxu3 }
 0x105   : > { %v799_v56 = vpop.f32.mrf.mxu0  ;;  %v848_v33 = vpop.f32.mrf.mxu1 }
 0x108   : > { %v5439_v34 = vpop.f32.mrf.mxu2  ;;  %v5441_v10 = vpop.f32.mrf.mxu3 }
 0x10a   : > { %v1181_v53 = vpop.permute.xlu0 %1180 }
 0x10d   : > { %v802_v12 = vpop.f32.mrf.mxu0  ;;  %v851_v38 = vpop.f32.mrf.mxu1  ;;  %1070 = vmatmul.bf16.gmra.mxu2 %v924_v0  ;;  %1119 = vmatmul.bf16.gmra.mxu3 %v924_v0 }
 0x110   : > { %972 = vmatmul.bf16.gmra.mxu0 %v924_v0  ;;  %1021 = vmatmul.bf16.gmra.mxu1 %v924_v0  ;;  %v5446_v39 = vpop.f32.mrf.mxu2  ;;  %v5448_v58 = vpop.f32.mrf.mxu3 }
 0x113   : > { %v1186_v18 = vpop.permute.xlu0 %1185 }
 0x115   : > { %v804_v6 = vpop.f32.mrf.mxu0  ;;  %v853_v49 = vpop.f32.mrf.mxu1 }
 0x118   : > { %v5450_v50 = vpop.f32.mrf.mxu2  ;;  %v5452_v42 = vpop.f32.mrf.mxu3 }
 0x11d   : > { %v5454_v1 = vpop.f32.mrf.mxu0  ;;  %v5456_v8 = vpop.f32.mrf.mxu1  ;;  %1075 = vmatmul.bf16.gmra.mxu2 %v925_v31  ;;  %1124 = vmatmul.bf16.gmra.mxu3 %v925_v31 }
 0x120   : > { %977 = vmatmul.bf16.gmra.mxu0 %v925_v31  ;;  %1026 = vmatmul.bf16.gmra.mxu1 %v925_v31  ;;  %v5458_v2 = vpop.f32.mrf.mxu2  ;;  %v5460_v14 = vpop.f32.mrf.mxu3 }
 0x125   : > { %v5462_v7 = vpop.f32.mrf.mxu0  ;;  %v5464_v22 = vpop.f32.mrf.mxu1 }
 0x128   : > { %v5466_v47 = vpop.f32.mrf.mxu2  ;;  %v5468_v11 = vpop.f32.mrf.mxu3 }
 0x12d   : > { %v943_v9 = vpop.f32.mrf.mxu0  ;;  %v992_v55 = vpop.f32.mrf.mxu1 }
 0x12e   : > { %v944_v21 = vadd.f32 %v943_v9, %v797_v5  ;;  %v993_v16 = vadd.f32 %v992_v55, %v846_v30  ;;  %v1196_v55 = vpop.permute.xlu1 %1195 }
 0x130   : > { %v1041_v32 = vpop.f32.mrf.mxu2  ;;  %v1090_v45 = vpop.f32.mrf.mxu3 }
 0x131   : > { %v1130_v36 = vadd.f32 %v1041_v32, %v944_v21  ;;  %v1131_v37 = vadd.f32 %v1090_v45, %v993_v16 }
 0x133   : > { %v1258_v62 = vadd.f32 %v1181_v53, %v1130_v36  ;;  %v1259_v20 = vadd.f32 %v1181_v53, %v1131_v37  ;;  %v1201_v37 = vpop.permute.xlu2 %1200 }
 0x135   : > { %v945_v44 = vpop.f32.mrf.mxu0  ;;  %v994_v13 = vpop.f32.mrf.mxu1  ;;  %1290 = vst [vmem:[#allocation3] sm:$0xff] %v1258_v62 }
 0x136   : > { %1291 = vst [vmem:[#allocation3 + $0x8] sm:$0xff] %v1259_v20  ;;  %v946_v17 = vadd.f32 %v945_v44, %v799_v56  ;;  %v995_v0 = vadd.f32 %v994_v13, %v848_v33 }
 0x138   : > { %v1043_v61 = vpop.f32.mrf.mxu2  ;;  %v1092_v59 = vpop.f32.mrf.mxu3 }
 0x139   : > { %v1132_v26 = vadd.f32 %v1043_v61, %v946_v17  ;;  %v1133_v46 = vadd.f32 %v1092_v59, %v995_v0 }
 0x13b   : > { %v1260_v23 = vadd.f32 %v1186_v18, %v1132_v26  ;;  %v1261_v29 = vadd.f32 %v1186_v18, %v1133_v46  ;;  %v1206_v46 = vpop.permute.xlu2 %1205 }
 0x13d   : > { %v948_v15 = vpop.f32.mrf.mxu0  ;;  %v997_v24 = vpop.f32.mrf.mxu1  ;;  %1292 = vst [vmem:[#allocation3 + $0x10] sm:$0xff] %v1260_v23 }
 0x13e   : > { %1293 = vst [vmem:[#allocation3 + $0x18] sm:$0xff] %v1261_v29  ;;  %v949_v52 = vadd.f32 %v948_v15, %v802_v12  ;;  %v998_v54 = vadd.f32 %v997_v24, %v851_v38 }
 0x140   : > { %v1046_v60 = vpop.f32.mrf.mxu2  ;;  %v1095_v48 = vpop.f32.mrf.mxu3 }
 0x141   : > { %v1134_v5 = vadd.f32 %v1046_v60, %v949_v52  ;;  %v1135_v30 = vadd.f32 %v1095_v48, %v998_v54  ;;  %v1211_v48 = vpop.permute.xlu0 %1210 }
 0x143   : > { %v1262_v33 = vadd.f32 %v1191_v25, %v1134_v5  ;;  %v1263_v3 = vadd.f32 %v1191_v25, %v1135_v30 }
 0x145   : > { %v950_v31 = vpop.f32.mrf.mxu0  ;;  %v999_v56 = vpop.f32.mrf.mxu1  ;;  %1294 = vst [vmem:[#allocation3 + $0x20] sm:$0xff] %v1262_v33 }
 0x146   : > { %1295 = vst [vmem:[#allocation3 + $0x28] sm:$0xff] %v1263_v3  ;;  %v951_v57 = vadd.f32 %v950_v31, %v804_v6  ;;  %v1000_v9 = vadd.f32 %v999_v56, %v853_v49 }
 0x148   : > { %v1048_v53 = vpop.f32.mrf.mxu2  ;;  %v1097_v21 = vpop.f32.mrf.mxu3 }
 0x149   : > { %v1136_v16 = vadd.f32 %v1048_v53, %v951_v57  ;;  %v1137_v32 = vadd.f32 %v1097_v21, %v1000_v9 }
 0x14b   : > { %v1264_v38 = vadd.f32 %v1196_v55, %v1136_v16  ;;  %v1265_v36 = vadd.f32 %v1196_v55, %v1137_v32  ;;  %v1216_v55 = vpop.permute.xlu1 %1215 }
 0x14d   : > { %v953_v45 = vpop.f32.mrf.mxu0  ;;  %v1002_v12 = vpop.f32.mrf.mxu1  ;;  %1296 = vst [vmem:[#allocation3 + $0x30] sm:$0xff] %v1264_v38 }
 0x14e   : > { %1297 = vst [vmem:[#allocation3 + $0x38] sm:$0xff] %v1265_v36  ;;  %v954_v44 = vadd.f32 %v953_v45, %v5454_v1  ;;  %v1003_v13 = vadd.f32 %v1002_v12, %v5456_v8 }
 0x150   : > { %v1051_v62 = vpop.f32.mrf.mxu2  ;;  %v1100_v20 = vpop.f32.mrf.mxu3 }
 0x151   : > { %v1138_v6 = vadd.f32 %v1051_v62, %v954_v44  ;;  %v1139_v49 = vadd.f32 %v1100_v20, %v1003_v13 }
 0x153   : > { %v1266_v18 = vadd.f32 %v1201_v37, %v1138_v6  ;;  %v1267_v61 = vadd.f32 %v1201_v37, %v1139_v49  ;;  %v1221_v37 = vpop.permute.xlu2 %1220 }
 0x155   : > { %v955_v17 = vpop.f32.mrf.mxu0  ;;  %v1004_v0 = vpop.f32.mrf.mxu1  ;;  %1298 = vst [vmem:[#allocation3 + $0x40] sm:$0xff] %v1266_v18 }
 0x156   : > { %1299 = vst [vmem:[#allocation3 + $0x48] sm:$0xff] %v1267_v61  ;;  %v956_v59 = vadd.f32 %v955_v17, %v5462_v7  ;;  %v1005_v26 = vadd.f32 %v1004_v0, %v5464_v22 }
 0x158   : > { %v1053_v15 = vpop.f32.mrf.mxu2  ;;  %v1102_v24 = vpop.f32.mrf.mxu3 }
 0x159   : > { %v1140_v1 = vadd.f32 %v1053_v15, %v956_v59  ;;  %v1141_v23 = vadd.f32 %v1102_v24, %v1005_v26 }
 0x15b   : > { %v1268_v25 = vadd.f32 %v1206_v46, %v1140_v1  ;;  %v1269_v52 = vadd.f32 %v1206_v46, %v1141_v23  ;;  %v1226_v46 = vpop.permute.xlu0 %1225 }
 0x15d   : > { %v958_v8 = vpop.f32.mrf.mxu0  ;;  %v1007_v29 = vpop.f32.mrf.mxu1  ;;  %1300 = vst [vmem:[#allocation3 + $0x50] sm:$0xff] %v1268_v25 }
 0x15e   : > { %1301 = vst [vmem:[#allocation3 + $0x58] sm:$0xff] %v1269_v52  ;;  %v959_v54 = vadd.f32 %v958_v8, %v5387_v43  ;;  %v1008_v60 = vadd.f32 %v1007_v29, %v5389_v28  ;;  %v1231_v8 = vpop.permute.xlu1 %1230 }
 0x160   : > { %v1056_v5 = vpop.f32.mrf.mxu2  ;;  %v1105_v7 = vpop.f32.mrf.mxu3 }
 0x161   : > { %v1142_v30 = vadd.f32 %v1056_v5, %v959_v54  ;;  %v1143_v22 = vadd.f32 %v1105_v7, %v1008_v60 }
 0x163   : > { %v1270_v33 = vadd.f32 %v1211_v48, %v1142_v30  ;;  %v1271_v3 = vadd.f32 %v1211_v48, %v1143_v22 }
 0x165   : > { %v960_v31 = vpop.f32.mrf.mxu0  ;;  %v1009_v56 = vpop.f32.mrf.mxu1  ;;  %1302 = vst [vmem:[#allocation3 + $0x60] sm:$0xff] %v1270_v33 }
 0x166   : > { %1303 = vst [vmem:[#allocation3 + $0x68] sm:$0xff] %v1271_v3  ;;  %v961_v57 = vadd.f32 %v960_v31, %v5396_v63  ;;  %v1010_v9 = vadd.f32 %v1009_v56, %v5398_v4  ;;  %v1236_v33 = vpop.permute.xlu2 %1235 }
 0x168   : > { %v1058_v53 = vpop.f32.mrf.mxu2  ;;  %v1107_v43 = vpop.f32.mrf.mxu3 }
 0x169   : > { %v1144_v21 = vadd.f32 %v1058_v53, %v961_v57  ;;  %v1145_v28 = vadd.f32 %v1107_v43, %v1010_v9  ;;  %v4688_v53 = vmov 0.0  }
 0x16a   : > { %1322 = vst [vmem:[#allocation4 + $0xb0] sm:$0xff] %v4688_v53 }
 0x16b   : > { %v1272_v45 = vadd.f32 %v1216_v55, %v1144_v21  ;;  %v1273_v12 = vadd.f32 %v1216_v55, %v1145_v28  ;;  %1323 = vst [vmem:[#allocation4] sm:$0xff] %v4688_v53 }
 0x16c   : > { %1324 = vst [vmem:[#allocation4 + $0xd8] sm:$0xff] %v4688_v53 }
 0x16d   : > { %v963_v16 = vpop.f32.mrf.mxu0  ;;  %v1012_v32 = vpop.f32.mrf.mxu1  ;;  %1304 = vst [vmem:[#allocation3 + $0x70] sm:$0xff] %v1272_v45 }
 0x16e   : > { %1305 = vst [vmem:[#allocation3 + $0x78] sm:$0xff] %v1273_v12  ;;  %v964_v38 = vadd.f32 %v963_v16, %v5412_v40  ;;  %v1013_v36 = vadd.f32 %v1012_v32, %v5414_v35  ;;  %v1241_v32 = vpop.permute.xlu0 %1240 }
 0x16f   : > { %1325 = vst [vmem:[#allocation4 + $0x18] sm:$0xff] %v4688_v53 }
 0x170   : > { %v1061_v44 = vpop.f32.mrf.mxu2  ;;  %v1110_v63 = vpop.f32.mrf.mxu3  ;;  %1326 = vst [vmem:[#allocation4 + $0x50] sm:$0xff] %v4688_v53 }
 0x171   : > { %v1146_v13 = vadd.f32 %v1061_v44, %v964_v38  ;;  %v1147_v4 = vadd.f32 %v1110_v63, %v1013_v36  ;;  %1327 = vst [vmem:[#allocation4 + $0x68] sm:$0xff] %v4688_v53 }
 0x172   : > { %1328 = vst [vmem:[#allocation4 + $0x30] sm:$0xff] %v4688_v53 }
 0x173   : > { %v1274_v6 = vadd.f32 %v1221_v37, %v1146_v13  ;;  %v1275_v49 = vadd.f32 %v1221_v37, %v1147_v4  ;;  %1329 = vst [vmem:[#allocation4 + $0x48] sm:$0xff] %v4688_v53  ;;  %v1246_v37 = vpop.permute.xlu1 %1245 }
 0x174   : > { %1330 = vst [vmem:[#allocation4 + $0x80] sm:$0xff] %v4688_v53 }
 0x175   : > { %v965_v62 = vpop.f32.mrf.mxu0  ;;  %v1014_v20 = vpop.f32.mrf.mxu1  ;;  %1306 = vst [vmem:[#allocation3 + $0x80] sm:$0xff] %v1274_v6 }
 0x176   : > { %1307 = vst [vmem:[#allocation3 + $0x88] sm:$0xff] %v1275_v49  ;;  %v966_v17 = vadd.f32 %v965_v62, %v5424_v51  ;;  %v1015_v0 = vadd.f32 %v1014_v20, %v5426_v19 }
 0x177   : > { %1331 = vst [vmem:[#allocation4 + $0x88] sm:$0xff] %v4688_v53 }
 0x178   : > { %v1063_v18 = vpop.f32.mrf.mxu2  ;;  %v1112_v61 = vpop.f32.mrf.mxu3  ;;  %1332 = vst [vmem:[#allocation4 + $0xe8] sm:$0xff] %v4688_v53 }
 0x179   : > { %v1148_v40 = vadd.f32 %v1063_v18, %v966_v17  ;;  %v1149_v59 = vadd.f32 %v1112_v61, %v1015_v0  ;;  %1333 = vst [vmem:[#allocation4 + $0xb8] sm:$0xff] %v4688_v53  ;;  %v1251_v18 = vpop.permute.xlu2 %1250 }
 0x17a   : > { %1334 = vst [vmem:[#allocation4 + $0x60] sm:$0xff] %v4688_v53 }
 0x17b   : > { %v1276_v15 = vadd.f32 %v1226_v46, %v1148_v40  ;;  %v1277_v24 = vadd.f32 %v1226_v46, %v1149_v59  ;;  %1335 = vst [vmem:[#allocation4 + $0xf0] sm:$0xff] %v4688_v53 }
 0x17c   : > { %1336 = vst [vmem:[#allocation4 + $0x8] sm:$0xff] %v4688_v53 }
 0x17d   : > { %v968_v35 = vpop.f32.mrf.mxu0  ;;  %v1017_v26 = vpop.f32.mrf.mxu1  ;;  %1308 = vst [vmem:[#allocation3 + $0x90] sm:$0xff] %v1276_v15 }
 0x17e   : > { %1309 = vst [vmem:[#allocation3 + $0x98] sm:$0xff] %v1277_v24  ;;  %v969_v1 = vadd.f32 %v968_v35, %v5432_v41  ;;  %v1018_v23 = vadd.f32 %v1017_v26, %v5434_v27 }
 0x17f   : > { %1337 = vst [vmem:[#allocation4 + $0x78] sm:$0xff] %v4688_v53 }
 0x180   : > { %v1066_v29 = vpop.f32.mrf.mxu2  ;;  %v1115_v51 = vpop.f32.mrf.mxu3  ;;  %1338 = vst [vmem:[#allocation4 + $0x38] sm:$0xff] %v4688_v53 }
 0x181   : > { %v1150_v25 = vadd.f32 %v1066_v29, %v969_v1  ;;  %v1151_v19 = vadd.f32 %v1115_v51, %v1018_v23  ;;  %1339 = vst [vmem:[#allocation4 + $0x58] sm:$0xff] %v4688_v53  ;;  %v1256_v1 = vpop.permute.xlu0 %1255 }
 0x182   : > { %1340 = vst [vmem:[#allocation4 + $0x40] sm:$0xff] %v4688_v53 }
 0x183   : > { %v1278_v60 = vadd.f32 %v1231_v8, %v1150_v25  ;;  %v1279_v48 = vadd.f32 %v1231_v8, %v1151_v19  ;;  %1341 = vst [vmem:[#allocation4 + $0xc8] sm:$0xff] %v4688_v53 }
 0x184   : > { %1342 = vst [vmem:[#allocation4 + $0xe0] sm:$0xff] %v4688_v53 }
 0x185   : > { %v970_v52 = vpop.f32.mrf.mxu0  ;;  %v1019_v54 = vpop.f32.mrf.mxu1  ;;  %1310 = vst [vmem:[#allocation3 + $0xa0] sm:$0xff] %v1278_v60 }
 0x186   : > { %1311 = vst [vmem:[#allocation3 + $0xa8] sm:$0xff] %v1279_v48  ;;  %v971_v5 = vadd.f32 %v970_v52, %v5439_v34  ;;  %v1020_v7 = vadd.f32 %v1019_v54, %v5441_v10 }
 0x187   : > { %1343 = vst [vmem:[#allocation4 + $0x90] sm:$0xff] %v4688_v53 }
 0x188   : > { %v1068_v30 = vpop.f32.mrf.mxu2  ;;  %v1117_v22 = vpop.f32.mrf.mxu3  ;;  %1344 = vst [vmem:[#allocation4 + $0x70] sm:$0xff] %v4688_v53 }
 0x189   : > { %v1152_v41 = vadd.f32 %v1068_v30, %v971_v5  ;;  %v1153_v31 = vadd.f32 %v1117_v22, %v1020_v7  ;;  %1345 = vst [vmem:[#allocation4 + $0xc0] sm:$0xff] %v4688_v53 }
 0x18a   : > { %1346 = vst [vmem:[#allocation4 + $0xa8] sm:$0xff] %v4688_v53 }
 0x18b   : > { %v1280_v3 = vadd.f32 %v1236_v33, %v1152_v41  ;;  %v1281_v57 = vadd.f32 %v1236_v33, %v1153_v31  ;;  %1347 = vst [vmem:[#allocation4 + $0xd0] sm:$0xff] %v4688_v53 }
 0x18c   : > { %1348 = vst [vmem:[#allocation4 + $0x10] sm:$0xff] %v4688_v53 }
 0x18d   : > { %v973_v27 = vpop.f32.mrf.mxu0  ;;  %v1022_v56 = vpop.f32.mrf.mxu1  ;;  %1312 = vst [vmem:[#allocation3 + $0xb0] sm:$0xff] %v1280_v3 }
 0x18e   : > { %1313 = vst [vmem:[#allocation3 + $0xb8] sm:$0xff] %v1281_v57  ;;  %v974_v9 = vadd.f32 %v973_v27, %v5446_v39  ;;  %v1023_v55 = vadd.f32 %v1022_v56, %v5448_v58 }
 0x18f   : > { %1349 = vst [vmem:[#allocation4 + $0x28] sm:$0xff] %v4688_v53 }
 0x190   : > { %v1071_v34 = vpop.f32.mrf.mxu2  ;;  %v1120_v10 = vpop.f32.mrf.mxu3  ;;  %1350 = vst [vmem:[#allocation4 + $0xa0] sm:$0xff] %v4688_v53 }
 0x191   : > { %v1154_v43 = vadd.f32 %v1071_v34, %v974_v9  ;;  %v1155_v21 = vadd.f32 %v1120_v10, %v1023_v55  ;;  %1351 = vst [vmem:[#allocation4 + $0xf8] sm:$0xff] %v4688_v53 }
 0x192   : > { %1352 = vst [vmem:[#allocation4 + $0x20] sm:$0xff] %v4688_v53 }
 0x193   : > { %v1282_v45 = vadd.f32 %v1241_v32, %v1154_v43  ;;  %v1283_v39 = vadd.f32 %v1241_v32, %v1155_v21  ;;  %1353 = vst [vmem:[#allocation4 + $0x98] sm:$0xff] %v4688_v53 }
 0x195   : > { %v975_v28 = vpop.f32.mrf.mxu0  ;;  %v1024_v16 = vpop.f32.mrf.mxu1  ;;  %1314 = vst [vmem:[#allocation3 + $0xc0] sm:$0xff] %v1282_v45 }
 0x196   : > { %1315 = vst [vmem:[#allocation3 + $0xc8] sm:$0xff] %v1283_v39  ;;  %v976_v58 = vadd.f32 %v975_v28, %v5450_v50  ;;  %v1025_v12 = vadd.f32 %v1024_v16, %v5452_v42 }
 0x198   : > { %v1073_v38 = vpop.f32.mrf.mxu2  ;;  %v1122_v36 = vpop.f32.mrf.mxu3 }
 0x199   : > { %v1156_v44 = vadd.f32 %v1073_v38, %v976_v58  ;;  %v1157_v63 = vadd.f32 %v1122_v36, %v1025_v12 }
 0x19b   : > { %v1284_v62 = vadd.f32 %v1246_v37, %v1156_v44  ;;  %v1285_v20 = vadd.f32 %v1246_v37, %v1157_v63 }
 0x19d   : > { %v978_v13 = vpop.f32.mrf.mxu0  ;;  %v1027_v4 = vpop.f32.mrf.mxu1  ;;  %1316 = vst [vmem:[#allocation3 + $0xd0] sm:$0xff] %v1284_v62 }
 0x19e   : > { %1317 = vst [vmem:[#allocation3 + $0xd8] sm:$0xff] %v1285_v20  ;;  %v979_v50 = vadd.f32 %v978_v13, %v5458_v2  ;;  %v1028_v42 = vadd.f32 %v1027_v4, %v5460_v14 }
 0x1a0   : > { %v1076_v6 = vpop.f32.mrf.mxu2  ;;  %v1125_v49 = vpop.f32.mrf.mxu3 }
 0x1a1   : > { %v1158_v17 = vadd.f32 %v1076_v6, %v979_v50  ;;  %v1159_v0 = vadd.f32 %v1125_v49, %v1028_v42 }
 0x1a3   : > { %v1286_v61 = vadd.f32 %v1251_v18, %v1158_v17  ;;  %v1287_v40 = vadd.f32 %v1251_v18, %v1159_v0 }
 0x1a5   : > { %v980_v2 = vpop.f32.mrf.mxu0  ;;  %v1029_v59 = vpop.f32.mrf.mxu1  ;;  %1318 = vst [vmem:[#allocation3 + $0xe0] sm:$0xff] %v1286_v61 }
 0x1a6   : > { %1319 = vst [vmem:[#allocation3 + $0xe8] sm:$0xff] %v1287_v40  ;;  %v981_v14 = vadd.f32 %v980_v2, %v5466_v47  ;;  %v1030_v35 = vadd.f32 %v1029_v59, %v5468_v11  ;;  %v1354_v47 = vlaneseq }
 0x1a8   : > { %v1078_v26 = vpop.f32.mrf.mxu2  ;;  %v1127_v46 = vpop.f32.mrf.mxu3  ;;  %vm1356_vm0 = vcmp.lt.s32.totalorder %v1354_v47, 256 }
 0x1a9   : > { %v1160_v15 = vadd.f32 %v1078_v26, %v981_v14  ;;  %v1161_v24 = vadd.f32 %v1127_v46, %v1030_v35  ;;  %1358 = vst.msk [vmem:[#allocation5] sm:$0x3] %vm1356_vm0, %v4688_v53 }
 0x1ab   : > { %v1288_v23 = vadd.f32 %v1256_v1, %v1160_v15  ;;  %v1289_v8 = vadd.f32 %v1256_v1, %v1161_v24 }
 0x1ad   : > { %1320 = vst [vmem:[#allocation3 + $0xf0] sm:$0xff] %v1288_v23 }
 0x1ae   : > { %1321 = vst [vmem:[#allocation3 + $0xf8] sm:$0xff] %v1289_v8 }
 0x1af PF: > { %s4409_s26 = sshll.u32 %s4669_s27, 7  ;;  %v5533_v19 = vld [vmem:[#allocation2 + $0x20] sm:$0xff]  ;;  %v5535_v52 = vld [vmem:[#allocation2 + $0x28] sm:$0xff]  ;;  %v5537_v54 = vld [vmem:[#allocation2 + $0x30] sm:$0xff]  ;;  %vm1508_vm1 = vcmask 261120   ;;  %p4460_p7 = scmp.ne.s32.totalorder %s4669_s27, 1 }
 0x1b0   : > { %s5528_s28 = sshra.s32 %s4409_s26, 7  ;;  %v5539_v60 = vld [vmem:[#allocation2 + $0x38] sm:$0xff]  ;;  %v5543_v48 = vpack.c.bf16 %v5535_v52, %v5533_v19  ;;  %v5553_v31 = vld [vmem:[#allocation2] sm:$0xff]  ;;  %v5555_v27 = vld [vmem:[#allocation2 + $0x8] sm:$0xff] }
 0x1b1   : > { %s4410_s12 = sshll.u32 %s5528_s28, 3  ;;  %v5547_v5 = vpack.c.bf16 %v5539_v60, %v5537_v54  ;;  %v5557_v56 = vld [vmem:[#allocation2 + $0x10] sm:$0xff]  ;;  %v5559_v33 = vld [vmem:[#allocation2 + $0x18] sm:$0xff]  ;;  %v5563_v3 = vpack.c.bf16 %v5555_v27, %v5553_v31 }
 0x1b2   : > { %s1363_s13 = scalar_lea.vmem [#allocation2], %s4410_s12  ;;  %v1496_v7 = vunpack.c.l.b16 %v5543_v48  ;;  %v1497_v30 = vunpack.c.h.b16 %v5543_v48  ;;  %v5567_v55 = vpack.c.bf16 %v5559_v33, %v5557_v56  ;;  %s6517_s14 = scalar_lea.vmem [#allocation3], %s4410_s12 }
 0x1b3   : > { %v1364_v11 = vld [vmem:[%s1363_s13] sm:$0xff]  ;;  %v1365_v29 = vld [vmem:[%s1363_s13 + $0x10] sm:$0xff]  ;;  %v1498_v22 = vunpack.c.l.b16 %v5547_v5  ;;  %v1499_v41 = vunpack.c.h.b16 %v5547_v5  ;;  %v1492_v53 = vunpack.c.l.b16 %v5563_v3  ;;  %v1493_v34 = vunpack.c.h.b16 %v5563_v3 }
 0x1b4   : > { %1368 = vxpose.xlu0.b32.start [1/4] (short) %v1364_v11, 128  ;;  %v1366_v51 = vld [vmem:[%s1363_s13 + $0x20] sm:$0xff]  ;;  %v1367_v25 = vld [vmem:[%s1363_s13 + $0x30] sm:$0xff]  ;;  %v1494_v10 = vunpack.c.l.b16 %v5567_v55  ;;  %v1495_v43 = vunpack.c.h.b16 %v5567_v55 }
 0x1b5   : > { %v1502_v57 = vpack.c.b16 %v1498_v22, %v1496_v7  ;;  %v1503_v9 = vpack.c.b16 %v1499_v41, %v1497_v30 }
 0x1b6   : > { %v1500_v21 = vpack.c.b16 %v1494_v10, %v1492_v53  ;;  %v1501_v28 = vpack.c.b16 %v1495_v43, %v1493_v34 }
 0x1b7   : > { %1701 = vmatpush.bf16.msra.mxu2 %v1502_v57  ;;  %1750 = vmatpush.bf16.msra.mxu3 %v1503_v9 }
 0x1b8   : > { %1539 = vmatpush.bf16.msra.mxu0 %v1502_v57  ;;  %1588 = vmatpush.bf16.msra.mxu1 %v1503_v9 }
 0x1bb   : > { %1702 = vmatpush.bf16.msra.mxu2 %v1500_v21  ;;  %1751 = vmatpush.bf16.msra.mxu3 %v1501_v28 }
 0x1bc   : > { %1369 = vxpose.xlu0.b32.cont [2/4] (short) %v1365_v29, 128  ;;  %1540 = vmatpush.bf16.msra.mxu0 %v1500_v21 }
 0x1bd   : > { %1589 = vmatpush.bf16.msra.mxu1 %v1501_v28 }
 0x1c4   : > { %1370 = vxpose.xlu0.b32.cont [3/4] (short) %v1366_v51, 128 }
 0x1cc   : > { %1371 = vxpose.xlu0.b32.end [4/4] (short) %v1367_v25, 128 }
 0x258   : > { %v1384_v16 = vpop.trf.xlu0 }
 0x259   : > { %v1408_v32 = vpack.c.bf16 %v1384_v16, %v1384_v16 }
 0x25b   : > { %v1424_v39 = vunpack.c.l.bf16 %v1408_v32  ;;  %v1647_v12 = vunpack.c.l.b16 %v1408_v32 }
 0x25d   : > { %v1440_v37 = vsub.f32 %v1384_v16, %v1424_v39 }
 0x260   : > { %v1385_v45 = vpop.trf.xlu0 }
 0x261   : > { %v1409_v58 = vpack.c.bf16 %v1385_v45, %v1385_v45 }
 0x263   : > { %v1425_v38 = vunpack.c.l.bf16 %v1409_v58  ;;  %v1648_v36 = vunpack.c.l.b16 %v1409_v58 }
 0x265   : > { %v1441_v44 = vsub.f32 %v1385_v45, %v1425_v38  ;;  %v5573_v63 = vpack.c.b16 %v1648_v36, %v1647_v12 }
 0x267   : > { %v1456_v13 = vpack.c.bf16 %v1441_v44, %v1440_v37  ;;  %4427 = vmatmul.msk.bf16.vlgmr.msra.gmra.mxu2 %vm1508_vm1, %v5573_v63  ;;  %4435 = vmatmul.msk.bf16.vlgmr.msra.gmra.mxu3 %vm1508_vm1, %v5573_v63  ;;  %v1472_v37 = vunpack.c.l.bf16 %v5543_v48  ;;  %v1474_v44 = vunpack.c.l.bf16 %v5547_v5 }
 0x268   : > { %v1386_v4 = vpop.trf.xlu0 }
 0x269   : > { %4411 = vmatmul.msk.bf16.vlgmr.msra.gmra.mxu0 %vm1508_vm1, %v1456_v13  ;;  %4419 = vmatmul.msk.bf16.vlgmr.msra.gmra.mxu1 %vm1508_vm1, %v1456_v13  ;;  %v1410_v62 = vpack.c.bf16 %v1386_v4, %v1386_v4  ;;  %v1473_v13 = vunpack.c.h.bf16 %v5543_v48 }
 0x26b   : > { %v1426_v50 = vunpack.c.l.bf16 %v1410_v62  ;;  %v1649_v6 = vunpack.c.l.b16 %v1410_v62  ;;  %v1475_v62 = vunpack.c.h.bf16 %v5547_v5 }
 0x26d   : > { %v1442_v0 = vsub.f32 %v1386_v4, %v1426_v50  ;;  %v1482_v50 = vsub.f32 %v5537_v54, %v1474_v44 }
 0x270   : > { %v1387_v20 = vpop.trf.xlu0 }
 0x271   : > { %v1411_v42 = vpack.c.bf16 %v1387_v20, %v1387_v20 }
 0x273   : > { %v1427_v49 = vunpack.c.l.bf16 %v1411_v42  ;;  %v1650_v17 = vunpack.c.l.b16 %v1411_v42  ;;  %v1481_v42 = vsub.f32 %v5535_v52, %v1473_v13 }
 0x275   : > { %v1443_v18 = vsub.f32 %v1387_v20, %v1427_v49  ;;  %v5581_v61 = vpack.c.b16 %v1650_v17, %v1649_v6  ;;  %v1480_v20 = vsub.f32 %v5533_v19, %v1472_v37  ;;  %v1483_v6 = vsub.f32 %v5539_v60, %v1475_v62 }
 0x277   : > { %v1457_v40 = vpack.c.bf16 %v1443_v18, %v1442_v0  ;;  %4428 = vmatmul.msk.bf16.gmra.mxu2 %vm1508_vm1, %v5581_v61  ;;  %4436 = vmatmul.msk.bf16.gmra.mxu3 %vm1508_vm1, %v5581_v61  ;;  %v1486_v49 = vpack.c.bf16 %v1482_v50, %v1480_v20  ;;  %v1487_v17 = vpack.c.bf16 %v1483_v6, %v1481_v42 }
 0x278   : > { %v1388_v2 = vpop.trf.xlu0 }
 0x279   : > { %4412 = vmatmul.msk.bf16.gmra.mxu0 %vm1508_vm1, %v1457_v40  ;;  %4420 = vmatmul.msk.bf16.gmra.mxu1 %vm1508_vm1, %v1457_v40  ;;  %v1412_v59 = vpack.c.bf16 %v1388_v2, %v1388_v2 }
 0x27a   : > { %1799 = vmatpush.bf16.msrb.mxu0 %v1486_v49  ;;  %1848 = vmatpush.bf16.msrb.mxu1 %v1487_v17 }
 0x27b   : > { %v1428_v35 = vunpack.c.l.bf16 %v1412_v59  ;;  %v1651_v46 = vunpack.c.l.b16 %v1412_v59 }
 0x27d   : > { %v1444_v1 = vsub.f32 %v1388_v2, %v1428_v35 }
 0x280   : > { %v1389_v14 = vpop.trf.xlu0 }
 0x281   : > { %v1413_v26 = vpack.c.bf16 %v1389_v14, %v1389_v14 }
 0x283   : > { %v1429_v15 = vunpack.c.l.bf16 %v1413_v26  ;;  %v1652_v24 = vunpack.c.l.b16 %v1413_v26 }
 0x285   : > { %v1445_v23 = vsub.f32 %v1389_v14, %v1429_v15  ;;  %v5589_v8 = vpack.c.b16 %v1652_v24, %v1651_v46  ;;  %v1468_v46 = vunpack.c.l.bf16 %v5563_v3  ;;  %v1470_v15 = vunpack.c.l.bf16 %v5567_v55 }
 0x286   : > { %v1469_v24 = vunpack.c.h.bf16 %v5563_v3 }
 0x287   : > { %v1458_v47 = vpack.c.bf16 %v1445_v23, %v1444_v1  ;;  %4429 = vmatmul.msk.bf16.gmra.mxu2 %vm1508_vm1, %v5589_v8  ;;  %4437 = vmatmul.msk.bf16.gmra.mxu3 %vm1508_vm1, %v5589_v8  ;;  %v1471_v1 = vunpack.c.h.bf16 %v5567_v55 }
 0x288   : > { %v1390_v11 = vpop.trf.xlu0 }
 0x289   : > { %4413 = vmatmul.msk.bf16.gmra.mxu0 %vm1508_vm1, %v1458_v47  ;;  %4421 = vmatmul.msk.bf16.gmra.mxu1 %vm1508_vm1, %v1458_v47  ;;  %v1414_v29 = vpack.c.bf16 %v1390_v11, %v1390_v11 }
 0x28b   : > { %v1430_v25 = vunpack.c.l.bf16 %v1414_v29  ;;  %v1653_v30 = vunpack.c.l.b16 %v1414_v29  ;;  %v1478_v29 = vsub.f32 %v5557_v56, %v1470_v15 }
 0x28d   : > { %v1446_v57 = vsub.f32 %v1390_v11, %v1430_v25  ;;  %v1476_v11 = vsub.f32 %v5553_v31, %v1468_v46  ;;  %v1479_v25 = vsub.f32 %v5559_v33, %v1471_v1 }
 0x290   : > { %v1391_v51 = vpop.trf.xlu0 }
 0x291   : > { %v1415_v7 = vpack.c.bf16 %v1391_v51, %v1391_v51 }
 0x293   : > { %v1431_v22 = vunpack.c.l.bf16 %v1415_v7  ;;  %v1654_v41 = vunpack.c.l.b16 %v1415_v7 }
 0x295   : > { %v1447_v9 = vsub.f32 %v1391_v51, %v1431_v22  ;;  %v5597_v53 = vpack.c.b16 %v1654_v41, %v1653_v30  ;;  %v1477_v51 = vsub.f32 %v5555_v27, %v1469_v24  ;;  %v1484_v41 = vpack.c.bf16 %v1478_v29, %v1476_v11 }
 0x297   : > { %v1459_v34 = vpack.c.bf16 %v1447_v9, %v1446_v57  ;;  %4430 = vmatmul.msk.bf16.gmra.mxu2 %vm1508_vm1, %v5597_v53  ;;  %4438 = vmatmul.msk.bf16.gmra.mxu3 %vm1508_vm1, %v5597_v53  ;;  %v1485_v57 = vpack.c.bf16 %v1479_v25, %v1477_v51 }
 0x298   : > { %v1392_v10 = vpop.trf.xlu0  ;;  %1800 = vmatpush.bf16.msrb.mxu0 %v1484_v41 }
 0x299   : > { %4414 = vmatmul.msk.bf16.gmra.mxu0 %vm1508_vm1, %v1459_v34  ;;  %4422 = vmatmul.msk.bf16.gmra.mxu1 %vm1508_vm1, %v1459_v34  ;;  %v1416_v43 = vpack.c.bf16 %v1392_v10, %v1392_v10 }
 0x29a   : > { %1849 = vmatpush.bf16.msrb.mxu1 %v1485_v57 }
 0x29b   : > { %v1432_v28 = vunpack.c.l.bf16 %v1416_v43  ;;  %v1655_v32 = vunpack.c.l.b16 %v1416_v43 }
 0x29d   : > { %v1448_v58 = vsub.f32 %v1392_v10, %v1432_v28 }
 0x2a0   : > { %v1393_v21 = vpop.trf.xlu0 }
 0x2a1   : > { %v1417_v16 = vpack.c.bf16 %v1393_v21, %v1393_v21 }
 0x2a3   : > { %v1433_v45 = vunpack.c.l.bf16 %v1417_v16  ;;  %v1656_v39 = vunpack.c.l.b16 %v1417_v16 }
 0x2a5   : > { %v1449_v12 = vsub.f32 %v1393_v21, %v1433_v45  ;;  %v5605_v38 = vpack.c.b16 %v1656_v39, %v1655_v32 }
 0x2a7   : > { %v1460_v36 = vpack.c.bf16 %v1449_v12, %v1448_v58  ;;  %4431 = vmatmul.msk.bf16.gmra.mxu2 %vm1508_vm1, %v5605_v38  ;;  %4439 = vmatmul.msk.bf16.gmra.mxu3 %vm1508_vm1, %v5605_v38 }
 0x2a8   : > { %v1394_v4 = vpop.trf.xlu0 }
 0x2a9   : > { %4415 = vmatmul.msk.bf16.gmra.mxu0 %vm1508_vm1, %v1460_v36  ;;  %4423 = vmatmul.msk.bf16.gmra.mxu1 %vm1508_vm1, %v1460_v36  ;;  %v1418_v0 = vpack.c.bf16 %v1394_v4, %v1394_v4 }
 0x2ab   : > { %v1434_v18 = vunpack.c.l.bf16 %v1418_v0  ;;  %v1657_v40 = vunpack.c.l.b16 %v1418_v0 }
 0x2ad   : > { %v1450_v14 = vsub.f32 %v1394_v4, %v1434_v18 }
 0x2b0   : > { %v1395_v48 = vpop.trf.xlu0 }
 0x2b1   : > { %v1419_v5 = vpack.c.bf16 %v1395_v48, %v1395_v48 }
 0x2b3   : > { %v1435_v2 = vunpack.c.l.bf16 %v1419_v5  ;;  %v1658_v59 = vunpack.c.l.b16 %v1419_v5 }
 0x2b5   : > { %v1451_v35 = vsub.f32 %v1395_v48, %v1435_v2  ;;  %v5621_v19 = vpack.c.b16 %v1658_v59, %v1657_v40 }
 0x2b7   : > { %v1461_v54 = vpack.c.bf16 %v1451_v35, %v1450_v14  ;;  %4432 = vmatmul.msk.bf16.gmra.mxu2 %vm1508_vm1, %v5621_v19  ;;  %4440 = vmatmul.msk.bf16.gmra.mxu3 %vm1508_vm1, %v5621_v19 }
 0x2b8   : > { %v1396_v52 = vpop.trf.xlu0 }
 0x2b9   : > { %4416 = vmatmul.msk.bf16.gmra.mxu0 %vm1508_vm1, %v1461_v54  ;;  %4424 = vmatmul.msk.bf16.gmra.mxu1 %vm1508_vm1, %v1461_v54  ;;  %v1420_v60 = vpack.c.bf16 %v1396_v52, %v1396_v52 }
 0x2bb   : > { %v1436_v23 = vunpack.c.l.bf16 %v1420_v60  ;;  %v1659_v7 = vunpack.c.l.b16 %v1420_v60 }
 0x2bd   : > { %v1452_v9 = vsub.f32 %v1396_v52, %v1436_v23 }
 0x2c0   : > { %v1397_v26 = vpop.trf.xlu0 }
 0x2c1   : > { %v1421_v47 = vpack.c.bf16 %v1397_v26, %v1397_v26 }
 0x2c3   : > { %v1437_v30 = vunpack.c.l.bf16 %v1421_v47  ;;  %v1660_v22 = vunpack.c.l.b16 %v1421_v47 }
 0x2c5   : > { %v1453_v34 = vsub.f32 %v1397_v26, %v1437_v30  ;;  %v5637_v3 = vpack.c.b16 %v1660_v22, %v1659_v7 }
 0x2c7   : > { %v1462_v55 = vpack.c.bf16 %v1453_v34, %v1452_v9  ;;  %4433 = vmatmul.msk.bf16.gmra.mxu2 %vm1508_vm1, %v5637_v3  ;;  %4441 = vmatmul.msk.bf16.gmra.mxu3 %vm1508_vm1, %v5637_v3 }
 0x2c8   : > { %v1398_v31 = vpop.trf.xlu0 }
 0x2c9   : > { %4417 = vmatmul.msk.bf16.gmra.mxu0 %vm1508_vm1, %v1462_v55  ;;  %4425 = vmatmul.msk.bf16.gmra.mxu1 %vm1508_vm1, %v1462_v55  ;;  %v1422_v27 = vpack.c.bf16 %v1398_v31, %v1398_v31 }
 0x2cb   : > { %v1438_v33 = vunpack.c.l.bf16 %v1422_v27  ;;  %v1661_v43 = vunpack.c.l.b16 %v1422_v27 }
 0x2cd   : > { %v1454_v16 = vsub.f32 %v1398_v31, %v1438_v33 }
 0x2d0   : > { %v1399_v56 = vpop.trf.xlu0 }
 0x2d1   : > { %v1423_v10 = vpack.c.bf16 %v1399_v56, %v1399_v56 }
 0x2d3   : > { %v1439_v21 = vunpack.c.l.bf16 %v1423_v10  ;;  %v1662_v28 = vunpack.c.l.b16 %v1423_v10 }
 0x2d5   : > { %v1455_v32 = vsub.f32 %v1399_v56, %v1439_v21  ;;  %v1670_v45 = vpack.c.b16 %v1662_v28, %v1661_v43 }
 0x2d7   : > { %v1463_v39 = vpack.c.bf16 %v1455_v32, %v1454_v16  ;;  %4434 = vmatmul.msk.bf16.gmra.mxu2 %vm1508_vm1, %v1670_v45  ;;  %4442 = vmatmul.msk.bf16.gmra.mxu3 %vm1508_vm1, %v1670_v45 }
 0x2d9   : > { %4418 = vmatmul.msk.bf16.gmra.mxu0 %vm1508_vm1, %v1463_v39  ;;  %4426 = vmatmul.msk.bf16.gmra.mxu1 %vm1508_vm1, %v1463_v39 }
 0x2e6   : > { %v1542_v58 = vpop.f32.mrf.mxu0  ;;  %v1591_v12 = vpop.f32.mrf.mxu1 }
 0x2e9   : > { %4443 = vmatmul.msk.bf16.vlgmr.msrb.gmra.mxu0 %vm1508_vm1, %v5573_v63  ;;  %4451 = vmatmul.msk.bf16.vlgmr.msrb.gmra.mxu1 %vm1508_vm1, %v5573_v63 }
 0x2ea   : > { %v1704_v36 = vpop.f32.mrf.mxu2  ;;  %v1753_v37 = vpop.f32.mrf.mxu3 }
 0x2eb   : > { %v1705_v44 = vadd.f32 %v1704_v36, %v1542_v58  ;;  %v1754_v13 = vadd.f32 %v1753_v37, %v1591_v12 }
 0x2ee   : > { %v5653_v4 = vpop.f32.mrf.mxu0  ;;  %v5655_v62 = vpop.f32.mrf.mxu1 }
 0x2f2   : > { %v5657_v20 = vpop.f32.mrf.mxu2  ;;  %v5659_v50 = vpop.f32.mrf.mxu3 }
 0x2f6   : > { %v1547_v42 = vpop.f32.mrf.mxu0  ;;  %v1596_v6 = vpop.f32.mrf.mxu1 }
 0x2f9   : > { %4444 = vmatmul.msk.bf16.gmra.mxu0 %vm1508_vm1, %v5581_v61  ;;  %4452 = vmatmul.msk.bf16.gmra.mxu1 %vm1508_vm1, %v5581_v61 }
 0x2fa   : > { %v1709_v63 = vpop.f32.mrf.mxu2  ;;  %v1758_v49 = vpop.f32.mrf.mxu3 }
 0x2fb   : > { %v1710_v17 = vadd.f32 %v1709_v63, %v1547_v42  ;;  %v1759_v0 = vadd.f32 %v1758_v49, %v1596_v6 }
 0x2fe   : > { %v5665_v48 = vpop.f32.mrf.mxu0  ;;  %v5667_v18 = vpop.f32.mrf.mxu1 }
 0x302   : > { %v5735_v25 = vpop.f32.mrf.mxu2  ;;  %v5737_v7 = vpop.f32.mrf.mxu3 }
 0x306   : > { %v1552_v5 = vpop.f32.mrf.mxu0  ;;  %v1601_v40 = vpop.f32.mrf.mxu1 }
 0x309   : > { %4445 = vmatmul.msk.bf16.gmra.mxu0 %vm1508_vm1, %v5589_v8  ;;  %4453 = vmatmul.msk.bf16.gmra.mxu1 %vm1508_vm1, %v5589_v8 }
 0x30a   : > { %v1714_v9 = vpop.f32.mrf.mxu2  ;;  %v1763_v34 = vpop.f32.mrf.mxu3 }
 0x30b   : > { %v1764_v39 = vadd.f32 %v1763_v34, %v1601_v40 }
 0x30e   : > { %v5673_v2 = vpop.f32.mrf.mxu0  ;;  %v5675_v59 = vpop.f32.mrf.mxu1 }
 0x312   : > { %v5747_v31 = vpop.f32.mrf.mxu2  ;;  %v5749_v27 = vpop.f32.mrf.mxu3 }
 0x316   : > { %v5677_v61 = vpop.f32.mrf.mxu0  ;;  %v5679_v14 = vpop.f32.mrf.mxu1 }
 0x319   : > { %4446 = vmatmul.msk.bf16.gmra.mxu0 %vm1508_vm1, %v5597_v53  ;;  %4454 = vmatmul.msk.bf16.gmra.mxu1 %vm1508_vm1, %v5597_v53 }
 0x31a   : > { %v1719_v16 = vpop.f32.mrf.mxu2  ;;  %v1768_v32 = vpop.f32.mrf.mxu3 }
 0x31e   : > { %v5685_v35 = vpop.f32.mrf.mxu0  ;;  %v5687_v54 = vpop.f32.mrf.mxu1 }
 0x326   : > { %v5689_v52 = vpop.f32.mrf.mxu0  ;;  %v5691_v8 = vpop.f32.mrf.mxu1 }
 0x329   : > { %4447 = vmatmul.msk.bf16.gmra.mxu0 %vm1508_vm1, %v5605_v38  ;;  %4455 = vmatmul.msk.bf16.gmra.mxu1 %vm1508_vm1, %v5605_v38 }
 0x32e   : > { %v5697_v60 = vpop.f32.mrf.mxu0  ;;  %v5699_v26 = vpop.f32.mrf.mxu1 }
 0x336   : > { %v5701_v46 = vpop.f32.mrf.mxu0  ;;  %v5703_v53 = vpop.f32.mrf.mxu1 }
 0x339   : > { %4448 = vmatmul.msk.bf16.gmra.mxu0 %vm1508_vm1, %v5621_v19  ;;  %4456 = vmatmul.msk.bf16.gmra.mxu1 %vm1508_vm1, %v5621_v19 }
 0x33e   : > { %v5709_v15 = vpop.f32.mrf.mxu0  ;;  %v5711_v24 = vpop.f32.mrf.mxu1 }
 0x346   : > { %v5713_v1 = vpop.f32.mrf.mxu0  ;;  %v5715_v38 = vpop.f32.mrf.mxu1 }
 0x349   : > { %4449 = vmatmul.msk.bf16.gmra.mxu0 %vm1508_vm1, %v5637_v3  ;;  %4457 = vmatmul.msk.bf16.gmra.mxu1 %vm1508_vm1, %v5637_v3 }
 0x34e   : > { %v5721_v23 = vpop.f32.mrf.mxu0  ;;  %v5723_v47 = vpop.f32.mrf.mxu1 }
 0x356   : > { %v5725_v11 = vpop.f32.mrf.mxu0  ;;  %v5727_v19 = vpop.f32.mrf.mxu1 }
 0x359   : > { %4450 = vmatmul.msk.bf16.gmra.mxu0 %vm1508_vm1, %v1670_v45  ;;  %4458 = vmatmul.msk.bf16.gmra.mxu1 %vm1508_vm1, %v1670_v45  ;;  %v1715_v45 = vadd.f32 %v1714_v9, %v1552_v5  ;;  %v1769_v5 = vadd.f32 %v1768_v32, %v5679_v14 }
 0x35e   : > { %v5731_v29 = vpop.f32.mrf.mxu0  ;;  %v5733_v51 = vpop.f32.mrf.mxu1 }
 0x366   : > { %v1802_v30 = vpop.f32.mrf.mxu0  ;;  %v1851_v22 = vpop.f32.mrf.mxu1 }
 0x367   : > { %v5739_v41 = vadd.f32 %v1802_v30, %v1705_v44  ;;  %v5741_v57 = vadd.f32 %v1851_v22, %v1754_v13  ;;  %v1721_v44 = vpop.f32.mrf.mxu2  ;;  %v1770_v13 = vpop.f32.mrf.mxu3 }
 0x36e   : > { %v5743_v3 = vpop.f32.mrf.mxu0  ;;  %v5745_v55 = vpop.f32.mrf.mxu1 }
 0x36f   : > { %v1724_v49 = vpop.f32.mrf.mxu2 }
 0x376   : > { %v1807_v56 = vpop.f32.mrf.mxu0  ;;  %v1856_v33 = vpop.f32.mrf.mxu1 }
 0x377   : > { %v5751_v10 = vadd.f32 %v1807_v56, %v1710_v17  ;;  %v5753_v43 = vadd.f32 %v1856_v33, %v1759_v0  ;;  %v1773_v17 = vpop.f32.mrf.mxu3  ;;  %v1720_v0 = vadd.f32 %v1719_v16, %v5677_v61  ;;  %v1722_v56 = vadd.f32 %v1721_v44, %v5685_v35 }
 0x378   : > { %v1771_v33 = vadd.f32 %v1770_v13, %v5687_v54 }
 0x37e   : > { %v5755_v21 = vpop.f32.mrf.mxu0  ;;  %v5757_v28 = vpop.f32.mrf.mxu1 }
 0x386   : > { %v1812_v58 = vpop.f32.mrf.mxu0  ;;  %v1861_v12 = vpop.f32.mrf.mxu1 }
 0x387   : > { %v5759_v36 = vadd.f32 %v1812_v58, %v1715_v45  ;;  %v5761_v37 = vadd.f32 %v1861_v12, %v1764_v39  ;;  %v1726_v45 = vpop.f32.mrf.mxu2  ;;  %v1775_v39 = vpop.f32.mrf.mxu3  ;;  %v1725_v12 = vadd.f32 %v1724_v49, %v5689_v52 }
 0x389   : > { %v1935_v42 = vmax.f32 %v5759_v36, %v5761_v37 }
 0x38b   : > { %1936 = vmax.xlane.f32.xlu2 %v1935_v42  ;;  %v1774_v42 = vadd.f32 %v1773_v17, %v5691_v8 }
 0x38e   : > { %v5765_v6 = vpop.f32.mrf.mxu0  ;;  %v5767_v63 = vpop.f32.mrf.mxu1 }
 0x38f   : > { %v1729_v44 = vpop.f32.mrf.mxu2  ;;  %v1778_v54 = vpop.f32.mrf.mxu3 }
 0x396   : > { %v1817_v40 = vpop.f32.mrf.mxu0  ;;  %v1866_v30 = vpop.f32.mrf.mxu1 }
 0x397   : > { %v5771_v22 = vadd.f32 %v1817_v40, %v1720_v0  ;;  %v5773_v9 = vadd.f32 %v1866_v30, %v1769_v5  ;;  %v1727_v30 = vadd.f32 %v1726_v45, %v5697_v60  ;;  %v1731_v17 = vpop.f32.mrf.mxu2 }
 0x399   : > { %v1941_v34 = vmax.f32 %v5771_v22, %v5773_v9 }
 0x39b   : > { %1942 = vmax.xlane.f32.xlu0 %v1941_v34  ;;  %v1776_v34 = vadd.f32 %v1775_v39, %v5699_v26 }
 0x39e   : > { %v1819_v58 = vpop.f32.mrf.mxu0  ;;  %v1868_v61 = vpop.f32.mrf.mxu1 }
 0x39f   : > { %v5779_v16 = vadd.f32 %v1819_v58, %v1722_v56  ;;  %v5781_v14 = vadd.f32 %v1868_v61, %v1771_v33  ;;  %v1780_v33 = vpop.f32.mrf.mxu3  ;;  %v1730_v61 = vadd.f32 %v1729_v44, %v5701_v46 }
 0x3a1   : > { %v1944_v32 = vmax.f32 %v5779_v16, %v5781_v14 }
 0x3a3   : > { %1945 = vmax.xlane.f32.xlu1 %v1944_v32  ;;  %v1779_v32 = vadd.f32 %v1778_v54, %v5703_v53 }
 0x3a6   : > { %v1822_v0 = vpop.f32.mrf.mxu0  ;;  %v1871_v35 = vpop.f32.mrf.mxu1 }
 0x3a7   : > { %v5787_v13 = vadd.f32 %v1822_v0, %v1725_v12  ;;  %v5789_v5 = vadd.f32 %v1871_v35, %v1774_v42  ;;  %v1734_v42 = vpop.f32.mrf.mxu2  ;;  %v1783_v0 = vpop.f32.mrf.mxu3  ;;  %v1732_v35 = vadd.f32 %v1731_v17, %v5709_v15 }
 0x3a9   : > { %v1947_v40 = vmax.f32 %v5787_v13, %v5789_v5 }
 0x3ab   : > { %1948 = vmax.xlane.f32.xlu1 %v1947_v40  ;;  %v1781_v40 = vadd.f32 %v1780_v33, %v5711_v24 }
 0x3ae   : > { %v1824_v56 = vpop.f32.mrf.mxu0  ;;  %v1873_v52 = vpop.f32.mrf.mxu1 }
 0x3af   : > { %v5795_v49 = vadd.f32 %v1824_v56, %v1727_v30  ;;  %v5797_v8 = vadd.f32 %v1873_v52, %v1776_v34  ;;  %v1735_v34 = vadd.f32 %v1734_v42, %v5713_v1  ;;  %v1784_v56 = vadd.f32 %v1783_v0, %v5715_v38  ;;  %v1736_v52 = vpop.f32.mrf.mxu2 }
 0x3b1   : > { %v1950_v58 = vmax.f32 %v5795_v49, %v5797_v8 }
 0x3b3   : > { %1951 = vmax.xlane.f32.xlu2 %v1950_v58  ;;  %v1785_v58 = vpop.f32.mrf.mxu3 }
 0x3b6   : > { %v1827_v12 = vpop.f32.mrf.mxu0  ;;  %v1876_v60 = vpop.f32.mrf.mxu1 }
 0x3b7   : > { %v5803_v45 = vadd.f32 %v1827_v12, %v1730_v61  ;;  %v5805_v26 = vadd.f32 %v1876_v60, %v1779_v32  ;;  %v1737_v32 = vadd.f32 %v1736_v52, %v5721_v23  ;;  %v1786_v12 = vadd.f32 %v1785_v58, %v5723_v47  ;;  %v1739_v42 = vpop.f32.mrf.mxu2 }
 0x3b9   : > { %v1953_v39 = vmax.f32 %v5803_v45, %v5805_v26 }
 0x3bb   : > { %1954 = vmax.xlane.f32.xlu1 %v1953_v39  ;;  %v1788_v0 = vpop.f32.mrf.mxu3 }
 0x3be   : > { %v1829_v30 = vpop.f32.mrf.mxu0  ;;  %v1878_v46 = vpop.f32.mrf.mxu1 }
 0x3bf   : > { %v5811_v44 = vadd.f32 %v1829_v30, %v1732_v35  ;;  %v5813_v53 = vadd.f32 %v1878_v46, %v1781_v40  ;;  %v1740_v40 = vadd.f32 %v1739_v42, %v5725_v11  ;;  %v1789_v30 = vadd.f32 %v1788_v0, %v5727_v19  ;;  %v1741_v52 = vpop.f32.mrf.mxu2 }
 0x3c0   : > { %v1742_v11 = vadd.f32 %v1741_v52, %v5731_v29  ;;  %v1766_v29 = vadd.f32 %v5749_v27, %v5675_v59 }
 0x3c1   : > { %v1956_v54 = vmax.f32 %v5811_v44, %v5813_v53 }
 0x3c2   : > { %v5861_v42 = vadd.f32 %v5767_v63, %v1766_v29  ;;  %v1756_v63 = vadd.f32 %v5659_v50, %v5655_v62 }
 0x3c3   : > { %1957 = vmax.xlane.f32.xlu2 %v1956_v54  ;;  %v1790_v58 = vpop.f32.mrf.mxu3 }
 0x3c4   : > { %v1791_v19 = vadd.f32 %v1790_v58, %v5733_v51 }
 0x3c6   : > { %v1832_v61 = vpop.f32.mrf.mxu0  ;;  %v1881_v15 = vpop.f32.mrf.mxu1 }
 0x3c7   : > { %v5819_v17 = vadd.f32 %v1832_v61, %v1735_v34  ;;  %v5821_v24 = vadd.f32 %v1881_v15, %v1784_v56  ;;  %v1929_v34 = vmax.f32 %v5751_v10, %v5753_v43 }
 0x3c9   : > { %v1959_v33 = vmax.f32 %v5819_v17, %v5821_v24 }
 0x3cb   : > { %1960 = vmax.xlane.f32.xlu2 %v1959_v33 }
 0x3ce   : > { %v1834_v60 = vpop.f32.mrf.mxu0  ;;  %v1883_v1 = vpop.f32.mrf.mxu1 }
 0x3cf   : > { %v5827_v39 = vadd.f32 %v1834_v60, %v1737_v32  ;;  %v5829_v38 = vadd.f32 %v1883_v1, %v1786_v12  ;;  %v1923_v12 = vmax.f32 %v5739_v41, %v5741_v57  ;;  %v1717_v1 = vadd.f32 %v5747_v31, %v5673_v2 }
 0x3d0   : > { %v1761_v2 = vadd.f32 %v5737_v7, %v5667_v18  ;;  %v5885_v18 = vadd.f32 %v5745_v55, %v1756_v63 }
 0x3d1   : > { %v1962_v35 = vmax.f32 %v5827_v39, %v5829_v38  ;;  %v5858_v51 = vadd.f32 %v5765_v6, %v1717_v1  ;;  %v1707_v6 = vadd.f32 %v5657_v20, %v5653_v4 }
 0x3d2   : > { %v5873_v31 = vadd.f32 %v5757_v28, %v1761_v2 }
 0x3d3   : > { %1963 = vmax.xlane.f32.xlu2 %v1962_v35  ;;  %v1938_v0 = vmax.f32 %v5858_v51, %v5861_v42  ;;  %v1712_v35 = vadd.f32 %v5735_v25, %v5665_v48  ;;  %v5882_v48 = vadd.f32 %v5743_v3, %v1707_v6 }
 0x3d5   : > { %v5870_v59 = vadd.f32 %v5755_v21, %v1712_v35  ;;  %v1926_v25 = vmax.f32 %v5882_v48, %v5885_v18 }
 0x3d6   : > { %v1837_v46 = vpop.f32.mrf.mxu0  ;;  %v1886_v23 = vpop.f32.mrf.mxu1 }
 0x3d7   : > { %v5835_v54 = vadd.f32 %v1837_v46, %v1740_v40  ;;  %v5837_v47 = vadd.f32 %v1886_v23, %v1789_v30  ;;  %v1932_v27 = vmax.f32 %v5870_v59, %v5873_v31 }
 0x3d9   : > { %v1965_v56 = vmax.f32 %v5835_v54, %v5837_v47 }
 0x3db   : > { %1930 = vmax.xlane.f32.xlu2 %v1929_v34  ;;  %1966 = vmax.xlane.f32.xlu1 %v1965_v56 }
 0x3de   : > { %v1839_v61 = vpop.f32.mrf.mxu0  ;;  %v1888_v15 = vpop.f32.mrf.mxu1 }
 0x3df   : > { %v5845_v33 = vadd.f32 %v1839_v61, %v1742_v11  ;;  %v5847_v32 = vadd.f32 %v1888_v15, %v1791_v19 }
 0x3e1   : > { %v1968_v60 = vmax.f32 %v5845_v33, %v5847_v32 }
 0x3e3   : > { %1924 = vmax.xlane.f32.xlu2 %v1923_v12  ;;  %1969 = vmax.xlane.f32.xlu1 %v1968_v60 }
 0x3eb   : > { %1939 = vmax.xlane.f32.xlu1 %v1938_v0 }
 0x3f3   : > { %1933 = vmax.xlane.f32.xlu1 %v1932_v27 }
 0x3fb   : > { %1927 = vmax.xlane.f32.xlu1 %v1926_v25 }
 0x3fe   : > { %v5891_v21 = vpop.xlane.xlu2 %1936 }
 0x416   : > { %v5889_v7 = vpop.xlane.xlu1 %1945 }
 0x41e   : > { %v1949_v28 = vpop.xlane.xlu1 %1948 }
 0x41f   : > { %v1987_v4 = vsub.f32 %v5787_v13, %v1949_v28  ;;  %v1988_v62 = vsub.f32 %v5789_v5, %v1949_v28 }
 0x421   : > { %v2035_v20 = vmul.f32 1.442695, %v1987_v4  ;;  %v2037_v50 = vmul.f32 1.442695, %v1988_v62 }
 0x423   : > { %4546 = vpow2.f32 %v2035_v20 }
 0x424   : > { %4548 = vpow2.f32 %v2037_v50 }
 0x426   : > { %v1952_v3 = vpop.xlane.xlu2 %1951 }
 0x427   : > { %v1989_v55 = vsub.f32 %v5795_v49, %v1952_v3  ;;  %v1990_v40 = vsub.f32 %v5797_v8, %v1952_v3 }
 0x429   : > { %v5897_v30 = vpop.eup %4546  ;;  %v2039_v46 = vmul.f32 1.442695, %v1989_v55  ;;  %v2041_v23 = vmul.f32 1.442695, %v1990_v40 }
 0x42a   : > { %v5899_v34 = vpop.eup %4548 }
 0x42b   : > { %4550 = vpow2.f32 %v2039_v46  ;;  %v2091_v13 = vadd.f32 %v5899_v34, %v5897_v30 }
 0x42c   : > { %4552 = vpow2.f32 %v2041_v23 }
 0x42d   : > { %2092 = vadd.xlane.f32.xlu2 %v2091_v13 }
 0x42e   : > { %v1955_v5 = vpop.xlane.xlu1 %1954 }
 0x42f   : > { %v1991_v56 = vsub.f32 %v5803_v45, %v1955_v5  ;;  %v1992_v52 = vsub.f32 %v5805_v26, %v1955_v5 }
 0x431   : > { %v5905_v49 = vpop.eup %4550  ;;  %v2043_v8 = vmul.f32 1.442695, %v1991_v56  ;;  %v2045_v58 = vmul.f32 1.442695, %v1992_v52 }
 0x432   : > { %v5907_v11 = vpop.eup %4552 }
 0x433   : > { %4554 = vpow2.f32 %v2043_v8  ;;  %v2094_v19 = vadd.f32 %v5907_v11, %v5905_v49 }
 0x434   : > { %4556 = vpow2.f32 %v2045_v58 }
 0x435   : > { %2095 = vadd.xlane.f32.xlu1 %v2094_v19 }
 0x436   : > { %v1958_v61 = vpop.xlane.xlu2 %1957 }
 0x437   : > { %v1993_v15 = vsub.f32 %v5811_v44, %v1958_v61  ;;  %v1994_v12 = vsub.f32 %v5813_v53, %v1958_v61  ;;  %v1979_v61 = vsub.f32 %v5759_v36, %v5891_v21 }
 0x439   : > { %v5913_v45 = vpop.eup %4554  ;;  %v2047_v26 = vmul.f32 1.442695, %v1993_v15  ;;  %v2049_v60 = vmul.f32 1.442695, %v1994_v12 }
 0x43a   : > { %v5915_v1 = vpop.eup %4556 }
 0x43b   : > { %4558 = vpow2.f32 %v2047_v26  ;;  %v2097_v29 = vadd.f32 %v5915_v1, %v5913_v45 }
 0x43c   : > { %4560 = vpow2.f32 %v2049_v60 }
 0x43d   : > { %2098 = vadd.xlane.f32.xlu2 %v2097_v29  ;;  %v2019_v29 = vmul.f32 1.442695, %v1979_v61 }
 0x43e   : > { %v1961_v0 = vpop.xlane.xlu2 %1960 }
 0x43f   : > { %v1995_v35 = vsub.f32 %v5819_v17, %v1961_v0  ;;  %v1996_v2 = vsub.f32 %v5821_v24, %v1961_v0 }
 0x441   : > { %v5921_v44 = vpop.eup %4558  ;;  %v2051_v53 = vmul.f32 1.442695, %v1995_v35  ;;  %v2053_v27 = vmul.f32 1.442695, %v1996_v2 }
 0x442   : > { %v5923_v6 = vpop.eup %4560 }
 0x443   : > { %4562 = vpow2.f32 %v2051_v53  ;;  %v2100_v63 = vadd.f32 %v5923_v6, %v5921_v44 }
 0x444   : > { %4564 = vpow2.f32 %v2053_v27 }
 0x445   : > { %2101 = vadd.xlane.f32.xlu1 %v2100_v63 }
 0x446   : > { %v1964_v25 = vpop.xlane.xlu2 %1963 }
 0x447   : > { %v1997_v28 = vsub.f32 %v5827_v39, %v1964_v25  ;;  %v1998_v4 = vsub.f32 %v5829_v38, %v1964_v25  ;;  %v1943_v39 = vpop.xlane.xlu0 %1942 }
 0x448   : > { %v1983_v5 = vsub.f32 %v5771_v22, %v1943_v39  ;;  %v1984_v52 = vsub.f32 %v5773_v9, %v1943_v39  ;;  %v1980_v22 = vsub.f32 %v5761_v37, %v5891_v21  ;;  %v1985_v9 = vsub.f32 %v5779_v16, %v5889_v7 }
 0x449   : > { %v5929_v17 = vpop.eup %4562  ;;  %v2055_v24 = vmul.f32 1.442695, %v1997_v28  ;;  %v2057_v62 = vmul.f32 1.442695, %v1998_v4 }
 0x44a   : > { %v5931_v20 = vpop.eup %4564  ;;  %v2027_v8 = vmul.f32 1.442695, %v1983_v5  ;;  %v2029_v19 = vmul.f32 1.442695, %v1984_v52  ;;  %v2021_v37 = vmul.f32 1.442695, %v1980_v22 }
 0x44b   : > { %4566 = vpow2.f32 %v2055_v24  ;;  %v2103_v50 = vadd.f32 %v5931_v20, %v5929_v17  ;;  %v2031_v0 = vmul.f32 1.442695, %v1985_v9 }
 0x44c   : > { %4568 = vpow2.f32 %v2057_v62 }
 0x44d   : > { %2104 = vadd.xlane.f32.xlu2 %v2103_v50 }
 0x44e   : > { %v1967_v3 = vpop.xlane.xlu1 %1966 }
 0x44f   : > { %v1999_v55 = vsub.f32 %v5835_v54, %v1967_v3  ;;  %v2000_v40 = vsub.f32 %v5837_v47, %v1967_v3 }
 0x451   : > { %v5937_v46 = vpop.eup %4566  ;;  %v2059_v38 = vmul.f32 1.442695, %v1999_v55  ;;  %v2061_v13 = vmul.f32 1.442695, %v2000_v40 }
 0x452   : > { %v5939_v23 = vpop.eup %4568 }
 0x453   : > { %v2106_v56 = vadd.f32 %v5939_v23, %v5937_v46  ;;  %4570 = vpow2.f32 %v2059_v38 }
 0x454   : > { %4572 = vpow2.f32 %v2061_v13 }
 0x455   : > { %2107 = vadd.xlane.f32.xlu1 %v2106_v56  ;;  %4574 = vpow2.f32 %v2027_v8 }
 0x456   : > { %v1970_v54 = vpop.xlane.xlu1 %1969  ;;  %4576 = vpow2.f32 %v2029_v19 }
 0x457   : > { %v2001_v47 = vsub.f32 %v5845_v33, %v1970_v54  ;;  %v2002_v58 = vsub.f32 %v5847_v32, %v1970_v54  ;;  %v1986_v33 = vsub.f32 %v5781_v14, %v5889_v7  ;;  %v1931_v32 = vpop.xlane.xlu2 %1930 }
 0x458   : > { %v1975_v16 = vsub.f32 %v5751_v10, %v1931_v32  ;;  %v1976_v14 = vsub.f32 %v5753_v43, %v1931_v32 }
 0x459   : > { %v2063_v15 = vmul.f32 1.442695, %v2001_v47  ;;  %v2065_v12 = vmul.f32 1.442695, %v2002_v58  ;;  %v5951_v26 = vpop.eup %4570  ;;  %v2033_v35 = vmul.f32 1.442695, %v1986_v33 }
 0x45a   : > { %v5955_v60 = vpop.eup %4572  ;;  %v2011_v28 = vmul.f32 1.442695, %v1975_v16  ;;  %v2013_v24 = vmul.f32 1.442695, %v1976_v14 }
 0x45b   : > { %4578 = vpow2.f32 %v2063_v15  ;;  %v2109_v36 = vadd.f32 %v5955_v60, %v5951_v26  ;;  %v5961_v2 = vpop.eup %4574 }
 0x45c   : > { %4580 = vpow2.f32 %v2065_v12  ;;  %v5964_v53 = vpop.eup %4576 }
 0x45d   : > { %2110 = vadd.xlane.f32.xlu2 %v2109_v36  ;;  %4582 = vpow2.f32 %v2019_v29  ;;  %v2085_v4 = vadd.f32 %v5964_v53, %v5961_v2 }
 0x45e   : > { %v1940_v21 = vpop.xlane.xlu1 %1939  ;;  %4584 = vpow2.f32 %v2021_v37 }
 0x45f   : > { %4586 = vpow2.f32 %v2031_v0  ;;  %v1981_v27 = vsub.f32 %v5858_v51, %v1940_v21  ;;  %v1982_v25 = vsub.f32 %v5861_v42, %v1940_v21  ;;  %v1925_v62 = vpop.xlane.xlu2 %1924 }
 0x460   : > { %4588 = vpow2.f32 %v2033_v35  ;;  %v1971_v42 = vsub.f32 %v5739_v41, %v1925_v62  ;;  %v1972_v38 = vsub.f32 %v5741_v57, %v1925_v62 }
 0x461   : > { %v5967_v7 = vpop.eup %4578  ;;  %v2023_v3 = vmul.f32 1.442695, %v1981_v27  ;;  %v2025_v55 = vmul.f32 1.442695, %v1982_v25  ;;  %4590 = vpow2.f32 %v2011_v28 }
 0x462   : > { %v5970_v63 = vpop.eup %4580  ;;  %4592 = vpow2.f32 %v2013_v24  ;;  %v2003_v56 = vmul.f32 1.442695, %v1971_v42  ;;  %v2005_v8 = vmul.f32 1.442695, %v1972_v38 }
 0x463   : > { %v2112_v10 = vadd.f32 %v5970_v63, %v5967_v7  ;;  %v5977_v50 = vpop.eup %4582  ;;  %4594 = vpow2.f32 %v2023_v3 }
 0x464   : > { %v5979_v51 = vpop.eup %4584  ;;  %4596 = vpow2.f32 %v2025_v55 }
 0x465   : > { %2086 = vadd.xlane.f32.xlu2 %v2085_v4  ;;  %2113 = vadd.xlane.f32.xlu1 %v2112_v10  ;;  %v5981_v40 = vpop.eup %4586  ;;  %v2079_v52 = vadd.f32 %v5979_v51, %v5977_v50  ;;  %4598 = vpow2.f32 %v2003_v56 }
 0x466   : > { %v1934_v43 = vpop.xlane.xlu1 %1933  ;;  %v5984_v39 = vpop.eup %4588  ;;  %4600 = vpow2.f32 %v2005_v8 }
 0x467   : > { %v1977_v13 = vsub.f32 %v5870_v59, %v1934_v43  ;;  %v1978_v5 = vsub.f32 %v5873_v31, %v1934_v43  ;;  %v2088_v54 = vadd.f32 %v5984_v39, %v5981_v40  ;;  %v5993_v41 = vpop.eup %4590 }
 0x468   : > { %v5995_v57 = vpop.eup %4592 }
 0x469   : > { %v2015_v47 = vmul.f32 1.442695, %v1977_v13  ;;  %v2017_v58 = vmul.f32 1.442695, %v1978_v5  ;;  %v5997_v19 = vpop.eup %4594  ;;  %v2073_v22 = vadd.f32 %v5995_v57, %v5993_v41 }
 0x46a   : > { %v5999_v31 = vpop.eup %4596 }
 0x46b   : > { %4602 = vpow2.f32 %v2015_v47  ;;  %v2082_v12 = vadd.f32 %v5999_v31, %v5997_v19  ;;  %v6007_v9 = vpop.eup %4598 }
 0x46c   : > { %4604 = vpow2.f32 %v2017_v58  ;;  %v6009_v32 = vpop.eup %4600 }
 0x46d   : > { %2080 = vadd.xlane.f32.xlu2 %v2079_v52  ;;  %2089 = vadd.xlane.f32.xlu1 %v2088_v54 }
 0x46e   : > { %v1928_v59 = vpop.xlane.xlu1 %1927 }
 0x46f   : > { %v1973_v61 = vsub.f32 %v5882_v48, %v1928_v59  ;;  %v1974_v15 = vsub.f32 %v5885_v18, %v1928_v59  ;;  %v2067_v18 = vadd.f32 %v6009_v32, %v6007_v9 }
 0x471   : > { %v2007_v33 = vmul.f32 1.442695, %v1973_v61  ;;  %v2009_v29 = vmul.f32 1.442695, %v1974_v15  ;;  %v6011_v36 = vpop.eup %4602 }
 0x472   : > { %v6013_v48 = vpop.eup %4604 }
 0x473   : > { %4606 = vpow2.f32 %v2007_v33  ;;  %v2076_v37 = vadd.f32 %v6013_v48, %v6011_v36 }
 0x474   : > { %4608 = vpow2.f32 %v2009_v29 }
 0x475   : > { %2074 = vadd.xlane.f32.xlu2 %v2073_v22  ;;  %2083 = vadd.xlane.f32.xlu1 %v2082_v12 }
 0x479   : > { %v6019_v21 = vpop.eup %4606 }
 0x47a   : > { %v6021_v0 = vpop.eup %4608 }
 0x47b   : > { %v2070_v35 = vadd.f32 %v6021_v0, %v6019_v21 }
 0x47d   : > { %2068 = vadd.xlane.f32.xlu2 %v2067_v18  ;;  %2077 = vadd.xlane.f32.xlu1 %v2076_v37 }
 0x485   : > { %2071 = vadd.xlane.f32.xlu1 %v2070_v35 }
 0x4a0   : > { %v2093_v16 = vpop.xlane.xlu2 %2092 }
 0x4a1   : > { %4610 = vrcp.f32 %v2093_v16  ;;  %v2246_v8 = vand.u32 2147483648, %v2093_v16  ;;  %vm2240_vm3 = vweird.f32 %v2093_v16  ;;  %v2244_v58 = vand.u32 2147483647, %v2093_v16 }
 0x4a3   : > { %v2247_v33 = vor.u32 1.1754944e-38, %v2246_v8  ;;  %vm2245_vm6 = vcmp.eq.f32.partialorder %v2244_v58, 8.507059e+37 }
 0x4a7   : > { %v4611_v27 = vpop.eup %4610 }
 0x4a8   : > { %v2096_v14 = vpop.xlane.xlu1 %2095  ;;  %v2236_v28 = vmul.f32 %v4611_v27, %v2093_v16  ;;  %vm2241_vm2 = vweird.f32 %v4611_v27 }
 0x4a9   : > { %4612 = vrcp.f32 %v2096_v14  ;;  %vm6042_vm4 = vmor %vm2240_vm3, %vm2241_vm2  ;;  %v2261_v29 = vand.u32 2147483648, %v2096_v14  ;;  %vm2255_vm7 = vweird.f32 %v2096_v14  ;;  %v2259_v16 = vand.u32 2147483647, %v2096_v14 }
 0x4aa   : > { %v2237_v24 = vsub.f32 1.0, %v2236_v28 }
 0x4ab   : > { %vm2260_vm11 = vcmp.eq.f32.partialorder %v2259_v16, 8.507059e+37 }
 0x4ac   : > { %v2238_v55 = vmul.f32 %v4611_v27, %v2237_v24 }
 0x4ae   : > { %v2239_v56 = vadd.f32 %v4611_v27, %v2238_v55 }
 0x4af   : > { %v4613_v4 = vpop.eup %4612 }
 0x4b0   : > { %v6025_v25 = vpop.xlane.xlu2 %2098  ;;  %v2251_v62 = vmul.f32 %v4613_v4, %v2096_v14  ;;  %v2243_v15 = vsel %vm6042_vm4, %v4611_v27, %v2239_v56  ;;  %vm2256_vm5 = vweird.f32 %v4613_v4 }
 0x4b1   : > { %4614 = vrcp.f32 %v6025_v25  ;;  %v2248_v28 = vsel %vm2245_vm6, %v2247_v33, %v2243_v15  ;;  %vm6057_vm8 = vmor %vm2255_vm7, %vm2256_vm5  ;;  %v2274_v24 = vand.u32 2147483647, %v6025_v25  ;;  %vm2270_vm13 = vweird.f32 %v6025_v25 }
 0x4b2   : > { %v2252_v42 = vsub.f32 1.0, %v2251_v62  ;;  %v2276_v62 = vand.u32 2147483648, %v6025_v25  ;;  %v6077_v8 = vmul.f32 %v5899_v34, %v2248_v28 }
 0x4b3   : > { %vm6088_vm0 = vcmp.eq.f32.partialorder %v2274_v24, 8.507059e+37 }
 0x4b4   : > { %v2253_v52 = vmul.f32 %v4613_v4, %v2252_v42  ;;  %7631 = vst [vmem:[#allocation27_spill] sm:$0xff] %v6077_v8 }
 0x4b6   : > { %v2254_v22 = vadd.f32 %v4613_v4, %v2253_v52 }
 0x4b7   : > { %v6031_v43 = vpop.eup %4614 }
 0x4b8   : > { %v6028_v10 = vpop.xlane.xlu1 %2101  ;;  %v2266_v38 = vmul.f32 %v6031_v43, %v6025_v25  ;;  %v2258_v42 = vsel %vm6057_vm8, %v4613_v4, %v2254_v22  ;;  %vm2271_vm10 = vweird.f32 %v6031_v43  ;;  %v6074_v4 = vmul.f32 %v5897_v30, %v2248_v28 }
 0x4b9   : > { %4616 = vrcp.f32 %v6028_v10  ;;  %v2291_v14 = vand.u32 2147483648, %v6028_v10  ;;  %vm2285_vm12 = vweird.f32 %v6028_v10  ;;  %vm6084_vm15 = vmor %vm2270_vm13, %vm2271_vm10  ;;  %v2277_v30 = vor.u32 1.1754944e-38, %v2276_v62 }
 0x4ba   : > { %v2267_v47 = vsub.f32 1.0, %v2266_v38  ;;  %7630 = vst [vmem:[#allocation26_spill] sm:$0xff] %v6074_v4 }
 0x4bb   : > { %v2292_v22 = vor.u32 1.1754944e-38, %v2291_v14  ;;  %v6129_v14 = vpack.c.bf16 %v6077_v8, %v6074_v4 }
 0x4bc   : > { %v2268_v18 = vmul.f32 %v6031_v43, %v2267_v47 }
 0x4bd   : > { %7644 = vst [vmem:[#allocation32_spill] sm:$0xff] %v6129_v14 }
 0x4be   : > { %v2269_v56 = vadd.f32 %v6031_v43, %v2268_v18 }
 0x4bf   : > { %v6033_v3 = vpop.eup %4616 }
 0x4c0   : > { %v2281_v13 = vmul.f32 %v6033_v3, %v6028_v10  ;;  %v6039_v5 = vpop.xlane.xlu2 %2104  ;;  %vm2286_vm9 = vweird.f32 %v6033_v3  ;;  %v2273_v25 = vsel %vm6084_vm15, %v6031_v43, %v2269_v56 }
 0x4c1   : > { %4618 = vrcp.f32 %v6039_v5  ;;  %vm6080_vm14 = vmor %vm2285_vm12, %vm2286_vm9  ;;  %vm2300_vm3 = vweird.f32 %v6039_v5  ;;  %v2304_v43 = vand.u32 2147483647, %v6039_v5  ;;  %v2278_v27 = vsel %vm6088_vm0, %v2277_v30, %v2273_v25 }
 0x4c2   : > { %v2282_v54 = vsub.f32 1.0, %v2281_v13  ;;  %v2262_v13 = vor.u32 1.1754944e-38, %v2261_v29  ;;  %v6137_v56 = vmul.f32 %v5913_v45, %v2278_v27 }
 0x4c3   : > { %vm2305_vm6 = vcmp.eq.f32.partialorder %v2304_v43, 8.507059e+37 }
 0x4c4   : > { %v2283_v12 = vmul.f32 %v6033_v3, %v2282_v54  ;;  %v2289_v54 = vand.u32 2147483647, %v6028_v10  ;;  %v2263_v47 = vsel %vm2260_vm11, %v2262_v13, %v2258_v42  ;;  %7646 = vst [vmem:[#allocation34_spill] sm:$0xff] %v6137_v56 }
 0x4c5   : > { %v6102_v29 = vmul.f32 %v5905_v49, %v2263_v47  ;;  %v6105_v18 = vmul.f32 %v5907_v11, %v2263_v47 }
 0x4c6   : > { %v2284_v38 = vadd.f32 %v6033_v3, %v2283_v12  ;;  %vm2290_vm2 = vcmp.eq.f32.partialorder %v2289_v54, 8.507059e+37 }
 0x4c7   : > { %v6046_v61 = vpop.eup %4618  ;;  %7638 = vst [vmem:[#allocation28_spill] sm:$0xff] %v6102_v29 }
 0x4c8   : > { %v2296_v37 = vmul.f32 %v6046_v61, %v6039_v5  ;;  %v6054_v35 = vpop.xlane.xlu1 %2107  ;;  %v2288_v34 = vsel %vm6080_vm14, %v6033_v3, %v2284_v38  ;;  %vm2301_vm1 = vweird.f32 %v6046_v61  ;;  %7639 = vst [vmem:[#allocation29_spill] sm:$0xff] %v6105_v18  ;;  %v2306_v3 = vand.u32 2147483648, %v6039_v5 }
 0x4c9   : > { %4620 = vrcp.f32 %v6054_v35  ;;  %vm6112_vm4 = vmor %vm2300_vm3, %vm2301_vm1  ;;  %v2321_v49 = vand.u32 2147483648, %v6054_v35  ;;  %v2319_v5 = vand.u32 2147483647, %v6054_v35  ;;  %vm2315_vm7 = vweird.f32 %v6054_v35 }
 0x4ca   : > { %v2297_v55 = vsub.f32 1.0, %v2296_v37  ;;  %v2293_v37 = vsel %vm2290_vm2, %v2292_v22, %v2288_v34  ;;  %v2307_v38 = vor.u32 1.1754944e-38, %v2306_v3 }
 0x4cb   : > { %v6125_v42 = vmul.f32 %v5923_v6, %v2293_v37  ;;  %vm2320_vm9 = vcmp.eq.f32.partialorder %v2319_v5, 8.507059e+37 }
 0x4cc   : > { %v2298_v52 = vmul.f32 %v6046_v61, %v2297_v55  ;;  %v6122_v55 = vmul.f32 %v5921_v44, %v2293_v37  ;;  %v6140_v44 = vmul.f32 %v5915_v1, %v2278_v27 }
 0x4cd   : > { %7643 = vst [vmem:[#allocation31_spill] sm:$0xff] %v6125_v42 }
 0x4ce   : > { %v2299_v12 = vadd.f32 %v6046_v61, %v2298_v52  ;;  %7642 = vst [vmem:[#allocation30_spill] sm:$0xff] %v6122_v55  ;;  %v2322_v52 = vor.u32 1.1754944e-38, %v2321_v49  ;;  %v6160_v34 = vpack.c.bf16 %v6140_v44, %v6137_v56 }
 0x4cf   : > { %v4621_v59 = vpop.eup %4620  ;;  %7647 = vst [vmem:[#allocation35_spill] sm:$0xff] %v6140_v44 }
 0x4d0   : > { %v2311_v33 = vmul.f32 %v4621_v59, %v6054_v35  ;;  %v2111_v28 = vpop.xlane.xlu2 %2110  ;;  %v2303_v11 = vsel %vm6112_vm4, %v6046_v61, %v2299_v12  ;;  %vm2316_vm5 = vweird.f32 %v4621_v59  ;;  %v6134_v61 = vpack.c.bf16 %v6105_v18, %v6102_v29 }
 0x4d1   : > { %4622 = vrcp.f32 %v2111_v28  ;;  %v2308_v6 = vsel %vm2305_vm6, %v2307_v38, %v2303_v11  ;;  %vm2317_vm8 = vmor %vm2315_vm7, %vm2316_vm5  ;;  %v6144_v35 = vpack.c.bf16 %v6125_v42, %v6122_v55  ;;  %v2336_v3 = vand.u32 2147483648, %v2111_v28 }
 0x4d2   : > { %v2312_v16 = vsub.f32 1.0, %v2311_v33  ;;  %7645 = vst [vmem:[#allocation33_spill] sm:$0xff] %v6134_v61  ;;  %v6147_v15 = vmul.f32 %v5929_v17, %v2308_v6  ;;  %v6150_v45 = vmul.f32 %v5931_v20, %v2308_v6  ;;  %v2678_v22 = vunpack.c.l.b16 %v6134_v61 }
 0x4d3   : > { %v2679_v17 = vunpack.c.h.b16 %v6134_v61  ;;  %v2334_v33 = vand.u32 2147483647, %v2111_v28  ;;  %v2682_v37 = vunpack.c.l.b16 %v6144_v35  ;;  %v2683_v43 = vunpack.c.h.b16 %v6144_v35 }
 0x4d4   : > { %v2313_v62 = vmul.f32 %v4621_v59, %v2312_v16  ;;  %7648 = vst [vmem:[#allocation36_spill] sm:$0xff] %v6150_v45  ;;  %v6175_v27 = vpack.c.bf16 %v6150_v45, %v6147_v15  ;;  %v2681_v24 = vunpack.c.h.b16 %v6160_v34  ;;  %vm2330_vm11 = vweird.f32 %v2111_v28 }
 0x4d5   : > { %vm6194_vm13 = vcmp.eq.f32.partialorder %v2334_v33, 8.507059e+37 }
 0x4d6   : > { %v2314_v13 = vadd.f32 %v4621_v59, %v2313_v62  ;;  %v2685_v33 = vunpack.c.h.b16 %v6175_v27 }
 0x4d7   : > { %v4623_v47 = vpop.eup %4622 }
 0x4d8   : > { %v2318_v54 = vsel %vm2317_vm8, %v4621_v59, %v2314_v13  ;;  %v2326_v10 = vmul.f32 %v4623_v47, %v2111_v28  ;;  %v6152_v1 = vpop.xlane.xlu2 %2086  ;;  %v6154_v30 = vpop.xlane.xlu1 %2113  ;;  %v2676_v59 = vunpack.c.l.b16 %v6129_v14  ;;  %vm2331_vm10 = vweird.f32 %v4623_v47 }
 0x4d9   : > { %v2323_v58 = vsel %vm2320_vm9, %v2322_v52, %v2318_v54  ;;  %4624 = vrcp.f32 %v6152_v1  ;;  %vm6190_vm12 = vmor %vm2330_vm11, %vm2331_vm10  ;;  %v2337_v52 = vor.u32 1.1754944e-38, %v2336_v3  ;;  %v6200_v28 = vpack.c.b16 %v2683_v43, %v2681_v24 }
 0x4da   : > { %v6165_v20 = vmul.f32 %v5937_v46, %v2323_v58  ;;  %v6168_v25 = vmul.f32 %v5939_v23, %v2323_v58  ;;  %v2327_v12 = vsub.f32 1.0, %v2326_v10  ;;  %4626 = vrcp.f32 %v6154_v30 }
 0x4db   : > { %v2677_v46 = vunpack.c.h.b16 %v6129_v14  ;;  %v2680_v23 = vunpack.c.l.b16 %v6160_v34  ;;  %v6180_v49 = vpack.c.b16 %v2678_v22, %v2676_v59  ;;  %v2216_v3 = vand.u32 2147483648, %v6152_v1 }
 0x4dc   : > { %7649 = vst [vmem:[#allocation37_spill] sm:$0xff] %v6168_v25  ;;  %v2328_v16 = vmul.f32 %v4623_v47, %v2327_v12  ;;  %v6184_v62 = vpack.c.bf16 %v6168_v25, %v6165_v20  ;;  %v2684_v12 = vunpack.c.l.b16 %v6175_v27  ;;  %v2349_v43 = vand.u32 2147483647, %v6154_v30 }
 0x4dd   : > { %v6186_v5 = vpack.c.b16 %v2679_v17, %v2677_v46  ;;  %v6198_v54 = vpack.c.b16 %v2682_v37, %v2680_v23  ;;  %v2351_v46 = vand.u32 2147483648, %v6154_v30  ;;  %vm2210_vm14 = vweird.f32 %v6152_v1 }
 0x4de   : > { %v2329_v11 = vadd.f32 %v4623_v47, %v2328_v16  ;;  %v2214_v16 = vand.u32 2147483647, %v6152_v1  ;;  %v2686_v23 = vunpack.c.l.b16 %v6184_v62  ;;  %v2687_v13 = vunpack.c.h.b16 %v6184_v62 }
 0x4df   : > { %v6188_v38 = vpop.eup %4624  ;;  %vm2345_vm15 = vweird.f32 %v6154_v30  ;;  %v2217_v44 = vor.u32 1.1754944e-38, %v2216_v3  ;;  %vm6227_vm1 = vcmp.eq.f32.partialorder %v2349_v43, 8.507059e+37 }
 0x4e0   : > { %v4627_v58 = vpop.eup %4626  ;;  %v2333_v10 = vsel %vm6190_vm12, %v4623_v47, %v2329_v11  ;;  %v2206_v59 = vmul.f32 %v6188_v38, %v6152_v1  ;;  %v6206_v22 = vpop.xlane.xlu2 %2080  ;;  %vm6237_vm2 = vcmp.eq.f32.partialorder %v2214_v16, 8.507059e+37  ;;  %vm2211_vm3 = vweird.f32 %v6188_v38 }
 0x4e1   : > { %v6208_v17 = vpop.xlane.xlu1 %2089  ;;  %v2341_v37 = vmul.f32 %v4627_v58, %v6154_v30  ;;  %4628 = vrcp.f32 %v6206_v22  ;;  %v2338_v24 = vsel %vm6194_vm13, %v2337_v52, %v2333_v10  ;;  %vm2346_vm0 = vweird.f32 %v4627_v58  ;;  %vm6274_vm5 = vmor %vm2210_vm14, %vm2211_vm3 }
 0x4e2   : > { %v2207_v47 = vsub.f32 1.0, %v2206_v59  ;;  %4630 = vrcp.f32 %v6208_v17  ;;  %v6232_v6 = vmul.f32 %v5951_v26, %v2338_v24  ;;  %v6235_v52 = vmul.f32 %v5955_v60, %v2338_v24  ;;  %vm2347_vm4 = vmor %vm2345_vm15, %vm2346_vm0 }
 0x4e3   : > { %v2342_v11 = vsub.f32 1.0, %v2341_v37  ;;  %v2352_v37 = vor.u32 1.1754944e-38, %v2351_v46  ;;  %v2186_v24 = vand.u32 2147483648, %v6206_v22  ;;  %v2231_v26 = vand.u32 2147483648, %v6208_v17 }
 0x4e4   : > { %v2208_v18 = vmul.f32 %v6188_v38, %v2207_v47  ;;  %v6241_v47 = vpack.c.b16 %v2686_v23, %v2684_v12  ;;  %v2184_v12 = vand.u32 2147483647, %v6206_v22  ;;  %v6268_v29 = vpack.c.bf16 %v6235_v52, %v6232_v6 }
 0x4e5   : > { %v2343_v8 = vmul.f32 %v4627_v58, %v2342_v11  ;;  %v6246_v11 = vpack.c.b16 %v2687_v13, %v2685_v33  ;;  %vm2180_vm6 = vweird.f32 %v6206_v22  ;;  %vm2225_vm7 = vweird.f32 %v6208_v17 }
 0x4e6   : > { %v2209_v59 = vadd.f32 %v6188_v38, %v2208_v18  ;;  %v2229_v18 = vand.u32 2147483647, %v6208_v17  ;;  %vm6292_vm8 = vcmp.eq.f32.partialorder %v2184_v12, 8.507059e+37  ;;  %v2689_v10 = vunpack.c.h.b16 %v6268_v29 }
 0x4e7   : > { %v6243_v3 = vpop.eup %4628  ;;  %v2344_v43 = vadd.f32 %v4627_v58, %v2343_v8 }
 0x4e8   : > { %v2176_v60 = vmul.f32 %v6243_v3, %v6206_v22  ;;  %v6255_v16 = vpop.xlane.xlu2 %2074  ;;  %v4631_v33 = vpop.eup %4630  ;;  %vm6296_vm9 = vcmp.eq.f32.partialorder %v2229_v18, 8.507059e+37  ;;  %vm2181_vm10 = vweird.f32 %v6243_v3 }
 0x4e9   : > { %v6257_v46 = vpop.xlane.xlu1 %2083  ;;  %v2348_v23 = vsel %vm2347_vm4, %v4627_v58, %v2344_v43  ;;  %4632 = vrcp.f32 %v6255_v16  ;;  %vm2226_vm11 = vweird.f32 %v4631_v33  ;;  %vm2150_vm12 = vweird.f32 %v6255_v16  ;;  %vm6322_vm13 = vmor %vm2180_vm6, %vm2181_vm10 }
 0x4ea   : > { %v2353_v30 = vsel %vm6227_vm1, %v2352_v37, %v2348_v23  ;;  %v2177_v13 = vsub.f32 1.0, %v2176_v60  ;;  %v2221_v37 = vmul.f32 %v4631_v33, %v6208_v17  ;;  %v2213_v60 = vsel %vm6274_vm5, %v6188_v38, %v2209_v59  ;;  %vm2227_vm14 = vmor %vm2225_vm7, %vm2226_vm11 }
 0x4eb   : > { %v6279_v43 = vmul.f32 %v5967_v7, %v2353_v30  ;;  %v6282_v4 = vmul.f32 %v5970_v63, %v2353_v30  ;;  %4634 = vrcp.f32 %v6257_v46  ;;  %v2187_v63 = vor.u32 1.1754944e-38, %v2186_v24 }
 0x4ec   : > { %v2178_v1 = vmul.f32 %v6243_v3, %v2177_v13  ;;  %v2222_v23 = vsub.f32 1.0, %v2221_v37  ;;  %v2232_v38 = vor.u32 1.1754944e-38, %v2231_v26  ;;  %v2688_v59 = vunpack.c.l.b16 %v6268_v29 }
 0x4ed   : > { %v2218_v12 = vsel %vm6237_vm2, %v2217_v44, %v2213_v60  ;;  %v6309_v24 = vpack.c.bf16 %v6282_v4, %v6279_v43  ;;  %v2154_v26 = vand.u32 2147483647, %v6255_v16  ;;  %v2199_v42 = vand.u32 2147483647, %v6257_v46 }
 0x4ee   : > { %v2179_v8 = vadd.f32 %v6243_v3, %v2178_v1  ;;  %v2223_v58 = vmul.f32 %v4631_v33, %v2222_v23  ;;  %v2156_v23 = vand.u32 2147483648, %v6255_v16  ;;  %v6330_v14 = vmul.f32 %v5961_v2, %v2218_v12 }
 0x4ef   : > { %v6303_v13 = vpop.eup %4632  ;;  %v6333_v45 = vmul.f32 %v5964_v53, %v2218_v12  ;;  %vm2195_vm15 = vweird.f32 %v6257_v46  ;;  %v2690_v2 = vunpack.c.l.b16 %v6309_v24  ;;  %vm6345_vm0 = vcmp.eq.f32.partialorder %v2154_v26, 8.507059e+37 }
 0x4f0   : > { %v2146_v18 = vmul.f32 %v6303_v13, %v6255_v16  ;;  %v6315_v37 = vpop.xlane.xlu2 %2068  ;;  %v2224_v60 = vadd.f32 %v4631_v33, %v2223_v58  ;;  %v2183_v22 = vsel %vm6322_vm13, %v6243_v3, %v2179_v8  ;;  %v2201_v3 = vand.u32 2147483648, %v6257_v46 }
 0x4f1   : > { %v6317_v1 = vpop.xlane.xlu1 %2077  ;;  %4636 = vrcp.f32 %v6315_v37  ;;  %v4635_v56 = vpop.eup %4634  ;;  %v2188_v17 = vsel %vm6292_vm8, %v2187_v63, %v2183_v22  ;;  %v2157_v8 = vor.u32 1.1754944e-38, %v2156_v23  ;;  %vm6353_vm1 = vcmp.eq.f32.partialorder %v2199_v42, 8.507059e+37 }
 0x4f2   : > { %v2147_v58 = vsub.f32 1.0, %v2146_v18  ;;  %v2228_v55 = vsel %vm2227_vm14, %v4631_v33, %v2224_v60  ;;  %v2191_v61 = vmul.f32 %v4635_v56, %v6257_v46  ;;  %4638 = vrcp.f32 %v6317_v1 }
 0x4f3   : > { %v2233_v18 = vsel %vm6296_vm9, %v2232_v38, %v2228_v55  ;;  %vm2151_vm2 = vweird.f32 %v6303_v13  ;;  %v2124_v44 = vand.u32 2147483647, %v6315_v37  ;;  %vm2196_vm3 = vweird.f32 %v4635_v56 }
 0x4f4   : > { %v2148_v25 = vmul.f32 %v6303_v13, %v2147_v58  ;;  %v2192_v33 = vsub.f32 1.0, %v2191_v61  ;;  %v2706_v7 = vpack.c.b16 %v2690_v2, %v2688_v59  ;;  %v2691_v63 = vunpack.c.h.b16 %v6309_v24  ;;  %vm6375_vm5 = vmor %vm2150_vm12, %vm2151_vm2 }
 0x4f5   : > { %v6364_v42 = vmul.f32 %v5977_v50, %v2188_v17  ;;  %v2202_v61 = vor.u32 1.1754944e-38, %v2201_v3  ;;  %vm2120_vm4 = vweird.f32 %v6315_v37  ;;  %v2126_v50 = vand.u32 2147483648, %v6315_v37  ;;  %vm2197_vm6 = vmor %vm2195_vm15, %vm2196_vm3 }
 0x4f6   : > { %v2149_v26 = vadd.f32 %v6303_v13, %v2148_v25  ;;  %v2193_v58 = vmul.f32 %v4635_v56, %v2192_v33  ;;  %v6371_v25 = vmul.f32 %v5981_v40, %v2233_v18  ;;  %2724 = vmatpush.bf16.msrb.mxu2 %v2706_v7  ;;  %v2707_v59 = vpack.c.b16 %v2691_v63, %v2689_v10 }
 0x4f7   : > { %v4637_v60 = vpop.eup %4636  ;;  %2870 = vmatpush.bf16.msra.mxu0 %v2706_v7  ;;  %v6381_v2 = vmul.f32 %v5984_v39, %v2233_v18  ;;  %v6391_v3 = vmul.f32 %v5979_v51, %v2188_v17  ;;  %vm6393_vm7 = vcmp.eq.f32.partialorder %v2124_v44, 8.507059e+37  ;;  %v2169_v18 = vand.u32 2147483647, %v6317_v1 }
 0x4f8   : > { %v2116_v23 = vmul.f32 %v4637_v60, %v6315_v37  ;;  %v2194_v38 = vadd.f32 %v4635_v56, %v2193_v58  ;;  %v4639_v22 = vpop.eup %4638  ;;  %v2153_v40 = vsel %vm6375_vm5, %v6303_v13, %v2149_v26  ;;  %2773 = vmatpush.bf16.msrb.mxu3 %v2707_v59  ;;  %2919 = vmatpush.bf16.msra.mxu1 %v2707_v59  ;;  %vm2121_vm8 = vweird.f32 %v4637_v60 }
 0x4f9   : > { %v6368_v55 = vpop.xlane.xlu1 %2071  ;;  %v2161_v39 = vmul.f32 %v4639_v22, %v6317_v1  ;;  %v2158_v51 = vsel %vm6345_vm0, %v2157_v8, %v2153_v40  ;;  %v2127_v17 = vor.u32 1.1754944e-38, %v2126_v50  ;;  %v2171_v26 = vand.u32 2147483648, %v6317_v1  ;;  %vm2122_vm10 = vmor %vm2120_vm4, %vm2121_vm8 }
 0x4fa   : > { %v2117_v16 = vsub.f32 1.0, %v2116_v23  ;;  %4640 = vrcp.f32 %v6368_v55  ;;  %v2198_v10 = vsel %vm2197_vm6, %v4635_v56, %v2194_v38  ;;  %2725 = vmatpush.bf16.msrb.mxu2 %v6241_v47  ;;  %vm2165_vm9 = vweird.f32 %v6317_v1 }
 0x4fb   : > { %v2203_v13 = vsel %vm6353_vm1, %v2202_v61, %v2198_v10  ;;  %v2162_v56 = vsub.f32 1.0, %v2161_v39  ;;  %2871 = vmatpush.bf16.msra.mxu0 %v6241_v47  ;;  %v6409_v12 = vpack.c.bf16 %v6333_v45, %v6330_v14  ;;  %v6413_v58 = vpack.c.bf16 %v6381_v2, %v6371_v25 }
 0x4fc   : > { %v2118_v46 = vmul.f32 %v4637_v60, %v2117_v16  ;;  %v6416_v53 = vmul.f32 %v5997_v19, %v2203_v13  ;;  %v6419_v8 = vmul.f32 %v5999_v31, %v2203_v13  ;;  %vm2166_vm11 = vweird.f32 %v4639_v22  ;;  %2774 = vmatpush.bf16.msrb.mxu3 %v6246_v11  ;;  %2920 = vmatpush.bf16.msra.mxu1 %v6246_v11 }
 0x4fd   : > { %v2163_v47 = vmul.f32 %v4639_v22, %v2162_v56  ;;  %v6426_v63 = vmul.f32 %v5993_v41, %v2158_v51  ;;  %v6429_v61 = vmul.f32 %v5995_v57, %v2158_v51  ;;  %vm6431_vm12 = vcmp.eq.f32.partialorder %v2169_v18, 8.507059e+37  ;;  %vm2167_vm13 = vmor %vm2165_vm9, %vm2166_vm11 }
 0x4fe   : > { %v2119_v44 = vadd.f32 %v4637_v60, %v2118_v46  ;;  %v2172_v30 = vor.u32 1.1754944e-38, %v2171_v26  ;;  %2726 = vmatpush.bf16.msrb.mxu2 %v6198_v54  ;;  %v2139_v41 = vand.u32 2147483647, %v6368_v55  ;;  %v2141_v57 = vand.u32 2147483648, %v6368_v55 }
 0x4ff   : > { %v2164_v23 = vadd.f32 %v4639_v22, %v2163_v47  ;;  %2872 = vmatpush.bf16.msra.mxu0 %v6198_v54  ;;  %v2672_v11 = vunpack.c.l.b16 %v6409_v12  ;;  %v2675_v40 = vunpack.c.h.b16 %v6413_v58  ;;  %v6451_v54 = vpack.c.bf16 %v6419_v8, %v6416_v53 }
 0x500   : > { %v4641_v7 = vpop.eup %4640  ;;  %v2123_v19 = vsel %vm2122_vm10, %v4637_v60, %v2119_v44  ;;  %v2674_v60 = vunpack.c.l.b16 %v6413_v58  ;;  %2775 = vmatpush.bf16.msrb.mxu3 %v6200_v28  ;;  %2921 = vmatpush.bf16.msra.mxu1 %v6200_v28  ;;  %v6463_v10 = vpack.c.bf16 %v6391_v3, %v6364_v42  ;;  %vm2135_vm15 = vweird.f32 %v6368_v55 }
 0x501   : > { %v2128_v37 = vsel %vm6393_vm7, %v2127_v17, %v2123_v19  ;;  %v2131_v38 = vmul.f32 %v4641_v7, %v6368_v55  ;;  %v2168_v50 = vsel %vm2167_vm13, %v4639_v22, %v2164_v23  ;;  %vm2136_vm14 = vweird.f32 %v4641_v7 }
 0x502   : > { %v6454_v1 = vmul.f32 %v6007_v9, %v2128_v37  ;;  %v6457_v16 = vmul.f32 %v6009_v32, %v2128_v37  ;;  %v2173_v22 = vsel %vm6431_vm12, %v2172_v30, %v2168_v50  ;;  %2727 = vmatpush.bf16.msrb.mxu2 %v6180_v49  ;;  %v2673_v9 = vunpack.c.h.b16 %v6409_v12  ;;  %vm2137_vm0 = vmor %vm2135_vm15, %vm2136_vm14 }
 0x503   : > { %v2132_v59 = vsub.f32 1.0, %v2131_v38  ;;  %v6466_v28 = vmul.f32 %v6011_v36, %v2173_v22  ;;  %v6469_v33 = vmul.f32 %v6013_v48, %v2173_v22  ;;  %2873 = vmatpush.bf16.msra.mxu0 %v6180_v49  ;;  %v6477_v32 = vpack.c.bf16 %v6429_v61, %v6426_v63 }
 0x504   : > { %v2592_v36 = vunpack.c.l.bf16 %v6268_v29  ;;  %2776 = vmatpush.bf16.msrb.mxu3 %v6186_v5  ;;  %2922 = vmatpush.bf16.msra.mxu1 %v6186_v5  ;;  %v2698_v48 = vpack.c.b16 %v2674_v60, %v2672_v11  ;;  %v2670_v46 = vunpack.c.l.b16 %v6451_v54  ;;  %vm2140_vm1 = vcmp.eq.f32.partialorder %v2139_v41, 8.507059e+37 }
 0x505   : > { %v2133_v39 = vmul.f32 %v4641_v7, %v2132_v59  ;;  %v6485_v49 = vpack.c.bf16 %v6469_v33, %v6466_v28  ;;  %v2142_v55 = vor.u32 1.1754944e-38, %v2141_v57  ;;  %v2699_v18 = vpack.c.b16 %v2675_v40, %v2673_v9  ;;  %v2476_v59 = vld [vmem:[%s6517_s14] sm:$0xff]  ;;  %v2477_v40 = vld [vmem:[%s6517_s14 + $0x10] sm:$0xff] }
 0x506   : > { %v2671_v51 = vunpack.c.h.b16 %v6451_v54  ;;  %2728 = vmatpush.bf16.msrb.mxu2 %v2698_v48  ;;  %v2668_v56 = vunpack.c.l.b16 %v6463_v10  ;;  %v6492_v26 = vpack.c.bf16 %v6457_v16, %v6454_v1  ;;  %v2669_v47 = vunpack.c.h.b16 %v6463_v10 }
 0x507   : > { %v2134_v13 = vadd.f32 %v4641_v7, %v2133_v39  ;;  %2874 = vmatpush.bf16.msra.mxu0 %v2698_v48  ;;  %v2666_v5 = vunpack.c.l.b16 %v6485_v49  ;;  %v2664_v19 = vunpack.c.l.b16 %v6477_v32  ;;  %v2667_v31 = vunpack.c.h.b16 %v6485_v49 }
 0x508   : > { %2777 = vmatpush.bf16.msrb.mxu3 %v2699_v18  ;;  %2923 = vmatpush.bf16.msra.mxu1 %v2699_v18  ;;  %v2696_v23 = vpack.c.b16 %v2670_v46, %v2668_v56  ;;  %v2665_v30 = vunpack.c.h.b16 %v6477_v32  ;;  %v2697_v38 = vpack.c.b16 %v2671_v51, %v2669_v47  ;;  %v2594_v57 = vunpack.c.l.bf16 %v6309_v24 }
 0x509   : > { %v2138_v17 = vsel %vm2137_vm0, %v4641_v7, %v2134_v13  ;;  %v2694_v41 = vpack.c.b16 %v2666_v5, %v2664_v19  ;;  %v2624_v11 = vsub.f32 %v6232_v6, %v2592_v36  ;;  %v2660_v50 = vunpack.c.l.b16 %v6492_v26 }
 0x50a   : > { %v2143_v44 = vsel %vm2140_vm1, %v2142_v55, %v2138_v17  ;;  %2729 = vmatpush.bf16.msrb.mxu2 %v2696_v23  ;;  %v2695_v22 = vpack.c.b16 %v2667_v31, %v2665_v30  ;;  %v2595_v39 = vunpack.c.h.bf16 %v6309_v24  ;;  %v6522_v9 = vpack.c.bf16 %v2476_v59, %v2476_v59 }
 0x50b   : > { %v6498_v37 = vmul.f32 %v6019_v21, %v2143_v44  ;;  %v6501_v7 = vmul.f32 %v6021_v0, %v2143_v44  ;;  %2875 = vmatpush.bf16.msra.mxu0 %v2696_v23  ;;  %v6524_v36 = vpack.c.bf16 %v2477_v40, %v2477_v40  ;;  %v2626_v18 = vsub.f32 %v6279_v43, %v2594_v57 }
 0x50c   : > { %2778 = vmatpush.bf16.msrb.mxu3 %v2697_v38  ;;  %2924 = vmatpush.bf16.msra.mxu1 %v2697_v38  ;;  %v2593_v51 = vunpack.c.h.bf16 %v6268_v29  ;;  %v2508_v24 = vunpack.c.l.bf16 %v6522_v9  ;;  %v2661_v47 = vunpack.c.h.b16 %v6492_v26  ;;  %v2627_v19 = vsub.f32 %v6282_v4, %v2595_v39 }
 0x50d   : > { %v2388_v60 = vadd.f32 %v6498_v37, %v6454_v1  ;;  %v2409_v21 = vadd.f32 %v6501_v7, %v6457_v16  ;;  %v6512_v0 = vpack.c.bf16 %v6501_v7, %v6498_v37  ;;  %7676 = vst [vmem:[#allocation38_spill] sm:$0xff] %v6524_v36  ;;  %v2509_v17 = vunpack.c.l.bf16 %v6524_v36 }
 0x50e   : > { %2730 = vmatpush.bf16.msrb.mxu2 %v2694_v41  ;;  %v2524_v31 = vsub.f32 %v2476_v59, %v2508_v24  ;;  %v2591_v30 = vunpack.c.h.bf16 %v6184_v62  ;;  %vm2433_vm2 = vcmask 1040384  }
 0x50f   : > { %v2389_v13 = vadd.f32 %v2388_v60, %v6426_v63  ;;  %v2410_v48 = vadd.f32 %v2409_v21, %v6429_v61  ;;  %v2662_v46 = vunpack.c.l.b16 %v6512_v0  ;;  %v2663_v55 = vunpack.c.h.b16 %v6512_v0  ;;  %2876 = vmatpush.bf16.msra.mxu0 %v2694_v41 }
 0x510   : > { %v2525_v23 = vsub.f32 %v2477_v40, %v2509_v17  ;;  %2779 = vmatpush.bf16.msrb.mxu3 %v2695_v22  ;;  %2925 = vmatpush.bf16.msra.mxu1 %v2695_v22  ;;  %v2586_v60 = vunpack.c.l.bf16 %v6144_v35  ;;  %v2642_v21 = vpack.c.bf16 %v2626_v18, %v2624_v11  ;;  %v2625_v41 = vsub.f32 %v6235_v52, %v2593_v51  ;;  %v7680_v51 = vld [vmem:[#allocation33_spill] sm:$0xff] }
 0x511   : > { %v2390_v56 = vadd.f32 %v2389_v13, %v6466_v28  ;;  %v2411_v5 = vadd.f32 %v2410_v48, %v6469_v33  ;;  %v2692_v44 = vpack.c.b16 %v2662_v46, %v2660_v50  ;;  %v2693_v57 = vpack.c.b16 %v2663_v55, %v2661_v47  ;;  %v7679_v55 = vld [vmem:[#allocation37_spill] sm:$0xff] }
 0x512   : > { %v2540_v50 = vpack.c.bf16 %v2525_v23, %v2524_v31  ;;  %v7677_v13 = vunpack.c.l.bf16 %v6184_v62  ;;  %v7678_v48 = vunpack.c.l.bf16 %v6175_v27  ;;  %v2584_v46 = vunpack.c.l.bf16 %v6160_v34  ;;  %v7683_v23 = vld [vmem:[#allocation36_spill] sm:$0xff] }
 0x513   : > { %v2391_v29 = vadd.f32 %v2390_v56, %v6364_v42  ;;  %v2412_v38 = vadd.f32 %v2411_v5, %v6391_v3  ;;  %2731 = vmatpush.bf16.msrb.mxu2 %v2692_v44  ;;  %2877 = vmatpush.bf16.msra.mxu0 %v2692_v44  ;;  %v2643_v11 = vpack.c.bf16 %v2627_v19, %v2625_v41  ;;  %v2587_v62 = vunpack.c.h.bf16 %v6144_v35  ;;  %v7681_v5 = vld [vmem:[#allocation30_spill] sm:$0xff]  ;;  %v7684_v35 = vld [vmem:[#allocation32_spill] sm:$0xff] }
 0x514   : > { %v2622_v59 = vsub.f32 %v6165_v20, %v7677_v13  ;;  %v2620_v22 = vsub.f32 %v6147_v15, %v7678_v48  ;;  %v2623_v18 = vsub.f32 %v7679_v55, %v2591_v30  ;;  %v2582_v24 = vunpack.c.l.bf16 %v7680_v51  ;;  %2780 = vmatpush.bf16.msrb.mxu3 %v2693_v57  ;;  %2926 = vmatpush.bf16.msra.mxu1 %v2693_v57  ;;  %v7685_v57 = vld [vmem:[#allocation34_spill] sm:$0xff] }
 0x515   : > { %v2392_v40 = vadd.f32 %v2391_v29, %v6416_v53  ;;  %v2413_v39 = vadd.f32 %v2412_v38, %v6419_v8  ;;  %v2618_v44 = vsub.f32 %v7681_v5, %v2586_v60  ;;  %v2585_v47 = vunpack.c.h.bf16 %v6160_v34  ;;  %v7686_v60 = vld [vmem:[#allocation31_spill] sm:$0xff]  ;;  %v7688_v48 = vld [vmem:[#allocation26_spill] sm:$0xff] }
 0x516   : > { %2732 = vmatmul.bf16.vlgmr.msrb.gmra.mxu2 %v2540_v50  ;;  %v2640_v31 = vpack.c.bf16 %v2622_v59, %v2620_v22  ;;  %v7682_v19 = vunpack.c.h.bf16 %v6175_v27  ;;  %v2580_v29 = vunpack.c.l.bf16 %v7684_v35  ;;  %v2583_v38 = vunpack.c.h.bf16 %v7680_v51  ;;  %v7687_v27 = vld [vmem:[#allocation28_spill] sm:$0xff] }
 0x517   : > { %2968 = vmatpush.bf16.msra.mxu2 %v2642_v21  ;;  %v2393_v17 = vadd.f32 %v2392_v40, %v6330_v14  ;;  %v2414_v56 = vadd.f32 %v2413_v39, %v6333_v45  ;;  %v2616_v13 = vsub.f32 %v7685_v57, %v2584_v46  ;;  %2781 = vmatmul.bf16.vlgmr.msrb.gmra.mxu3 %v2540_v50  ;;  %v2581_v39 = vunpack.c.h.bf16 %v7684_v35  ;;  %v7691_v50 = vld [vmem:[#allocation29_spill] sm:$0xff] }
 0x518   : > { %3017 = vmatpush.bf16.msra.mxu3 %v2643_v11  ;;  %v2621_v30 = vsub.f32 %v7683_v23, %v7682_v19  ;;  %v2619_v59 = vsub.f32 %v7686_v60, %v2587_v62  ;;  %v2614_v40 = vsub.f32 %v7687_v27, %v2582_v24  ;;  %v7689_v11 = vld [vmem:[#allocation27_spill] sm:$0xff]  ;;  %v2612_v46 = vsub.f32 %v7688_v48, %v2580_v29 }
 0x519   : > { %v2394_v21 = vadd.f32 %v2393_v17, %v6371_v25  ;;  %v2415_v41 = vadd.f32 %v2414_v56, %v6381_v2  ;;  %v2638_v17 = vpack.c.bf16 %v2618_v44, %v2616_v13  ;;  %v7690_v19 = vld [vmem:[#allocation35_spill] sm:$0xff]  ;;  %v2615_v36 = vsub.f32 %v7691_v50, %v2583_v38 }
 0x51a   : > { %v2641_v34 = vpack.c.bf16 %v2623_v18, %v2621_v30  ;;  %v2617_v56 = vsub.f32 %v7690_v19, %v2585_v47  ;;  %v2576_v18 = vunpack.c.l.bf16 %v6409_v12  ;;  %v2578_v62 = vunpack.c.l.bf16 %v6413_v58  ;;  %v2479_v24 = vld [vmem:[%s6517_s14 + $0x30] sm:$0xff] }
 0x51b   : > { %2969 = vmatpush.bf16.msra.mxu2 %v2640_v31  ;;  %v2395_v22 = vadd.f32 %v2394_v21, %v7688_v48  ;;  %v2416_v51 = vadd.f32 %v2415_v41, %v7689_v11  ;;  %v2478_v31 = vld [vmem:[%s6517_s14 + $0x20] sm:$0xff]  ;;  %v6583_v44 = vpack.c.bf16 %v2479_v24, %v2479_v24  ;;  %v2636_v41 = vpack.c.bf16 %v2614_v40, %v2612_v46 }
 0x51c   : > { %3018 = vmatpush.bf16.msra.mxu3 %v2641_v34  ;;  %v6581_v21 = vpack.c.bf16 %v2478_v31, %v2478_v31  ;;  %v2639_v47 = vpack.c.bf16 %v2619_v59, %v2617_v56  ;;  %v2613_v29 = vsub.f32 %v7689_v11, %v2581_v39  ;;  %v2579_v38 = vunpack.c.h.bf16 %v6413_v58 }
 0x51d   : > { %v2396_v30 = vadd.f32 %v2395_v22, %v7687_v27  ;;  %v2417_v35 = vadd.f32 %v2416_v51, %v7691_v50  ;;  %v2511_v27 = vunpack.c.l.bf16 %v6583_v44  ;;  %v2608_v51 = vsub.f32 %v6330_v14, %v2576_v18 }
 0x51e   : > { %v2510_v48 = vunpack.c.l.bf16 %v6581_v21  ;;  %v2637_v22 = vpack.c.bf16 %v2615_v36, %v2613_v29  ;;  %v2577_v59 = vunpack.c.h.bf16 %v6409_v12  ;;  %v2611_v11 = vsub.f32 %v6381_v2, %v2579_v38 }
 0x51f   : > { %2970 = vmatpush.bf16.msra.mxu2 %v2638_v17  ;;  %v2397_v13 = vadd.f32 %v2396_v30, %v7685_v57  ;;  %v2418_v34 = vadd.f32 %v2417_v35, %v7690_v19  ;;  %v2610_v17 = vsub.f32 %v6371_v25, %v2578_v62  ;;  %v2527_v57 = vsub.f32 %v2479_v24, %v2511_v27 }
 0x520   : > { %3019 = vmatpush.bf16.msra.mxu3 %v2639_v47  ;;  %v2526_v39 = vsub.f32 %v2478_v31, %v2510_v48  ;;  %v2572_v19 = vunpack.c.l.bf16 %v6463_v10  ;;  %v2574_v56 = vunpack.c.l.bf16 %v6451_v54  ;;  %v2575_v36 = vunpack.c.h.bf16 %v6451_v54  ;;  %v2481_v47 = vld [vmem:[%s6517_s14 + $0x50] sm:$0xff] }
 0x521   : > { %v2398_v40 = vadd.f32 %v2397_v13, %v7681_v5  ;;  %v2419_v58 = vadd.f32 %v2418_v34, %v7686_v60  ;;  %v2573_v12 = vunpack.c.h.bf16 %v6463_v10  ;;  %v2634_v5 = vpack.c.bf16 %v2610_v17, %v2608_v51 }
 0x522   : > { %v2609_v60 = vsub.f32 %v6333_v45, %v2577_v59  ;;  %v2541_v46 = vpack.c.bf16 %v2527_v57, %v2526_v39  ;;  %v2606_v50 = vsub.f32 %v6416_v53, %v2574_v56  ;;  %v2568_v62 = vunpack.c.l.bf16 %v6477_v32 }
 0x523   : > { %2971 = vmatpush.bf16.msra.mxu2 %v2636_v41  ;;  %v2399_v14 = vadd.f32 %v2398_v40, %v6147_v15  ;;  %v2420_v25 = vadd.f32 %v2419_v58, %v7683_v23  ;;  %v2570_v15 = vunpack.c.l.bf16 %v6485_v49  ;;  %v2604_v10 = vsub.f32 %v6364_v42, %v2572_v19  ;;  %v2480_v42 = vld [vmem:[%s6517_s14 + $0x40] sm:$0xff] }
 0x524   : > { %3020 = vmatpush.bf16.msra.mxu3 %v2637_v22  ;;  %v2635_v54 = vpack.c.bf16 %v2611_v11, %v2609_v60  ;;  %v2607_v23 = vsub.f32 %v6419_v8, %v2575_v36  ;;  %v2571_v45 = vunpack.c.h.bf16 %v6485_v49  ;;  %v2569_v30 = vunpack.c.h.bf16 %v6477_v32 }
 0x525   : > { %v2400_v2 = vadd.f32 %v2399_v14, %v6165_v20  ;;  %v2421_v18 = vadd.f32 %v2420_v25, %v7679_v55  ;;  %v2605_v55 = vsub.f32 %v6391_v3, %v2573_v12  ;;  %v2632_v31 = vpack.c.bf16 %v2606_v50, %v2604_v10  ;;  %v2482_v14 = vld [vmem:[%s6517_s14 + $0x60] sm:$0xff]  ;;  %v2483_v25 = vld [vmem:[%s6517_s14 + $0x70] sm:$0xff] }
 0x526   : > { %2737 = vmatmul.bf16.gmra.mxu2 %v2541_v46  ;;  %v2602_v24 = vsub.f32 %v6466_v28, %v2570_v15  ;;  %v2566_v35 = vunpack.c.l.bf16 %v6512_v0  ;;  %v2603_v3 = vsub.f32 %v6469_v33, %v2571_v45  ;;  %v2564_v41 = vunpack.c.l.bf16 %v6492_v26  ;;  %v2387_v12 = vld [vmem:[#allocation5] sm:$0x3]  ;;  %v2485_v45 = vld [vmem:[%s6517_s14 + $0x90] sm:$0xff] }
 0x527   : > { %2972 = vmatpush.bf16.msra.mxu2 %v2634_v5  ;;  %v2401_v53 = vadd.f32 %v2400_v2, %v6232_v6  ;;  %v2422_v20 = vadd.f32 %v2421_v18, %v6235_v52  ;;  %v2600_v6 = vsub.f32 %v6426_v63, %v2568_v62  ;;  %2786 = vmatmul.bf16.gmra.mxu3 %v2541_v46  ;;  %v2567_v28 = vunpack.c.h.bf16 %v6512_v0 }
 0x528   : > { %3021 = vmatpush.bf16.msra.mxu3 %v2635_v54  ;;  %v2633_v52 = vpack.c.bf16 %v2607_v23, %v2605_v55  ;;  %v6626_v38 = vpack.c.bf16 %v2480_v42, %v2480_v42  ;;  %v6628_v13 = vpack.c.bf16 %v2481_v47, %v2481_v47  ;;  %v2598_v63 = vsub.f32 %v6498_v37, %v2566_v35  ;;  %v2484_v23 = vld [vmem:[%s6517_s14 + $0x80] sm:$0xff] }
 0x529   : > { %v2402_v8 = vadd.f32 %v2401_v53, %v6279_v43  ;;  %v2423_v49 = vadd.f32 %v2422_v20, %v6282_v4  ;;  %v2630_v43 = vpack.c.bf16 %v2602_v24, %v2600_v6  ;;  %v2601_v4 = vsub.f32 %v6429_v61, %v2569_v30  ;;  %v7692_v20 = vld [vmem:[#allocation38_spill] sm:$0xff]  ;;  %v2487_v6 = vld [vmem:[%s6517_s14 + $0xb0] sm:$0xff] }
 0x52a   : > { %v2565_v34 = vunpack.c.h.bf16 %v6492_v26  ;;  %v2512_v27 = vunpack.c.l.bf16 %v6626_v38  ;;  %v2513_v0 = vunpack.c.l.bf16 %v6628_v13  ;;  %v2596_v51 = vsub.f32 %v6454_v1, %v2564_v41 }
 0x52b   : > { %2973 = vmatpush.bf16.msra.mxu2 %v2632_v31  ;;  %v2403_v32 = vrot.slane %v2402_v8, 4  ;;  %v2424_v29 = vrot.slane %v2423_v49, 4  ;;  %v2631_v22 = vpack.c.bf16 %v2603_v3, %v2601_v4  ;;  %v2599_v17 = vsub.f32 %v6501_v7, %v2567_v28 }
 0x52c   : > { %3022 = vmatpush.bf16.msra.mxu3 %v2633_v52  ;;  %v2628_v61 = vpack.c.bf16 %v2598_v63, %v2596_v51  ;;  %v2597_v26 = vsub.f32 %v6457_v16, %v2565_v34  ;;  %v2528_v37 = vsub.f32 %v2480_v42, %v2512_v27  ;;  %v2529_v58 = vsub.f32 %v2481_v47, %v2513_v0 }
 0x52d   : > { %v2404_v48 = vadd.f32 %v2403_v32, %v2402_v8  ;;  %v2425_v33 = vadd.f32 %v2424_v29, %v2423_v49  ;;  %v2437_v36 = vlaneseq  ;;  %v6640_v60 = vpack.c.bf16 %v2482_v14, %v2482_v14  ;;  %v2486_v49 = vld [vmem:[%s6517_s14 + $0xa0] sm:$0xff] }
 0x52e   : > { %v2629_v11 = vpack.c.bf16 %v2599_v17, %v2597_v26  ;;  %v2542_v1 = vpack.c.bf16 %v2529_v58, %v2528_v37  ;;  %v6642_v46 = vpack.c.bf16 %v2483_v25, %v2483_v25  ;;  %v2838_v53 = vunpack.c.l.b16 %v6522_v9  ;;  %v2490_v26 = vld [vmem:[%s6517_s14 + $0xe0] sm:$0xff]  ;;  %v2491_v37 = vld [vmem:[%s6517_s14 + $0xf0] sm:$0xff] }
 0x52f   : > { %2974 = vmatpush.bf16.msra.mxu2 %v2630_v43  ;;  %v2405_v59 = vrot.slane %v2404_v48, 2  ;;  %v2426_v40 = vrot.slane %v2425_v33, 2  ;;  %vm2439_vm3 = vcmp.lt.s32.totalorder %v2437_v36, 256  ;;  %v2514_v18 = vunpack.c.l.bf16 %v6640_v60 }
 0x530   : > { %3023 = vmatpush.bf16.msra.mxu3 %v2631_v22  ;;  %v2515_v62 = vunpack.c.l.bf16 %v6642_v46  ;;  %v2839_v55 = vunpack.c.l.b16 %v7692_v20  ;;  %v6650_v31 = vpack.c.bf16 %v2484_v23, %v2484_v23  ;;  %v6652_v24 = vpack.c.bf16 %v2485_v45, %v2485_v45 }
 0x531   : > { %v2406_v39 = vadd.f32 %v2405_v59, %v2404_v48  ;;  %v2427_v57 = vadd.f32 %v2426_v40, %v2425_v33  ;;  %v2530_v15 = vsub.f32 %v2482_v14, %v2514_v18  ;;  %v2840_v52 = vunpack.c.l.b16 %v6581_v21  ;;  %v2488_v48 = vld [vmem:[%s6517_s14 + $0xc0] sm:$0xff]  ;;  %v2489_v33 = vld [vmem:[%s6517_s14 + $0xd0] sm:$0xff] }
 0x532   : > { %v2531_v54 = vsub.f32 %v2483_v25, %v2515_v62  ;;  %v6654_v30 = vpack.c.b16 %v2839_v55, %v2838_v53  ;;  %v2516_v35 = vunpack.c.l.bf16 %v6650_v31  ;;  %v2517_v42 = vunpack.c.l.bf16 %v6652_v24 }
 0x533   : > { %2975 = vmatpush.bf16.msra.mxu2 %v2628_v61  ;;  %v2407_v19 = vrot.slane %v2406_v39, 1  ;;  %v2428_v56 = vrot.slane %v2427_v57, 1  ;;  %v2841_v3 = vunpack.c.l.b16 %v6583_v44  ;;  %v2502_v41 = vpack.c.bf16 %v2486_v49, %v2486_v49 }
 0x534   : > { %3024 = vmatpush.bf16.msra.mxu3 %v2629_v11  ;;  %v2543_v10 = vpack.c.bf16 %v2531_v54, %v2530_v15  ;;  %2878 = vmatmul.bf16.vlgmr.msra.gmra.mxu0 %v6654_v30  ;;  %v2532_v47 = vsub.f32 %v2484_v23, %v2516_v35  ;;  %v2533_v9 = vsub.f32 %v2485_v45, %v2517_v42  ;;  %v2842_v21 = vunpack.c.l.b16 %v6626_v38 }
 0x535   : > { %v2429_v7 = vadd.f32 %v2428_v56, %v2427_v57  ;;  %v2408_v5 = vadd.f32 %v2407_v19, %v2406_v39  ;;  %2927 = vmatmul.bf16.vlgmr.msra.gmra.mxu1 %v6654_v30  ;;  %v2503_v28 = vpack.c.bf16 %v2487_v6, %v2487_v6  ;;  %v2855_v32 = vpack.c.b16 %v2841_v3, %v2840_v52 }
 0x536   : > { %2742 = vmatmul.bf16.gmra.mxu2 %v2542_v1  ;;  %v2544_v8 = vpack.c.bf16 %v2533_v9, %v2532_v47  ;;  %v2518_v29 = vunpack.c.l.bf16 %v2502_v41  ;;  %v2843_v44 = vunpack.c.l.b16 %v6628_v13  ;;  %v2504_v27 = vpack.c.bf16 %v2488_v48, %v2488_v48 }
 0x537   : > { %v2432_v16 = vrot.slane %v2429_v7, 7  ;;  %2791 = vmatmul.bf16.gmra.mxu3 %v2542_v1  ;;  %v2519_v43 = vunpack.c.l.bf16 %v2503_v28  ;;  %v2505_v0 = vpack.c.bf16 %v2489_v33, %v2489_v33  ;;  %v2506_v58 = vpack.c.bf16 %v2490_v26, %v2490_v26 }
 0x538   : > { %v2534_v4 = vsub.f32 %v2486_v49, %v2518_v29  ;;  %v2856_v22 = vpack.c.b16 %v2843_v44, %v2842_v21  ;;  %v2520_v51 = vunpack.c.l.bf16 %v2504_v27  ;;  %v2507_v39 = vpack.c.bf16 %v2491_v37, %v2491_v37 }
 0x539   : > { %v2434_v50 = vsel %vm2433_vm2, %v2408_v5, %v2432_v16  ;;  %v2535_v63 = vsub.f32 %v2487_v6, %v2519_v43  ;;  %v2521_v17 = vunpack.c.l.bf16 %v2505_v0  ;;  %v2522_v38 = vunpack.c.l.bf16 %v2506_v58 }
 0x53a   : > { %v2436_v2 = vadd.f32 %v2434_v50, %v2387_v12  ;;  %v2536_v59 = vsub.f32 %v2488_v48, %v2520_v51  ;;  %v2523_v13 = vunpack.c.l.bf16 %v2507_v39  ;;  %v2844_v19 = vunpack.c.l.b16 %v6640_v60 }
 0x53b   : > { %v2545_v34 = vpack.c.bf16 %v2535_v63, %v2534_v4  ;;  %v2537_v40 = vsub.f32 %v2489_v33, %v2521_v17  ;;  %v2538_v57 = vsub.f32 %v2490_v26, %v2522_v38  ;;  %v2845_v56 = vunpack.c.l.b16 %v6642_v46 }
 0x53c   : > { %2441 = vst.msk [vmem:[#allocation5] sm:$0x3] %vm2439_vm3, %v2436_v2  ;;  %v2539_v11 = vsub.f32 %v2491_v37, %v2523_v13  ;;  %v2846_v7 = vunpack.c.l.b16 %v6650_v31  ;;  %v2847_v14 = vunpack.c.l.b16 %v6652_v24  ;;  %v2848_v46 = vunpack.c.l.b16 %v2502_v41  ;;  %v2442_v37 = vld [vmem:[#allocation4 + $0xb0] sm:$0xff]  ;;  %v2443_v13 = vld [vmem:[#allocation4] sm:$0xff] }
 0x53d   : > { %v2546_v61 = vpack.c.bf16 %v2537_v40, %v2536_v59  ;;  %v2857_v36 = vpack.c.b16 %v2845_v56, %v2844_v19  ;;  %v2849_v50 = vunpack.c.l.b16 %v2503_v28  ;;  %v2851_v23 = vunpack.c.l.b16 %v2505_v0 }
 0x53e   : > { %v2547_v1 = vpack.c.bf16 %v2539_v11, %v2538_v57  ;;  %v2858_v25 = vpack.c.b16 %v2847_v14, %v2846_v7  ;;  %v2852_v24 = vunpack.c.l.b16 %v2506_v58  ;;  %v2444_v14 = vld [vmem:[#allocation4 + $0xd8] sm:$0xff] }
 0x53f   : > { %v2859_v2 = vpack.c.b16 %v2849_v50, %v2848_v46  ;;  %v2445_v50 = vld [vmem:[#allocation4 + $0x18] sm:$0xff] }
 0x544   : > { %2883 = vmatmul.bf16.gmra.mxu0 %v2855_v32 }
 0x545   : > { %2932 = vmatmul.bf16.gmra.mxu1 %v2855_v32 }
 0x546   : > { %2747 = vmatmul.bf16.gmra.mxu2 %v2543_v10 }
 0x547   : > { %2796 = vmatmul.bf16.gmra.mxu3 %v2543_v10  ;;  %v2850_v10 = vunpack.c.l.b16 %v2504_v27 }
 0x549   : > { %v2860_v45 = vpack.c.b16 %v2851_v23, %v2850_v10 }
 0x554   : > { %2888 = vmatmul.bf16.gmra.mxu0 %v2856_v22 }
 0x555   : > { %2937 = vmatmul.bf16.gmra.mxu1 %v2856_v22 }
 0x556   : > { %2752 = vmatmul.bf16.gmra.mxu2 %v2544_v8 }
 0x557   : > { %2801 = vmatmul.bf16.gmra.mxu3 %v2544_v8 }
 0x564   : > { %2893 = vmatmul.bf16.gmra.mxu0 %v2857_v36 }
 0x565   : > { %2942 = vmatmul.bf16.gmra.mxu1 %v2857_v36 }
 0x566   : > { %2757 = vmatmul.bf16.gmra.mxu2 %v2545_v34 }
 0x567   : > { %2806 = vmatmul.bf16.gmra.mxu3 %v2545_v34 }
 0x574   : > { %2898 = vmatmul.bf16.gmra.mxu0 %v2858_v25 }
 0x575   : > { %2947 = vmatmul.bf16.gmra.mxu1 %v2858_v25 }
 0x576   : > { %2762 = vmatmul.bf16.gmra.mxu2 %v2546_v61 }
 0x577   : > { %2811 = vmatmul.bf16.gmra.mxu3 %v2546_v61 }
 0x584   : > { %2903 = vmatmul.bf16.gmra.mxu0 %v2859_v2 }
 0x585   : > { %2952 = vmatmul.bf16.gmra.mxu1 %v2859_v2 }
 0x586   : > { %2767 = vmatmul.bf16.gmra.mxu2 %v2547_v1 }
 0x587   : > { %2816 = vmatmul.bf16.gmra.mxu3 %v2547_v1 }
 0x594   : > { %2908 = vmatmul.bf16.gmra.mxu0 %v2860_v45 }
 0x595   : > { %2957 = vmatmul.bf16.gmra.mxu1 %v2860_v45 }
 0x596   : > { %2976 = vmatmul.bf16.vlgmr.msra.gmra.mxu2 %v6654_v30 }
 0x597   : > { %3025 = vmatmul.bf16.vlgmr.msra.gmra.mxu3 %v6654_v30  ;;  %v2853_v30 = vunpack.c.l.b16 %v2507_v39 }
 0x599   : > { %v6676_v12 = vpop.f32.mrf.mxu2  ;;  %v2861_v35 = vpack.c.b16 %v2853_v30, %v2852_v24  ;;  %v2446_v30 = vld [vmem:[#allocation4 + $0x50] sm:$0xff] }
 0x59a   : > { %v6678_v5 = vpop.f32.mrf.mxu3 }
 0x5a1   : > { %v6680_v16 = vpop.f32.mrf.mxu2 }
 0x5a2   : > { %v6682_v60 = vpop.f32.mrf.mxu3 }
 0x5a4   : > { %2913 = vmatmul.bf16.gmra.mxu0 %v2861_v35 }
 0x5a5   : > { %2962 = vmatmul.bf16.gmra.mxu1 %v2861_v35 }
 0x5a6   : > { %2981 = vmatmul.bf16.gmra.mxu2 %v2855_v32 }
 0x5a7   : > { %3030 = vmatmul.bf16.gmra.mxu3 %v2855_v32 }
 0x5a9   : > { %v6684_v18 = vpop.f32.mrf.mxu2 }
 0x5aa   : > { %v6686_v62 = vpop.f32.mrf.mxu3 }
 0x5b1   : > { %v6688_v15 = vpop.f32.mrf.mxu2  ;;  %v2879_v43 = vpop.f32.mrf.mxu0 }
 0x5b2   : > { %v6690_v54 = vpop.f32.mrf.mxu3  ;;  %v2928_v4 = vpop.f32.mrf.mxu1  ;;  %v2880_v26 = vadd.f32 %v2879_v43, %v6676_v12 }
 0x5b3   : > { %v2929_v39 = vadd.f32 %v2928_v4, %v6678_v5 }
 0x5b6   : > { %2986 = vmatmul.bf16.gmra.mxu2 %v2856_v22 }
 0x5b7   : > { %3035 = vmatmul.bf16.gmra.mxu3 %v2856_v22 }
 0x5b9   : > { %v6692_v53 = vpop.f32.mrf.mxu2  ;;  %v2881_v48 = vpop.f32.mrf.mxu0 }
 0x5ba   : > { %v6694_v20 = vpop.f32.mrf.mxu3  ;;  %v2930_v21 = vpop.f32.mrf.mxu1 }
 0x5bb   : > { %v2931_v12 = vadd.f32 %v2930_v21, %v6682_v60 }
 0x5c1   : > { %v6696_v55 = vpop.f32.mrf.mxu2  ;;  %v2884_v0 = vpop.f32.mrf.mxu0 }
 0x5c2   : > { %v6698_v31 = vpop.f32.mrf.mxu3  ;;  %v2933_v51 = vpop.f32.mrf.mxu1 }
 0x5c6   : > { %2991 = vmatmul.bf16.gmra.mxu2 %v2857_v36 }
 0x5c7   : > { %3040 = vmatmul.bf16.gmra.mxu3 %v2857_v36  ;;  %v2882_v36 = vadd.f32 %v2881_v48, %v6680_v16  ;;  %v2934_v16 = vadd.f32 %v2933_v51, %v6686_v62  ;;  %v2447_v48 = vld [vmem:[#allocation4 + $0x68] sm:$0xff] }
 0x5c9   : > { %v6700_v42 = vpop.f32.mrf.mxu2  ;;  %v2886_v40 = vpop.f32.mrf.mxu0 }
 0x5ca   : > { %v6702_v47 = vpop.f32.mrf.mxu3  ;;  %v2935_v61 = vpop.f32.mrf.mxu1 }
 0x5d1   : > { %v6704_v9 = vpop.f32.mrf.mxu2  ;;  %v2889_v1 = vpop.f32.mrf.mxu0 }
 0x5d2   : > { %v6706_v8 = vpop.f32.mrf.mxu3  ;;  %v2938_v7 = vpop.f32.mrf.mxu1 }
 0x5d6   : > { %2996 = vmatmul.bf16.gmra.mxu2 %v2858_v25 }
 0x5d7   : > { %3045 = vmatmul.bf16.gmra.mxu3 %v2858_v25 }
 0x5d9   : > { %v6708_v49 = vpop.f32.mrf.mxu2  ;;  %v2891_v24 = vpop.f32.mrf.mxu0 }
 0x5da   : > { %v6710_v6 = vpop.f32.mrf.mxu3  ;;  %v2940_v4 = vpop.f32.mrf.mxu1 }
 0x5e1   : > { %v6712_v52 = vpop.f32.mrf.mxu2 }
 0x5e2   : > { %v6714_v3 = vpop.f32.mrf.mxu3 }
 0x5e6   : > { %3001 = vmatmul.bf16.gmra.mxu2 %v2859_v2 }
 0x5e7   : > { %3050 = vmatmul.bf16.gmra.mxu3 %v2859_v2 }
 0x5e9   : > { %v6716_v41 = vpop.f32.mrf.mxu2 }
 0x5ea   : > { %v6718_v28 = vpop.f32.mrf.mxu3 }
 0x5f1   : > { %v6720_v32 = vpop.f32.mrf.mxu2 }
 0x5f2   : > { %v6722_v29 = vpop.f32.mrf.mxu3 }
 0x5f6   : > { %3006 = vmatmul.bf16.gmra.mxu2 %v2860_v45 }
 0x5f7   : > { %3055 = vmatmul.bf16.gmra.mxu3 %v2860_v45  ;;  %v2885_v45 = vadd.f32 %v2884_v0, %v6684_v18  ;;  %v2936_v18 = vadd.f32 %v2935_v61, %v6690_v54 }
 0x5f9   : > { %v6724_v63 = vpop.f32.mrf.mxu2 }
 0x5fa   : > { %v6726_v34 = vpop.f32.mrf.mxu3 }
 0x601   : > { %v6728_v33 = vpop.f32.mrf.mxu2 }
 0x602   : > { %v6730_v44 = vpop.f32.mrf.mxu3 }
 0x606   : > { %3011 = vmatmul.bf16.gmra.mxu2 %v2861_v35 }
 0x607   : > { %3060 = vmatmul.bf16.gmra.mxu3 %v2861_v35 }
 0x609   : > { %v6732_v27 = vpop.f32.mrf.mxu2 }
 0x60a   : > { %v6734_v22 = vpop.f32.mrf.mxu3 }
 0x611   : > { %v6736_v17 = vpop.f32.mrf.mxu2 }
 0x612   : > { %v6738_v59 = vpop.f32.mrf.mxu3 }
 0x619   : > { %v2977_v58 = vpop.f32.mrf.mxu2 }
 0x61a   : > { %v3066_v38 = vadd.f32 %v2977_v58, %v2880_v26  ;;  %v3026_v57 = vpop.f32.mrf.mxu3  ;;  %v2887_v58 = vadd.f32 %v2886_v40, %v6688_v15  ;;  %v2939_v15 = vadd.f32 %v2938_v7, %v6694_v20 }
 0x61b   : > { %v3067_v19 = vadd.f32 %v3026_v57, %v2929_v39  ;;  %v2448_v39 = vld [vmem:[#allocation4 + $0x30] sm:$0xff]  ;;  %v2449_v57 = vld [vmem:[#allocation4 + $0x48] sm:$0xff] }
 0x61c   : > { %v3098_v11 = vadd.f32 %v3066_v38, %v2442_v37 }
 0x61d   : > { %v3099_v56 = vadd.f32 %v3067_v19, %v2443_v13  ;;  %v2894_v13 = vpop.f32.mrf.mxu0  ;;  %v2943_v19 = vpop.f32.mrf.mxu1 }
 0x61e   : > { %3130 = vst [vmem:[#allocation4 + $0xb0] sm:$0xff] %v3098_v11 }
 0x61f   : > { %3131 = vst [vmem:[#allocation4] sm:$0xff] %v3099_v56 }
 0x621   : > { %v2979_v25 = vpop.f32.mrf.mxu2 }
 0x622   : > { %v3068_v46 = vadd.f32 %v2979_v25, %v2882_v36  ;;  %v3028_v2 = vpop.f32.mrf.mxu3  ;;  %v2890_v36 = vadd.f32 %v2889_v1, %v6692_v53  ;;  %v2941_v53 = vadd.f32 %v2940_v4, %v6698_v31 }
 0x623   : > { %v3069_v10 = vadd.f32 %v3028_v2, %v2931_v12  ;;  %v2451_v12 = vld [vmem:[#allocation4 + $0x88] sm:$0xff] }
 0x624   : > { %v3100_v5 = vadd.f32 %v3068_v46, %v2444_v14  ;;  %v2450_v14 = vld [vmem:[#allocation4 + $0x80] sm:$0xff] }
 0x625   : > { %v3101_v23 = vadd.f32 %v3069_v10, %v2445_v50  ;;  %v2896_v50 = vpop.f32.mrf.mxu0  ;;  %v2892_v10 = vadd.f32 %v2891_v24, %v6696_v55  ;;  %v2944_v55 = vadd.f32 %v2943_v19, %v6702_v47 }
 0x626   : > { %3132 = vst [vmem:[#allocation4 + $0xd8] sm:$0xff] %v3100_v5  ;;  %v2945_v5 = vpop.f32.mrf.mxu1 }
 0x627   : > { %3133 = vst [vmem:[#allocation4 + $0x18] sm:$0xff] %v3101_v23  ;;  %v2452_v23 = vld [vmem:[#allocation4 + $0xe8] sm:$0xff] }
 0x629   : > { %v2982_v35 = vpop.f32.mrf.mxu2 }
 0x62a   : > { %v3070_v43 = vadd.f32 %v2982_v35, %v2885_v45  ;;  %v3031_v26 = vpop.f32.mrf.mxu3 }
 0x62b   : > { %v3071_v21 = vadd.f32 %v3031_v26, %v2934_v16 }
 0x62c   : > { %v3102_v60 = vadd.f32 %v3070_v43, %v2446_v30  ;;  %v2453_v30 = vld [vmem:[#allocation4 + $0xb8] sm:$0xff] }
 0x62d   : > { %v3103_v37 = vadd.f32 %v3071_v21, %v2447_v48  ;;  %v2899_v43 = vpop.f32.mrf.mxu0  ;;  %v2895_v48 = vadd.f32 %v2894_v13, %v6700_v42  ;;  %v2946_v42 = vadd.f32 %v2945_v5, %v6706_v8  ;;  %v2460_v5 = vld [vmem:[#allocation4 + $0x40] sm:$0xff] }
 0x62e   : > { %3134 = vst [vmem:[#allocation4 + $0x50] sm:$0xff] %v3102_v60  ;;  %v2948_v26 = vpop.f32.mrf.mxu1  ;;  %v2454_v60 = vld [vmem:[#allocation4 + $0x60] sm:$0xff] }
 0x62f   : > { %3135 = vst [vmem:[#allocation4 + $0x68] sm:$0xff] %v3103_v37  ;;  %v2455_v37 = vld [vmem:[#allocation4 + $0xf0] sm:$0xff] }
 0x631   : > { %v2984_v38 = vpop.f32.mrf.mxu2 }
 0x632   : > { %v3072_v0 = vadd.f32 %v2984_v38, %v2887_v58  ;;  %v3033_v11 = vpop.f32.mrf.mxu3  ;;  %v2897_v38 = vadd.f32 %v2896_v50, %v6704_v9  ;;  %v2949_v9 = vadd.f32 %v2948_v26, %v6710_v6  ;;  %v2463_v26 = vld [vmem:[#allocation4 + $0x90] sm:$0xff] }
 0x633   : > { %v3073_v51 = vadd.f32 %v3033_v11, %v2936_v18 }
 0x634   : > { %v3104_v62 = vadd.f32 %v3072_v0, %v2448_v39  ;;  %v2456_v0 = vld [vmem:[#allocation4 + $0x8] sm:$0xff] }
 0x635   : > { %v3105_v56 = vadd.f32 %v3073_v51, %v2449_v57  ;;  %v2901_v18 = vpop.f32.mrf.mxu0 }
 0x636   : > { %3136 = vst [vmem:[#allocation4 + $0x30] sm:$0xff] %v3104_v62  ;;  %v2950_v11 = vpop.f32.mrf.mxu1  ;;  %v2457_v62 = vld [vmem:[#allocation4 + $0x78] sm:$0xff] }
 0x637   : > { %3137 = vst [vmem:[#allocation4 + $0x48] sm:$0xff] %v3105_v56 }
 0x639   : > { %v2987_v25 = vpop.f32.mrf.mxu2 }
 0x63a   : > { %v3074_v40 = vadd.f32 %v2987_v25, %v2890_v36  ;;  %v3036_v46 = vpop.f32.mrf.mxu3  ;;  %v2900_v36 = vadd.f32 %v2899_v43, %v6708_v49  ;;  %v2951_v49 = vadd.f32 %v2950_v11, %v6714_v3  ;;  %v2466_v11 = vld [vmem:[#allocation4 + $0xa8] sm:$0xff] }
 0x63b   : > { %v3075_v61 = vadd.f32 %v3036_v46, %v2939_v15 }
 0x63c   : > { %v3106_v54 = vadd.f32 %v3074_v40, %v2450_v14  ;;  %v2458_v14 = vld [vmem:[#allocation4 + $0x38] sm:$0xff] }
 0x63d   : > { %v3107_v2 = vadd.f32 %v3075_v61, %v2451_v12  ;;  %v2904_v40 = vpop.f32.mrf.mxu0  ;;  %v2459_v12 = vld [vmem:[#allocation4 + $0x58] sm:$0xff] }
 0x63e   : > { %3138 = vst [vmem:[#allocation4 + $0x80] sm:$0xff] %v3106_v54  ;;  %v2953_v61 = vpop.f32.mrf.mxu1 }
 0x63f   : > { %3139 = vst [vmem:[#allocation4 + $0x88] sm:$0xff] %v3107_v2  ;;  %v2902_v2 = vadd.f32 %v2901_v18, %v6712_v52  ;;  %v2954_v52 = vadd.f32 %v2953_v61, %v6718_v28 }
 0x641   : > { %v2989_v45 = vpop.f32.mrf.mxu2 }
 0x642   : > { %v3076_v1 = vadd.f32 %v2989_v45, %v2892_v10  ;;  %v3038_v35 = vpop.f32.mrf.mxu3  ;;  %v2461_v45 = vld [vmem:[#allocation4 + $0xc8] sm:$0xff] }
 0x643   : > { %v3077_v7 = vadd.f32 %v3038_v35, %v2941_v53 }
 0x644   : > { %v3108_v20 = vadd.f32 %v3076_v1, %v2452_v23 }
 0x645   : > { %v3109_v16 = vadd.f32 %v3077_v7, %v2453_v30  ;;  %v2906_v30 = vpop.f32.mrf.mxu0  ;;  %v2905_v7 = vadd.f32 %v2904_v40, %v6716_v41 }
 0x646   : > { %3140 = vst [vmem:[#allocation4 + $0xe8] sm:$0xff] %v3108_v20  ;;  %v2955_v20 = vpop.f32.mrf.mxu1 }
 0x647   : > { %3141 = vst [vmem:[#allocation4 + $0xb8] sm:$0xff] %v3109_v16  ;;  %v2462_v16 = vld [vmem:[#allocation4 + $0xe0] sm:$0xff]  ;;  %v2956_v41 = vadd.f32 %v2955_v20, %v6722_v29 }
 0x648   : > { %v2472_v20 = vld [vmem:[#allocation4 + $0x20] sm:$0xff] }
 0x649   : > { %v2992_v21 = vpop.f32.mrf.mxu2 }
 0x64a   : > { %v3078_v24 = vadd.f32 %v2992_v21, %v2895_v48  ;;  %v3041_v58 = vpop.f32.mrf.mxu3 }
 0x64b   : > { %v3079_v4 = vadd.f32 %v3041_v58, %v2944_v55 }
 0x64c   : > { %v3110_v31 = vadd.f32 %v3078_v24, %v2454_v60 }
 0x64d   : > { %v3111_v39 = vadd.f32 %v3079_v4, %v2455_v37  ;;  %v2909_v24 = vpop.f32.mrf.mxu0  ;;  %v2907_v37 = vadd.f32 %v2906_v30, %v6720_v32 }
 0x64e   : > { %3142 = vst [vmem:[#allocation4 + $0x60] sm:$0xff] %v3110_v31  ;;  %v2958_v58 = vpop.f32.mrf.mxu1  ;;  %v2464_v31 = vld [vmem:[#allocation4 + $0x70] sm:$0xff] }
 0x64f   : > { %3143 = vst [vmem:[#allocation4 + $0xf0] sm:$0xff] %v3111_v39  ;;  %v2959_v32 = vadd.f32 %v2958_v58, %v6726_v34 }
 0x651   : > { %v2994_v57 = vpop.f32.mrf.mxu2 }
 0x652   : > { %v3080_v13 = vadd.f32 %v2994_v57, %v2897_v38  ;;  %v3043_v51 = vpop.f32.mrf.mxu3  ;;  %v2465_v38 = vld [vmem:[#allocation4 + $0xc0] sm:$0xff] }
 0x653   : > { %v3081_v19 = vadd.f32 %v3043_v51, %v2946_v42  ;;  %v2910_v42 = vadd.f32 %v2909_v24, %v6724_v63 }
 0x654   : > { %v3112_v47 = vadd.f32 %v3080_v13, %v2456_v0 }
 0x655   : > { %v3113_v56 = vadd.f32 %v3081_v19, %v2457_v62  ;;  %v2911_v13 = vpop.f32.mrf.mxu0  ;;  %v2467_v19 = vld [vmem:[#allocation4 + $0xd0] sm:$0xff] }
 0x656   : > { %3144 = vst [vmem:[#allocation4 + $0x8] sm:$0xff] %v3112_v47  ;;  %v2960_v47 = vpop.f32.mrf.mxu1 }
 0x657   : > { %3145 = vst [vmem:[#allocation4 + $0x78] sm:$0xff] %v3113_v56  ;;  %v2961_v63 = vadd.f32 %v2960_v47, %v6730_v44 }
 0x659   : > { %v2997_v25 = vpop.f32.mrf.mxu2 }
 0x65a   : > { %v3082_v15 = vadd.f32 %v2997_v25, %v2900_v36  ;;  %v3046_v46 = vpop.f32.mrf.mxu3  ;;  %v2912_v25 = vadd.f32 %v2911_v13, %v6728_v33 }
 0x65b   : > { %v3083_v54 = vadd.f32 %v3046_v46, %v2949_v9  ;;  %v2468_v9 = vld [vmem:[#allocation4 + $0x10] sm:$0xff]  ;;  %v2469_v46 = vld [vmem:[#allocation4 + $0x28] sm:$0xff] }
 0x65c   : > { %v3114_v8 = vadd.f32 %v3082_v15, %v2458_v14 }
 0x65d   : > { %v3115_v50 = vadd.f32 %v3083_v54, %v2459_v12  ;;  %v2914_v12 = vpop.f32.mrf.mxu0 }
 0x65e   : > { %3146 = vst [vmem:[#allocation4 + $0x38] sm:$0xff] %v3114_v8  ;;  %v2963_v61 = vpop.f32.mrf.mxu1 }
 0x65f   : > { %3147 = vst [vmem:[#allocation4 + $0x58] sm:$0xff] %v3115_v50  ;;  %v2964_v33 = vadd.f32 %v2963_v61, %v6734_v22 }
 0x661   : > { %v2999_v10 = vpop.f32.mrf.mxu2 }
 0x662   : > { %v3084_v23 = vadd.f32 %v2999_v10, %v2902_v2  ;;  %v3048_v53 = vpop.f32.mrf.mxu3  ;;  %v2915_v2 = vadd.f32 %v2914_v12, %v6732_v27 }
 0x663   : > { %v3085_v1 = vadd.f32 %v3048_v53, %v2951_v49 }
 0x664   : > { %v3116_v6 = vadd.f32 %v3084_v23, %v2460_v5  ;;  %v2470_v5 = vld [vmem:[#allocation4 + $0xa0] sm:$0xff]  ;;  %v2471_v23 = vld [vmem:[#allocation4 + $0xf8] sm:$0xff] }
 0x665   : > { %v3117_v35 = vadd.f32 %v3085_v1, %v2461_v45 }
 0x666   : > { %3148 = vst [vmem:[#allocation4 + $0x40] sm:$0xff] %v3116_v6  ;;  %v2916_v6 = vpop.f32.mrf.mxu0  ;;  %v2965_v30 = vpop.f32.mrf.mxu1 }
 0x667   : > { %3149 = vst [vmem:[#allocation4 + $0xc8] sm:$0xff] %v3117_v35  ;;  %v2917_v35 = vadd.f32 %v2916_v6, %v6736_v17  ;;  %v2966_v27 = vadd.f32 %v2965_v30, %v6738_v59 }
 0x669   : > { %v3002_v43 = vpop.f32.mrf.mxu2 }
 0x66a   : > { %v3086_v48 = vadd.f32 %v3002_v43, %v2905_v7  ;;  %v3051_v60 = vpop.f32.mrf.mxu3  ;;  %v2473_v43 = vld [vmem:[#allocation4 + $0x98] sm:$0xff] }
 0x66b   : > { %v3087_v21 = vadd.f32 %v3051_v60, %v2954_v52 }
 0x66c   : > { %v3118_v3 = vadd.f32 %v3086_v48, %v2462_v16 }
 0x66d   : > { %v3119_v55 = vadd.f32 %v3087_v21, %v2463_v26 }
 0x66e   : > { %3150 = vst [vmem:[#allocation4 + $0xe0] sm:$0xff] %v3118_v3 }
 0x66f   : > { %3151 = vst [vmem:[#allocation4 + $0x90] sm:$0xff] %v3119_v55 }
 0x671   : > { %v3004_v4 = vpop.f32.mrf.mxu2 }
 0x672   : > { %v3088_v39 = vadd.f32 %v3004_v4, %v2907_v37  ;;  %v3053_v18 = vpop.f32.mrf.mxu3 }
 0x673   : > { %v3089_v0 = vadd.f32 %v3053_v18, %v2956_v41 }
 0x674   : > { %v3120_v28 = vadd.f32 %v3088_v39, %v2464_v31 }
 0x675   : > { %v3121_v57 = vadd.f32 %v3089_v0, %v2465_v38 }
 0x676   : > { %3152 = vst [vmem:[#allocation4 + $0x70] sm:$0xff] %v3120_v28 }
 0x677   : > { %3153 = vst [vmem:[#allocation4 + $0xc0] sm:$0xff] %v3121_v57 }
 0x679   : > { %v3007_v62 = vpop.f32.mrf.mxu2 }
 0x67a   : > { %v3090_v51 = vadd.f32 %v3007_v62, %v2910_v42  ;;  %v3056_v56 = vpop.f32.mrf.mxu3 }
 0x67b   : > { %v3091_v36 = vadd.f32 %v3056_v56, %v2959_v32 }
 0x67c   : > { %v3122_v29 = vadd.f32 %v3090_v51, %v2466_v11 }
 0x67d   : > { %v3123_v14 = vadd.f32 %v3091_v36, %v2467_v19 }
 0x67e   : > { %3154 = vst [vmem:[#allocation4 + $0xa8] sm:$0xff] %v3122_v29 }
 0x67f   : > { %3155 = vst [vmem:[#allocation4 + $0xd0] sm:$0xff] %v3123_v14 }
 0x681   : > { %v3009_v15 = vpop.f32.mrf.mxu2 }
 0x682   : > { %v3092_v40 = vadd.f32 %v3009_v15, %v2912_v25  ;;  %v3058_v8 = vpop.f32.mrf.mxu3 }
 0x683   : > { %v3093_v54 = vadd.f32 %v3058_v8, %v2961_v63 }
 0x684   : > { %v3124_v34 = vadd.f32 %v3092_v40, %v2468_v9 }
 0x685   : > { %v3125_v50 = vadd.f32 %v3093_v54, %v2469_v46 }
 0x686   : > { %3156 = vst [vmem:[#allocation4 + $0x10] sm:$0xff] %v3124_v34 }
 0x687   : > { %3157 = vst [vmem:[#allocation4 + $0x28] sm:$0xff] %v3125_v50 }
 0x689   : > { %v3012_v10 = vpop.f32.mrf.mxu2 }
 0x68a   : > { %v3094_v49 = vadd.f32 %v3012_v10, %v2915_v2  ;;  %v3061_v45 = vpop.f32.mrf.mxu3 }
 0x68b   : > { %v3095_v53 = vadd.f32 %v3061_v45, %v2964_v33 }
 0x68c   : > { %v3126_v44 = vadd.f32 %v3094_v49, %v2470_v5 }
 0x68d   : > { %v3127_v1 = vadd.f32 %v3095_v53, %v2471_v23 }
 0x68e   : > { %3158 = vst [vmem:[#allocation4 + $0xa0] sm:$0xff] %v3126_v44 }
 0x68f   : > { %3159 = vst [vmem:[#allocation4 + $0xf8] sm:$0xff] %v3127_v1 }
 0x691   : > { %v3014_v7 = vpop.f32.mrf.mxu2 }
 0x692   : > { %v3096_v16 = vadd.f32 %v3014_v7, %v2917_v35  ;;  %v3063_v52 = vpop.f32.mrf.mxu3 }
 0x693   : > { %v3097_v48 = vadd.f32 %v3063_v52, %v2966_v27  ;;  %3165 = sbr.rel (%p4460_p7) target bundleno = 2207 (0x89f), region = 52 }
 0x694   : > { %v3128_v22 = vadd.f32 %v3096_v16, %v2472_v20 }
 0x695   : > { %v3129_v26 = vadd.f32 %v3097_v48, %v2473_v43 }
 0x696   : > { %3160 = vst [vmem:[#allocation4 + $0x20] sm:$0xff] %v3128_v22 }
 0x697   : > { %3161 = vst [vmem:[#allocation4 + $0x98] sm:$0xff] %v3129_v26 }
 0x698   : > { %v3198_v60 = vld [vmem:[#allocation5] sm:$0x3]  ;;  %v3244_v39 = vld [vmem:[#allocation4 + $0xf8] sm:$0xff]  ;;  %v3195_v18 = vld [vmem:[%s4770_s16 + $0xe8] sm:$0xff]  ;;  %vm4146_vm8 = vcmask 7168  }
 0x699   : > { %v3199_v3 = vadd.f32 1e-09, %v3198_v60  ;;  %v3243_v41 = vld [vmem:[#allocation4 + $0xa0] sm:$0xff]  ;;  %v3239_v42 = vld [vmem:[#allocation4 + $0xa8] sm:$0xff]  ;;  %v3240_v62 = vld [vmem:[#allocation4 + $0xd0] sm:$0xff] }
 0x69a   : > { %v3194_v38 = vld [vmem:[%s4770_s16 + $0xe0] sm:$0xff]  ;;  %v3241_v32 = vld [vmem:[#allocation4 + $0x10] sm:$0xff]  ;;  %v3242_v51 = vld [vmem:[#allocation4 + $0x28] sm:$0xff] }
 0x69b   : > { %4645 = vrcp.f32 %v3199_v3  ;;  %v3211_v55 = vand.u32 2147483648, %v3199_v3  ;;  %vm3205_vm4 = vweird.f32 %v3199_v3  ;;  %v3209_v24 = vand.u32 2147483647, %v3199_v3  ;;  %v3196_v47 = vld [vmem:[%s4770_s16 + $0xf0] sm:$0xff]  ;;  %v3197_v19 = vld [vmem:[%s4770_s16 + $0xf8] sm:$0xff]  ;;  %v3190_v56 = vld [vmem:[%s4770_s16 + $0xc0] sm:$0xff] }
 0x69c   : > { %v3191_v9 = vld [vmem:[%s4770_s16 + $0xc8] sm:$0xff]  ;;  %v3192_v15 = vld [vmem:[%s4770_s16 + $0xd0] sm:$0xff]  ;;  %v3193_v63 = vld [vmem:[%s4770_s16 + $0xd8] sm:$0xff] }
 0x69d   : > { %v3212_v58 = vor.u32 1.1754944e-38, %v3211_v55  ;;  %vm3210_vm7 = vcmp.eq.f32.partialorder %v3209_v24, 8.507059e+37  ;;  %v3245_v0 = vld [vmem:[#allocation4 + $0x20] sm:$0xff]  ;;  %v3236_v54 = vld [vmem:[#allocation4 + $0x90] sm:$0xff]  ;;  %v3187_v27 = vld [vmem:[%s4770_s16 + $0xa8] sm:$0xff] }
 0x69e   : > { %v3246_v57 = vld [vmem:[#allocation4 + $0x98] sm:$0xff]  ;;  %v3235_v34 = vld [vmem:[#allocation4 + $0xe0] sm:$0xff]  ;;  %v3237_v10 = vld [vmem:[#allocation4 + $0x70] sm:$0xff] }
 0x69f   : > { %v3238_v33 = vld [vmem:[#allocation4 + $0xc0] sm:$0xff]  ;;  %v3188_v60 = vld [vmem:[%s4770_s16 + $0xb0] sm:$0xff]  ;;  %v3231_v24 = vld [vmem:[#allocation4 + $0x38] sm:$0xff] }
 0x6a0   : > { %v3186_v7 = vld [vmem:[%s4770_s16 + $0xa0] sm:$0xff] }
 0x6a1   : > { %v4646_v17 = vpop.eup %4645 }
 0x6a2   : > { %v3201_v21 = vmul.f32 %v4646_v17, %v3199_v3  ;;  %vm3206_vm5 = vweird.f32 %v4646_v17  ;;  %v3189_v3 = vld [vmem:[%s4770_s16 + $0xb8] sm:$0xff] }
 0x6a3   : > { %vm3207_vm6 = vmor %vm3205_vm4, %vm3206_vm5 }
 0x6a4   : > { %v3202_v59 = vsub.f32 1.0, %v3201_v21 }
 0x6a6   : > { %v3203_v37 = vmul.f32 %v4646_v17, %v3202_v59 }
 0x6a8   : > { %v3204_v31 = vadd.f32 %v4646_v17, %v3203_v37  ;;  %v3232_v37 = vld [vmem:[#allocation4 + $0x58] sm:$0xff] }
 0x6aa   : > { %v3208_v4 = vsel %vm3207_vm6, %v4646_v17, %v3204_v31 }
 0x6ab   : > { %v3213_v28 = vsel %vm3210_vm7, %v3212_v58, %v3208_v4 }
 0x6ac   : > { %v6775_v13 = vperm.slane %v3213_v28, 0  ;;  %v6777_v11 = vperm.slane %v3213_v28, 1 }
 0x6ae   : > { %v3280_v29 = vmul.f32 %v6775_v13, %v3243_v41  ;;  %v3281_v36 = vmul.f32 %v6777_v11, %v3244_v39  ;;  %v3282_v14 = vmul.f32 %v6775_v13, %v3245_v0  ;;  %v3283_v25 = vmul.f32 %v6777_v11, %v3246_v57  ;;  %v3233_v39 = vld [vmem:[#allocation4 + $0x40] sm:$0xff] }
 0x6af   : > { %v3276_v40 = vmul.f32 %v6775_v13, %v3239_v42  ;;  %v3277_v12 = vmul.f32 %v6777_v11, %v3240_v62  ;;  %v3278_v46 = vmul.f32 %v6775_v13, %v3241_v32  ;;  %v3279_v8 = vmul.f32 %v6777_v11, %v3242_v51  ;;  %v3182_v42 = vld [vmem:[%s4770_s16 + $0x80] sm:$0xff]  ;;  %v3183_v62 = vld [vmem:[%s4770_s16 + $0x88] sm:$0xff]  ;;  %v3184_v51 = vld [vmem:[%s4770_s16 + $0x90] sm:$0xff] }
 0x6b0   : > { %v6793_v61 = vsub.f32 %v3194_v38, %v3280_v29  ;;  %v6795_v50 = vsub.f32 %v3195_v18, %v3281_v36  ;;  %v6797_v2 = vsub.f32 %v3196_v47, %v3282_v14  ;;  %v6799_v5 = vsub.f32 %v3197_v19, %v3283_v25  ;;  %v3234_v38 = vld [vmem:[#allocation4 + $0xc8] sm:$0xff]  ;;  %v3185_v47 = vld [vmem:[%s4770_s16 + $0x98] sm:$0xff]  ;;  %v3227_v25 = vld [vmem:[#allocation4 + $0x60] sm:$0xff] }
 0x6b1   : > { %v6801_v49 = vsub.f32 %v3190_v56, %v3276_v40  ;;  %v6803_v23 = vsub.f32 %v3191_v9, %v3277_v12  ;;  %v6805_v45 = vsub.f32 %v3192_v15, %v3278_v46  ;;  %v6807_v44 = vsub.f32 %v3193_v63, %v3279_v8  ;;  %v3228_v9 = vld [vmem:[#allocation4 + $0xf0] sm:$0xff] }
 0x6b2   : > { %v6811_v53 = vpack.c.bf16 %v6795_v50, %v6793_v61  ;;  %v6815_v6 = vpack.c.bf16 %v6799_v5, %v6797_v2  ;;  %v3272_v1 = vmul.f32 %v6775_v13, %v3235_v34  ;;  %v3273_v30 = vmul.f32 %v6777_v11, %v3236_v54 }
 0x6b3   : > { %v6821_v35 = vpack.c.bf16 %v6803_v23, %v6801_v49  ;;  %v6825_v20 = vpack.c.bf16 %v6807_v44, %v6805_v45  ;;  %v3274_v16 = vmul.f32 %v6775_v13, %v3237_v10  ;;  %v3275_v43 = vmul.f32 %v6777_v11, %v3238_v33  ;;  %v3229_v10 = vld [vmem:[#allocation4 + $0x8] sm:$0xff]  ;;  %v3230_v33 = vld [vmem:[#allocation4 + $0x78] sm:$0xff] }
 0x6b4   : > { %v3528_v52 = vunpack.c.l.b16 %v6811_v53  ;;  %v3530_v22 = vunpack.c.l.b16 %v6815_v6  ;;  %v3529_v48 = vunpack.c.h.b16 %v6811_v53  ;;  %v3531_v26 = vunpack.c.h.b16 %v6815_v6 }
 0x6b5   : > { %v3524_v17 = vunpack.c.l.b16 %v6821_v35  ;;  %v3526_v21 = vunpack.c.l.b16 %v6825_v20  ;;  %v3525_v55 = vunpack.c.h.b16 %v6821_v35  ;;  %v3527_v59 = vunpack.c.h.b16 %v6825_v20 }
 0x6b6   : > { %v6841_v58 = vpack.c.b16 %v3530_v22, %v3528_v52  ;;  %v6843_v31 = vpack.c.b16 %v3531_v26, %v3529_v48  ;;  %v6845_v4 = vsub.f32 %v3186_v7, %v3272_v1  ;;  %v6847_v41 = vsub.f32 %v3187_v27, %v3273_v30  ;;  %v3178_v30 = vld [vmem:[%s4770_s16 + $0x60] sm:$0xff]  ;;  %v3179_v7 = vld [vmem:[%s4770_s16 + $0x68] sm:$0xff]  ;;  %v3180_v48 = vld [vmem:[%s4770_s16 + $0x70] sm:$0xff] }
 0x6b7   : > { %v6849_v18 = vpack.c.b16 %v3526_v21, %v3524_v17  ;;  %v6851_v28 = vpack.c.b16 %v3527_v59, %v3525_v55  ;;  %v6853_v0 = vsub.f32 %v3188_v60, %v3274_v16  ;;  %v6855_v57 = vsub.f32 %v3189_v3, %v3275_v43  ;;  %v3181_v26 = vld [vmem:[%s4770_s16 + $0x78] sm:$0xff]  ;;  %v3223_v60 = vld [vmem:[#allocation4 + $0x80] sm:$0xff] }
 0x6b8   : > { %3564 = vmatpush.bf16.msra.mxu0 %v6841_v58  ;;  %4483 = vmatpush.bf16.msra.mxu2 %v6841_v58  ;;  %v6863_v32 = vpack.c.bf16 %v6847_v41, %v6845_v4  ;;  %v3268_v19 = vmul.f32 %v6775_v13, %v3231_v24  ;;  %v3269_v56 = vmul.f32 %v6777_v11, %v3232_v37 }
 0x6b9   : > { %3613 = vmatpush.bf16.msra.mxu1 %v6843_v31  ;;  %4491 = vmatpush.bf16.msra.mxu3 %v6843_v31  ;;  %v6873_v29 = vpack.c.bf16 %v6855_v57, %v6853_v0  ;;  %v3270_v36 = vmul.f32 %v6775_v13, %v3233_v39  ;;  %v3271_v14 = vmul.f32 %v6777_v11, %v3234_v38  ;;  %v3224_v38 = vld [vmem:[#allocation4 + $0x88] sm:$0xff] }
 0x6ba   : > { %v3520_v15 = vunpack.c.l.b16 %v6863_v32  ;;  %v3521_v63 = vunpack.c.h.b16 %v6863_v32  ;;  %v6879_v40 = vsub.f32 %v3182_v42, %v3268_v19  ;;  %v6881_v12 = vsub.f32 %v3183_v62, %v3269_v56  ;;  %v3225_v42 = vld [vmem:[#allocation4 + $0xe8] sm:$0xff]  ;;  %v3226_v62 = vld [vmem:[#allocation4 + $0xb8] sm:$0xff]  ;;  %v3174_v19 = vld [vmem:[%s4770_s16 + $0x40] sm:$0xff] }
 0x6bb   : > { %v3522_v46 = vunpack.c.l.b16 %v6873_v29  ;;  %v3523_v8 = vunpack.c.h.b16 %v6873_v29  ;;  %v6885_v34 = vsub.f32 %v3184_v51, %v3270_v36  ;;  %v6887_v54 = vsub.f32 %v3185_v47, %v3271_v14  ;;  %v3219_v36 = vld [vmem:[#allocation4 + $0x50] sm:$0xff] }
 0x6bc   : > { %3565 = vmatpush.bf16.msra.mxu0 %v6849_v18  ;;  %4484 = vmatpush.bf16.msra.mxu2 %v6849_v18  ;;  %v6893_v1 = vpack.c.bf16 %v6881_v12, %v6879_v40  ;;  %v3264_v27 = vmul.f32 %v6775_v13, %v3227_v25  ;;  %v3265_v16 = vmul.f32 %v6777_v11, %v3228_v9 }
 0x6bd   : > { %3614 = vmatpush.bf16.msra.mxu1 %v6851_v28  ;;  %4492 = vmatpush.bf16.msra.mxu3 %v6851_v28  ;;  %v6901_v43 = vpack.c.b16 %v3522_v46, %v3520_v15  ;;  %v6903_v52 = vpack.c.b16 %v3523_v8, %v3521_v63  ;;  %v6907_v22 = vpack.c.bf16 %v6887_v54, %v6885_v34  ;;  %v3175_v15 = vld [vmem:[%s4770_s16 + $0x48] sm:$0xff]  ;;  %v3176_v63 = vld [vmem:[%s4770_s16 + $0x50] sm:$0xff]  ;;  %v3177_v8 = vld [vmem:[%s4770_s16 + $0x58] sm:$0xff] }
 0x6be   : > { %v3516_v3 = vunpack.c.l.b16 %v6893_v1  ;;  %v3517_v17 = vunpack.c.h.b16 %v6893_v1  ;;  %v3266_v21 = vmul.f32 %v6775_v13, %v3229_v10  ;;  %v3267_v55 = vmul.f32 %v6777_v11, %v3230_v33 }
 0x6bf   : > { %v3518_v59 = vunpack.c.l.b16 %v6907_v22  ;;  %v3519_v24 = vunpack.c.h.b16 %v6907_v22  ;;  %v6917_v37 = vsub.f32 %v3178_v30, %v3264_v27  ;;  %v6919_v39 = vsub.f32 %v3179_v7, %v3265_v16  ;;  %v3220_v7 = vld [vmem:[#allocation4 + $0x68] sm:$0xff]  ;;  %v3221_v27 = vld [vmem:[#allocation4 + $0x30] sm:$0xff] }
 0x6c0   : > { %3566 = vmatpush.bf16.msra.mxu0 %v6901_v43  ;;  %4485 = vmatpush.bf16.msra.mxu2 %v6901_v43  ;;  %v6923_v51 = vsub.f32 %v3180_v48, %v3266_v21  ;;  %v6925_v47 = vsub.f32 %v3181_v26, %v3267_v55  ;;  %v3260_v56 = vmul.f32 %v6775_v13, %v3223_v60  ;;  %v3222_v60 = vld [vmem:[#allocation4 + $0x48] sm:$0xff] }
 0x6c1   : > { %7693 = vst [vmem:[#allocation39_spill] sm:$0xff] %v6919_v39  ;;  %3615 = vmatpush.bf16.msra.mxu1 %v6903_v52  ;;  %4493 = vmatpush.bf16.msra.mxu3 %v6903_v52  ;;  %v6931_v14 = vpack.c.b16 %v3518_v59, %v3516_v3  ;;  %v6933_v25 = vpack.c.b16 %v3519_v24, %v3517_v17  ;;  %v3170_v24 = vld [vmem:[%s4770_s16 + $0x20] sm:$0xff] }
 0x6c2   : > { %7694 = vst [vmem:[#allocation40_spill] sm:$0xff] %v6925_v47  ;;  %v6937_v9 = vpack.c.bf16 %v6919_v39, %v6917_v37  ;;  %v6943_v46 = vpack.c.bf16 %v6925_v47, %v6923_v51  ;;  %v3261_v10 = vmul.f32 %v6777_v11, %v3224_v38  ;;  %v3262_v33 = vmul.f32 %v6775_v13, %v3225_v42  ;;  %v3171_v38 = vld [vmem:[%s4770_s16 + $0x28] sm:$0xff]  ;;  %v3172_v42 = vld [vmem:[%s4770_s16 + $0x30] sm:$0xff]  ;;  %v3216_v39 = vld [vmem:[#allocation4] sm:$0xff] }
 0x6c3   : > { %v3263_v30 = vmul.f32 %v6777_v11, %v3226_v62  ;;  %v6951_v26 = vsub.f32 %v3174_v19, %v3260_v56  ;;  %v3256_v3 = vmul.f32 %v6775_v13, %v3219_v36  ;;  %v3173_v19 = vld [vmem:[%s4770_s16 + $0x38] sm:$0xff]  ;;  %v3257_v56 = vmul.f32 %v6777_v11, %v3220_v7  ;;  %v3215_v47 = vld [vmem:[#allocation4 + $0xb0] sm:$0xff] }
 0x6c4   : > { %v3512_v16 = vunpack.c.l.b16 %v6937_v9  ;;  %v3513_v48 = vunpack.c.h.b16 %v6937_v9  ;;  %3567 = vmatpush.bf16.msra.mxu0 %v6931_v14  ;;  %4486 = vmatpush.bf16.msra.mxu2 %v6931_v14  ;;  %v3514_v17 = vunpack.c.l.b16 %v6943_v46  ;;  %v3515_v21 = vunpack.c.h.b16 %v6943_v46 }
 0x6c5   : > { %7695 = vst [vmem:[#allocation41_spill] sm:$0xff] %v6951_v26  ;;  %v6958_v55 = vsub.f32 %v3175_v15, %v3261_v10  ;;  %v6960_v59 = vsub.f32 %v3176_v63, %v3262_v33  ;;  %3616 = vmatpush.bf16.msra.mxu1 %v6933_v25  ;;  %4494 = vmatpush.bf16.msra.mxu3 %v6933_v25 }
 0x6c6   : > { %v6967_v62 = vsub.f32 %v3177_v8, %v3263_v30  ;;  %v3258_v36 = vmul.f32 %v6775_v13, %v3221_v27  ;;  %v6972_v15 = vpack.c.b16 %v3514_v17, %v3512_v16  ;;  %v6974_v63 = vpack.c.b16 %v3515_v21, %v3513_v48  ;;  %v3166_v16 = vld [vmem:[%s4770_s16] sm:$0xff]  ;;  %v3217_v48 = vld [vmem:[#allocation4 + $0xd8] sm:$0xff] }
 0x6c7   : > { %7696 = vst [vmem:[#allocation42_spill] sm:$0xff] %v6958_v55  ;;  %v6978_v10 = vpack.c.bf16 %v6958_v55, %v6951_v26  ;;  %v3259_v33 = vmul.f32 %v6777_v11, %v3222_v60  ;;  %v6985_v30 = vsub.f32 %v3170_v24, %v3256_v3  ;;  %v6987_v7 = vsub.f32 %v3171_v38, %v3257_v56  ;;  %v3218_v17 = vld [vmem:[#allocation4 + $0x18] sm:$0xff] }
 0x6c8   : > { %7697 = vst [vmem:[#allocation43_spill] sm:$0xff] %v6960_v59  ;;  %v6983_v8 = vpack.c.bf16 %v6967_v62, %v6960_v59  ;;  %v6989_v27 = vsub.f32 %v3172_v42, %v3258_v36  ;;  %3568 = vmatpush.bf16.msra.mxu0 %v6972_v15  ;;  %4487 = vmatpush.bf16.msra.mxu2 %v6972_v15  ;;  %v3167_v36 = vld [vmem:[%s4770_s16 + $0x8] sm:$0xff] }
 0x6c9   : > { %7698 = vst [vmem:[#allocation44_spill] sm:$0xff] %v6967_v62  ;;  %v3508_v60 = vunpack.c.l.b16 %v6978_v10  ;;  %v3509_v21 = vunpack.c.h.b16 %v6978_v10  ;;  %v6996_v3 = vsub.f32 %v3173_v19, %v3259_v33  ;;  %v3252_v24 = vmul.f32 %v6775_v13, %v3215_v47  ;;  %3617 = vmatpush.bf16.msra.mxu1 %v6974_v63  ;;  %4495 = vmatpush.bf16.msra.mxu3 %v6974_v63  ;;  %v3168_v62 = vld [vmem:[%s4770_s16 + $0x10] sm:$0xff]  ;;  %v3169_v47 = vld [vmem:[%s4770_s16 + $0x18] sm:$0xff] }
 0x6ca   : > { %7699 = vst [vmem:[#allocation45_spill] sm:$0xff] %v6983_v8  ;;  %v3510_v38 = vunpack.c.l.b16 %v6983_v8  ;;  %v3511_v42 = vunpack.c.h.b16 %v6983_v8  ;;  %v7005_v56 = vpack.c.bf16 %v6987_v7, %v6985_v30  ;;  %v3253_v55 = vmul.f32 %v6777_v11, %v3216_v39 }
 0x6cb   : > { %7700 = vst [vmem:[#allocation46_spill] sm:$0xff] %v6985_v30  ;;  %v7012_v19 = vpack.c.bf16 %v6996_v3, %v6989_v27  ;;  %v3254_v33 = vmul.f32 %v6775_v13, %v3217_v48  ;;  %v3255_v59 = vmul.f32 %v6777_v11, %v3218_v17  ;;  %v7017_v26 = vsub.f32 %v3166_v16, %v3252_v24  ;;  %v3317_v30 = vld [vmem:[%s7502_s4 + $0x8] sm:$0xff] }
 0x6cc   : > { %7701 = vst [vmem:[#allocation47_spill] sm:$0xff] %v6987_v7  ;;  %v3316_v7 = vld [vmem:[%s7502_s4] sm:$0xff]  ;;  %v7025_v39 = vpack.c.b16 %v3510_v38, %v3508_v60  ;;  %v7027_v8 = vpack.c.b16 %v3511_v42, %v3509_v21  ;;  %v3505_v13 = vunpack.c.h.b16 %v7005_v56  ;;  %v7033_v48 = vsub.f32 %v3167_v36, %v3253_v55 }
 0x6cd   : > { %7702 = vst [vmem:[#allocation48_spill] sm:$0xff] %v6989_v27  ;;  %v3506_v11 = vunpack.c.l.b16 %v7012_v19  ;;  %v3507_v16 = vunpack.c.h.b16 %v7012_v19  ;;  %v7035_v17 = vsub.f32 %v3168_v62, %v3254_v33  ;;  %v7039_v60 = vsub.f32 %v3169_v47, %v3255_v59  ;;  %v3324_v38 = vld [vmem:[%s7502_s4 + $0x40] sm:$0xff] }
 0x6ce   : > { %7703 = vst [vmem:[#allocation49_spill] sm:$0xff] %v6996_v3  ;;  %v3504_v3 = vunpack.c.l.b16 %v7005_v56  ;;  %3569 = vmatpush.bf16.msra.mxu0 %v7025_v39  ;;  %4488 = vmatpush.bf16.msra.mxu2 %v7025_v39  ;;  %v7041_v21 = vpack.c.bf16 %v3316_v7, %v3316_v7  ;;  %v7043_v24 = vpack.c.bf16 %v3317_v30, %v3317_v30  ;;  %v3432_v42 = vunpack.c.l.bf16 %v6811_v53 }
 0x6cf   : > { %7704 = vst [vmem:[#allocation50_spill] sm:$0xff] %v7005_v56  ;;  %3618 = vmatpush.bf16.msra.mxu1 %v7027_v8  ;;  %4496 = vmatpush.bf16.msra.mxu3 %v7027_v8  ;;  %v7053_v62 = vpack.c.b16 %v3507_v16, %v3505_v13  ;;  %v7057_v59 = vpack.c.bf16 %v7033_v48, %v7017_v26  ;;  %v3434_v36 = vunpack.c.l.bf16 %v6815_v6  ;;  %v3433_v13 = vunpack.c.h.bf16 %v6811_v53 }
 0x6d0   : > { %7705 = vst [vmem:[#allocation51_spill] sm:$0xff] %v7012_v19  ;;  %v7051_v55 = vpack.c.b16 %v3506_v11, %v3504_v3  ;;  %v7062_v47 = vpack.c.bf16 %v7039_v60, %v7035_v17  ;;  %v3348_v33 = vunpack.c.l.bf16 %v7041_v21  ;;  %v3349_v27 = vunpack.c.l.bf16 %v7043_v24  ;;  %v3325_v3 = vld [vmem:[%s7502_s4 + $0x48] sm:$0xff] }
 0x6d1   : > { %7706 = vst [vmem:[#allocation52_spill] sm:$0xff] %v7017_v26  ;;  %v3500_v11 = vunpack.c.l.b16 %v7057_v59  ;;  %v3501_v16 = vunpack.c.h.b16 %v7057_v59  ;;  %v3435_v26 = vunpack.c.h.bf16 %v6815_v6  ;;  %v7081_v53 = vpack.c.bf16 %v3325_v3, %v3325_v3 }
 0x6d2   : > { %7707 = vst [vmem:[#allocation53_spill] sm:$0xff] %v7027_v8  ;;  %3570 = vmatpush.bf16.msra.mxu0 %v7051_v55  ;;  %4489 = vmatpush.bf16.msra.mxu2 %v7051_v55  ;;  %v3364_v19 = vsub.f32 %v3316_v7, %v3348_v33  ;;  %v3365_v56 = vsub.f32 %v3317_v30, %v3349_v27  ;;  %v3319_v7 = vld [vmem:[%s7502_s4 + $0x18] sm:$0xff]  ;;  %v3326_v27 = vld [vmem:[%s7502_s4 + $0x50] sm:$0xff] }
 0x6d3   : > { %7708 = vst [vmem:[#allocation54_spill] sm:$0xff] %v7033_v48  ;;  %v7072_v48 = vpack.c.bf16 %v3324_v38, %v3324_v38  ;;  %3619 = vmatpush.bf16.msra.mxu1 %v7053_v62  ;;  %4497 = vmatpush.bf16.msra.mxu3 %v7053_v62  ;;  %v3464_v6 = vsub.f32 %v6793_v61, %v3432_v42  ;;  %v3357_v61 = vunpack.c.l.bf16 %v7081_v53 }
 0x6d4   : > { %7709 = vst [vmem:[#allocation55_spill] sm:$0xff] %v7035_v17  ;;  %v3503_v17 = vunpack.c.h.b16 %v7062_v47  ;;  %v3466_v30 = vsub.f32 %v6797_v2, %v3434_v36  ;;  %v3380_v33 = vpack.c.bf16 %v3365_v56, %v3364_v19  ;;  %v7111_v19 = vpack.c.bf16 %v3319_v7, %v3319_v7 }
 0x6d5   : > { %7710 = vst [vmem:[#allocation56_spill] sm:$0xff] %v7039_v60  ;;  %v3502_v60 = vunpack.c.l.b16 %v7062_v47  ;;  %v3373_v56 = vsub.f32 %v3325_v3, %v3357_v61  ;;  %v3431_v3 = vunpack.c.h.bf16 %v6825_v20 }
 0x6d6   : > { %7711 = vst [vmem:[#allocation57_spill] sm:$0xff] %v7043_v24  ;;  %v7090_v8 = vpack.c.b16 %v3503_v17, %v3501_v16  ;;  %v3327_v17 = vld [vmem:[%s7502_s4 + $0x58] sm:$0xff]  ;;  %v3482_v2 = vpack.c.bf16 %v3466_v30, %v3464_v6  ;;  %v3424_v30 = vunpack.c.l.bf16 %v6863_v32 }
 0x6d7   : > { %7712 = vst [vmem:[#allocation58_spill] sm:$0xff] %v7051_v55  ;;  %v3318_v55 = vld [vmem:[%s7502_s4 + $0x10] sm:$0xff]  ;;  %v7088_v24 = vpack.c.b16 %v3502_v60, %v3500_v11  ;;  %v3467_v60 = vsub.f32 %v6799_v5, %v3435_v26  ;;  %v3430_v5 = vunpack.c.l.bf16 %v6825_v20  ;;  %v3429_v26 = vunpack.c.h.bf16 %v6821_v35 }
 0x6d8   : > { %7713 = vst [vmem:[#allocation59_spill] sm:$0xff] %v7057_v59  ;;  %v3356_v59 = vunpack.c.l.bf16 %v7072_v48  ;;  %v7107_v36 = vpack.c.bf16 %v3318_v55, %v3318_v55  ;;  %3620 = vmatpush.bf16.msra.mxu1 %v7090_v8  ;;  %4498 = vmatpush.bf16.msra.mxu3 %v7090_v8  ;;  %v3463_v61 = vsub.f32 %v6807_v44, %v3431_v3  ;;  %v3321_v44 = vld [vmem:[%s7502_s4 + $0x28] sm:$0xff] }
 0x6d9   : > { %7714 = vst [vmem:[#allocation60_spill] sm:$0xff] %v7072_v48  ;;  %v3465_v48 = vsub.f32 %v6795_v50, %v3433_v13  ;;  %3571 = vmatpush.bf16.msra.mxu0 %v7088_v24  ;;  %4490 = vmatpush.bf16.msra.mxu2 %v7088_v24  ;;  %v7113_v50 = vpack.c.bf16 %v3326_v27, %v3326_v27  ;;  %v3329_v3 = vld [vmem:[%s7502_s4 + $0x68] sm:$0xff] }
 0x6da   : > { %v3372_v42 = vsub.f32 %v3324_v38, %v3356_v59  ;;  %v3428_v38 = vunpack.c.l.bf16 %v6821_v35  ;;  %v7118_v59 = vpack.c.bf16 %v3327_v17, %v3327_v17  ;;  %v3350_v16 = vunpack.c.l.bf16 %v7107_v36 }
 0x6db   : > { %v3483_v11 = vpack.c.bf16 %v3467_v60, %v3465_v48  ;;  %3621 = vmatmul.bf16.vlgmr.msra.gmra.mxu1 %v3380_v33  ;;  %v3462_v20 = vsub.f32 %v6805_v45, %v3430_v5  ;;  %v3461_v48 = vsub.f32 %v6803_v23, %v3429_v26  ;;  %v3320_v45 = vld [vmem:[%s7502_s4 + $0x20] sm:$0xff] }
 0x6dc   : > { %3759 = vmatpush.bf16.msrb.mxu3 %v6843_v31  ;;  %3572 = vmatmul.bf16.vlgmr.msra.gmra.mxu0 %v3380_v33  ;;  %v3384_v13 = vpack.c.bf16 %v3373_v56, %v3372_v42  ;;  %v3358_v31 = vunpack.c.l.bf16 %v7113_v50  ;;  %v3460_v6 = vsub.f32 %v6801_v49, %v3428_v38  ;;  %v3359_v35 = vunpack.c.l.bf16 %v7118_v59 }
 0x6dd   : > { %3710 = vmatpush.bf16.msrb.mxu2 %v6841_v58  ;;  %3808 = vmatpush.bf16.msrb.mxu0 %v3482_v2  ;;  %v3351_v58 = vunpack.c.l.bf16 %v7111_v19  ;;  %v3426_v33 = vunpack.c.l.bf16 %v6873_v29  ;;  %v3456_v42 = vsub.f32 %v6845_v4, %v3424_v30  ;;  %v3425_v49 = vunpack.c.h.bf16 %v6863_v32 }
 0x6de   : > { %3592 = vmatmul.bf16.vlgmr.msra.gmra.mxu2 %v3384_v13  ;;  %3641 = vmatmul.bf16.vlgmr.msra.gmra.mxu3 %v3384_v13  ;;  %v3480_v2 = vpack.c.bf16 %v3462_v20, %v3460_v6  ;;  %v3366_v60 = vsub.f32 %v3318_v55, %v3350_v16  ;;  %v3481_v56 = vpack.c.bf16 %v3463_v61, %v3461_v48  ;;  %v3421_v13 = vunpack.c.h.bf16 %v6893_v1 }
 0x6df   : > { %3857 = vmatpush.bf16.msrb.mxu1 %v3483_v11  ;;  %v3367_v23 = vsub.f32 %v3319_v7, %v3351_v58  ;;  %v3457_v38 = vsub.f32 %v6847_v41, %v3425_v49  ;;  %v3374_v4 = vsub.f32 %v3326_v27, %v3358_v31  ;;  %v3375_v32 = vsub.f32 %v3327_v17, %v3359_v35  ;;  %v3328_v41 = vld [vmem:[%s7502_s4 + $0x60] sm:$0xff] }
 0x6e0   : > { %3760 = vmatpush.bf16.msrb.mxu3 %v6851_v28  ;;  %v3427_v28 = vunpack.c.h.bf16 %v6873_v29  ;;  %v3420_v29 = vunpack.c.l.bf16 %v6893_v1  ;;  %v7150_v7 = vpack.c.bf16 %v3320_v45, %v3320_v45  ;;  %v7155_v27 = vpack.c.bf16 %v3321_v44, %v3321_v44 }
 0x6e1   : > { %3711 = vmatpush.bf16.msrb.mxu2 %v6849_v18  ;;  %v3458_v18 = vsub.f32 %v6853_v0, %v3426_v33  ;;  %3809 = vmatpush.bf16.msrb.mxu0 %v3480_v2  ;;  %v3381_v17 = vpack.c.bf16 %v3367_v23, %v3366_v60  ;;  %v7161_v26 = vpack.c.bf16 %v3328_v41, %v3328_v41  ;;  %v3423_v16 = vunpack.c.h.bf16 %v6907_v22  ;;  %v7717_v2 = vld [vmem:[#allocation53_spill] sm:$0xff] }
 0x6e2   : > { %v3459_v0 = vsub.f32 %v6855_v57, %v3427_v28  ;;  %v3385_v57 = vpack.c.bf16 %v3375_v32, %v3374_v4  ;;  %v3352_v11 = vunpack.c.l.bf16 %v7150_v7  ;;  %v3453_v58 = vsub.f32 %v6881_v12, %v3421_v13  ;;  %v7715_v12 = vld [vmem:[#allocation39_spill] sm:$0xff]  ;;  %v7719_v60 = vld [vmem:[#allocation57_spill] sm:$0xff]  ;;  %v7726_v13 = vld [vmem:[#allocation44_spill] sm:$0xff] }
 0x6e3   : > { %3858 = vmatpush.bf16.msrb.mxu1 %v3481_v56  ;;  %v3478_v55 = vpack.c.bf16 %v3458_v18, %v3456_v42  ;;  %v3418_v1 = vunpack.c.l.bf16 %v6943_v46  ;;  %v3417_v31 = vunpack.c.h.bf16 %v6937_v9  ;;  %v3455_v30 = vsub.f32 %v6887_v54, %v3423_v16  ;;  %v7718_v18 = vld [vmem:[#allocation45_spill] sm:$0xff]  ;;  %v7721_v32 = vld [vmem:[#allocation43_spill] sm:$0xff] }
 0x6e4   : > { %3761 = vmatpush.bf16.msrb.mxu3 %v6903_v52  ;;  %v3479_v5 = vpack.c.bf16 %v3459_v0, %v3457_v38  ;;  %v3452_v52 = vsub.f32 %v6879_v40, %v3420_v29  ;;  %v3419_v20 = vunpack.c.h.bf16 %v6943_v46  ;;  %v3360_v54 = vunpack.c.l.bf16 %v7161_v26  ;;  %v7720_v38 = vld [vmem:[#allocation41_spill] sm:$0xff]  ;;  %v7722_v29 = vld [vmem:[#allocation50_spill] sm:$0xff] }
 0x6e5   : > { %3712 = vmatpush.bf16.msrb.mxu2 %v6901_v43  ;;  %v3422_v43 = vunpack.c.l.bf16 %v6907_v22  ;;  %3810 = vmatpush.bf16.msrb.mxu0 %v3478_v55  ;;  %v3450_v22 = vsub.f32 %v6923_v51, %v3418_v1  ;;  %v3449_v48 = vsub.f32 %v7715_v12, %v3417_v31  ;;  %v3477_v33 = vpack.c.bf16 %v3455_v30, %v3453_v58  ;;  %v7729_v58 = vld [vmem:[#allocation47_spill] sm:$0xff] }
 0x6e6   : > { %v3412_v46 = vunpack.c.l.bf16 %v6978_v10  ;;  %v3678_v49 = vunpack.c.l.b16 %v7041_v21  ;;  %v3414_v28 = vunpack.c.l.bf16 %v7718_v18  ;;  %v3679_v23 = vunpack.c.l.b16 %v7719_v60  ;;  %v7730_v31 = vld [vmem:[#allocation59_spill] sm:$0xff] }
 0x6e7   : > { %3859 = vmatpush.bf16.msrb.mxu1 %v3479_v5  ;;  %v3454_v40 = vsub.f32 %v6885_v34, %v3422_v43  ;;  %v7178_v34 = vpack.c.bf16 %v3329_v3, %v3329_v3  ;;  %v3376_v56 = vsub.f32 %v3328_v41, %v3360_v54  ;;  %v3408_v55 = vunpack.c.l.bf16 %v7722_v29  ;;  %v7723_v5 = vld [vmem:[#allocation58_spill] sm:$0xff] }
 0x6e8   : > { %3762 = vmatpush.bf16.msrb.mxu3 %v6933_v25  ;;  %v3353_v25 = vunpack.c.l.bf16 %v7155_v27  ;;  %v3444_v4 = vsub.f32 %v7720_v38, %v3412_v46  ;;  %v3446_v0 = vsub.f32 %v7721_v32, %v3414_v28  ;;  %v7724_v43 = vld [vmem:[#allocation42_spill] sm:$0xff]  ;;  %v3406_v30 = vunpack.c.l.bf16 %v7062_v47  ;;  %v3331_v28 = vld [vmem:[%s7502_s4 + $0x78] sm:$0xff] }
 0x6e9   : > { %3713 = vmatpush.bf16.msrb.mxu2 %v6931_v14  ;;  %v3416_v14 = vunpack.c.l.bf16 %v6937_v9  ;;  %v3476_v6 = vpack.c.bf16 %v3454_v40, %v3452_v52  ;;  %v7716_v9 = vld [vmem:[#allocation40_spill] sm:$0xff]  ;;  %v7727_v40 = vld [vmem:[#allocation46_spill] sm:$0xff]  ;;  %v3407_v12 = vunpack.c.h.bf16 %v7062_v47 }
 0x6ea   : > { %v3451_v61 = vsub.f32 %v7716_v9, %v3419_v20  ;;  %v3369_v42 = vsub.f32 %v3321_v44, %v3353_v25  ;;  %v3440_v16 = vsub.f32 %v7727_v40, %v3408_v55  ;;  %v7728_v25 = vld [vmem:[#allocation48_spill] sm:$0xff]  ;;  %v7731_v20 = vld [vmem:[#allocation49_spill] sm:$0xff] }
 0x6eb   : > { %v3448_v35 = vsub.f32 %v6917_v37, %v3416_v14  ;;  %3626 = vmatmul.bf16.gmra.mxu1 %v3381_v17  ;;  %3811 = vmatpush.bf16.msrb.mxu0 %v3476_v6  ;;  %v3404_v6 = vunpack.c.l.bf16 %v7730_v31  ;;  %v3322_v47 = vld [vmem:[%s7502_s4 + $0x30] sm:$0xff] }
 0x6ec   : > { %3763 = vmatpush.bf16.msrb.mxu3 %v6974_v63  ;;  %3577 = vmatmul.bf16.gmra.mxu0 %v3381_v17  ;;  %v3361_v63 = vunpack.c.l.bf16 %v7178_v34  ;;  %v3475_v51 = vpack.c.bf16 %v3451_v61, %v3449_v48  ;;  %v7725_v17 = vld [vmem:[#allocation51_spill] sm:$0xff] }
 0x6ed   : > { %3714 = vmatpush.bf16.msrb.mxu2 %v6972_v15  ;;  %v3474_v37 = vpack.c.bf16 %v3450_v22, %v3448_v35  ;;  %v3368_v15 = vsub.f32 %v3320_v45, %v3352_v11  ;;  %3860 = vmatpush.bf16.msrb.mxu1 %v3477_v33  ;;  %v3413_v45 = vunpack.c.h.bf16 %v6978_v10  ;;  %v3410_v41 = vunpack.c.l.bf16 %v7725_v17  ;;  %v7732_v33 = vld [vmem:[#allocation52_spill] sm:$0xff]  ;;  %v7733_v61 = vld [vmem:[#allocation55_spill] sm:$0xff] }
 0x6ee   : > { %3597 = vmatmul.bf16.gmra.mxu2 %v3385_v57  ;;  %3646 = vmatmul.bf16.gmra.mxu3 %v3385_v57  ;;  %v3377_v21 = vsub.f32 %v3329_v3, %v3361_v63  ;;  %v3409_v57 = vunpack.c.h.bf16 %v7722_v29  ;;  %v3472_v10 = vpack.c.bf16 %v3446_v0, %v3444_v4  ;;  %v3411_v14 = vunpack.c.h.bf16 %v7725_v17  ;;  %v7735_v63 = vld [vmem:[#allocation56_spill] sm:$0xff] }
 0x6ef   : > { %3812 = vmatpush.bf16.msrb.mxu0 %v3474_v37  ;;  %v3382_v44 = vpack.c.bf16 %v3369_v42, %v3368_v15  ;;  %v3445_v52 = vsub.f32 %v7724_v43, %v3413_v45  ;;  %v3442_v3 = vsub.f32 %v7728_v25, %v3410_v41  ;;  %v3436_v9 = vsub.f32 %v7732_v33, %v3404_v6  ;;  %v7734_v15 = vld [vmem:[#allocation54_spill] sm:$0xff]  ;;  %v3944_v40 = vld [vmem:[%s7503_s5 + $0x30] sm:$0xff] }
 0x6f0   : > { %3764 = vmatpush.bf16.msrb.mxu3 %v7717_v2  ;;  %v3441_v1 = vsub.f32 %v7729_v58, %v3409_v57  ;;  %v3443_v22 = vsub.f32 %v7731_v20, %v3411_v14  ;;  %v3438_v54 = vsub.f32 %v7733_v61, %v3406_v30  ;;  %v3694_v37 = vpack.c.b16 %v3679_v23, %v3678_v49  ;;  %v3938_v41 = vld [vmem:[%s7503_s5] sm:$0xff]  ;;  %v3941_v14 = vld [vmem:[%s7503_s5 + $0x18] sm:$0xff]  ;;  %v3947_v25 = vld [vmem:[%s7503_s5 + $0x48] sm:$0xff] }
 0x6f1   : > { %3715 = vmatpush.bf16.msrb.mxu2 %v7025_v39  ;;  %v3415_v39 = vunpack.c.h.bf16 %v7718_v18  ;;  %3861 = vmatpush.bf16.msrb.mxu1 %v3475_v51  ;;  %v3470_v48 = vpack.c.bf16 %v3442_v3, %v3440_v16  ;;  %v3439_v51 = vsub.f32 %v7735_v63, %v3407_v12  ;;  %v3680_v2 = vunpack.c.l.b16 %v7107_v36  ;;  %v3950_v3 = vld [vmem:[%s7503_s5 + $0x60] sm:$0xff]  ;;  %v3945_v58 = vld [vmem:[%s7503_s5 + $0x38] sm:$0xff]  ;;  %v3948_v20 = vld [vmem:[%s7503_s5 + $0x50] sm:$0xff] }
 0x6f2   : > { %v3471_v46 = vpack.c.bf16 %v3443_v22, %v3441_v1  ;;  %v3681_v49 = vunpack.c.l.b16 %v7111_v19  ;;  %v3386_v18 = vpack.c.bf16 %v3377_v21, %v3376_v56  ;;  %v3468_v60 = vpack.c.bf16 %v3438_v54, %v3436_v9  ;;  %v3953_v1 = vld [vmem:[%s7503_s5 + $0x78] sm:$0xff]  ;;  %v3942_v22 = vld [vmem:[%s7503_s5 + $0x20] sm:$0xff]  ;;  %v3943_v33 = vld [vmem:[%s7503_s5 + $0x28] sm:$0xff] }
 0x6f3   : > { %v3447_v11 = vsub.f32 %v7726_v13, %v3415_v39  ;;  %3813 = vmatpush.bf16.msrb.mxu0 %v3472_v10  ;;  %v3338_v23 = vpack.c.bf16 %v3322_v47, %v3322_v47  ;;  %v7235_v19 = vpack.c.bf16 %v3331_v28, %v3331_v28  ;;  %v3682_v43 = vunpack.c.l.b16 %v7150_v7  ;;  %v3939_v7 = vld [vmem:[%s7503_s5 + $0x8] sm:$0xff]  ;;  %v3946_v9 = vld [vmem:[%s7503_s5 + $0x40] sm:$0xff]  ;;  %v3952_v63 = vld [vmem:[%s7503_s5 + $0x70] sm:$0xff] }
 0x6f4   : > { %3765 = vmatpush.bf16.msrb.mxu3 %v7053_v62  ;;  %v3405_v62 = vunpack.c.h.bf16 %v7730_v31  ;;  %v3695_v56 = vpack.c.b16 %v3681_v49, %v3680_v2  ;;  %v4689_v10 = vmov 0   ;;  %v7736_v31 = vld [vmem:[#allocation60_spill] sm:$0xff]  ;;  %v3687_v30 = vunpack.c.l.b16 %v7081_v53  ;;  %v3951_v53 = vld [vmem:[%s7503_s5 + $0x68] sm:$0xff] }
 0x6f5   : > { %3716 = vmatpush.bf16.msrb.mxu2 %v7723_v5  ;;  %v3473_v35 = vpack.c.bf16 %v3447_v11, %v3445_v52  ;;  %v3354_v45 = vunpack.c.l.bf16 %v3338_v23  ;;  %v3363_v39 = vunpack.c.l.bf16 %v7235_v19  ;;  %v3683_v52 = vunpack.c.l.b16 %v7155_v27  ;;  %4642 = vset.pattern.permute.xlu0 %v4689_v10  ;;  %v3940_v11 = vld [vmem:[%s7503_s5 + $0x10] sm:$0xff] }
 0x6f6   : > { %v3437_v42 = vsub.f32 %v7734_v15, %v3405_v62  ;;  %4643 = vset.pattern.permute.xlu1 %v4689_v10  ;;  %3956 = vperm.xlu0 %4642, %v3938_v41   ;;  %v3684_v27 = vunpack.c.l.b16 %v3338_v23  ;;  %v3686_v6 = vunpack.c.l.b16 %v7736_v31  ;;  %v3688_v62 = vunpack.c.l.b16 %v7113_v50 }
 0x6f7   : > { %3862 = vmatpush.bf16.msrb.mxu1 %v3473_v35  ;;  %3814 = vmatpush.bf16.msrb.mxu0 %v3470_v48  ;;  %v3370_v29 = vsub.f32 %v3322_v47, %v3354_v45  ;;  %v3379_v5 = vsub.f32 %v3331_v28, %v3363_v39  ;;  %v3696_v57 = vpack.c.b16 %v3683_v52, %v3682_v43  ;;  %v3689_v12 = vunpack.c.l.b16 %v7118_v59 }
 0x6f8   : > { %3766 = vmatpush.bf16.msrb.mxu3 %v7090_v8  ;;  %v3330_v8 = vld [vmem:[%s7502_s4 + $0x70] sm:$0xff]  ;;  %v3469_v4 = vpack.c.bf16 %v3439_v51, %v3437_v42  ;;  %4644 = vset.pattern.permute.xlu2 %v4689_v10  ;;  %v3698_v35 = vpack.c.b16 %v3687_v30, %v3686_v6  ;;  %v3690_v61 = vunpack.c.l.b16 %v7161_v26  ;;  %v3691_v50 = vunpack.c.l.b16 %v7178_v34 }
 0x6f9   : > { %3717 = vmatpush.bf16.msrb.mxu2 %v7088_v24  ;;  %v3323_v24 = vld [vmem:[%s7502_s4 + $0x38] sm:$0xff]  ;;  %v7233_v36 = vpack.c.bf16 %v3330_v8, %v3330_v8  ;;  %3966 = vperm.xlu1 %4643, %v3940_v11   ;;  %v3699_v48 = vpack.c.b16 %v3689_v12, %v3688_v62  ;;  %v3693_v47 = vunpack.c.l.b16 %v7235_v19 }
 0x6fa   : > { %v3339_v38 = vpack.c.bf16 %v3323_v24, %v3323_v24  ;;  %3976 = vperm.xlu2 %4644, %v3942_v22  }
 0x6fb   : > { %3863 = vmatpush.bf16.msrb.mxu1 %v3471_v46  ;;  %3815 = vmatpush.bf16.msrb.mxu0 %v3468_v60  ;;  %v3362_v0 = vunpack.c.l.bf16 %v7233_v36  ;;  %v3949_v46 = vld [vmem:[%s7503_s5 + $0x58] sm:$0xff]  ;;  %v3692_v51 = vunpack.c.l.b16 %v7233_v36 }
 0x6fc   : > { %3582 = vmatmul.bf16.gmra.mxu0 %v3382_v44  ;;  %3631 = vmatmul.bf16.gmra.mxu1 %v3382_v44  ;;  %v3355_v32 = vunpack.c.l.bf16 %v3339_v38  ;;  %v3685_v13 = vunpack.c.l.b16 %v3339_v38 }
 0x6fd   : > { %v3378_v21 = vsub.f32 %v3330_v8, %v3362_v0  ;;  %v3701_v8 = vpack.c.b16 %v3693_v47, %v3692_v51 }
 0x6fe   : > { %3602 = vmatmul.bf16.gmra.mxu2 %v3386_v18  ;;  %3651 = vmatmul.bf16.gmra.mxu3 %v3386_v18  ;;  %v3371_v55 = vsub.f32 %v3323_v24, %v3355_v32  ;;  %v3697_v16 = vpack.c.b16 %v3685_v13, %v3684_v27 }
 0x6ff   : > { %3864 = vmatpush.bf16.msrb.mxu1 %v3469_v4  ;;  %v3387_v17 = vpack.c.bf16 %v3379_v5, %v3378_v21  ;;  %3961 = vperm.xlu0 %4642, %v3939_v7  }
 0x700   : > { %v3383_v44 = vpack.c.bf16 %v3371_v55, %v3370_v29 }
 0x701   : > { %3971 = vperm.xlu1 %4643, %v3941_v14  }
 0x702   : > { %3981 = vperm.xlu2 %4644, %v3943_v33  }
 0x707   : > { %3986 = vperm.xlu0 %4642, %v3944_v40  }
 0x709   : > { %3991 = vperm.xlu1 %4643, %v3945_v58  }
 0x70a   : > { %3996 = vperm.xlu2 %4644, %v3946_v9  }
 0x70c   : > { %3587 = vmatmul.bf16.gmra.mxu0 %v3383_v44  ;;  %3636 = vmatmul.bf16.gmra.mxu1 %v3383_v44 }
 0x70e   : > { %3607 = vmatmul.bf16.gmra.mxu2 %v3387_v17  ;;  %3656 = vmatmul.bf16.gmra.mxu3 %v3387_v17 }
 0x70f   : > { %4001 = vperm.xlu0 %4642, %v3947_v25  }
 0x711   : > { %4006 = vperm.xlu1 %4643, %v3948_v20  }
 0x712   : > { %4011 = vperm.xlu2 %4644, %v3949_v46  }
 0x717   : > { %4016 = vperm.xlu0 %4642, %v3950_v3  }
 0x719   : > { %4021 = vperm.xlu1 %4643, %v3951_v53  }
 0x71a   : > { %4026 = vperm.xlu2 %4644, %v3952_v63  }
 0x71c   : > { %3816 = vmatmul.bf16.vlgmr.msrb.gmra.mxu0 %v3694_v37  ;;  %3865 = vmatmul.bf16.vlgmr.msrb.gmra.mxu1 %v3694_v37 }
 0x71e   : > { %3718 = vmatmul.bf16.vlgmr.msrb.gmra.mxu2 %v3694_v37  ;;  %3767 = vmatmul.bf16.vlgmr.msrb.gmra.mxu3 %v3694_v37  ;;  %v3700_v37 = vpack.c.b16 %v3691_v50, %v3690_v61 }
 0x71f   : > { %4031 = vperm.xlu0 %4642, %v3953_v1  }
 0x72c   : > { %3821 = vmatmul.bf16.gmra.mxu0 %v3695_v56  ;;  %3870 = vmatmul.bf16.gmra.mxu1 %v3695_v56 }
 0x72e   : > { %3723 = vmatmul.bf16.gmra.mxu2 %v3695_v56  ;;  %3772 = vmatmul.bf16.gmra.mxu3 %v3695_v56 }
 0x73c   : > { %3826 = vmatmul.bf16.gmra.mxu0 %v3696_v57  ;;  %3875 = vmatmul.bf16.gmra.mxu1 %v3696_v57 }
 0x73e   : > { %3728 = vmatmul.bf16.gmra.mxu2 %v3696_v57  ;;  %3777 = vmatmul.bf16.gmra.mxu3 %v3696_v57 }
 0x74c   : > { %3831 = vmatmul.bf16.gmra.mxu0 %v3697_v16  ;;  %3880 = vmatmul.bf16.gmra.mxu1 %v3697_v16 }
 0x74e   : > { %3733 = vmatmul.bf16.gmra.mxu2 %v3697_v16  ;;  %3782 = vmatmul.bf16.gmra.mxu3 %v3697_v16 }
 0x758   : > { %v3622_v54 = vpop.f32.mrf.mxu1 }
 0x759   : > { %v3573_v59 = vpop.f32.mrf.mxu0 }
 0x75c   : > { %3836 = vmatmul.bf16.gmra.mxu0 %v3698_v35  ;;  %3885 = vmatmul.bf16.gmra.mxu1 %v3698_v35 }
 0x75e   : > { %3738 = vmatmul.bf16.gmra.mxu2 %v3698_v35  ;;  %3787 = vmatmul.bf16.gmra.mxu3 %v3698_v35 }
 0x760   : > { %v7298_v34 = vpop.f32.mrf.mxu1 }
 0x761   : > { %v7292_v15 = vpop.f32.mrf.mxu2  ;;  %v7294_v42 = vpop.f32.mrf.mxu3 }
 0x762   : > { %v7296_v26 = vpop.f32.mrf.mxu0 }
 0x768   : > { %v7311_v18 = vpop.f32.mrf.mxu1  ;;  %v3957_v27 = vpop.permute.xlu0 %3956 }
 0x769   : > { %v7305_v24 = vpop.f32.mrf.mxu2  ;;  %v7307_v2 = vpop.f32.mrf.mxu3 }
 0x76a   : > { %v7309_v49 = vpop.f32.mrf.mxu0 }
 0x76b   : > { %v3967_v46 = vpop.permute.xlu1 %3966 }
 0x76c   : > { %3841 = vmatmul.bf16.gmra.mxu0 %v3699_v48  ;;  %3890 = vmatmul.bf16.gmra.mxu1 %v3699_v48 }
 0x76e   : > { %3743 = vmatmul.bf16.gmra.mxu2 %v3699_v48  ;;  %3792 = vmatmul.bf16.gmra.mxu3 %v3699_v48 }
 0x770   : > { %v7319_v38 = vpop.f32.mrf.mxu1 }
 0x771   : > { %v7313_v28 = vpop.f32.mrf.mxu2  ;;  %v7315_v60 = vpop.f32.mrf.mxu3 }
 0x772   : > { %v7317_v23 = vpop.f32.mrf.mxu0  ;;  %v3962_v12 = vpop.permute.xlu0 %3961 }
 0x779   : > { %v7321_v4 = vpop.f32.mrf.mxu2  ;;  %v7323_v36 = vpop.f32.mrf.mxu3 }
 0x77a   : > { %v7325_v19 = vpop.f32.mrf.mxu0  ;;  %v7327_v56 = vpop.f32.mrf.mxu1 }
 0x77c   : > { %3846 = vmatmul.bf16.gmra.mxu0 %v3700_v37  ;;  %3895 = vmatmul.bf16.gmra.mxu1 %v3700_v37 }
 0x77e   : > { %3748 = vmatmul.bf16.gmra.mxu2 %v3700_v37  ;;  %3797 = vmatmul.bf16.gmra.mxu3 %v3700_v37 }
 0x781   : > { %v7329_v45 = vpop.f32.mrf.mxu2  ;;  %v7331_v32 = vpop.f32.mrf.mxu3 }
 0x782   : > { %v7333_v0 = vpop.f32.mrf.mxu0  ;;  %v7335_v39 = vpop.f32.mrf.mxu1 }
 0x789   : > { %v7337_v29 = vpop.f32.mrf.mxu2  ;;  %v7339_v55 = vpop.f32.mrf.mxu3 }
 0x78a   : > { %v7341_v21 = vpop.f32.mrf.mxu0  ;;  %v7343_v5 = vpop.f32.mrf.mxu1 }
 0x78c   : > { %3851 = vmatmul.bf16.gmra.mxu0 %v3701_v8  ;;  %3900 = vmatmul.bf16.gmra.mxu1 %v3701_v8 }
 0x78e   : > { %3753 = vmatmul.bf16.gmra.mxu2 %v3701_v8  ;;  %3802 = vmatmul.bf16.gmra.mxu3 %v3701_v8 }
 0x791   : > { %v7345_v44 = vpop.f32.mrf.mxu2  ;;  %v7347_v43 = vpop.f32.mrf.mxu3 }
 0x792   : > { %v7349_v52 = vpop.f32.mrf.mxu0  ;;  %v7351_v17 = vpop.f32.mrf.mxu1 }
 0x799   : > { %v7353_v41 = vpop.f32.mrf.mxu2  ;;  %v7355_v57 = vpop.f32.mrf.mxu3 }
 0x79a   : > { %v3817_v10 = vpop.f32.mrf.mxu0  ;;  %v3866_v7 = vpop.f32.mrf.mxu1 }
 0x7a1   : > { %v3719_v13 = vpop.f32.mrf.mxu2  ;;  %v3768_v11 = vpop.f32.mrf.mxu3 }
 0x7a2   : > { %v3720_v40 = vadd.f32 %v3719_v13, %v3573_v59  ;;  %v3769_v16 = vadd.f32 %v3768_v11, %v3622_v54  ;;  %v3819_v14 = vpop.f32.mrf.mxu0  ;;  %v3868_v25 = vpop.f32.mrf.mxu1 }
 0x7a4   : > { %v3906_v3 = vadd.f32 %v3817_v10, %v3720_v40  ;;  %v3907_v58 = vadd.f32 %v3866_v7, %v3769_v16 }
 0x7a6   : > { %v4034_v1 = vadd.f32 %v3957_v27, %v3906_v3  ;;  %v4035_v31 = vadd.f32 %v3957_v27, %v3907_v58 }
 0x7a8   : > { %4066 = vst [vmem:[%s4775_s19] sm:$0xff] %v4034_v1  ;;  %v4098_v6 = vadd.f32 %v4035_v31, %v4034_v1  ;;  %v4163_v9 = vmul.f32 %v4034_v1, %v4034_v1  ;;  %v4164_v61 = vmul.f32 %v4035_v31, %v4035_v31 }
 0x7a9   : > { %4067 = vst [vmem:[%s4775_s19 + $0x8] sm:$0xff] %v4035_v31  ;;  %v3721_v30 = vpop.f32.mrf.mxu2  ;;  %v3770_v35 = vpop.f32.mrf.mxu3 }
 0x7aa   : > { %v3722_v20 = vadd.f32 %v3721_v30, %v7296_v26  ;;  %v3771_v22 = vadd.f32 %v3770_v35, %v7298_v34  ;;  %4099 = vadd.xlane.f32.xlu1 %v4098_v6  ;;  %v3822_v53 = vpop.f32.mrf.mxu0  ;;  %v3871_v62 = vpop.f32.mrf.mxu1  ;;  %v4195_v54 = vadd.f32 %v4164_v61, %v4163_v9 }
 0x7ab   : > { %v3972_v31 = vpop.permute.xlu1 %3971 }
 0x7ac   : > { %v3908_v48 = vadd.f32 %v3819_v14, %v3722_v20  ;;  %v3909_v33 = vadd.f32 %v3868_v25, %v3771_v22 }
 0x7ae   : > { %v4036_v50 = vadd.f32 %v3962_v12, %v3908_v48  ;;  %v4037_v59 = vadd.f32 %v3962_v12, %v3909_v33 }
 0x7b0   : > { %4068 = vst [vmem:[%s4775_s19 + $0x10] sm:$0xff] %v4036_v50  ;;  %v4101_v37 = vadd.f32 %v4037_v59, %v4036_v50  ;;  %v4165_v27 = vmul.f32 %v4036_v50, %v4036_v50  ;;  %v4166_v13 = vmul.f32 %v4037_v59, %v4037_v59 }
 0x7b1   : > { %4069 = vst [vmem:[%s4775_s19 + $0x18] sm:$0xff] %v4037_v59  ;;  %v3724_v26 = vpop.f32.mrf.mxu2  ;;  %v3773_v63 = vpop.f32.mrf.mxu3 }
 0x7b2   : > { %v3725_v34 = vadd.f32 %v3724_v26, %v7309_v49  ;;  %v3774_v51 = vadd.f32 %v3773_v63, %v7311_v18  ;;  %4196 = vadd.xlane.f32.xlu1 %v4195_v54  ;;  %4102 = vadd.xlane.f32.xlu2 %v4101_v37  ;;  %v3824_v47 = vpop.f32.mrf.mxu0  ;;  %v3873_v8 = vpop.f32.mrf.mxu1  ;;  %v4198_v16 = vadd.f32 %v4166_v13, %v4165_v27 }
 0x7b3   : > { %v3977_v37 = vpop.permute.xlu2 %3976 }
 0x7b4   : > { %v3910_v10 = vadd.f32 %v3822_v53, %v3725_v34  ;;  %v3911_v7 = vadd.f32 %v3871_v62, %v3774_v51 }
 0x7b6   : > { %v4038_v11 = vadd.f32 %v3967_v46, %v3910_v10  ;;  %v4039_v40 = vadd.f32 %v3967_v46, %v3911_v7 }
 0x7b8   : > { %4070 = vst [vmem:[%s4775_s19 + $0x20] sm:$0xff] %v4038_v11  ;;  %v4104_v14 = vadd.f32 %v4039_v40, %v4038_v11  ;;  %v4167_v35 = vmul.f32 %v4038_v11, %v4038_v11  ;;  %v4168_v20 = vmul.f32 %v4039_v40, %v4039_v40 }
 0x7b9   : > { %4071 = vst [vmem:[%s4775_s19 + $0x28] sm:$0xff] %v4039_v40  ;;  %v3726_v25 = vpop.f32.mrf.mxu2  ;;  %v3775_v3 = vpop.f32.mrf.mxu3 }
 0x7ba   : > { %v3727_v49 = vadd.f32 %v3726_v25, %v7317_v23  ;;  %v3776_v18 = vadd.f32 %v3775_v3, %v7319_v38  ;;  %4199 = vadd.xlane.f32.xlu2 %v4198_v16  ;;  %4105 = vadd.xlane.f32.xlu0 %v4104_v14  ;;  %v3827_v58 = vpop.f32.mrf.mxu0  ;;  %v3876_v1 = vpop.f32.mrf.mxu1  ;;  %v4201_v62 = vadd.f32 %v4168_v20, %v4167_v35 }
 0x7bb   : > { %v3982_v14 = vpop.permute.xlu2 %3981 }
 0x7bc   : > { %v3912_v6 = vadd.f32 %v3824_v47, %v3727_v49  ;;  %v3913_v30 = vadd.f32 %v3873_v8, %v3776_v18 }
 0x7be   : > { %v4040_v22 = vadd.f32 %v3972_v31, %v3912_v6  ;;  %v4041_v53 = vadd.f32 %v3972_v31, %v3913_v30 }
 0x7c0   : > { %4072 = vst [vmem:[%s4775_s19 + $0x30] sm:$0xff] %v4040_v22  ;;  %v4107_v12 = vadd.f32 %v4041_v53, %v4040_v22  ;;  %v4169_v48 = vmul.f32 %v4040_v22, %v4040_v22  ;;  %v4170_v33 = vmul.f32 %v4041_v53, %v4041_v53 }
 0x7c1   : > { %4073 = vst [vmem:[%s4775_s19 + $0x38] sm:$0xff] %v4041_v53  ;;  %v3729_v23 = vpop.f32.mrf.mxu2  ;;  %v3778_v38 = vpop.f32.mrf.mxu3 }
 0x7c2   : > { %v3730_v9 = vadd.f32 %v3729_v23, %v7325_v19  ;;  %v3779_v61 = vadd.f32 %v3778_v38, %v7327_v56  ;;  %4202 = vadd.xlane.f32.xlu0 %v4201_v62  ;;  %4108 = vadd.xlane.f32.xlu2 %v4107_v12  ;;  %v3829_v50 = vpop.f32.mrf.mxu0  ;;  %v3878_v59 = vpop.f32.mrf.mxu1  ;;  %v4204_v54 = vadd.f32 %v4170_v33, %v4169_v48 }
 0x7c3   : > { %v3987_v53 = vpop.permute.xlu0 %3986 }
 0x7c4   : > { %v3914_v46 = vadd.f32 %v3827_v58, %v3730_v9  ;;  %v3915_v26 = vadd.f32 %v3876_v1, %v3779_v61  ;;  %4205 = vadd.xlane.f32.xlu1 %v4204_v54 }
 0x7c6   : > { %v4042_v63 = vadd.f32 %v3977_v37, %v3914_v46  ;;  %v4043_v34 = vadd.f32 %v3977_v37, %v3915_v26  ;;  %v3992_v46 = vpop.permute.xlu1 %3991 }
 0x7c8   : > { %4074 = vst [vmem:[%s4775_s19 + $0x40] sm:$0xff] %v4042_v63  ;;  %v4171_v51 = vmul.f32 %v4042_v63, %v4042_v63  ;;  %v4172_v47 = vmul.f32 %v4043_v34, %v4043_v34  ;;  %v4110_v11 = vadd.f32 %v4043_v34, %v4042_v63 }
 0x7c9   : > { %4075 = vst [vmem:[%s4775_s19 + $0x48] sm:$0xff] %v4043_v34  ;;  %v3731_v19 = vpop.f32.mrf.mxu2  ;;  %v3780_v8 = vpop.f32.mrf.mxu3 }
 0x7ca   : > { %v3732_v56 = vadd.f32 %v3731_v19, %v7333_v0  ;;  %v3781_v10 = vadd.f32 %v3780_v8, %v7335_v39  ;;  %v3832_v7 = vpop.f32.mrf.mxu0  ;;  %v3881_v27 = vpop.f32.mrf.mxu1  ;;  %v4207_v13 = vadd.f32 %v4172_v47, %v4171_v51 }
 0x7cc   : > { %v3916_v40 = vadd.f32 %v3829_v50, %v3732_v56  ;;  %v3917_v16 = vadd.f32 %v3878_v59, %v3781_v10  ;;  %4208 = vadd.xlane.f32.xlu2 %v4207_v13  ;;  %4111 = vadd.xlane.f32.xlu1 %v4110_v11  ;;  %v3997_v11 = vpop.permute.xlu2 %3996 }
 0x7ce   : > { %v4044_v25 = vadd.f32 %v3982_v14, %v3916_v40  ;;  %v4045_v3 = vadd.f32 %v3982_v14, %v3917_v16 }
 0x7d0   : > { %4076 = vst [vmem:[%s4775_s19 + $0x50] sm:$0xff] %v4044_v25  ;;  %v4173_v49 = vmul.f32 %v4044_v25, %v4044_v25  ;;  %v4174_v18 = vmul.f32 %v4045_v3, %v4045_v3  ;;  %v4113_v35 = vadd.f32 %v4045_v3, %v4044_v25 }
 0x7d1   : > { %4077 = vst [vmem:[%s4775_s19 + $0x58] sm:$0xff] %v4045_v3  ;;  %v3734_v0 = vpop.f32.mrf.mxu2  ;;  %v3783_v58 = vpop.f32.mrf.mxu3 }
 0x7d2   : > { %v3735_v39 = vadd.f32 %v3734_v0, %v7341_v21  ;;  %v3784_v1 = vadd.f32 %v3783_v58, %v7343_v5  ;;  %v3834_v31 = vpop.f32.mrf.mxu0  ;;  %v3883_v6 = vpop.f32.mrf.mxu1  ;;  %v4210_v30 = vadd.f32 %v4174_v18, %v4173_v49 }
 0x7d4   : > { %v3918_v20 = vadd.f32 %v3832_v7, %v3735_v39  ;;  %v3919_v22 = vadd.f32 %v3881_v27, %v3784_v1  ;;  %4211 = vadd.xlane.f32.xlu0 %v4210_v30  ;;  %4114 = vadd.xlane.f32.xlu2 %v4113_v35 }
 0x7d6   : > { %v4046_v62 = vadd.f32 %v3987_v53, %v3918_v20  ;;  %v4047_v12 = vadd.f32 %v3987_v53, %v3919_v22 }
 0x7d8   : > { %4078 = vst [vmem:[%s4775_s19 + $0x60] sm:$0xff] %v4046_v62  ;;  %v4175_v48 = vmul.f32 %v4046_v62, %v4046_v62  ;;  %v4176_v33 = vmul.f32 %v4047_v12, %v4047_v12  ;;  %v4116_v59 = vadd.f32 %v4047_v12, %v4046_v62 }
 0x7d9   : > { %4079 = vst [vmem:[%s4775_s19 + $0x68] sm:$0xff] %v4047_v12  ;;  %v3736_v21 = vpop.f32.mrf.mxu2  ;;  %v3785_v23 = vpop.f32.mrf.mxu3 }
 0x7da   : > { %v3737_v5 = vadd.f32 %v3736_v21, %v7349_v52  ;;  %v3786_v38 = vadd.f32 %v3785_v23, %v7351_v17  ;;  %v3837_v9 = vpop.f32.mrf.mxu0  ;;  %v3886_v61 = vpop.f32.mrf.mxu1  ;;  %v4213_v50 = vadd.f32 %v4176_v33, %v4175_v48 }
 0x7dc   : > { %v3920_v54 = vadd.f32 %v3834_v31, %v3737_v5  ;;  %v3921_v37 = vadd.f32 %v3883_v6, %v3786_v38  ;;  %4214 = vadd.xlane.f32.xlu1 %v4213_v50  ;;  %4117 = vadd.xlane.f32.xlu0 %v4116_v59  ;;  %v4002_v6 = vpop.permute.xlu0 %4001  ;;  %v4007_v38 = vpop.permute.xlu1 %4006 }
 0x7de   : > { %v4048_v26 = vadd.f32 %v3992_v46, %v3920_v54  ;;  %v4049_v63 = vadd.f32 %v3992_v46, %v3921_v37 }
 0x7e0   : > { %4080 = vst [vmem:[%s4775_s19 + $0x70] sm:$0xff] %v4048_v26  ;;  %v4177_v34 = vmul.f32 %v4048_v26, %v4048_v26  ;;  %v4178_v51 = vmul.f32 %v4049_v63, %v4049_v63  ;;  %v4119_v7 = vadd.f32 %v4049_v63, %v4048_v26 }
 0x7e1   : > { %4081 = vst [vmem:[%s4775_s19 + $0x78] sm:$0xff] %v4049_v63  ;;  %v3739_v52 = vpop.f32.mrf.mxu2  ;;  %v3788_v47 = vpop.f32.mrf.mxu3 }
 0x7e2   : > { %v3740_v17 = vadd.f32 %v3739_v52, %v7292_v15  ;;  %v3789_v19 = vadd.f32 %v3788_v47, %v7294_v42  ;;  %v3839_v8 = vpop.f32.mrf.mxu0  ;;  %v3888_v56 = vpop.f32.mrf.mxu1  ;;  %v4216_v10 = vadd.f32 %v4178_v51, %v4177_v34 }
 0x7e3   : > { %v4012_v47 = vpop.permute.xlu2 %4011 }
 0x7e4   : > { %v3922_v27 = vadd.f32 %v3837_v9, %v3740_v17  ;;  %v3923_v13 = vadd.f32 %v3886_v61, %v3789_v19  ;;  %4217 = vadd.xlane.f32.xlu2 %v4216_v10  ;;  %4120 = vadd.xlane.f32.xlu1 %v4119_v7 }
 0x7e6   : > { %v4050_v40 = vadd.f32 %v3997_v11, %v3922_v27  ;;  %v4051_v16 = vadd.f32 %v3997_v11, %v3923_v13 }
 0x7e8   : > { %4082 = vst [vmem:[%s4775_s19 + $0x80] sm:$0xff] %v4050_v40  ;;  %v4179_v14 = vmul.f32 %v4050_v40, %v4050_v40  ;;  %v4180_v25 = vmul.f32 %v4051_v16, %v4051_v16  ;;  %v4122_v39 = vadd.f32 %v4051_v16, %v4050_v40 }
 0x7e9   : > { %4083 = vst [vmem:[%s4775_s19 + $0x88] sm:$0xff] %v4051_v16  ;;  %v3741_v15 = vpop.f32.mrf.mxu2  ;;  %v3790_v3 = vpop.f32.mrf.mxu3 }
 0x7ea   : > { %v3742_v42 = vadd.f32 %v3741_v15, %v7305_v24  ;;  %v3791_v49 = vadd.f32 %v3790_v3, %v7307_v2  ;;  %v3842_v18 = vpop.f32.mrf.mxu0  ;;  %v3891_v0 = vpop.f32.mrf.mxu1  ;;  %v4219_v58 = vadd.f32 %v4180_v25, %v4179_v14 }
 0x7eb   : > { %v4017_v16 = vpop.permute.xlu0 %4016 }
 0x7ec   : > { %v3924_v1 = vadd.f32 %v3839_v8, %v3742_v42  ;;  %v3925_v31 = vadd.f32 %v3888_v56, %v3791_v49  ;;  %4220 = vadd.xlane.f32.xlu0 %v4219_v58  ;;  %4123 = vadd.xlane.f32.xlu2 %v4122_v39 }
 0x7ee   : > { %v4052_v30 = vadd.f32 %v4002_v6, %v3924_v1  ;;  %v4053_v35 = vadd.f32 %v4002_v6, %v3925_v31  ;;  %v4022_v6 = vpop.permute.xlu1 %4021 }
 0x7f0   : > { %4084 = vst [vmem:[%s4775_s19 + $0x90] sm:$0xff] %v4052_v30  ;;  %v4181_v20 = vmul.f32 %v4052_v30, %v4052_v30  ;;  %v4182_v22 = vmul.f32 %v4053_v35, %v4053_v35  ;;  %v4125_v21 = vadd.f32 %v4053_v35, %v4052_v30 }
 0x7f1   : > { %4085 = vst [vmem:[%s4775_s19 + $0x98] sm:$0xff] %v4053_v35  ;;  %v3744_v24 = vpop.f32.mrf.mxu2  ;;  %v3793_v53 = vpop.f32.mrf.mxu3 }
 0x7f2   : > { %v3745_v2 = vadd.f32 %v3744_v24, %v7313_v28  ;;  %v3794_v62 = vadd.f32 %v3793_v53, %v7315_v60  ;;  %v3844_v12 = vpop.f32.mrf.mxu0  ;;  %v3893_v48 = vpop.f32.mrf.mxu1  ;;  %v4222_v33 = vadd.f32 %v4182_v22, %v4181_v20 }
 0x7f4   : > { %v3926_v23 = vadd.f32 %v3842_v18, %v3745_v2  ;;  %v3927_v5 = vadd.f32 %v3891_v0, %v3794_v62  ;;  %4223 = vadd.xlane.f32.xlu1 %v4222_v33  ;;  %4126 = vadd.xlane.f32.xlu0 %v4125_v21 }
 0x7f6   : > { %v4054_v9 = vadd.f32 %v4007_v38, %v3926_v23  ;;  %v4055_v61 = vadd.f32 %v4007_v38, %v3927_v5 }
 0x7f8   : > { %4086 = vst [vmem:[%s4775_s19 + $0xa0] sm:$0xff] %v4054_v9  ;;  %v4183_v50 = vmul.f32 %v4054_v9, %v4054_v9  ;;  %v4184_v59 = vmul.f32 %v4055_v61, %v4055_v61  ;;  %v4128_v26 = vadd.f32 %v4055_v61, %v4054_v9 }
 0x7f9   : > { %4087 = vst [vmem:[%s4775_s19 + $0xa8] sm:$0xff] %v4055_v61  ;;  %v3746_v28 = vpop.f32.mrf.mxu2  ;;  %v3795_v54 = vpop.f32.mrf.mxu3 }
 0x7fa   : > { %v3747_v60 = vadd.f32 %v3746_v28, %v7321_v4  ;;  %v3796_v37 = vadd.f32 %v3795_v54, %v7323_v36  ;;  %v4225_v46 = vadd.f32 %v4184_v59, %v4183_v50  ;;  %v3847_v51 = vpop.f32.mrf.mxu0  ;;  %v3896_v52 = vpop.f32.mrf.mxu1 }
 0x7fc   : > { %v3928_v63 = vadd.f32 %v3844_v12, %v3747_v60  ;;  %v3929_v34 = vadd.f32 %v3893_v48, %v3796_v37  ;;  %4226 = vadd.xlane.f32.xlu2 %v4225_v46  ;;  %4129 = vadd.xlane.f32.xlu1 %v4128_v26  ;;  %v4027_v48 = vpop.permute.xlu2 %4026  ;;  %v4032_v60 = vpop.permute.xlu0 %4031 }
 0x7fe   : > { %v4056_v17 = vadd.f32 %v4012_v47, %v3928_v63  ;;  %v4057_v19 = vadd.f32 %v4012_v47, %v3929_v34 }
 0x800   : > { %4088 = vst [vmem:[%s4775_s19 + $0xb0] sm:$0xff] %v4056_v17  ;;  %v4185_v8 = vmul.f32 %v4056_v17, %v4056_v17  ;;  %v4186_v56 = vmul.f32 %v4057_v19, %v4057_v19  ;;  %v4131_v13 = vadd.f32 %v4057_v19, %v4056_v17 }
 0x801   : > { %4089 = vst [vmem:[%s4775_s19 + $0xb8] sm:$0xff] %v4057_v19  ;;  %v3749_v4 = vpop.f32.mrf.mxu2  ;;  %v3798_v10 = vpop.f32.mrf.mxu3 }
 0x802   : > { %v3750_v36 = vadd.f32 %v3749_v4, %v7329_v45  ;;  %v3799_v7 = vadd.f32 %v3798_v10, %v7331_v32  ;;  %v4228_v27 = vadd.f32 %v4186_v56, %v4185_v8  ;;  %v3849_v15 = vpop.f32.mrf.mxu0  ;;  %v3898_v3 = vpop.f32.mrf.mxu1 }
 0x804   : > { %v3930_v11 = vadd.f32 %v3847_v51, %v3750_v36  ;;  %v3931_v40 = vadd.f32 %v3896_v52, %v3799_v7  ;;  %4229 = vadd.xlane.f32.xlu0 %v4228_v27  ;;  %4132 = vadd.xlane.f32.xlu2 %v4131_v13 }
 0x806   : > { %v4058_v14 = vadd.f32 %v4017_v16, %v3930_v11  ;;  %v4059_v25 = vadd.f32 %v4017_v16, %v3931_v40 }
 0x808   : > { %4090 = vst [vmem:[%s4775_s19 + $0xc0] sm:$0xff] %v4058_v14  ;;  %v4187_v42 = vmul.f32 %v4058_v14, %v4058_v14  ;;  %v4188_v49 = vmul.f32 %v4059_v25, %v4059_v25  ;;  %v4134_v39 = vadd.f32 %v4059_v25, %v4058_v14 }
 0x809   : > { %4091 = vst [vmem:[%s4775_s19 + $0xc8] sm:$0xff] %v4059_v25  ;;  %v3751_v45 = vpop.f32.mrf.mxu2  ;;  %v3800_v18 = vpop.f32.mrf.mxu3 }
 0x80a   : > { %v3752_v32 = vadd.f32 %v3751_v45, %v7337_v29  ;;  %v3801_v0 = vadd.f32 %v3800_v18, %v7339_v55  ;;  %v4231_v58 = vadd.f32 %v4188_v49, %v4187_v42  ;;  %v3852_v20 = vpop.f32.mrf.mxu0  ;;  %v3901_v22 = vpop.f32.mrf.mxu1 }
 0x80c   : > { %v3932_v1 = vadd.f32 %v3849_v15, %v3752_v32  ;;  %v3933_v31 = vadd.f32 %v3898_v3, %v3801_v0  ;;  %4232 = vadd.xlane.f32.xlu1 %v4231_v58  ;;  %4135 = vadd.xlane.f32.xlu0 %v4134_v39 }
 0x80e   : > { %v4060_v30 = vadd.f32 %v4022_v6, %v3932_v1  ;;  %v4061_v35 = vadd.f32 %v4022_v6, %v3933_v31 }
 0x810   : > { %4092 = vst [vmem:[%s4775_s19 + $0xd0] sm:$0xff] %v4060_v30  ;;  %v4137_v2 = vadd.f32 %v4061_v35, %v4060_v30  ;;  %v4189_v28 = vmul.f32 %v4060_v30, %v4060_v30  ;;  %v4190_v54 = vmul.f32 %v4061_v35, %v4061_v35 }
 0x811   : > { %4093 = vst [vmem:[%s4775_s19 + $0xd8] sm:$0xff] %v4061_v35  ;;  %v3754_v24 = vpop.f32.mrf.mxu2  ;;  %v3803_v53 = vpop.f32.mrf.mxu3 }
 0x812   : > { %v3755_v29 = vadd.f32 %v3754_v24, %v7345_v44  ;;  %v3804_v55 = vadd.f32 %v3803_v53, %v7347_v43  ;;  %v3854_v43 = vpop.f32.mrf.mxu0  ;;  %v3903_v61 = vpop.f32.mrf.mxu1 }
 0x814   : > { %v3934_v62 = vadd.f32 %v3852_v20, %v3755_v29  ;;  %v3935_v12 = vadd.f32 %v3901_v22, %v3804_v55  ;;  %4138 = vadd.xlane.f32.xlu1 %v4137_v2 }
 0x816   : > { %v4062_v33 = vadd.f32 %v4027_v48, %v3934_v62  ;;  %v4063_v21 = vadd.f32 %v4027_v48, %v3935_v12 }
 0x818   : > { %4094 = vst [vmem:[%s4775_s19 + $0xe0] sm:$0xff] %v4062_v33  ;;  %v4140_v23 = vadd.f32 %v4063_v21, %v4062_v33  ;;  %v4191_v52 = vmul.f32 %v4062_v33, %v4062_v33  ;;  %v4192_v47 = vmul.f32 %v4063_v21, %v4063_v21 }
 0x819   : > { %4095 = vst [vmem:[%s4775_s19 + $0xe8] sm:$0xff] %v4063_v21  ;;  %v3756_v5 = vpop.f32.mrf.mxu2  ;;  %v3805_v38 = vpop.f32.mrf.mxu3 }
 0x81a   : > { %v3757_v9 = vadd.f32 %v3756_v5, %v7353_v41  ;;  %v3806_v44 = vadd.f32 %v3805_v38, %v7355_v57  ;;  %4141 = vadd.xlane.f32.xlu2 %v4140_v23  ;;  %v4234_v41 = vadd.f32 %v4190_v54, %v4189_v28  ;;  %v4237_v8 = vadd.f32 %v4192_v47, %v4191_v52 }
 0x81c   : > { %v3936_v50 = vadd.f32 %v3854_v43, %v3757_v9  ;;  %v3937_v59 = vadd.f32 %v3903_v61, %v3806_v44 }
 0x81d   : > { %v4100_v37 = vpop.xlane.xlu1 %4099 }
 0x81e   : > { %v4064_v46 = vadd.f32 %v4032_v60, %v3936_v50  ;;  %v4065_v26 = vadd.f32 %v4032_v60, %v3937_v59  ;;  %4147 = vst.msk [vmem:[%s4780_s22] sm:$0xff] %vm4146_vm8, %v4100_v37 }
 0x820   : > { %4096 = vst [vmem:[%s4775_s19 + $0xf0] sm:$0xff] %v4064_v46  ;;  %v4143_v57 = vadd.f32 %v4065_v26, %v4064_v46  ;;  %v4193_v63 = vmul.f32 %v4064_v46, %v4064_v46  ;;  %v4194_v34 = vmul.f32 %v4065_v26, %v4065_v26 }
 0x821   : > { %4097 = vst [vmem:[%s4775_s19 + $0xf8] sm:$0xff] %v4065_v26 }
 0x822   : > { %4235 = vadd.xlane.f32.xlu2 %v4234_v41  ;;  %4144 = vadd.xlane.f32.xlu0 %v4143_v57  ;;  %v4240_v51 = vadd.f32 %v4194_v34, %v4193_v63 }
 0x824   : > { %4241 = vadd.xlane.f32.xlu1 %v4240_v51 }
 0x825   : > { %v4197_v17 = vpop.xlane.xlu1 %4196  ;;  %v4103_v19 = vpop.xlane.xlu2 %4102 }
 0x826   : > { %4243 = vst.msk [vmem:[%s4785_s25] sm:$0xff] %vm4146_vm8, %v4197_v17 }
 0x827   : > { %4148 = vst.msk [vmem:[%s4780_s22 + $0x8] sm:$0xff] %vm4146_vm8, %v4103_v19 }
 0x82a   : > { %4238 = vadd.xlane.f32.xlu0 %v4237_v8 }
 0x82d   : > { %v4200_v56 = vpop.xlane.xlu2 %4199  ;;  %v4106_v4 = vpop.xlane.xlu0 %4105 }
 0x82e   : > { %4244 = vst.msk [vmem:[%s4785_s25 + $0x8] sm:$0xff] %vm4146_vm8, %v4200_v56 }
 0x82f   : > { %4149 = vst.msk [vmem:[%s4780_s22 + $0x10] sm:$0xff] %vm4146_vm8, %v4106_v4 }
 0x835   : > { %v4203_v10 = vpop.xlane.xlu0 %4202  ;;  %v4109_v36 = vpop.xlane.xlu2 %4108 }
 0x836   : > { %4245 = vst.msk [vmem:[%s4785_s25 + $0x10] sm:$0xff] %vm4146_vm8, %v4203_v10 }
 0x837   : > { %4150 = vst.msk [vmem:[%s4780_s22 + $0x18] sm:$0xff] %vm4146_vm8, %v4109_v36  ;;  %v4206_v7 = vpop.xlane.xlu1 %4205 }
 0x838   : > { %4246 = vst.msk [vmem:[%s4785_s25 + $0x18] sm:$0xff] %vm4146_vm8, %v4206_v7 }
 0x83f   : > { %v4209_v27 = vpop.xlane.xlu2 %4208  ;;  %v4112_v13 = vpop.xlane.xlu1 %4111 }
 0x840   : > { %4247 = vst.msk [vmem:[%s4785_s25 + $0x20] sm:$0xff] %vm4146_vm8, %v4209_v27 }
 0x841   : > { %4151 = vst.msk [vmem:[%s4780_s22 + $0x20] sm:$0xff] %vm4146_vm8, %v4112_v13 }
 0x847   : > { %v4212_v11 = vpop.xlane.xlu0 %4211  ;;  %v4115_v40 = vpop.xlane.xlu2 %4114 }
 0x848   : > { %4248 = vst.msk [vmem:[%s4785_s25 + $0x28] sm:$0xff] %vm4146_vm8, %v4212_v11 }
 0x849   : > { %4152 = vst.msk [vmem:[%s4780_s22 + $0x28] sm:$0xff] %vm4146_vm8, %v4115_v40 }
 0x84f   : > { %v4215_v16 = vpop.xlane.xlu1 %4214  ;;  %v4118_v14 = vpop.xlane.xlu0 %4117 }
 0x850   : > { %4249 = vst.msk [vmem:[%s4785_s25 + $0x30] sm:$0xff] %vm4146_vm8, %v4215_v16 }
 0x851   : > { %4153 = vst.msk [vmem:[%s4780_s22 + $0x30] sm:$0xff] %vm4146_vm8, %v4118_v14 }
 0x857   : > { %v4218_v25 = vpop.xlane.xlu2 %4217  ;;  %v4121_v15 = vpop.xlane.xlu1 %4120 }
 0x858   : > { %4250 = vst.msk [vmem:[%s4785_s25 + $0x38] sm:$0xff] %vm4146_vm8, %v4218_v25 }
 0x859   : > { %4154 = vst.msk [vmem:[%s4780_s22 + $0x38] sm:$0xff] %vm4146_vm8, %v4121_v15 }
 0x85f   : > { %v4221_v3 = vpop.xlane.xlu0 %4220  ;;  %v4124_v42 = vpop.xlane.xlu2 %4123 }
 0x860   : > { %4251 = vst.msk [vmem:[%s4785_s25 + $0x40] sm:$0xff] %vm4146_vm8, %v4221_v3 }
 0x861   : > { %4155 = vst.msk [vmem:[%s4780_s22 + $0x40] sm:$0xff] %vm4146_vm8, %v4124_v42 }
 0x867   : > { %v4224_v49 = vpop.xlane.xlu1 %4223  ;;  %v4127_v45 = vpop.xlane.xlu0 %4126 }
 0x868   : > { %4252 = vst.msk [vmem:[%s4785_s25 + $0x48] sm:$0xff] %vm4146_vm8, %v4224_v49 }
 0x869   : > { %4156 = vst.msk [vmem:[%s4780_s22 + $0x48] sm:$0xff] %vm4146_vm8, %v4127_v45 }
 0x86f   : > { %v4227_v18 = vpop.xlane.xlu2 %4226  ;;  %v4130_v32 = vpop.xlane.xlu1 %4129 }
 0x870   : > { %4253 = vst.msk [vmem:[%s4785_s25 + $0x50] sm:$0xff] %vm4146_vm8, %v4227_v18 }
 0x871   : > { %4157 = vst.msk [vmem:[%s4780_s22 + $0x50] sm:$0xff] %vm4146_vm8, %v4130_v32 }
 0x877   : > { %v4230_v0 = vpop.xlane.xlu0 %4229  ;;  %v4133_v58 = vpop.xlane.xlu2 %4132 }
 0x878   : > { %4254 = vst.msk [vmem:[%s4785_s25 + $0x58] sm:$0xff] %vm4146_vm8, %v4230_v0 }
 0x879   : > { %4158 = vst.msk [vmem:[%s4780_s22 + $0x58] sm:$0xff] %vm4146_vm8, %v4133_v58 }
 0x87f   : > { %v4233_v39 = vpop.xlane.xlu1 %4232  ;;  %v4136_v1 = vpop.xlane.xlu0 %4135 }
 0x880   : > { %4255 = vst.msk [vmem:[%s4785_s25 + $0x60] sm:$0xff] %vm4146_vm8, %v4233_v39 }
 0x881   : > { %4159 = vst.msk [vmem:[%s4780_s22 + $0x60] sm:$0xff] %vm4146_vm8, %v4136_v1 }
 0x887   : > { %v4139_v31 = vpop.xlane.xlu1 %4138 }
 0x888   : > { %4160 = vst.msk [vmem:[%s4780_s22 + $0x68] sm:$0xff] %vm4146_vm8, %v4139_v31 }
 0x88d   : > { %v4142_v6 = vpop.xlane.xlu2 %4141 }
 0x88e   : > { %4161 = vst.msk [vmem:[%s4780_s22 + $0x70] sm:$0xff] %vm4146_vm8, %v4142_v6 }
 0x895   : > { %v4236_v30 = vpop.xlane.xlu2 %4235  ;;  %v4145_v35 = vpop.xlane.xlu0 %4144 }
 0x896   : > { %4256 = vst.msk [vmem:[%s4785_s25 + $0x68] sm:$0xff] %vm4146_vm8, %v4236_v30 }
 0x897   : > { %4162 = vst.msk [vmem:[%s4780_s22 + $0x78] sm:$0xff] %vm4146_vm8, %v4145_v35  ;;  %v4242_v20 = vpop.xlane.xlu1 %4241 }
 0x898   : > { %4258 = vst.msk [vmem:[%s4785_s25 + $0x78] sm:$0xff] %vm4146_vm8, %v4242_v20 }
 0x89d   : > { %v4239_v22 = vpop.xlane.xlu0 %4238 }
 0x89e   : > { %4257 = vst.msk [vmem:[%s4785_s25 + $0x70] sm:$0xff] %vm4146_vm8, %v4239_v22 }
 0x89f PF: > { %s19_s9 = sadd.s32 1, %s4685_s9   ;;  %s7737_s27 = smov %s4677_s29 }
 0x8a0   : > { %p16_p8 = scmp.ge.s32.totalorder %s19_s9, 6   ;;  %s7738_s28 = smov %s4681_s30 }
 0x8a1   : > { %s7739_s29 = smov %s7742_s10  ;;  %s7740_s30 = smov %s7746_s11 }
 0x8a2   :  { %18 = sbr.rel (!%p16_p8) target bundleno = 3 (0x3), region = 108 }

</bundles_post_ra>
